<compile_context>
chip_gen: v5e
topology: v5e:2x2
jax: 0.10.0
libtpu: 0.0.40
codegen_flags: <defaults>
</compile_context>

<pallas_src>
import math

import jax
import jax.numpy as jnp
from jax import lax
from jax.experimental import pallas as pl
from jax.experimental.pallas import tpu as pltpu


def _round_up(x, m):
    return (x + m - 1) // m * m


def _interp_matrix(out_sz, in_sz):
    """Dense bilinear interpolation matrix (align_corners=True): (out, in)."""
    if out_sz == 1 or in_sz == 1:
        src = jnp.zeros((out_sz,), jnp.float32)
    else:
        src = jnp.arange(out_sz, dtype=jnp.float32) * (
            (in_sz - 1) / (out_sz - 1))
    lo = jnp.clip(jnp.floor(src).astype(jnp.int32), 0, in_sz - 1)
    hi = jnp.clip(lo + 1, 0, in_sz - 1)
    frac = src - lo.astype(jnp.float32)
    rows = jnp.arange(out_sz)
    m = jnp.zeros((out_sz, in_sz), jnp.float32)
    m = m.at[rows, lo].add(1.0 - frac)
    m = m.at[rows, hi].add(frac)
    return m


# ----------------------------------------------------------------------------
# Fused kernel: upsample + concat + rrm (3 convs) + residual + conv_out
# ----------------------------------------------------------------------------
def _make_rrm_kernel(H, W, Cx, Cu, Cout, pad0):
    Hp, Wp = H + 2, W + 2
    HpWp = Hp * Wp
    Cin = Cx + 1                       # probmap channels + 1 depth channel
    L = 2 * pad0 + HpWp                # flat padded image + slice overhang
    taps = [(dy, dx) for dy in range(3) for dx in range(3)]

    def conv3x3(x_ref, w_ref):
        """3x3 conv as 9 per-tap MXU matmuls over the channel dim.

        x_ref : (C_rows, L) bf16; the image occupies lanes
                [pad0, pad0 + HpWp) with a zero 1-pixel spatial halo.
        w_ref : (9, Cout, C_rows) bf16 (tap index t = ky*3 + kx).
        Returns (Cout, HpWp) f32 on the padded grid; border columns are
        meaningless (callers mask or discard them)."""
        acc = None
        for t, (dy, dx) in enumerate(taps):
            off = pad0 + (dy - 1) * Wp + (dx - 1)
            win = x_ref[:, off:off + HpWp]          # lane-dense bf16 window
            p = jnp.dot(w_ref[t], win, preferred_element_type=jnp.float32)
            acc = p if acc is None else acc + p
        return acc

    def kernel(x_ref, d_ref, mpad_ref, mask_ref,
               w1_ref, b1_ref, w2_ref, b2_ref, w3_ref, w4_ref, b4_ref,
               o_ref, x1_ref, x2_ref):
        # Zero only the tiny overhang strips (O(pad0), not O(H*W)); the image
        # interiors below are fully rewritten every step.  Done every step so
        # the kernel is correct regardless of how cores share the grid.
        zc = jnp.zeros((Cin, pad0), jnp.bfloat16)
        zu = jnp.zeros((Cu, pad0), jnp.bfloat16)
        x1_ref[:, 0:pad0] = zc
        x1_ref[:, pad0 + HpWp:L] = zc
        x2_ref[:, 0:pad0] = zu
        x2_ref[:, pad0 + HpWp:L] = zu

        interior = mask_ref[...] != 0.0             # (1, HpWp) bool

        # Bilinear upsample (align_corners=True) as one lane-dense matmul
        # against the precomputed padded-flat interpolation matrix (its halo
        # columns are zero, so the depth row lands with a zero halo).
        d_up = jnp.dot(d_ref[0], mpad_ref[...],
                       preferred_element_type=jnp.float32)   # (1, HpWp) f32

        # concat([probmap, depth], channel) in channel-major flat layout.
        x1_ref[0:Cx, pad0:pad0 + HpWp] = x_ref[0].astype(jnp.bfloat16)
        x1_ref[Cx:Cin, pad0:pad0 + HpWp] = d_up.astype(jnp.bfloat16)

        # rrm conv1 (BN folded into scale + bias) -> ReLU (LeakyReLU(False)).
        h1 = jnp.maximum(conv3x3(x1_ref, w1_ref) + b1_ref[...], 0.0)
        x2_ref[:, pad0:pad0 + HpWp] = (
            jnp.where(interior, h1, 0.0).astype(jnp.bfloat16))
        # rrm conv2 -> ReLU.
        h2 = jnp.maximum(conv3x3(x2_ref, w2_ref) + b2_ref[...], 0.0)
        x2_ref[:, pad0:pad0 + HpWp] = (
            jnp.where(interior, h2, 0.0).astype(jnp.bfloat16))
        # rrm conv3 (no bias) + residual with the concat input, in place:
        # f32 math on the accumulator, one bf16 down-cast on store.
        h3 = jnp.where(interior, conv3x3(x2_ref, w3_ref), 0.0)
        res = x1_ref[:, pad0:pad0 + HpWp].astype(jnp.float32) + h3
        x1_ref[:, pad0:pad0 + HpWp] = res.astype(jnp.bfloat16)
        # conv_out (bias) -> lane-dense f32 store of the whole padded flat
        # grid (wrapper strips the halo; a bf16 out dtype also works if the
        # consumer tolerates it).
        h4 = conv3x3(x1_ref, w4_ref) + b4_ref[...]
        o_ref[0] = h4.astype(o_ref.dtype)

    return kernel


def _fixed_spec(shape):
    nd = len(shape)
    return pl.BlockSpec(shape, lambda n: (0,) * nd)


def _rrm_pallas(x_flat, d_flat, mpad, mask, kp, H, W, Cu):
    """x_flat: (N, Cx, (H+2)*(W+2)) f32 padded-flat probmap,
    d_flat: (N, 1, hd*wd) f32 low-res depth, mpad: (hd*wd, HpWp) f32,
    mask: (1, HpWp) f32 interior mask."""
    N, Cx, HpWp = x_flat.shape
    Cin = Cx + 1
    Cout = kp['w4'].shape[1]
    hdwd = d_flat.shape[2]
    Wp = W + 2
    pad0 = _round_up(Wp + 1, 128)
    L = 2 * pad0 + HpWp

    kernel = _make_rrm_kernel(H, W, Cx, Cu, Cout, pad0)

    in_specs = [
        pl.BlockSpec((1, Cx, HpWp), lambda n: (n, 0, 0)),   # probmap (padded)
        pl.BlockSpec((1, 1, hdwd), lambda n: (n, 0, 0)),    # low-res depth
        _fixed_spec(mpad.shape),                            # upsample matrix
        _fixed_spec(mask.shape),                            # interior mask
        _fixed_spec(kp['w1'].shape), _fixed_spec(kp['b1'].shape),
        _fixed_spec(kp['w2'].shape), _fixed_spec(kp['b2'].shape),
        _fixed_spec(kp['w3'].shape),
        _fixed_spec(kp['w4'].shape), _fixed_spec(kp['b4'].shape),
    ]
    out_specs = pl.BlockSpec((1, Cout, HpWp), lambda n: (n, 0, 0))

    flops_per_img = 2 * HpWp * (
        hdwd + 9 * (Cin * Cu + Cu * Cu + Cu * Cin + Cin * Cout))
    weight_bytes = sum(int(v.size) * v.dtype.itemsize for v in kp.values())
    bytes_accessed = (x_flat.size * 4 + d_flat.size * 4 + mpad.size * 4
                      + mask.size * 4 + weight_bytes + N * Cout * HpWp * 4)

    return pl.pallas_call(
        kernel,
        out_shape=jax.ShapeDtypeStruct((N, Cout, HpWp), jnp.float32),
        grid=(N,),
        in_specs=in_specs,
        out_specs=out_specs,
        scratch_shapes=[pltpu.VMEM((Cin, L), jnp.bfloat16),   # concat / residual
                        pltpu.VMEM((Cu, L), jnp.bfloat16)],   # rrm hidden
        compiler_params=pltpu.CompilerParams(
            dimension_semantics=("parallel",),
            vmem_limit_bytes=32 * 1024 * 1024),
        cost_estimate=pl.CostEstimate(
            flops=int(N * flops_per_img),
            transcendentals=0,
            bytes_accessed=int(bytes_accessed)),
    )(x_flat, d_flat, mpad, mask,
      kp['w1'], kp['b1'], kp['w2'], kp['b2'], kp['w3'], kp['w4'], kp['b4'])


# ----------------------------------------------------------------------------
# Host-side parameter preparation (BN folding, per-tap channel-major reshape)
# ----------------------------------------------------------------------------
def _fold_bn(w_hwio, bn, eps=1e-5):
    gamma, beta, mean, var = bn
    scale = gamma / jnp.sqrt(var + eps)
    return w_hwio * scale[None, None, None, :], beta - mean * scale


def _to_taps(w_hwio):
    """(3,3,Cin,Cout) HWIO -> (9, Cout, Cin) bf16, tap index t = ky*3 + kx."""
    cin, cout = w_hwio.shape[2], w_hwio.shape[3]
    return jnp.transpose(w_hwio, (0, 1, 3, 2)).reshape(
        9, cout, cin).astype(jnp.bfloat16)


def prepare_params(raw):
    w1, b1 = _fold_bn(raw['rrm1_w'], raw['bn1'])
    w2, b2 = _fold_bn(raw['rrm2_w'], raw['bn2'])
    w3 = raw['rrm3_w']
    w4, b4 = raw['co_w'], raw['co_b']
    kparams = {
        'w1': _to_taps(w1), 'b1': b1.reshape(-1, 1),
        'w2': _to_taps(w2), 'b2': b2.reshape(-1, 1),
        'w3': _to_taps(w3),
        'w4': _to_taps(w4), 'b4': b4.reshape(-1, 1),
    }
    refparams = {   # same folded values, HWIO bf16, for the pure-JAX reference
        'w1': w1.astype(jnp.bfloat16), 'b1': b1,
        'w2': w2.astype(jnp.bfloat16), 'b2': b2,
        'w3': w3.astype(jnp.bfloat16),
        'w4': w4.astype(jnp.bfloat16), 'b4': b4,
    }
    return kparams, refparams


def res_refine_module_forward(raw_params, probmap_nchw, depthmap_nchw):
    """ResRefineModule.forward.
    probmap: (N, in_channels-1, H, W), depthmap: (N, 1, h, w) -> (N,256,H,W)."""
    N, Cx, H, W = probmap_nchw.shape
    hd, wd = depthmap_nchw.shape[2:]
    Hp, Wp = H + 2, W + 2
    HpWp = Hp * Wp
    Cu = raw_params['rrm1_w'].shape[-1]
    kp, _ = prepare_params(raw_params)

    # Channel-major, flat-padded spatial layout.  NCHW is already H,W-major so
    # the pad + reshape is a single cheap pass over the (small) input.
    x_flat = jnp.pad(probmap_nchw,
                     ((0, 0), (0, 0), (1, 1), (1, 1))).reshape(N, Cx, HpWp)
    d_flat = depthmap_nchw.reshape(N, 1, hd * wd)

    # Bilinear (align_corners=True) upsample folded into one matrix that maps
    # the low-res depth straight onto the padded flat grid (halo columns = 0).
    ay = _interp_matrix(H, hd)
    ax = _interp_matrix(W, wd)
    a4 = jnp.einsum('Yy,Xx->YXyx', ay, ax)
    mpad = jnp.zeros((Hp, Wp, hd, wd), jnp.float32)
    mpad = mpad.at[1:H + 1, 1:W + 1].set(a4).reshape(HpWp, hd * wd).T

    mask = jnp.zeros((Hp, Wp), jnp.float32).at[1:H + 1, 1:W + 1].set(1.0)
    mask = mask.reshape(1, HpWp)

    out_flat = _rrm_pallas(x_flat, d_flat, mpad, mask, kp, H, W, Cu)
    Cout = out_flat.shape[1]
    # Output is already channel-major (=> NCHW); only strip the 1-pixel halo.
    return out_flat.reshape(N, Cout, Hp, Wp)[:, :, 1:H + 1, 1:W + 1]


# ----------------------------------------------------------------------------
# Pure-JAX reference (same folded bf16 weights, f32 accumulation)
# ----------------------------------------------------------------------------
def reference_forward(raw_params, probmap_nchw, depthmap_nchw):
    N, Cx, H, W = probmap_nchw.shape
    hd, wd = depthmap_nchw.shape[2:]
    _, rp = prepare_params(raw_params)
    x = jnp.transpose(probmap_nchw, (0, 2, 3, 1))
    d = depthmap_nchw[:, 0]
    ay = _interp_matrix(H, hd)
    axt = _interp_matrix(W, wd).T
    d_up = jnp.einsum('Hh,nhw,wW->nHW', ay, d, axt,
                      precision=lax.Precision.HIGHEST)
    prob = jnp.concatenate([x, d_up[..., None]], axis=-1)

    def conv(xv, wv, bv=None, relu=False):
        y = lax.conv_general_dilated(
            xv.astype(jnp.bfloat16), wv, (1, 1), 'SAME',
            dimension_numbers=('NHWC', 'HWIO', 'NHWC'),
            preferred_element_type=jnp.float32)
        if bv is not None:
            y = y + bv
        if relu:
            y = jnp.maximum(y, 0.0)
        return y

    h = conv(prob, rp['w1'], rp['b1'], relu=True)
    h = conv(h, rp['w2'], rp['b2'], relu=True)
    h = conv(h, rp['w3'])
    out = conv(h + prob, rp['w4'], rp['b4'])
    return jnp.transpose(out, (0, 3, 1, 2))


# ----------------------------------------------------------------------------
# Deterministic parameter initialization (PyTorch-shaped module params)
# ----------------------------------------------------------------------------
def init_params(key, in_ch, up_ch):
    ks = jax.random.split(key, 7)

    def conv_w(k, cin, cout):
        return jax.random.normal(k, (3, 3, cin, cout), jnp.float32) * (
            1.0 / math.sqrt(9 * cin))

    def bn(k, c):
        kg, kb, km, kv = jax.random.split(k, 4)
        gamma = 1.0 + 0.1 * jax.random.normal(kg, (c,), jnp.float32)
        beta = 0.1 * jax.random.normal(kb, (c,), jnp.float32)
        mean = 0.1 * jax.random.normal(km, (c,), jnp.float32)
        var = jnp.abs(jax.random.normal(kv, (c,), jnp.float32)) + 0.5
        return gamma, beta, mean, var

    return {
        'rrm1_w': conv_w(ks[0], in_ch, up_ch), 'bn1': bn(ks[1], up_ch),
        'rrm2_w': conv_w(ks[2], up_ch, up_ch), 'bn2': bn(ks[3], up_ch),
        'rrm3_w': conv_w(ks[4], up_ch, in_ch),
        'co_w': conv_w(ks[5], in_ch, 256),
        'co_b': 0.05 * jax.random.normal(ks[6], (256,), jnp.float32),
    }


if __name__ == "__main__":
    # probmap has in_channels-1 = 16 channels; module in_channels = 17.
    N, Cx, H, W = 2, 16, 16, 16
    hd, wd = 8, 8                      # low-resolution previous depth map
    up_ch = 8

    key = jax.random.PRNGKey(0)
    kx, kd, kpar = jax.random.split(key, 3)
    probmap = jax.random.normal(kx, (N, Cx, H, W), jnp.float32)
    depthmap = jax.random.uniform(kd, (N, 1, hd, wd), jnp.float32,
                                  minval=0.1, maxval=10.0)
    raw = init_params(kpar, Cx + 1, up_ch)

    out = res_refine_module_forward(raw, probmap, depthmap)
    jax.block_until_ready(out)

    assert out.shape == (N, 256, H, W), out.shape
    assert bool(jnp.all(jnp.isfinite(out)))

    ref = reference_forward(raw, probmap, depthmap)
    assert bool(jnp.allclose(out, ref, rtol=5e-2, atol=5e-2)), (
        float(jnp.max(jnp.abs(out - ref))))

    print("KERNEL_OK")
</pallas_src>

<mosaic_0001>
module attributes {stable_mosaic.version = 11 : i64} {
  func.func @kernel(%arg0: i32, %arg1: memref<1x16x324xf32, #tpu.memory_space<vmem>>, %arg2: memref<1x1x64xf32, #tpu.memory_space<vmem>>, %arg3: memref<64x324xf32, #tpu.memory_space<vmem>>, %arg4: memref<1x324xf32, #tpu.memory_space<vmem>>, %arg5: memref<9x8x17xbf16, #tpu.memory_space<vmem>>, %arg6: memref<8x1xf32, #tpu.memory_space<vmem>>, %arg7: memref<9x8x8xbf16, #tpu.memory_space<vmem>>, %arg8: memref<8x1xf32, #tpu.memory_space<vmem>>, %arg9: memref<9x17x8xbf16, #tpu.memory_space<vmem>>, %arg10: memref<9x256x17xbf16, #tpu.memory_space<vmem>>, %arg11: memref<256x1xf32, #tpu.memory_space<vmem>>, %arg12: memref<1x256x324xf32, #tpu.memory_space<vmem>>, %arg13: memref<17x580xbf16, #tpu.memory_space<vmem>>, %arg14: memref<8x580xbf16, #tpu.memory_space<vmem>>) attributes {dimension_semantics = [#tpu.dimension_semantics<parallel>], iteration_bounds = array<i64: 2>, scalar_prefetch = 0 : i64, scratch_operands = 2 : i64, tpu.core_type = #tpu.core_type<tc>, window_params = [{transform_indices = @transform_0, window_bounds = array<i64: 1, 16, 324>}, {transform_indices = @transform_1, window_bounds = array<i64: 1, 1, 64>}, {pipeline_mode = #tpu.pipeline_mode<synchronous>, transform_indices = @transform_2, window_bounds = array<i64: 64, 324>}, {pipeline_mode = #tpu.pipeline_mode<synchronous>, transform_indices = @transform_3, window_bounds = array<i64: 1, 324>}, {pipeline_mode = #tpu.pipeline_mode<synchronous>, transform_indices = @transform_4, window_bounds = array<i64: 9, 8, 17>}, {pipeline_mode = #tpu.pipeline_mode<synchronous>, transform_indices = @transform_5, window_bounds = array<i64: 8, 1>}, {pipeline_mode = #tpu.pipeline_mode<synchronous>, transform_indices = @transform_6, window_bounds = array<i64: 9, 8, 8>}, {pipeline_mode = #tpu.pipeline_mode<synchronous>, transform_indices = @transform_7, window_bounds = array<i64: 8, 1>}, {pipeline_mode = #tpu.pipeline_mode<synchronous>, transform_indices = @transform_8, window_bounds = array<i64: 9, 17, 8>}, {pipeline_mode = #tpu.pipeline_mode<synchronous>, transform_indices = @transform_9, window_bounds = array<i64: 9, 256, 17>}, {pipeline_mode = #tpu.pipeline_mode<synchronous>, transform_indices = @transform_10, window_bounds = array<i64: 256, 1>}, {transform_indices = @transform_11, window_bounds = array<i64: 1, 256, 324>}]} {
    %cst = arith.constant 0.000000e+00 : bf16
    %0 = vector.broadcast %cst : bf16 to vector<17x128xbf16>
    %cst_0 = arith.constant 0.000000e+00 : bf16
    %1 = vector.broadcast %cst_0 : bf16 to vector<8x128xbf16>
    %c0 = arith.constant 0 : index
    %c0_1 = arith.constant 0 : index
    %2 = vector.load %arg13[%c0, %c0_1] : memref<17x580xbf16, #tpu.memory_space<vmem>>, vector<17x128xbf16>
    tpu.vector_store %arg13[%c0, %c0_1], %0 {strides = array<i32>} : memref<17x580xbf16, #tpu.memory_space<vmem>>, vector<17x128xbf16>,
    %c0_2 = arith.constant 0 : index
    %c452 = arith.constant 452 : index
    %3 = vector.load %arg13[%c0_2, %c452] : memref<17x580xbf16, #tpu.memory_space<vmem>>, vector<17x128xbf16>
    tpu.vector_store %arg13[%c0_2, %c452], %0 {strides = array<i32>} : memref<17x580xbf16, #tpu.memory_space<vmem>>, vector<17x128xbf16>,
    %c0_3 = arith.constant 0 : index
    %c0_4 = arith.constant 0 : index
    %4 = vector.load %arg14[%c0_3, %c0_4] : memref<8x580xbf16, #tpu.memory_space<vmem>>, vector<8x128xbf16>
    tpu.vector_store %arg14[%c0_3, %c0_4], %1 {strides = array<i32>} : memref<8x580xbf16, #tpu.memory_space<vmem>>, vector<8x128xbf16>,
    %c0_5 = arith.constant 0 : index
    %c452_6 = arith.constant 452 : index
    %5 = vector.load %arg14[%c0_5, %c452_6] : memref<8x580xbf16, #tpu.memory_space<vmem>>, vector<8x128xbf16>
    tpu.vector_store %arg14[%c0_5, %c452_6], %1 {strides = array<i32>} : memref<8x580xbf16, #tpu.memory_space<vmem>>, vector<8x128xbf16>,
    %c0_7 = arith.constant 0 : index
    %c0_8 = arith.constant 0 : index
    %6 = vector.load %arg4[%c0_7, %c0_8] : memref<1x324xf32, #tpu.memory_space<vmem>>, vector<1x324xf32>
    %cst_9 = arith.constant 0.000000e+00 : f32
    %7 = vector.broadcast %cst_9 : f32 to vector<1x324xf32>
    %8 = arith.cmpf one, %6, %7 : vector<1x324xf32>
    %c0_10 = arith.constant 0 : index
    %c0_11 = arith.constant 0 : index
    %c0_12 = arith.constant 0 : index
    %9 = vector.load %arg2[%c0_10, %c0_11, %c0_12] : memref<1x1x64xf32, #tpu.memory_space<vmem>>, vector<1x1x64xf32>
    %10 = vector.shape_cast %9 : vector<1x1x64xf32> to vector<1x64xf32>
    %c0_13 = arith.constant 0 : index
    %c0_14 = arith.constant 0 : index
    %11 = vector.load %arg3[%c0_13, %c0_14] : memref<64x324xf32, #tpu.memory_space<vmem>>, vector<64x324xf32>
    %cst_15 = arith.constant dense<0.000000e+00> : vector<1x324xf32>
    %12 = tpu.matmul %10, %11, %cst_15 {dimension_numbers = #tpu.dot_dimension_numbers<[1], [0], [0], [1], [0, 0, 1, 1], [], []>} : vector<1x64xf32>, vector<64x324xf32>, vector<1x324xf32> -> vector<1x324xf32>
    %c0_16 = arith.constant 0 : index
    %c0_17 = arith.constant 0 : index
    %c0_18 = arith.constant 0 : index
    %13 = vector.load %arg1[%c0_16, %c0_17, %c0_18] : memref<1x16x324xf32, #tpu.memory_space<vmem>>, vector<1x16x324xf32>
    %14 = vector.shape_cast %13 : vector<1x16x324xf32> to vector<16x324xf32>
    %15 = arith.truncf %14 : vector<16x324xf32> to vector<16x324xbf16>
    %c0_19 = arith.constant 0 : index
    %c128 = arith.constant 128 : index
    %16 = vector.load %arg13[%c0_19, %c128] : memref<17x580xbf16, #tpu.memory_space<vmem>>, vector<16x324xbf16>
    tpu.vector_store %arg13[%c0_19, %c128], %15 {strides = array<i32>} : memref<17x580xbf16, #tpu.memory_space<vmem>>, vector<16x324xbf16>,
    %17 = arith.truncf %12 : vector<1x324xf32> to vector<1x324xbf16>
    %c16 = arith.constant 16 : index
    %c128_20 = arith.constant 128 : index
    %18 = vector.load %arg13[%c16, %c128_20] : memref<17x580xbf16, #tpu.memory_space<vmem>>, vector<1x324xbf16>
    tpu.vector_store %arg13[%c16, %c128_20], %17 {strides = array<i32>} : memref<17x580xbf16, #tpu.memory_space<vmem>>, vector<1x324xbf16>,
    %c0_21 = arith.constant 0 : index
    %c109 = arith.constant 109 : index
    %19 = vector.load %arg13[%c0_21, %c109] : memref<17x580xbf16, #tpu.memory_space<vmem>>, vector<17x324xbf16>
    %c0_22 = arith.constant 0 : index
    %c0_23 = arith.constant 0 : index
    %c0_24 = arith.constant 0 : index
    %20 = vector.load %arg5[%c0_22, %c0_23, %c0_24] : memref<9x8x17xbf16, #tpu.memory_space<vmem>>, vector<1x8x17xbf16>
    %21 = vector.shape_cast %20 : vector<1x8x17xbf16> to vector<8x17xbf16>
    %cst_25 = arith.constant dense<0.000000e+00> : vector<8x324xf32>
    %22 = tpu.matmul %21, %19, %cst_25 {dimension_numbers = #tpu.dot_dimension_numbers<[1], [0], [0], [1], [0, 0, 1, 1], [], []>} : vector<8x17xbf16>, vector<17x324xbf16>, vector<8x324xf32> -> vector<8x324xf32>
    %c0_26 = arith.constant 0 : index
    %c110 = arith.constant 110 : index
    %23 = vector.load %arg13[%c0_26, %c110] : memref<17x580xbf16, #tpu.memory_space<vmem>>, vector<17x324xbf16>
    %c1 = arith.constant 1 : index
    %c0_27 = arith.constant 0 : index
    %c0_28 = arith.constant 0 : index
    %24 = vector.load %arg5[%c1, %c0_27, %c0_28] : memref<9x8x17xbf16, #tpu.memory_space<vmem>>, vector<1x8x17xbf16>
    %25 = vector.shape_cast %24 : vector<1x8x17xbf16> to vector<8x17xbf16>
    %cst_29 = arith.constant dense<0.000000e+00> : vector<8x324xf32>
    %26 = tpu.matmul %25, %23, %cst_29 {dimension_numbers = #tpu.dot_dimension_numbers<[1], [0], [0], [1], [0, 0, 1, 1], [], []>} : vector<8x17xbf16>, vector<17x324xbf16>, vector<8x324xf32> -> vector<8x324xf32>
    %27 = arith.addf %22, %26 : vector<8x324xf32>
    %c0_30 = arith.constant 0 : index
    %c111 = arith.constant 111 : index
    %28 = vector.load %arg13[%c0_30, %c111] : memref<17x580xbf16, #tpu.memory_space<vmem>>, vector<17x324xbf16>
    %c2 = arith.constant 2 : index
    %c0_31 = arith.constant 0 : index
    %c0_32 = arith.constant 0 : index
    %29 = vector.load %arg5[%c2, %c0_31, %c0_32] : memref<9x8x17xbf16, #tpu.memory_space<vmem>>, vector<1x8x17xbf16>
    %30 = vector.shape_cast %29 : vector<1x8x17xbf16> to vector<8x17xbf16>
    %cst_33 = arith.constant dense<0.000000e+00> : vector<8x324xf32>
    %31 = tpu.matmul %30, %28, %cst_33 {dimension_numbers = #tpu.dot_dimension_numbers<[1], [0], [0], [1], [0, 0, 1, 1], [], []>} : vector<8x17xbf16>, vector<17x324xbf16>, vector<8x324xf32> -> vector<8x324xf32>
    %32 = arith.addf %27, %31 : vector<8x324xf32>
    %c0_34 = arith.constant 0 : index
    %c127 = arith.constant 127 : index
    %33 = vector.load %arg13[%c0_34, %c127] : memref<17x580xbf16, #tpu.memory_space<vmem>>, vector<17x324xbf16>
    %c3 = arith.constant 3 : index
    %c0_35 = arith.constant 0 : index
    %c0_36 = arith.constant 0 : index
    %34 = vector.load %arg5[%c3, %c0_35, %c0_36] : memref<9x8x17xbf16, #tpu.memory_space<vmem>>, vector<1x8x17xbf16>
    %35 = vector.shape_cast %34 : vector<1x8x17xbf16> to vector<8x17xbf16>
    %cst_37 = arith.constant dense<0.000000e+00> : vector<8x324xf32>
    %36 = tpu.matmul %35, %33, %cst_37 {dimension_numbers = #tpu.dot_dimension_numbers<[1], [0], [0], [1], [0, 0, 1, 1], [], []>} : vector<8x17xbf16>, vector<17x324xbf16>, vector<8x324xf32> -> vector<8x324xf32>
    %37 = arith.addf %32, %36 : vector<8x324xf32>
    %c0_38 = arith.constant 0 : index
    %c128_39 = arith.constant 128 : index
    %38 = vector.load %arg13[%c0_38, %c128_39] : memref<17x580xbf16, #tpu.memory_space<vmem>>, vector<17x324xbf16>
    %c4 = arith.constant 4 : index
    %c0_40 = arith.constant 0 : index
    %c0_41 = arith.constant 0 : index
    %39 = vector.load %arg5[%c4, %c0_40, %c0_41] : memref<9x8x17xbf16, #tpu.memory_space<vmem>>, vector<1x8x17xbf16>
    %40 = vector.shape_cast %39 : vector<1x8x17xbf16> to vector<8x17xbf16>
    %cst_42 = arith.constant dense<0.000000e+00> : vector<8x324xf32>
    %41 = tpu.matmul %40, %38, %cst_42 {dimension_numbers = #tpu.dot_dimension_numbers<[1], [0], [0], [1], [0, 0, 1, 1], [], []>} : vector<8x17xbf16>, vector<17x324xbf16>, vector<8x324xf32> -> vector<8x324xf32>
    %42 = arith.addf %37, %41 : vector<8x324xf32>
    %c0_43 = arith.constant 0 : index
    %c129 = arith.constant 129 : index
    %43 = vector.load %arg13[%c0_43, %c129] : memref<17x580xbf16, #tpu.memory_space<vmem>>, vector<17x324xbf16>
    %c5 = arith.constant 5 : index
    %c0_44 = arith.constant 0 : index
    %c0_45 = arith.constant 0 : index
    %44 = vector.load %arg5[%c5, %c0_44, %c0_45] : memref<9x8x17xbf16, #tpu.memory_space<vmem>>, vector<1x8x17xbf16>
    %45 = vector.shape_cast %44 : vector<1x8x17xbf16> to vector<8x17xbf16>
    %cst_46 = arith.constant dense<0.000000e+00> : vector<8x324xf32>
    %46 = tpu.matmul %45, %43, %cst_46 {dimension_numbers = #tpu.dot_dimension_numbers<[1], [0], [0], [1], [0, 0, 1, 1], [], []>} : vector<8x17xbf16>, vector<17x324xbf16>, vector<8x324xf32> -> vector<8x324xf32>
    %47 = arith.addf %42, %46 : vector<8x324xf32>
    %c0_47 = arith.constant 0 : index
    %c145 = arith.constant 145 : index
    %48 = vector.load %arg13[%c0_47, %c145] : memref<17x580xbf16, #tpu.memory_space<vmem>>, vector<17x324xbf16>
    %c6 = arith.constant 6 : index
    %c0_48 = arith.constant 0 : index
    %c0_49 = arith.constant 0 : index
    %49 = vector.load %arg5[%c6, %c0_48, %c0_49] : memref<9x8x17xbf16, #tpu.memory_space<vmem>>, vector<1x8x17xbf16>
    %50 = vector.shape_cast %49 : vector<1x8x17xbf16> to vector<8x17xbf16>
    %cst_50 = arith.constant dense<0.000000e+00> : vector<8x324xf32>
    %51 = tpu.matmul %50, %48, %cst_50 {dimension_numbers = #tpu.dot_dimension_numbers<[1], [0], [0], [1], [0, 0, 1, 1], [], []>} : vector<8x17xbf16>, vector<17x324xbf16>, vector<8x324xf32> -> vector<8x324xf32>
    %52 = arith.addf %47, %51 : vector<8x324xf32>
    %c0_51 = arith.constant 0 : index
    %c146 = arith.constant 146 : index
    %53 = vector.load %arg13[%c0_51, %c146] : memref<17x580xbf16, #tpu.memory_space<vmem>>, vector<17x324xbf16>
    %c7 = arith.constant 7 : index
    %c0_52 = arith.constant 0 : index
    %c0_53 = arith.constant 0 : index
    %54 = vector.load %arg5[%c7, %c0_52, %c0_53] : memref<9x8x17xbf16, #tpu.memory_space<vmem>>, vector<1x8x17xbf16>
    %55 = vector.shape_cast %54 : vector<1x8x17xbf16> to vector<8x17xbf16>
    %cst_54 = arith.constant dense<0.000000e+00> : vector<8x324xf32>
    %56 = tpu.matmul %55, %53, %cst_54 {dimension_numbers = #tpu.dot_dimension_numbers<[1], [0], [0], [1], [0, 0, 1, 1], [], []>} : vector<8x17xbf16>, vector<17x324xbf16>, vector<8x324xf32> -> vector<8x324xf32>
    %57 = arith.addf %52, %56 : vector<8x324xf32>
    %c0_55 = arith.constant 0 : index
    %c147 = arith.constant 147 : index
    %58 = vector.load %arg13[%c0_55, %c147] : memref<17x580xbf16, #tpu.memory_space<vmem>>, vector<17x324xbf16>
    %c8 = arith.constant 8 : index
    %c0_56 = arith.constant 0 : index
    %c0_57 = arith.constant 0 : index
    %59 = vector.load %arg5[%c8, %c0_56, %c0_57] : memref<9x8x17xbf16, #tpu.memory_space<vmem>>, vector<1x8x17xbf16>
    %60 = vector.shape_cast %59 : vector<1x8x17xbf16> to vector<8x17xbf16>
    %cst_58 = arith.constant dense<0.000000e+00> : vector<8x324xf32>
    %61 = tpu.matmul %60, %58, %cst_58 {dimension_numbers = #tpu.dot_dimension_numbers<[1], [0], [0], [1], [0, 0, 1, 1], [], []>} : vector<8x17xbf16>, vector<17x324xbf16>, vector<8x324xf32> -> vector<8x324xf32>
    %62 = arith.addf %57, %61 : vector<8x324xf32>
    %c0_59 = arith.constant 0 : index
    %c0_60 = arith.constant 0 : index
    %63 = vector.load %arg6[%c0_59, %c0_60] : memref<8x1xf32, #tpu.memory_space<vmem>>, vector<8x1xf32>
    %64 = vector.broadcast %63 : vector<8x1xf32> to vector<8x324xf32>
    %65 = arith.addf %62, %64 : vector<8x324xf32>
    %cst_61 = arith.constant 0.000000e+00 : f32
    %66 = vector.broadcast %cst_61 : f32 to vector<8x324xf32>
    %67 = arith.maximumf %65, %66 : vector<8x324xf32>
    %cst_62 = arith.constant 0.000000e+00 : f32
    %68 = vector.shape_cast %8 : vector<1x324xi1> to vector<1x324xi1>
    %69 = vector.broadcast %68 : vector<1x324xi1> to vector<8x324xi1>
    %70 = vector.broadcast %cst_62 : f32 to vector<8x324xf32>
    %71 = arith.select %69, %67, %70 : vector<8x324xi1>, vector<8x324xf32>
    %72 = arith.truncf %71 : vector<8x324xf32> to vector<8x324xbf16>
    %c0_63 = arith.constant 0 : index
    %c128_64 = arith.constant 128 : index
    %73 = vector.load %arg14[%c0_63, %c128_64] : memref<8x580xbf16, #tpu.memory_space<vmem>>, vector<8x324xbf16>
    tpu.vector_store %arg14[%c0_63, %c128_64], %72 {strides = array<i32>} : memref<8x580xbf16, #tpu.memory_space<vmem>>, vector<8x324xbf16>,
    %c0_65 = arith.constant 0 : index
    %c109_66 = arith.constant 109 : index
    %74 = vector.load %arg14[%c0_65, %c109_66] : memref<8x580xbf16, #tpu.memory_space<vmem>>, vector<8x324xbf16>
    %c0_67 = arith.constant 0 : index
    %c0_68 = arith.constant 0 : index
    %c0_69 = arith.constant 0 : index
    %75 = vector.load %arg7[%c0_67, %c0_68, %c0_69] : memref<9x8x8xbf16, #tpu.memory_space<vmem>>, vector<1x8x8xbf16>
    %76 = vector.shape_cast %75 : vector<1x8x8xbf16> to vector<8x8xbf16>
    %cst_70 = arith.constant dense<0.000000e+00> : vector<8x324xf32>
    %77 = tpu.matmul %76, %74, %cst_70 {dimension_numbers = #tpu.dot_dimension_numbers<[1], [0], [0], [1], [0, 0, 1, 1], [], []>} : vector<8x8xbf16>, vector<8x324xbf16>, vector<8x324xf32> -> vector<8x324xf32>
    %c0_71 = arith.constant 0 : index
    %c110_72 = arith.constant 110 : index
    %78 = vector.load %arg14[%c0_71, %c110_72] : memref<8x580xbf16, #tpu.memory_space<vmem>>, vector<8x324xbf16>
    %c1_73 = arith.constant 1 : index
    %c0_74 = arith.constant 0 : index
    %c0_75 = arith.constant 0 : index
    %79 = vector.load %arg7[%c1_73, %c0_74, %c0_75] : memref<9x8x8xbf16, #tpu.memory_space<vmem>>, vector<1x8x8xbf16>
    %80 = vector.shape_cast %79 : vector<1x8x8xbf16> to vector<8x8xbf16>
    %cst_76 = arith.constant dense<0.000000e+00> : vector<8x324xf32>
    %81 = tpu.matmul %80, %78, %cst_76 {dimension_numbers = #tpu.dot_dimension_numbers<[1], [0], [0], [1], [0, 0, 1, 1], [], []>} : vector<8x8xbf16>, vector<8x324xbf16>, vector<8x324xf32> -> vector<8x324xf32>
    %82 = arith.addf %77, %81 : vector<8x324xf32>
    %c0_77 = arith.constant 0 : index
    %c111_78 = arith.constant 111 : index
    %83 = vector.load %arg14[%c0_77, %c111_78] : memref<8x580xbf16, #tpu.memory_space<vmem>>, vector<8x324xbf16>
    %c2_79 = arith.constant 2 : index
    %c0_80 = arith.constant 0 : index
    %c0_81 = arith.constant 0 : index
    %84 = vector.load %arg7[%c2_79, %c0_80, %c0_81] : memref<9x8x8xbf16, #tpu.memory_space<vmem>>, vector<1x8x8xbf16>
    %85 = vector.shape_cast %84 : vector<1x8x8xbf16> to vector<8x8xbf16>
    %cst_82 = arith.constant dense<0.000000e+00> : vector<8x324xf32>
    %86 = tpu.matmul %85, %83, %cst_82 {dimension_numbers = #tpu.dot_dimension_numbers<[1], [0], [0], [1], [0, 0, 1, 1], [], []>} : vector<8x8xbf16>, vector<8x324xbf16>, vector<8x324xf32> -> vector<8x324xf32>
    %87 = arith.addf %82, %86 : vector<8x324xf32>
    %c0_83 = arith.constant 0 : index
    %c127_84 = arith.constant 127 : index
    %88 = vector.load %arg14[%c0_83, %c127_84] : memref<8x580xbf16, #tpu.memory_space<vmem>>, vector<8x324xbf16>
    %c3_85 = arith.constant 3 : index
    %c0_86 = arith.constant 0 : index
    %c0_87 = arith.constant 0 : index
    %89 = vector.load %arg7[%c3_85, %c0_86, %c0_87] : memref<9x8x8xbf16, #tpu.memory_space<vmem>>, vector<1x8x8xbf16>
    %90 = vector.shape_cast %89 : vector<1x8x8xbf16> to vector<8x8xbf16>
    %cst_88 = arith.constant dense<0.000000e+00> : vector<8x324xf32>
    %91 = tpu.matmul %90, %88, %cst_88 {dimension_numbers = #tpu.dot_dimension_numbers<[1], [0], [0], [1], [0, 0, 1, 1], [], []>} : vector<8x8xbf16>, vector<8x324xbf16>, vector<8x324xf32> -> vector<8x324xf32>
    %92 = arith.addf %87, %91 : vector<8x324xf32>
    %c0_89 = arith.constant 0 : index
    %c128_90 = arith.constant 128 : index
    %93 = vector.load %arg14[%c0_89, %c128_90] : memref<8x580xbf16, #tpu.memory_space<vmem>>, vector<8x324xbf16>
    %c4_91 = arith.constant 4 : index
    %c0_92 = arith.constant 0 : index
    %c0_93 = arith.constant 0 : index
    %94 = vector.load %arg7[%c4_91, %c0_92, %c0_93] : memref<9x8x8xbf16, #tpu.memory_space<vmem>>, vector<1x8x8xbf16>
    %95 = vector.shape_cast %94 : vector<1x8x8xbf16> to vector<8x8xbf16>
    %cst_94 = arith.constant dense<0.000000e+00> : vector<8x324xf32>
    %96 = tpu.matmul %95, %93, %cst_94 {dimension_numbers = #tpu.dot_dimension_numbers<[1], [0], [0], [1], [0, 0, 1, 1], [], []>} : vector<8x8xbf16>, vector<8x324xbf16>, vector<8x324xf32> -> vector<8x324xf32>
    %97 = arith.addf %92, %96 : vector<8x324xf32>
    %c0_95 = arith.constant 0 : index
    %c129_96 = arith.constant 129 : index
    %98 = vector.load %arg14[%c0_95, %c129_96] : memref<8x580xbf16, #tpu.memory_space<vmem>>, vector<8x324xbf16>
    %c5_97 = arith.constant 5 : index
    %c0_98 = arith.constant 0 : index
    %c0_99 = arith.constant 0 : index
    %99 = vector.load %arg7[%c5_97, %c0_98, %c0_99] : memref<9x8x8xbf16, #tpu.memory_space<vmem>>, vector<1x8x8xbf16>
    %100 = vector.shape_cast %99 : vector<1x8x8xbf16> to vector<8x8xbf16>
    %cst_100 = arith.constant dense<0.000000e+00> : vector<8x324xf32>
    %101 = tpu.matmul %100, %98, %cst_100 {dimension_numbers = #tpu.dot_dimension_numbers<[1], [0], [0], [1], [0, 0, 1, 1], [], []>} : vector<8x8xbf16>, vector<8x324xbf16>, vector<8x324xf32> -> vector<8x324xf32>
    %102 = arith.addf %97, %101 : vector<8x324xf32>
    %c0_101 = arith.constant 0 : index
    %c145_102 = arith.constant 145 : index
    %103 = vector.load %arg14[%c0_101, %c145_102] : memref<8x580xbf16, #tpu.memory_space<vmem>>, vector<8x324xbf16>
    %c6_103 = arith.constant 6 : index
    %c0_104 = arith.constant 0 : index
    %c0_105 = arith.constant 0 : index
    %104 = vector.load %arg7[%c6_103, %c0_104, %c0_105] : memref<9x8x8xbf16, #tpu.memory_space<vmem>>, vector<1x8x8xbf16>
    %105 = vector.shape_cast %104 : vector<1x8x8xbf16> to vector<8x8xbf16>
    %cst_106 = arith.constant dense<0.000000e+00> : vector<8x324xf32>
    %106 = tpu.matmul %105, %103, %cst_106 {dimension_numbers = #tpu.dot_dimension_numbers<[1], [0], [0], [1], [0, 0, 1, 1], [], []>} : vector<8x8xbf16>, vector<8x324xbf16>, vector<8x324xf32> -> vector<8x324xf32>
    %107 = arith.addf %102, %106 : vector<8x324xf32>
    %c0_107 = arith.constant 0 : index
    %c146_108 = arith.constant 146 : index
    %108 = vector.load %arg14[%c0_107, %c146_108] : memref<8x580xbf16, #tpu.memory_space<vmem>>, vector<8x324xbf16>
    %c7_109 = arith.constant 7 : index
    %c0_110 = arith.constant 0 : index
    %c0_111 = arith.constant 0 : index
    %109 = vector.load %arg7[%c7_109, %c0_110, %c0_111] : memref<9x8x8xbf16, #tpu.memory_space<vmem>>, vector<1x8x8xbf16>
    %110 = vector.shape_cast %109 : vector<1x8x8xbf16> to vector<8x8xbf16>
    %cst_112 = arith.constant dense<0.000000e+00> : vector<8x324xf32>
    %111 = tpu.matmul %110, %108, %cst_112 {dimension_numbers = #tpu.dot_dimension_numbers<[1], [0], [0], [1], [0, 0, 1, 1], [], []>} : vector<8x8xbf16>, vector<8x324xbf16>, vector<8x324xf32> -> vector<8x324xf32>
    %112 = arith.addf %107, %111 : vector<8x324xf32>
    %c0_113 = arith.constant 0 : index
    %c147_114 = arith.constant 147 : index
    %113 = vector.load %arg14[%c0_113, %c147_114] : memref<8x580xbf16, #tpu.memory_space<vmem>>, vector<8x324xbf16>
    %c8_115 = arith.constant 8 : index
    %c0_116 = arith.constant 0 : index
    %c0_117 = arith.constant 0 : index
    %114 = vector.load %arg7[%c8_115, %c0_116, %c0_117] : memref<9x8x8xbf16, #tpu.memory_space<vmem>>, vector<1x8x8xbf16>
    %115 = vector.shape_cast %114 : vector<1x8x8xbf16> to vector<8x8xbf16>
    %cst_118 = arith.constant dense<0.000000e+00> : vector<8x324xf32>
    %116 = tpu.matmul %115, %113, %cst_118 {dimension_numbers = #tpu.dot_dimension_numbers<[1], [0], [0], [1], [0, 0, 1, 1], [], []>} : vector<8x8xbf16>, vector<8x324xbf16>, vector<8x324xf32> -> vector<8x324xf32>
    %117 = arith.addf %112, %116 : vector<8x324xf32>
    %c0_119 = arith.constant 0 : index
    %c0_120 = arith.constant 0 : index
    %118 = vector.load %arg8[%c0_119, %c0_120] : memref<8x1xf32, #tpu.memory_space<vmem>>, vector<8x1xf32>
    %119 = vector.broadcast %118 : vector<8x1xf32> to vector<8x324xf32>
    %120 = arith.addf %117, %119 : vector<8x324xf32>
    %cst_121 = arith.constant 0.000000e+00 : f32
    %121 = vector.broadcast %cst_121 : f32 to vector<8x324xf32>
    %122 = arith.maximumf %120, %121 : vector<8x324xf32>
    %cst_122 = arith.constant 0.000000e+00 : f32
    %123 = vector.shape_cast %8 : vector<1x324xi1> to vector<1x324xi1>
    %124 = vector.broadcast %123 : vector<1x324xi1> to vector<8x324xi1>
    %125 = vector.broadcast %cst_122 : f32 to vector<8x324xf32>
    %126 = arith.select %124, %122, %125 : vector<8x324xi1>, vector<8x324xf32>
    %127 = arith.truncf %126 : vector<8x324xf32> to vector<8x324xbf16>
    %c0_123 = arith.constant 0 : index
    %c128_124 = arith.constant 128 : index
    %128 = vector.load %arg14[%c0_123, %c128_124] : memref<8x580xbf16, #tpu.memory_space<vmem>>, vector<8x324xbf16>
    tpu.vector_store %arg14[%c0_123, %c128_124], %127 {strides = array<i32>} : memref<8x580xbf16, #tpu.memory_space<vmem>>, vector<8x324xbf16>,
    %c0_125 = arith.constant 0 : index
    %c109_126 = arith.constant 109 : index
    %129 = vector.load %arg14[%c0_125, %c109_126] : memref<8x580xbf16, #tpu.memory_space<vmem>>, vector<8x324xbf16>
    %c0_127 = arith.constant 0 : index
    %c0_128 = arith.constant 0 : index
    %c0_129 = arith.constant 0 : index
    %130 = vector.load %arg9[%c0_127, %c0_128, %c0_129] : memref<9x17x8xbf16, #tpu.memory_space<vmem>>, vector<1x17x8xbf16>
    %131 = vector.shape_cast %130 : vector<1x17x8xbf16> to vector<17x8xbf16>
    %cst_130 = arith.constant dense<0.000000e+00> : vector<17x324xf32>
    %132 = tpu.matmul %131, %129, %cst_130 {dimension_numbers = #tpu.dot_dimension_numbers<[1], [0], [0], [1], [0, 0, 1, 1], [], []>} : vector<17x8xbf16>, vector<8x324xbf16>, vector<17x324xf32> -> vector<17x324xf32>
    %c0_131 = arith.constant 0 : index
    %c110_132 = arith.constant 110 : index
    %133 = vector.load %arg14[%c0_131, %c110_132] : memref<8x580xbf16, #tpu.memory_space<vmem>>, vector<8x324xbf16>
    %c1_133 = arith.constant 1 : index
    %c0_134 = arith.constant 0 : index
    %c0_135 = arith.constant 0 : index
    %134 = vector.load %arg9[%c1_133, %c0_134, %c0_135] : memref<9x17x8xbf16, #tpu.memory_space<vmem>>, vector<1x17x8xbf16>
    %135 = vector.shape_cast %134 : vector<1x17x8xbf16> to vector<17x8xbf16>
    %cst_136 = arith.constant dense<0.000000e+00> : vector<17x324xf32>
    %136 = tpu.matmul %135, %133, %cst_136 {dimension_numbers = #tpu.dot_dimension_numbers<[1], [0], [0], [1], [0, 0, 1, 1], [], []>} : vector<17x8xbf16>, vector<8x324xbf16>, vector<17x324xf32> -> vector<17x324xf32>
    %137 = arith.addf %132, %136 : vector<17x324xf32>
    %c0_137 = arith.constant 0 : index
    %c111_138 = arith.constant 111 : index
    %138 = vector.load %arg14[%c0_137, %c111_138] : memref<8x580xbf16, #tpu.memory_space<vmem>>, vector<8x324xbf16>
    %c2_139 = arith.constant 2 : index
    %c0_140 = arith.constant 0 : index
    %c0_141 = arith.constant 0 : index
    %139 = vector.load %arg9[%c2_139, %c0_140, %c0_141] : memref<9x17x8xbf16, #tpu.memory_space<vmem>>, vector<1x17x8xbf16>
    %140 = vector.shape_cast %139 : vector<1x17x8xbf16> to vector<17x8xbf16>
    %cst_142 = arith.constant dense<0.000000e+00> : vector<17x324xf32>
    %141 = tpu.matmul %140, %138, %cst_142 {dimension_numbers = #tpu.dot_dimension_numbers<[1], [0], [0], [1], [0, 0, 1, 1], [], []>} : vector<17x8xbf16>, vector<8x324xbf16>, vector<17x324xf32> -> vector<17x324xf32>
    %142 = arith.addf %137, %141 : vector<17x324xf32>
    %c0_143 = arith.constant 0 : index
    %c127_144 = arith.constant 127 : index
    %143 = vector.load %arg14[%c0_143, %c127_144] : memref<8x580xbf16, #tpu.memory_space<vmem>>, vector<8x324xbf16>
    %c3_145 = arith.constant 3 : index
    %c0_146 = arith.constant 0 : index
    %c0_147 = arith.constant 0 : index
    %144 = vector.load %arg9[%c3_145, %c0_146, %c0_147] : memref<9x17x8xbf16, #tpu.memory_space<vmem>>, vector<1x17x8xbf16>
    %145 = vector.shape_cast %144 : vector<1x17x8xbf16> to vector<17x8xbf16>
    %cst_148 = arith.constant dense<0.000000e+00> : vector<17x324xf32>
    %146 = tpu.matmul %145, %143, %cst_148 {dimension_numbers = #tpu.dot_dimension_numbers<[1], [0], [0], [1], [0, 0, 1, 1], [], []>} : vector<17x8xbf16>, vector<8x324xbf16>, vector<17x324xf32> -> vector<17x324xf32>
    %147 = arith.addf %142, %146 : vector<17x324xf32>
    %c0_149 = arith.constant 0 : index
    %c128_150 = arith.constant 128 : index
    %148 = vector.load %arg14[%c0_149, %c128_150] : memref<8x580xbf16, #tpu.memory_space<vmem>>, vector<8x324xbf16>
    %c4_151 = arith.constant 4 : index
    %c0_152 = arith.constant 0 : index
    %c0_153 = arith.constant 0 : index
    %149 = vector.load %arg9[%c4_151, %c0_152, %c0_153] : memref<9x17x8xbf16, #tpu.memory_space<vmem>>, vector<1x17x8xbf16>
    %150 = vector.shape_cast %149 : vector<1x17x8xbf16> to vector<17x8xbf16>
    %cst_154 = arith.constant dense<0.000000e+00> : vector<17x324xf32>
    %151 = tpu.matmul %150, %148, %cst_154 {dimension_numbers = #tpu.dot_dimension_numbers<[1], [0], [0], [1], [0, 0, 1, 1], [], []>} : vector<17x8xbf16>, vector<8x324xbf16>, vector<17x324xf32> -> vector<17x324xf32>
    %152 = arith.addf %147, %151 : vector<17x324xf32>
    %c0_155 = arith.constant 0 : index
    %c129_156 = arith.constant 129 : index
    %153 = vector.load %arg14[%c0_155, %c129_156] : memref<8x580xbf16, #tpu.memory_space<vmem>>, vector<8x324xbf16>
    %c5_157 = arith.constant 5 : index
    %c0_158 = arith.constant 0 : index
    %c0_159 = arith.constant 0 : index
    %154 = vector.load %arg9[%c5_157, %c0_158, %c0_159] : memref<9x17x8xbf16, #tpu.memory_space<vmem>>, vector<1x17x8xbf16>
    %155 = vector.shape_cast %154 : vector<1x17x8xbf16> to vector<17x8xbf16>
    %cst_160 = arith.constant dense<0.000000e+00> : vector<17x324xf32>
    %156 = tpu.matmul %155, %153, %cst_160 {dimension_numbers = #tpu.dot_dimension_numbers<[1], [0], [0], [1], [0, 0, 1, 1], [], []>} : vector<17x8xbf16>, vector<8x324xbf16>, vector<17x324xf32> -> vector<17x324xf32>
    %157 = arith.addf %152, %156 : vector<17x324xf32>
    %c0_161 = arith.constant 0 : index
    %c145_162 = arith.constant 145 : index
    %158 = vector.load %arg14[%c0_161, %c145_162] : memref<8x580xbf16, #tpu.memory_space<vmem>>, vector<8x324xbf16>
    %c6_163 = arith.constant 6 : index
    %c0_164 = arith.constant 0 : index
    %c0_165 = arith.constant 0 : index
    %159 = vector.load %arg9[%c6_163, %c0_164, %c0_165] : memref<9x17x8xbf16, #tpu.memory_space<vmem>>, vector<1x17x8xbf16>
    %160 = vector.shape_cast %159 : vector<1x17x8xbf16> to vector<17x8xbf16>
    %cst_166 = arith.constant dense<0.000000e+00> : vector<17x324xf32>
    %161 = tpu.matmul %160, %158, %cst_166 {dimension_numbers = #tpu.dot_dimension_numbers<[1], [0], [0], [1], [0, 0, 1, 1], [], []>} : vector<17x8xbf16>, vector<8x324xbf16>, vector<17x324xf32> -> vector<17x324xf32>
    %162 = arith.addf %157, %161 : vector<17x324xf32>
    %c0_167 = arith.constant 0 : index
    %c146_168 = arith.constant 146 : index
    %163 = vector.load %arg14[%c0_167, %c146_168] : memref<8x580xbf16, #tpu.memory_space<vmem>>, vector<8x324xbf16>
    %c7_169 = arith.constant 7 : index
    %c0_170 = arith.constant 0 : index
    %c0_171 = arith.constant 0 : index
    %164 = vector.load %arg9[%c7_169, %c0_170, %c0_171] : memref<9x17x8xbf16, #tpu.memory_space<vmem>>, vector<1x17x8xbf16>
    %165 = vector.shape_cast %164 : vector<1x17x8xbf16> to vector<17x8xbf16>
    %cst_172 = arith.constant dense<0.000000e+00> : vector<17x324xf32>
    %166 = tpu.matmul %165, %163, %cst_172 {dimension_numbers = #tpu.dot_dimension_numbers<[1], [0], [0], [1], [0, 0, 1, 1], [], []>} : vector<17x8xbf16>, vector<8x324xbf16>, vector<17x324xf32> -> vector<17x324xf32>
    %167 = arith.addf %162, %166 : vector<17x324xf32>
    %c0_173 = arith.constant 0 : index
    %c147_174 = arith.constant 147 : index
    %168 = vector.load %arg14[%c0_173, %c147_174] : memref<8x580xbf16, #tpu.memory_space<vmem>>, vector<8x324xbf16>
    %c8_175 = arith.constant 8 : index
    %c0_176 = arith.constant 0 : index
    %c0_177 = arith.constant 0 : index
    %169 = vector.load %arg9[%c8_175, %c0_176, %c0_177] : memref<9x17x8xbf16, #tpu.memory_space<vmem>>, vector<1x17x8xbf16>
    %170 = vector.shape_cast %169 : vector<1x17x8xbf16> to vector<17x8xbf16>
    %cst_178 = arith.constant dense<0.000000e+00> : vector<17x324xf32>
    %171 = tpu.matmul %170, %168, %cst_178 {dimension_numbers = #tpu.dot_dimension_numbers<[1], [0], [0], [1], [0, 0, 1, 1], [], []>} : vector<17x8xbf16>, vector<8x324xbf16>, vector<17x324xf32> -> vector<17x324xf32>
    %172 = arith.addf %167, %171 : vector<17x324xf32>
    %cst_179 = arith.constant 0.000000e+00 : f32
    %173 = vector.shape_cast %8 : vector<1x324xi1> to vector<1x324xi1>
    %174 = vector.broadcast %173 : vector<1x324xi1> to vector<17x324xi1>
    %175 = vector.broadcast %cst_179 : f32 to vector<17x324xf32>
    %176 = arith.select %174, %172, %175 : vector<17x324xi1>, vector<17x324xf32>
    %c0_180 = arith.constant 0 : index
    %c128_181 = arith.constant 128 : index
    %177 = vector.load %arg13[%c0_180, %c128_181] : memref<17x580xbf16, #tpu.memory_space<vmem>>, vector<17x324xbf16>
    %178 = arith.extf %177 : vector<17x324xbf16> to vector<17x324xf32>
    %179 = arith.addf %178, %176 : vector<17x324xf32>
    %180 = arith.truncf %179 : vector<17x324xf32> to vector<17x324xbf16>
    %c0_182 = arith.constant 0 : index
    %c128_183 = arith.constant 128 : index
    %181 = vector.load %arg13[%c0_182, %c128_183] : memref<17x580xbf16, #tpu.memory_space<vmem>>, vector<17x324xbf16>
    tpu.vector_store %arg13[%c0_182, %c128_183], %180 {strides = array<i32>} : memref<17x580xbf16, #tpu.memory_space<vmem>>, vector<17x324xbf16>,
    %c0_184 = arith.constant 0 : index
    %c109_185 = arith.constant 109 : index
    %182 = vector.load %arg13[%c0_184, %c109_185] : memref<17x580xbf16, #tpu.memory_space<vmem>>, vector<17x324xbf16>
    %c0_186 = arith.constant 0 : index
    %c0_187 = arith.constant 0 : index
    %c0_188 = arith.constant 0 : index
    %183 = vector.load %arg10[%c0_186, %c0_187, %c0_188] : memref<9x256x17xbf16, #tpu.memory_space<vmem>>, vector<1x256x17xbf16>
    %184 = vector.shape_cast %183 : vector<1x256x17xbf16> to vector<256x17xbf16>
    %cst_189 = arith.constant dense<0.000000e+00> : vector<256x324xf32>
    %185 = tpu.matmul %184, %182, %cst_189 {dimension_numbers = #tpu.dot_dimension_numbers<[1], [0], [0], [1], [0, 0, 1, 1], [], []>} : vector<256x17xbf16>, vector<17x324xbf16>, vector<256x324xf32> -> vector<256x324xf32>
    %c0_190 = arith.constant 0 : index
    %c110_191 = arith.constant 110 : index
    %186 = vector.load %arg13[%c0_190, %c110_191] : memref<17x580xbf16, #tpu.memory_space<vmem>>, vector<17x324xbf16>
    %c1_192 = arith.constant 1 : index
    %c0_193 = arith.constant 0 : index
    %c0_194 = arith.constant 0 : index
    %187 = vector.load %arg10[%c1_192, %c0_193, %c0_194] : memref<9x256x17xbf16, #tpu.memory_space<vmem>>, vector<1x256x17xbf16>
    %188 = vector.shape_cast %187 : vector<1x256x17xbf16> to vector<256x17xbf16>
    %cst_195 = arith.constant dense<0.000000e+00> : vector<256x324xf32>
    %189 = tpu.matmul %188, %186, %cst_195 {dimension_numbers = #tpu.dot_dimension_numbers<[1], [0], [0], [1], [0, 0, 1, 1], [], []>} : vector<256x17xbf16>, vector<17x324xbf16>, vector<256x324xf32> -> vector<256x324xf32>
    %190 = arith.addf %185, %189 : vector<256x324xf32>
    %c0_196 = arith.constant 0 : index
    %c111_197 = arith.constant 111 : index
    %191 = vector.load %arg13[%c0_196, %c111_197] : memref<17x580xbf16, #tpu.memory_space<vmem>>, vector<17x324xbf16>
    %c2_198 = arith.constant 2 : index
    %c0_199 = arith.constant 0 : index
    %c0_200 = arith.constant 0 : index
    %192 = vector.load %arg10[%c2_198, %c0_199, %c0_200] : memref<9x256x17xbf16, #tpu.memory_space<vmem>>, vector<1x256x17xbf16>
    %193 = vector.shape_cast %192 : vector<1x256x17xbf16> to vector<256x17xbf16>
    %cst_201 = arith.constant dense<0.000000e+00> : vector<256x324xf32>
    %194 = tpu.matmul %193, %191, %cst_201 {dimension_numbers = #tpu.dot_dimension_numbers<[1], [0], [0], [1], [0, 0, 1, 1], [], []>} : vector<256x17xbf16>, vector<17x324xbf16>, vector<256x324xf32> -> vector<256x324xf32>
    %195 = arith.addf %190, %194 : vector<256x324xf32>
    %c0_202 = arith.constant 0 : index
    %c127_203 = arith.constant 127 : index
    %196 = vector.load %arg13[%c0_202, %c127_203] : memref<17x580xbf16, #tpu.memory_space<vmem>>, vector<17x324xbf16>
    %c3_204 = arith.constant 3 : index
    %c0_205 = arith.constant 0 : index
    %c0_206 = arith.constant 0 : index
    %197 = vector.load %arg10[%c3_204, %c0_205, %c0_206] : memref<9x256x17xbf16, #tpu.memory_space<vmem>>, vector<1x256x17xbf16>
    %198 = vector.shape_cast %197 : vector<1x256x17xbf16> to vector<256x17xbf16>
    %cst_207 = arith.constant dense<0.000000e+00> : vector<256x324xf32>
    %199 = tpu.matmul %198, %196, %cst_207 {dimension_numbers = #tpu.dot_dimension_numbers<[1], [0], [0], [1], [0, 0, 1, 1], [], []>} : vector<256x17xbf16>, vector<17x324xbf16>, vector<256x324xf32> -> vector<256x324xf32>
    %200 = arith.addf %195, %199 : vector<256x324xf32>
    %c0_208 = arith.constant 0 : index
    %c128_209 = arith.constant 128 : index
    %201 = vector.load %arg13[%c0_208, %c128_209] : memref<17x580xbf16, #tpu.memory_space<vmem>>, vector<17x324xbf16>
    %c4_210 = arith.constant 4 : index
    %c0_211 = arith.constant 0 : index
    %c0_212 = arith.constant 0 : index
    %202 = vector.load %arg10[%c4_210, %c0_211, %c0_212] : memref<9x256x17xbf16, #tpu.memory_space<vmem>>, vector<1x256x17xbf16>
    %203 = vector.shape_cast %202 : vector<1x256x17xbf16> to vector<256x17xbf16>
    %cst_213 = arith.constant dense<0.000000e+00> : vector<256x324xf32>
    %204 = tpu.matmul %203, %201, %cst_213 {dimension_numbers = #tpu.dot_dimension_numbers<[1], [0], [0], [1], [0, 0, 1, 1], [], []>} : vector<256x17xbf16>, vector<17x324xbf16>, vector<256x324xf32> -> vector<256x324xf32>
    %205 = arith.addf %200, %204 : vector<256x324xf32>
    %c0_214 = arith.constant 0 : index
    %c129_215 = arith.constant 129 : index
    %206 = vector.load %arg13[%c0_214, %c129_215] : memref<17x580xbf16, #tpu.memory_space<vmem>>, vector<17x324xbf16>
    %c5_216 = arith.constant 5 : index
    %c0_217 = arith.constant 0 : index
    %c0_218 = arith.constant 0 : index
    %207 = vector.load %arg10[%c5_216, %c0_217, %c0_218] : memref<9x256x17xbf16, #tpu.memory_space<vmem>>, vector<1x256x17xbf16>
    %208 = vector.shape_cast %207 : vector<1x256x17xbf16> to vector<256x17xbf16>
    %cst_219 = arith.constant dense<0.000000e+00> : vector<256x324xf32>
    %209 = tpu.matmul %208, %206, %cst_219 {dimension_numbers = #tpu.dot_dimension_numbers<[1], [0], [0], [1], [0, 0, 1, 1], [], []>} : vector<256x17xbf16>, vector<17x324xbf16>, vector<256x324xf32> -> vector<256x324xf32>
    %210 = arith.addf %205, %209 : vector<256x324xf32>
    %c0_220 = arith.constant 0 : index
    %c145_221 = arith.constant 145 : index
    %211 = vector.load %arg13[%c0_220, %c145_221] : memref<17x580xbf16, #tpu.memory_space<vmem>>, vector<17x324xbf16>
    %c6_222 = arith.constant 6 : index
    %c0_223 = arith.constant 0 : index
    %c0_224 = arith.constant 0 : index
    %212 = vector.load %arg10[%c6_222, %c0_223, %c0_224] : memref<9x256x17xbf16, #tpu.memory_space<vmem>>, vector<1x256x17xbf16>
    %213 = vector.shape_cast %212 : vector<1x256x17xbf16> to vector<256x17xbf16>
    %cst_225 = arith.constant dense<0.000000e+00> : vector<256x324xf32>
    %214 = tpu.matmul %213, %211, %cst_225 {dimension_numbers = #tpu.dot_dimension_numbers<[1], [0], [0], [1], [0, 0, 1, 1], [], []>} : vector<256x17xbf16>, vector<17x324xbf16>, vector<256x324xf32> -> vector<256x324xf32>
    %215 = arith.addf %210, %214 : vector<256x324xf32>
    %c0_226 = arith.constant 0 : index
    %c146_227 = arith.constant 146 : index
    %216 = vector.load %arg13[%c0_226, %c146_227] : memref<17x580xbf16, #tpu.memory_space<vmem>>, vector<17x324xbf16>
    %c7_228 = arith.constant 7 : index
    %c0_229 = arith.constant 0 : index
    %c0_230 = arith.constant 0 : index
    %217 = vector.load %arg10[%c7_228, %c0_229, %c0_230] : memref<9x256x17xbf16, #tpu.memory_space<vmem>>, vector<1x256x17xbf16>
    %218 = vector.shape_cast %217 : vector<1x256x17xbf16> to vector<256x17xbf16>
    %cst_231 = arith.constant dense<0.000000e+00> : vector<256x324xf32>
    %219 = tpu.matmul %218, %216, %cst_231 {dimension_numbers = #tpu.dot_dimension_numbers<[1], [0], [0], [1], [0, 0, 1, 1], [], []>} : vector<256x17xbf16>, vector<17x324xbf16>, vector<256x324xf32> -> vector<256x324xf32>
    %220 = arith.addf %215, %219 : vector<256x324xf32>
    %c0_232 = arith.constant 0 : index
    %c147_233 = arith.constant 147 : index
    %221 = vector.load %arg13[%c0_232, %c147_233] : memref<17x580xbf16, #tpu.memory_space<vmem>>, vector<17x324xbf16>
    %c8_234 = arith.constant 8 : index
    %c0_235 = arith.constant 0 : index
    %c0_236 = arith.constant 0 : index
    %222 = vector.load %arg10[%c8_234, %c0_235, %c0_236] : memref<9x256x17xbf16, #tpu.memory_space<vmem>>, vector<1x256x17xbf16>
    %223 = vector.shape_cast %222 : vector<1x256x17xbf16> to vector<256x17xbf16>
    %cst_237 = arith.constant dense<0.000000e+00> : vector<256x324xf32>
    %224 = tpu.matmul %223, %221, %cst_237 {dimension_numbers = #tpu.dot_dimension_numbers<[1], [0], [0], [1], [0, 0, 1, 1], [], []>} : vector<256x17xbf16>, vector<17x324xbf16>, vector<256x324xf32> -> vector<256x324xf32>
    %225 = arith.addf %220, %224 : vector<256x324xf32>
    %c0_238 = arith.constant 0 : index
    %c0_239 = arith.constant 0 : index
    %226 = vector.load %arg11[%c0_238, %c0_239] : memref<256x1xf32, #tpu.memory_space<vmem>>, vector<256x1xf32>
    %227 = vector.broadcast %226 : vector<256x1xf32> to vector<256x324xf32>
    %228 = arith.addf %225, %227 : vector<256x324xf32>
    %c0_240 = arith.constant 0 : index
    %c0_241 = arith.constant 0 : index
    %c0_242 = arith.constant 0 : index
    %229 = vector.load %arg12[%c0_240, %c0_241, %c0_242] : memref<1x256x324xf32, #tpu.memory_space<vmem>>, vector<1x256x324xf32>
    %230 = vector.shape_cast %229 : vector<1x256x324xf32> to vector<256x324xf32>
    %231 = vector.shape_cast %228 : vector<256x324xf32> to vector<1x256x324xf32>
    tpu.vector_store %arg12[%c0_240, %c0_241, %c0_242], %231 {strides = array<i32>} : memref<1x256x324xf32, #tpu.memory_space<vmem>>, vector<1x256x324xf32>,
    return
  }
  func.func @transform_0(%arg0: i32) -> (i32, i32, i32) {
    %c0_i32 = arith.constant 0 : i32
    %c0_i32_0 = arith.constant 0 : i32
    %c0_i32_1 = arith.constant 0 : i32
    return %arg0, %c0_i32, %c0_i32_0 : i32, i32, i32
  }
  func.func @transform_1(%arg0: i32) -> (i32, i32, i32) {
    %c0_i32 = arith.constant 0 : i32
    %c0_i32_0 = arith.constant 0 : i32
    %c0_i32_1 = arith.constant 0 : i32
    return %arg0, %c0_i32, %c0_i32_0 : i32, i32, i32
  }
  func.func @transform_2(%arg0: i32) -> (i32, i32) {
    %c0_i32 = arith.constant 0 : i32
    %c0_i32_0 = arith.constant 0 : i32
    %c0_i32_1 = arith.constant 0 : i32
    return %c0_i32, %c0_i32_0 : i32, i32
  }
  func.func @transform_3(%arg0: i32) -> (i32, i32) {
    %c0_i32 = arith.constant 0 : i32
    %c0_i32_0 = arith.constant 0 : i32
    %c0_i32_1 = arith.constant 0 : i32
    return %c0_i32, %c0_i32_0 : i32, i32
  }
  func.func @transform_4(%arg0: i32) -> (i32, i32, i32) {
    %c0_i32 = arith.constant 0 : i32
    %c0_i32_0 = arith.constant 0 : i32
    %c0_i32_1 = arith.constant 0 : i32
    %c0_i32_2 = arith.constant 0 : i32
    return %c0_i32, %c0_i32_0, %c0_i32_1 : i32, i32, i32
  }
  func.func @transform_5(%arg0: i32) -> (i32, i32) {
    %c0_i32 = arith.constant 0 : i32
    %c0_i32_0 = arith.constant 0 : i32
    %c0_i32_1 = arith.constant 0 : i32
    return %c0_i32, %c0_i32_0 : i32, i32
  }
  func.func @transform_6(%arg0: i32) -> (i32, i32, i32) {
    %c0_i32 = arith.constant 0 : i32
    %c0_i32_0 = arith.constant 0 : i32
    %c0_i32_1 = arith.constant 0 : i32
    %c0_i32_2 = arith.constant 0 : i32
    return %c0_i32, %c0_i32_0, %c0_i32_1 : i32, i32, i32
  }
  func.func @transform_7(%arg0: i32) -> (i32, i32) {
    %c0_i32 = arith.constant 0 : i32
    %c0_i32_0 = arith.constant 0 : i32
    %c0_i32_1 = arith.constant 0 : i32
    return %c0_i32, %c0_i32_0 : i32, i32
  }
  func.func @transform_8(%arg0: i32) -> (i32, i32, i32) {
    %c0_i32 = arith.constant 0 : i32
    %c0_i32_0 = arith.constant 0 : i32
    %c0_i32_1 = arith.constant 0 : i32
    %c0_i32_2 = arith.constant 0 : i32
    return %c0_i32, %c0_i32_0, %c0_i32_1 : i32, i32, i32
  }
  func.func @transform_9(%arg0: i32) -> (i32, i32, i32) {
    %c0_i32 = arith.constant 0 : i32
    %c0_i32_0 = arith.constant 0 : i32
    %c0_i32_1 = arith.constant 0 : i32
    %c0_i32_2 = arith.constant 0 : i32
    return %c0_i32, %c0_i32_0, %c0_i32_1 : i32, i32, i32
  }
  func.func @transform_10(%arg0: i32) -> (i32, i32) {
    %c0_i32 = arith.constant 0 : i32
    %c0_i32_0 = arith.constant 0 : i32
    %c0_i32_1 = arith.constant 0 : i32
    return %c0_i32, %c0_i32_0 : i32, i32
  }
  func.func @transform_11(%arg0: i32) -> (i32, i32, i32) {
    %c0_i32 = arith.constant 0 : i32
    %c0_i32_0 = arith.constant 0 : i32
    %c0_i32_1 = arith.constant 0 : i32
    return %arg0, %c0_i32, %c0_i32_0 : i32, i32, i32
  }
}

</mosaic_0001>

<bundles_post_ra>
// kernel: tpu_custom_call.1
= control target key start
LH: loop header
LB: loop body
LE: loop exit
PB: predicated region body
PF: predicated region fallthrough
CT: control target
= control target key end

     0   :  { %s9951_s17 = smov 0   ;;  %s14286_s0 = inlined_call_operand.vmem [shape: f32[2,16,324], index: 0, kind: input, shape index: {}]   ;;  %s14287_s1 = inlined_call_operand.vmem [shape: f32[2,1,64], index: 1, kind: input, shape index: {}]   ;;  %s14288_s2 = inlined_call_operand.vmem [shape: f32[64,324], index: 2, kind: input, shape index: {}]   ;;  %s14289_s3 = inlined_call_operand.vmem [shape: f32[1,324], index: 3, kind: input, shape index: {}]   ;;  %s14290_s4 = inlined_call_operand.vmem [shape: bf16[9,8,17], index: 4, kind: input, shape index: {}]   ;;  %s14291_s5 = inlined_call_operand.vmem [shape: f32[8,1], index: 5, kind: input, shape index: {}]   ;;  %s14292_s6 = inlined_call_operand.vmem [shape: bf16[9,8,8], index: 6, kind: input, shape index: {}]   ;;  %s14293_s7 = inlined_call_operand.vmem [shape: f32[8,1], index: 7, kind: input, shape index: {}]   ;;  %s14294_s8 = inlined_call_operand.vmem [shape: bf16[9,17,8], index: 8, kind: input, shape index: {}]   ;;  %s14295_s9 = inlined_call_operand.vmem [shape: bf16[9,256,17], index: 9, kind: input, shape index: {}]   ;;  %s14296_s10 = inlined_call_operand.vmem [shape: f32[256,1], index: 10, kind: input, shape index: {}]   ;;  %s14297_s11 = inlined_call_operand.vmem [shape: f32[2,256,324], index: 11, kind: output, shape index: {}]  }
   0x1 LB: > { %s8163_s18 = sadd.s32 4294967295, %s9880_s17   ;;  %p8167_p0 = scmp.ge.s32.totalorder %s9880_s17, 1  ;;  %s9880_s17 = sphi %s9951_s17, %s21_s17  }
   0x2   : > { %p345_p1 = scmp.lt.s32.totalorder %s9880_s17, 3 }
   0x4   : > { %p346_p2 = pnand %p8167_p0, %p345_p1 }
   0x6   : > { %349 = sbr.rel (%p346_p2) target bundleno = 3408 (0xd50), region = 64 }
   0xb   : > { %v450_v0 = vld [vmem:[%s14288_s2 + $0xa8] sm:$0xff]  ;;  %v451_v1 = vld [vmem:[%s14288_s2 + $0xb0] sm:$0xff]  ;;  %v452_v2 = vld [vmem:[%s14288_s2 + $0xb8] sm:$0xff]  ;;  %p388_p3 = scmp.lt.s32.totalorder %s8163_s18, 1  ;;  %v9882_v8 = vmov 0   ;;  %vm410_vm0 = vcmask 1044000  }
   0xc   : > { %465 = vmatpush.msra.mxu0 %v450_v0  ;;  %485 = vmatpush.msra.mxu1 %v451_v1  ;;  %v447_v3 = vld [vmem:[%s14288_s2 + $0x90] sm:$0xff]  ;;  %v448_v4 = vld [vmem:[%s14288_s2 + $0x98] sm:$0xff]  ;;  %v449_v5 = vld [vmem:[%s14288_s2 + $0xa0] sm:$0xff]  ;;  %402 = vst [vmem:[#allocation2] sm:$0xf] %v9882_v8  ;;  %vm411_vm1 = vcmask 556036  }
   0xd   : > { %505 = vmatpush.msra.mxu2 %v452_v2  ;;  %v444_v6 = vld [vmem:[%s14288_s2 + $0x78] sm:$0xff]  ;;  %v445_v7 = vld [vmem:[%s14288_s2 + $0x80] sm:$0xff]  ;;  %s15077_s18 = smov (!%p388_p3, %s8163_s18), 1  ;;  %9871 = vset.pattern.permute.xlu2 %v9882_v8  ;;  %v446_v9 = vld [vmem:[%s14288_s2 + $0x88] sm:$0xff]  ;;  %403 = vst [vmem:[#allocation2 + $0x14] sm:$0xf] %v9882_v8 }
   0xe   : > { %466 = vmatpush.msra.mxu0 %v447_v3  ;;  %486 = vmatpush.msra.mxu1 %v448_v4  ;;  %v441_v10 = vld [vmem:[%s14288_s2 + $0x60] sm:$0xff]  ;;  %v442_v11 = vld [vmem:[%s14288_s2 + $0x68] sm:$0xff]  ;;  %s9852_s24 = smul.u32 48, %s15077_s18  ;;  %424 = vst [vmem:[#allocation3] sm:$0xf] %v9882_v8  ;;  %v443_v12 = vld [vmem:[%s14288_s2 + $0x70] sm:$0xff]  ;;  %s395_s12 = scalar_lea.vmem %s14287_s1, %s15077_s18 }
   0xf   : > { %506 = vmatpush.msra.mxu2 %v449_v5  ;;  %9872 = vset.pattern.permute.xlu1 %v9882_v8  ;;  %v438_v13 = vld [vmem:[%s14288_s2 + $0x48] sm:$0xff]  ;;  %v439_v14 = vld [vmem:[%s14288_s2 + $0x50] sm:$0xff]  ;;  %v440_v15 = vld [vmem:[%s14288_s2 + $0x58] sm:$0xff]  ;;  %vm14299_vm3 = vcmask 551936   ;;  %vm453_vm4 = vcmask 523264   ;;  %s9883_s23 = smov 18  }
  0x10   : > { %467 = vmatpush.msra.mxu0 %v444_v6  ;;  %487 = vmatpush.msra.mxu1 %v445_v7  ;;  %s392_s16 = scalar_lea.vmem %s14286_s0, %s9852_s24  ;;  %v435_v16 = vld [vmem:[%s14288_s2 + $0x30] sm:$0xff]  ;;  %v436_v17 = vld [vmem:[%s14288_s2 + $0x38] sm:$0xff]  ;;  %v437_v18 = vld [vmem:[%s14288_s2 + $0x40] sm:$0xff]  ;;  %s9884_s25 = smov 19   ;;  %vm405_vm5 = vsmask.f32 256 }
  0x11   : > { %507 = vmatpush.msra.mxu2 %v446_v9  ;;  %9873 = vset.pattern.permute.xlu0 %v9882_v8  ;;  %v432_v19 = vld [vmem:[%s14288_s2 + $0x18] sm:$0xff]  ;;  %v433_v20 = vld [vmem:[%s14288_s2 + $0x20] sm:$0xff]  ;;  %vm10033_vm2 = vmor %vm411_vm1, %vm410_vm0  ;;  %s9885_s26 = smov 17   ;;  %vm415_vm6 = vcmask 1040928   ;;  %vm417_vm7 = vcmask 552964   ;;  %vm404_vm10 = vcmask 1040384  }
  0x12   : > { %468 = vmatpush.msra.mxu0 %v441_v10  ;;  %488 = vmatpush.msra.mxu1 %v442_v11  ;;  %v517_v22 = vld [vmem:[%s392_s16] sm:$0xff]  ;;  %413 = vst.msk [vmem:[#allocation2 + $0xc] sm:$0xff] %vm10033_vm2, %v9882_v8  ;;  %v518_v23 = vld [vmem:[%s392_s16 + $0x8] sm:$0xff]  ;;  %v519_v24 = vld [vmem:[%s392_s16 + $0x10] sm:$0xff]  ;;  %vm418_vm8 = vsmask.f32 4352 }
  0x13   : > { %508 = vmatpush.msra.mxu2 %v443_v12  ;;  %v520_v25 = vld [vmem:[%s392_s16 + $0x18] sm:$0xff]  ;;  %414 = vst.msk [vmem:[#allocation2 + $0x20] sm:$0xff] %vm10033_vm2, %v9882_v8  ;;  %v521_v26 = vld [vmem:[%s392_s16 + $0x20] sm:$0xff]  ;;  %v522_v27 = vld [vmem:[%s392_s16 + $0x28] sm:$0xff]  ;;  %v523_v28 = vpack.c.bf16 %v518_v23, %v517_v22  ;;  %v524_v29 = vpack.c.bf16 %v519_v24, %v519_v24  ;;  %vm534_vm14 = vcmask 1044484   ;;  %vm540_vm1 = vcmask 548864  }
  0x14   : > { %469 = vmatpush.msra.mxu0 %v438_v13  ;;  %489 = vmatpush.msra.mxu1 %v439_v14  ;;  %v8176_v30 = vld [vmem:[#allocation2] sm:$0xf]  ;;  %v434_v31 = vld [vmem:[%s14288_s2 + $0x28] sm:$0xff]  ;;  %v525_v32 = vpack.c.bf16 %v521_v26, %v520_v25  ;;  %v526_v33 = vpack.c.bf16 %v522_v27, %v522_v27  ;;  %425 = vst.msk [vmem:[#allocation3 + $0xc] sm:$0xff] %vm10033_vm2, %v9882_v8  ;;  %v9681_v34 = vld [vmem:[#allocation2 + $0x10] sm:$0xf0] }
  0x15   : > { %509 = vmatpush.msra.mxu2 %v440_v15  ;;  %v429_v35 = vld [vmem:[%s14288_s2] sm:$0xff]  ;;  %v430_v36 = vld [vmem:[%s14288_s2 + $0x8] sm:$0xff]  ;;  %527 = vst [vmem:[#allocation2 + $0x4] sm:$0xff] %v523_v28  ;;  %v10059_v37 = vor.u32 %v9681_v34, %v8176_v30  ;;  %v431_v38 = vld [vmem:[%s14288_s2 + $0x10] sm:$0xff]  ;;  %s9886_s24 = smov 1   ;;  %s9887_s27 = smov 127  }
  0x16   : > { %470 = vmatpush.msra.mxu0 %v435_v16  ;;  %490 = vmatpush.msra.mxu1 %v436_v17  ;;  %v428_v39 = vld [vmem:[%s395_s12] sm:$0x1]  ;;  %529 = vst.msk [vmem:[#allocation2 + $0xc] sm:$0xf] %vm14299_vm3, %v524_v29  ;;  %vm416_vm9 = vmand %vm415_vm6, %vm405_vm5  ;;  %v407_v49 = vld [vmem:[#allocation2 + $0x28] sm:$0x1] }
  0x17   : > { %510 = vmatpush.msra.mxu2 %v437_v18  ;;  %530 = vst [vmem:[#allocation2 + $0x18] sm:$0xff] %v525_v32  ;;  %580 = vrot.lane.b32.xlu1 %v10059_v37, %s9883_s23  ;;  %vm419_vm11 = vmand %vm417_vm7, %vm418_vm8  ;;  %v421_v50 = vld [vmem:[#allocation2 + $0x34] sm:$0x11]  ;;  %v537_v57 = vld [vmem:[#allocation2 + $0x2c] sm:$0x11]  ;;  %s9888_s28 = smov 111  }
  0x18   : > { %471 = vmatpush.msra.mxu0 %v432_v19  ;;  %491 = vmatpush.msra.mxu1 %v433_v20  ;;  %531 = vst.msk [vmem:[#allocation2 + $0x20] sm:$0xf] %vm14299_vm3, %v526_v33  ;;  %vm10095_vm12 = vmand %vm404_vm10, %vm405_vm5  ;;  %s9889_s29 = smov 110   ;;  %s9890_s30 = smov 109   ;;  %vm677_vm6 = vcmask 154624   ;;  %vm838_vm7 = vcmask 7168  }
  0x19   : > { %511 = vmatpush.msra.mxu2 %v434_v31  ;;  %661 = vrot.lane.b32.xlu2 %v10059_v37, %s9884_s25  ;;  %v408_v52 = vsel %vm10095_vm12, 0, %v407_v49  ;;  %vm420_vm13 = vmor %vm419_vm11, %vm416_vm9  ;;  %vm1078_vm9 = vcmask 908288   ;;  %vm14300_vm11 = vcmask 891904  }
  0x1a   : > { %472 = vmatpush.msra.mxu0 %v429_v35  ;;  %492 = vmatpush.msra.mxu1 %v430_v36  ;;  %409 = vst [vmem:[#allocation2 + $0x28] sm:$0x1] %v408_v52  ;;  %v422_v53 = vsel %vm420_vm13, 0, %v421_v50  ;;  %vm10101_vm15 = vmand %vm534_vm14, %vm418_vm8  ;;  %vm1002_vm8 = vcmask 1039360  }
  0x1b   : > { %512 = vmatpush.msra.mxu2 %v431_v38  ;;  %8170 = vmatmul.msk.f32.vlgmr.msra.gmra.mxu0 %vm453_vm4, %v428_v39  ;;  %423 = vst [vmem:[#allocation2 + $0x34] sm:$0x11] %v422_v53  ;;  %vm14298_vm0 = vmor %vm10101_vm15, %vm10095_vm12 }
  0x1c   : > { %8171 = vmatmul.msk.f32.vlgmr.msra.gmra.mxu1 %vm453_vm4, %v428_v39  ;;  %8172 = vmatmul.msk.f32.vlgmr.msra.gmra.mxu2 %vm453_vm4, %v428_v39  ;;  %v9679_v40 = vld [vmem:[#allocation2 + $0x4] sm:$0xf]  ;;  %v8184_v41 = vld [vmem:[#allocation2 + $0x8] sm:$0xf]  ;;  %vm10115_vm2 = vmand %vm540_vm1, %vm405_vm5  ;;  %vm596_vm4 = vcmask 146432   ;;  %vm606_vm5 = vcmask 138240  }
  0x1d   : > { %v9680_v44 = vld [vmem:[#allocation2 + $0xc] sm:$0xf]  ;;  %v8207_v22 = vld [vmem:[#allocation2 + $0x4] sm:$0xf]  ;;  %v9683_v26 = vld [vmem:[#allocation2 + $0x8] sm:$0xf] }
  0x1e   : > { %v8178_v42 = vld [vmem:[#allocation2 + $0x14] sm:$0xf0]  ;;  %v9682_v43 = vld [vmem:[#allocation2 + $0x18] sm:$0xf0]  ;;  %v8215_v12 = vld [vmem:[#allocation2 + $0xc] sm:$0xf] }
  0x1f   : > { %v10070_v45 = vor.u32 %v9679_v40, %v8178_v42  ;;  %v10072_v46 = vor.u32 %v9682_v43, %v8184_v41  ;;  %v8186_v47 = vld [vmem:[#allocation2 + $0x1c] sm:$0xf0]  ;;  %v9684_v23 = vld [vmem:[#allocation2 + $0x14] sm:$0xf0]  ;;  %v8209_v27 = vld [vmem:[#allocation2 + $0x18] sm:$0xf0] }
  0x20   : > { %v10078_v48 = vor.u32 %v9680_v44, %v8186_v47  ;;  %v9685_v13 = vld [vmem:[#allocation2 + $0x1c] sm:$0xf0]  ;;  %v10160_v24 = vor.u32 %v9684_v23, %v8207_v22  ;;  %v10169_v29 = vor.u32 %v9683_v26, %v8209_v27  ;;  %v10213_v42 = vsel %vm404_vm10, 65535, %v9882_v8 }
  0x21   : > { %582 = vrot.lane.b32.xlu1 %v10070_v45, %s9883_s23  ;;  %584 = vrot.lane.b32.xlu0 %v10072_v46, %s9883_s23  ;;  %v10145_v14 = vor.u32 %v9685_v13, %v8215_v12  ;;  %v551_v13 = vld [vmem:[%s14290_s4] sm:$0xf]  ;;  %vm14301_vm10 = vcmask 900096  }
  0x22   : > { %667 = vrot.lane.b32.xlu2 %v10078_v48, %s9884_s25  ;;  %v542_v62 = vld [vmem:[#allocation2 + $0x34] sm:$0x1] }
  0x29   : > { %586 = vrot.lane.b32.xlu1 %v10078_v48, %s9883_s23  ;;  %663 = vrot.lane.b32.xlu0 %v10070_v45, %s9884_s25 }
  0x31   : > { %665 = vrot.lane.b32.xlu1 %v10072_v46, %s9884_s25  ;;  %740 = vrot.lane.b32.xlu0 %v10059_v37, %s9885_s26 }
  0x39   : > { %742 = vrot.lane.b32.xlu1 %v10070_v45, %s9885_s26 }
  0x73   : > { %v10171_v30 = vpop.permute.xlu2 %661 }
  0x7c   : > { %v10183_v32 = vpop.permute.xlu2 %667 }
  0x89   : > { %v581_v28 = vpop.permute.xlu1 %580 }
  0x93   : > { %v583_v31 = vpop.permute.xlu1 %582  ;;  %v585_v33 = vpop.permute.xlu0 %584 }
  0x98   : > { %v474_v55 = vpop.f32.mrf.mxu0 }
  0x99   : > { %v494_v56 = vpop.f32.mrf.mxu1 }
  0x9a   : > { %v532_v58 = vpack.c.bf16 %v494_v56, %v474_v55 }
  0x9b   : > { %v587_v34 = vpop.permute.xlu1 %586  ;;  %v664_v36 = vpop.permute.xlu0 %663 }
  0x9c   : > { %v538_v59 = vsel %vm14298_vm0, %v532_v58, %v537_v57  ;;  %vm1348_vm0 = vcmask 1043456  }
  0x9d   : > { %539 = vst [vmem:[#allocation2 + $0x2c] sm:$0x11] %v538_v59  ;;  %v597_v59 = vsel %vm596_vm4, %v581_v28, %v583_v31 }
  0x9f   : > { %v514_v60 = vpop.f32.mrf.mxu2 }
  0xa0   : > { %v533_v63 = vpack.c.bf16 %v514_v60, %v514_v60  ;;  %v598_v60 = vsel %vm596_vm4, %v583_v31, %v585_v33 }
  0xa2   : > { %v543_v0 = vsel %vm10115_vm2, %v533_v63, %v542_v62 }
  0xa3   : > { %544 = vst [vmem:[#allocation2 + $0x34] sm:$0x1] %v543_v0  ;;  %v10205_v39 = vpop.permute.xlu0 %740 }
  0xa4   : > { %v549_v1 = vld [vmem:[#allocation2 + $0x28] sm:$0x11] }
  0xa5   : > { %v568_v2 = vunpack.c.l.b16 %v549_v1  ;;  %v569_v3 = vunpack.c.h.b16 %v549_v1  ;;  %v906_v15 = vld [vmem:[#allocation2 + $0x2c] sm:$0x11] }
  0xa6   : > { %v923_v17 = vunpack.c.h.b16 %v906_v15  ;;  %v922_v21 = vunpack.c.l.b16 %v906_v15 }
  0xa7   : > { %v576_v4 = vpack.c.b16 %v568_v2, %v568_v2  ;;  %v577_v5 = vpack.c.b16 %v569_v3, %v569_v3 }
  0xa8   : > { %v10151_v19 = vpack.c.b16 %v923_v17, %v923_v17  ;;  %v10162_v25 = vpack.c.b16 %v922_v21, %v922_v21 }
  0xa9   : > { %669 = vrot.lane.b32.xlu2 %v576_v4, %s9884_s25  ;;  %588 = vrot.lane.b32.xlu0 %v576_v4, %s9883_s23 }
  0xaa   : > { %750 = vrot.lane.b32.xlu1 %v577_v5, %s9885_s26  ;;  %v550_v6 = vld [vmem:[#allocation2 + $0x30] sm:$0x11] }
  0xab   : > { %v570_v7 = vunpack.c.l.b16 %v550_v6  ;;  %v571_v10 = vunpack.c.h.b16 %v550_v6  ;;  %v907_v16 = vld [vmem:[#allocation2 + $0x34] sm:$0x1] }
  0xac   : > { %v924_v18 = vunpack.c.l.b16 %v907_v16 }
  0xad   : > { %v578_v9 = vpack.c.b16 %v570_v7, %v570_v7  ;;  %v579_v11 = vpack.c.b16 %v571_v10, %v571_v10  ;;  %v678_v7 = vsel %vm677_vm6, %v10171_v30, %v664_v36 }
  0xae   : > { %v10153_v20 = vpack.c.b16 %v924_v18, %v924_v18 }
  0xb1   : > { %592 = vrot.lane.b32.xlu2 %v578_v9, %s9883_s23  ;;  %590 = vrot.lane.b32.xlu0 %v577_v5, %s9883_s23 }
  0xb2   : > { %673 = vrot.lane.b32.xlu1 %v578_v9, %s9884_s25 }
  0xb9   : > { %594 = vrot.lane.b32.xlu2 %v579_v11, %s9883_s23  ;;  %671 = vrot.lane.b32.xlu0 %v577_v5, %s9884_s25 }
  0xba   : > { %744 = vrot.lane.b32.xlu1 %v10072_v46, %s9885_s26 }
  0xc1   : > { %746 = vrot.lane.b32.xlu2 %v10078_v48, %s9885_s26  ;;  %748 = vrot.lane.b32.xlu0 %v576_v4, %s9885_s26 }
  0xc2   : > { %832 = vrot.lane.b32.xlu1 %v577_v5, %s9886_s24 }
  0xc9   : > { %826 = vrot.lane.b32.xlu2 %v10072_v46, %s9886_s24  ;;  %830 = vrot.lane.b32.xlu0 %v576_v4, %s9886_s24 }
  0xca   : > { %824 = vrot.lane.b32.xlu1 %v10070_v45, %s9886_s24  ;;  %v599_v45 = vsel %vm596_vm4, %v585_v33, %v587_v34 }
  0xd1   : > { %675 = vrot.lane.b32.xlu2 %v579_v11, %s9884_s25  ;;  %822 = vrot.lane.b32.xlu0 %v10059_v37, %s9886_s24  ;;  %v10193_v37 = vpop.permute.xlu1 %665 }
  0xd2   : > { %828 = vrot.lane.b32.xlu1 %v10078_v48, %s9886_s24  ;;  %v8173_v48 = vld [vmem:[%s14290_s4 + $0x4] sm:$0xf]  ;;  %v680_v12 = vsel %vm677_vm6, %v10193_v37, %v10183_v32  ;;  %v8196_v32 = vld [vmem:[%s14290_s4 + $0x8] sm:$0xf] }
  0xd9   : > { %752 = vrot.lane.b32.xlu2 %v578_v9, %s9885_s26  ;;  %754 = vrot.lane.b32.xlu0 %v579_v11, %s9885_s26  ;;  %v10207_v40 = vpop.permute.xlu1 %742 }
  0xda   : > { %994 = vrot.lane.b32.xlu1 %v10145_v14, %s9887_s27  ;;  %v757_v22 = vsel %vm606_vm5, %v10205_v39, %v10207_v40 }
  0xe1   : > { %834 = vrot.lane.b32.xlu2 %v578_v9, %s9886_s24  ;;  %998 = vrot.lane.b32.xlu0 %v10151_v19, %s9887_s27  ;;  %v679_v9 = vsel %vm677_vm6, %v664_v36, %v10193_v37  ;;  %v944_v37 = vand.u32 %v10153_v20, %v10213_v42 }
  0xe2   : > { %1000 = vrot.lane.b32.xlu1 %v10153_v20, %s9887_s27 }
  0xe9   : > { %996 = vrot.lane.b32.xlu2 %v10162_v25, %s9887_s27  ;;  %836 = vrot.lane.b32.xlu0 %v579_v11, %s9886_s24 }
  0xea   : > { %1066 = vrot.lane.b32.xlu1 %v10160_v24, %s9888_s28 }
  0xf1   : > { %990 = vrot.lane.b32.xlu2 %v10160_v24, %s9887_s27  ;;  %992 = vrot.lane.b32.xlu0 %v10169_v29, %s9887_s27 }
  0xf2   : > { %1070 = vrot.lane.b32.xlu1 %v10145_v14, %s9888_s28 }
  0xf9   : > { %1072 = vrot.lane.b32.xlu2 %v10162_v25, %s9888_s28  ;;  %1074 = vrot.lane.b32.xlu0 %v10151_v19, %s9888_s28 }
  0xfa   : > { %1152 = vrot.lane.b32.xlu1 %v10153_v20, %s9889_s29 }
 0x101   : > { %1068 = vrot.lane.b32.xlu2 %v10169_v29, %s9888_s28  ;;  %1150 = vrot.lane.b32.xlu0 %v10151_v19, %s9889_s29 }
 0x102   : > { %1146 = vrot.lane.b32.xlu1 %v10145_v14, %s9889_s29 }
 0x103   : > { %v670_v35 = vpop.permute.xlu2 %669 }
 0x109   : > { %1148 = vrot.lane.b32.xlu2 %v10162_v25, %s9889_s29  ;;  %1076 = vrot.lane.b32.xlu0 %v10153_v20, %s9888_s28 }
 0x10a   : > { %1218 = vrot.lane.b32.xlu1 %v10160_v24, %s9890_s30 }
 0x10b   : > { %v593_v38 = vpop.permute.xlu2 %592 }
 0x111   : > { %1142 = vrot.lane.b32.xlu2 %v10160_v24, %s9889_s29  ;;  %1144 = vrot.lane.b32.xlu0 %v10169_v29, %s9889_s29 }
 0x112   : > { %1222 = vrot.lane.b32.xlu1 %v10145_v14, %s9890_s30 }
 0x113   : > { %v595_v41 = vpop.permute.xlu2 %594 }
 0x114   : > { %v602_v43 = vsel %vm596_vm4, %v593_v38, %v595_v41 }
 0x115   : > { %v620_v44 = vand.u32 %v10213_v42, %v602_v43 }
 0x117   : > { %654 = vmatpush.bf16.msrb.mxu1 %v620_v44 }
 0x119   : > { %1224 = vrot.lane.b32.xlu2 %v10162_v25, %s9890_s30  ;;  %1226 = vrot.lane.b32.xlu0 %v10151_v19, %s9890_s30 }
 0x11b   : > { %v10222_v46 = vpop.permute.xlu2 %746  ;;  %v589_v47 = vpop.permute.xlu0 %588  ;;  %655 = vmatpush.bf16.msrb.mxu1 %v599_v45 }
 0x11c   : > { %v751_v49 = vpop.permute.xlu1 %750 }
 0x11e   : > { %8192 = vmatmul.msk.bf16.vlgmr.msrb.gmra.mxu1 %vm606_vm5, %v8173_v48 }
 0x121   : > { %1228 = vrot.lane.b32.xlu0 %v10153_v20, %s9890_s30  ;;  %1220 = vrot.lane.b32.xlu2 %v10169_v29, %s9890_s30  ;;  %v8200_v20 = vld [vmem:[%s14290_s4 + $0xc] sm:$0xf] }
 0x123   : > { %v10232_v50 = vpop.permute.xlu2 %826  ;;  %v591_v52 = vpop.permute.xlu0 %590 }
 0x124   : > { %v674_v53 = vpop.permute.xlu1 %673  ;;  %v600_v55 = vsel %vm596_vm4, %v589_v47, %v591_v52  ;;  %v601_v56 = vsel %vm596_vm4, %v591_v52, %v593_v38 }
 0x125   : > { %v614_v57 = vand.u32 %v10213_v42, %v600_v55  ;;  %v617_v58 = vand.u32 %v10213_v42, %v601_v56 }
 0x127   : > { %628 = vmatpush.bf16.msra.mxu3 %v614_v57  ;;  %641 = vmatpush.bf16.msrb.mxu0 %v617_v58 }
 0x12b   : > { %v676_v62 = vpop.permute.xlu2 %675  ;;  %v672_v63 = vpop.permute.xlu0 %671  ;;  %629 = vmatpush.bf16.msra.mxu3 %v597_v59  ;;  %642 = vmatpush.bf16.msrb.mxu0 %v598_v60 }
 0x12c   : > { %v683_v0 = vsel %vm677_vm6, %v674_v53, %v676_v62  ;;  %v10241_v1 = vpop.permute.xlu1 %744  ;;  %v681_v2 = vsel %vm677_vm6, %v670_v35, %v672_v63  ;;  %v682_v3 = vsel %vm677_vm6, %v672_v63, %v674_v53 }
 0x12d   : > { %v697_v4 = vand.u32 %v683_v0, %v10213_v42  ;;  %v691_v5 = vand.u32 %v681_v2, %v10213_v42  ;;  %v694_v6 = vand.u32 %v682_v3, %v10213_v42  ;;  %v758_v23 = vsel %vm606_vm5, %v10207_v40, %v10241_v1 }
 0x12e   : > { %8190 = vmatmul.msk.bf16.vlgmr.msra.gmra.mxu3 %vm606_vm5, %v8173_v48  ;;  %8191 = vmatmul.msk.bf16.vlgmr.msrb.gmra.mxu0 %vm606_vm5, %v8173_v48  ;;  %v941_v40 = vand.u32 %v10151_v19, %v10213_v42 }
 0x12f   : > { %705 = vmatpush.bf16.msrb.mxu2 %v691_v5  ;;  %718 = vmatpush.bf16.msrb.mxu3 %v694_v6 }
 0x130   : > { %731 = vmatpush.bf16.msra.mxu0 %v697_v4 }
 0x133   : > { %v753_v10 = vpop.permute.xlu2 %752  ;;  %706 = vmatpush.bf16.msrb.mxu2 %v678_v7  ;;  %v749_v11 = vpop.permute.xlu0 %748  ;;  %719 = vmatpush.bf16.msrb.mxu3 %v679_v9 }
 0x134   : > { %v761_v15 = vsel %vm606_vm5, %v751_v49, %v753_v10  ;;  %v760_v16 = vsel %vm606_vm5, %v749_v11, %v751_v49  ;;  %732 = vmatpush.bf16.msra.mxu0 %v680_v12  ;;  %v833_v17 = vpop.permute.xlu1 %832 }
 0x135   : > { %v773_v18 = vand.u32 %v761_v15, %v10213_v42  ;;  %v770_v21 = vand.u32 %v760_v16, %v10213_v42 }
 0x136   : > { %8193 = vmatmul.msk.bf16.vlgmr.msrb.gmra.mxu2 %vm606_vm5, %v551_v13 }
 0x137   : > { %784 = vmatpush.bf16.msra.mxu1 %v770_v21  ;;  %797 = vmatpush.bf16.msra.mxu2 %v773_v18 }
 0x13b   : > { %v835_v26 = vpop.permute.xlu2 %834  ;;  %v831_v27 = vpop.permute.xlu0 %830  ;;  %785 = vmatpush.bf16.msra.mxu1 %v757_v22  ;;  %798 = vmatpush.bf16.msra.mxu2 %v758_v23 }
 0x13c   : > { %v843_v28 = vsel %vm838_vm7, %v833_v17, %v835_v26  ;;  %v842_v30 = vsel %vm838_vm7, %v831_v27, %v833_v17  ;;  %v825_v31 = vpop.permute.xlu1 %824  ;;  %v8224_v17 = vld [vmem:[%s14290_s4 + $0x18] sm:$0xf] }
 0x13d   : > { %v855_v33 = vand.u32 %v843_v28, %v10213_v42  ;;  %v852_v34 = vand.u32 %v842_v30, %v10213_v42  ;;  %v840_v36 = vsel %vm838_vm7, %v825_v31, %v10232_v50 }
 0x13e   : > { %8194 = vmatmul.msk.bf16.vlgmr.msrb.gmra.mxu3 %vm606_vm5, %v551_v13  ;;  %8195 = vmatmul.msk.bf16.vlgmr.msra.gmra.mxu0 %vm606_vm5, %v551_v13 }
 0x13f   : > { %8197 = vmatmul.msk.bf16.vlgmr.msra.gmra.mxu1 %vm606_vm5, %v8196_v32  ;;  %866 = vmatpush.bf16.msrb.mxu0 %v852_v34 }
 0x140   : > { %879 = vmatpush.bf16.msrb.mxu1 %v855_v33 }
 0x143   : > { %v823_v35 = vpop.permute.xlu0 %822  ;;  %v997_v41 = vpop.permute.xlu2 %996 }
 0x144   : > { %880 = vmatpush.bf16.msrb.mxu1 %v840_v36  ;;  %v829_v38 = vpop.permute.xlu1 %828  ;;  %v839_v39 = vsel %vm838_vm7, %v823_v35, %v825_v31  ;;  %v8228_v35 = vld [vmem:[%s14290_s4 + $0x1c] sm:$0xf] }
 0x145   : > { %867 = vmatpush.bf16.msrb.mxu0 %v839_v39  ;;  %v841_v62 = vsel %vm838_vm7, %v10232_v50, %v829_v38  ;;  %v8220_v50 = vld [vmem:[%s14290_s4 + $0x14] sm:$0xf] }
 0x146   : > { %8198 = vmatmul.msk.bf16.vlgmr.msra.gmra.mxu2 %vm606_vm5, %v8196_v32 }
 0x148   : > { %978 = vmatpush.bf16.msra.mxu1 %v944_v37 }
 0x149   : > { %965 = vmatpush.bf16.msra.mxu0 %v941_v40 }
 0x14b   : > { %v755_v43 = vpop.permute.xlu0 %754  ;;  %v991_v47 = vpop.permute.xlu2 %990 }
 0x14c   : > { %979 = vmatpush.bf16.msra.mxu1 %v10145_v14  ;;  %v762_v44 = vsel %vm606_vm5, %v753_v10, %v755_v43  ;;  %v995_v45 = vpop.permute.xlu1 %994  ;;  %v759_v14 = vsel %vm606_vm5, %v10241_v1, %v10222_v46 }
 0x14d   : > { %966 = vmatpush.bf16.msra.mxu0 %v10169_v29  ;;  %v776_v19 = vand.u32 %v762_v44, %v10213_v42  ;;  %v938_v29 = vand.u32 %v10162_v25, %v10213_v42  ;;  %v8204_v25 = vld [vmem:[%s14290_s4 + $0x10] sm:$0xf] }
 0x14e   : > { %8201 = vmatmul.msk.bf16.vlgmr.msrb.gmra.mxu0 %vm606_vm5, %v8200_v20 }
 0x14f   : > { %8202 = vmatmul.msk.bf16.vlgmr.msrb.gmra.mxu1 %vm606_vm5, %v8200_v20  ;;  %810 = vmatpush.bf16.msra.mxu3 %v776_v19 }
 0x153   : > { %v999_v48 = vpop.permute.xlu0 %998  ;;  %811 = vmatpush.bf16.msra.mxu3 %v759_v14  ;;  %v1073_v57 = vpop.permute.xlu2 %1072 }
 0x154   : > { %v1001_v49 = vpop.permute.xlu1 %1000  ;;  %v1005_v59 = vsel %vm1002_vm8, %v997_v41, %v999_v48 }
 0x155   : > { %v1006_v52 = vsel %vm1002_vm8, %v999_v48, %v1001_v49  ;;  %v1020_v53 = vand.u32 %v1001_v49, %v10213_v42  ;;  %v1292_v48 = vld [vmem:[%s14291_s5] sm:$0xff] }
 0x156   : > { %8199 = vmatmul.msk.bf16.vlgmr.msra.gmra.mxu3 %vm606_vm5, %v8196_v32  ;;  %v1017_v55 = vand.u32 %v1006_v52, %v10213_v42  ;;  %1295 = vperm.xlu2 %9871, %v1292_v48   ;;  %v426_v48 = vld [vmem:[%s14289_s3] sm:$0x7] }
 0x157   : > { %952 = vmatpush.bf16.msrb.mxu3 %v938_v29  ;;  %1054 = vmatpush.bf16.msrb.mxu0 %v1020_v53  ;;  %vm427_vm13 = vcmp.ne.f32.partialorder %v426_v48, 0.0 }
 0x15b   : > { %953 = vmatpush.bf16.msrb.mxu3 %v10160_v24  ;;  %v837_v46 = vpop.permute.xlu0 %836  ;;  %1055 = vmatpush.bf16.msrb.mxu0 %v995_v45  ;;  %v1014_v24 = vand.u32 %v1005_v59, %v10213_v42  ;;  %v1069_v1 = vpop.permute.xlu2 %1068 }
 0x15c   : > { %v844_v56 = vsel %vm838_vm7, %v835_v26, %v837_v46  ;;  %v1067_v60 = vpop.permute.xlu1 %1066 }
 0x15d   : > { %v858_v58 = vand.u32 %v844_v56, %v10213_v42  ;;  %v1079_v7 = vsel %vm1078_vm9, %v1067_v60, %v1069_v1 }
 0x15e   : > { %8218 = vmatmul.msk.bf16.vlgmr.msra.gmra.mxu0 %vm606_vm5, %v8204_v25 }
 0x15f   : > { %1041 = vmatpush.bf16.msra.mxu3 %v1017_v55  ;;  %892 = vmatpush.bf16.msrb.mxu2 %v858_v58 }
 0x160   : > { %8219 = vmatmul.msk.bf16.vlgmr.msra.gmra.mxu1 %vm606_vm5, %v8204_v25 }
 0x163   : > { %v993_v63 = vpop.permute.xlu0 %992  ;;  %893 = vmatpush.bf16.msrb.mxu2 %v841_v62  ;;  %v1149_v9 = vpop.permute.xlu2 %1148 }
 0x164   : > { %v1004_v0 = vsel %vm1002_vm8, %v993_v63, %v995_v45  ;;  %v1003_v2 = vsel %vm1002_vm8, %v991_v47, %v993_v63  ;;  %v1071_v3 = vpop.permute.xlu1 %1070 }
 0x165   : > { %1042 = vmatpush.bf16.msra.mxu3 %v1004_v0  ;;  %v1080_v30 = vsel %vm1078_vm9, %v1069_v1, %v1071_v3 }
 0x166   : > { %8203 = vmatmul.msk.bf16.vlgmr.msrb.gmra.mxu2 %vm606_vm5, %v8200_v20  ;;  %8217 = vmatmul.msk.bf16.vlgmr.msrb.gmra.mxu3 %vm606_vm5, %v8204_v25  ;;  %v8232_v20 = vld [vmem:[%s14290_s4 + $0x20] sm:$0xf] }
 0x167   : > { %1028 = vmatpush.bf16.msra.mxu2 %v1014_v24 }
 0x16b   : > { %1029 = vmatpush.bf16.msra.mxu2 %v1003_v2  ;;  %v1075_v4 = vpop.permute.xlu0 %1074  ;;  %v1143_v18 = vpop.permute.xlu2 %1142 }
 0x16c   : > { %v1081_v5 = vsel %vm1078_vm9, %v1073_v57, %v1075_v4  ;;  %v1153_v10 = vpop.permute.xlu1 %1152 }
 0x16d   : > { %v1090_v6 = vand.u32 %v1081_v5, %v10213_v42  ;;  %v1172_v28 = vand.u32 %v1153_v10, %v10213_v42 }
 0x16e   : > { %8223 = vmatmul.msk.bf16.vlgmr.msrb.gmra.mxu0 %vm606_vm5, %v8220_v50 }
 0x16f   : > { %1104 = vmatpush.bf16.msrb.mxu1 %v1090_v6 }
 0x173   : > { %v1151_v11 = vpop.permute.xlu0 %1150  ;;  %1105 = vmatpush.bf16.msrb.mxu1 %v1079_v7  ;;  %v1225_v34 = vpop.permute.xlu2 %1224 }
 0x174   : > { %v1157_v12 = vsel %vm14301_vm10, %v1149_v9, %v1151_v11  ;;  %v1158_v13 = vsel %vm14301_vm10, %v1151_v11, %v1153_v10  ;;  %v1147_v27 = vpop.permute.xlu1 %1146 }
 0x175   : > { %v1166_v15 = vand.u32 %v1157_v12, %v10213_v42  ;;  %v1169_v16 = vand.u32 %v1158_v13, %v10213_v42 }
 0x176   : > { %8221 = vmatmul.msk.bf16.vlgmr.msra.gmra.mxu2 %vm606_vm5, %v8220_v50  ;;  %8222 = vmatmul.msk.bf16.vlgmr.msra.gmra.mxu3 %vm606_vm5, %v8220_v50 }
 0x177   : > { %1180 = vmatpush.bf16.msra.mxu0 %v1166_v15  ;;  %1193 = vmatpush.bf16.msra.mxu1 %v1169_v16 }
 0x178   : > { %8225 = vmatmul.msk.bf16.vlgmr.msrb.gmra.mxu1 %vm606_vm5, %v8224_v17 }
 0x17b   : > { %v1077_v21 = vpop.permute.xlu0 %1076  ;;  %v1221_v40 = vpop.permute.xlu2 %1220 }
 0x17c   : > { %v1082_v22 = vsel %vm1078_vm9, %v1075_v4, %v1077_v21  ;;  %v1096_v23 = vand.u32 %v1077_v21, %v10213_v42  ;;  %v1219_v39 = vpop.permute.xlu1 %1218 }
 0x17d   : > { %v1093_v26 = vand.u32 %v1082_v22, %v10213_v42  ;;  %v1231_v41 = vsel %vm14300_vm11, %v1219_v39, %v1221_v40 }
 0x17e   : > { %1130 = vmatpush.bf16.msrb.mxu3 %v1096_v23 }
 0x17f   : > { %1117 = vmatpush.bf16.msrb.mxu2 %v1093_v26 }
 0x182   : > { %1131 = vmatpush.bf16.msrb.mxu3 %v1071_v3 }
 0x183   : > { %v1145_v31 = vpop.permute.xlu0 %1144  ;;  %1118 = vmatpush.bf16.msrb.mxu2 %v1080_v30 }
 0x184   : > { %v1155_v32 = vsel %vm14301_vm10, %v1143_v18, %v1145_v31  ;;  %v1156_v33 = vsel %vm14301_vm10, %v1145_v31, %v1147_v27  ;;  %v1223_v14 = vpop.permute.xlu1 %1222 }
 0x185   : > { %1181 = vmatpush.bf16.msra.mxu0 %v1155_v32  ;;  %1194 = vmatpush.bf16.msra.mxu1 %v1156_v33  ;;  %v1232_v29 = vsel %vm14300_vm11, %v1221_v40, %v1223_v14 }
 0x186   : > { %8226 = vmatmul.msk.bf16.vlgmr.msrb.gmra.mxu2 %vm606_vm5, %v8224_v17  ;;  %8227 = vmatmul.msk.bf16.vlgmr.msrb.gmra.mxu3 %vm606_vm5, %v8224_v17 }
 0x187   : > { %1206 = vmatpush.bf16.msra.mxu2 %v1172_v28 }
 0x188   : > { %8229 = vmatmul.msk.bf16.vlgmr.msra.gmra.mxu0 %vm606_vm5, %v8228_v35  ;;  %8230 = vmatmul.msk.bf16.vlgmr.msra.gmra.mxu1 %vm606_vm5, %v8228_v35 }
 0x18b   : > { %1207 = vmatpush.bf16.msra.mxu2 %v1147_v27  ;;  %v1227_v36 = vpop.permute.xlu0 %1226 }
 0x18c   : > { %v1233_v37 = vsel %vm14300_vm11, %v1225_v34, %v1227_v36 }
 0x18d   : > { %v1242_v38 = vand.u32 %v1233_v37, %v10213_v42 }
 0x18f   : > { %1256 = vmatpush.bf16.msra.mxu3 %v1242_v38 }
 0x193   : > { %v1229_v43 = vpop.permute.xlu0 %1228  ;;  %1257 = vmatpush.bf16.msra.mxu3 %v1231_v41 }
 0x194   : > { %v1234_v44 = vsel %vm14300_vm11, %v1227_v36, %v1229_v43  ;;  %v1248_v45 = vand.u32 %v1229_v43, %v10213_v42 }
 0x195   : > { %v1245_v19 = vand.u32 %v1234_v44, %v10213_v42 }
 0x196   : > { %8231 = vmatmul.msk.bf16.vlgmr.msra.gmra.mxu2 %vm606_vm5, %v8228_v35  ;;  %8233 = vmatmul.msk.bf16.vlgmr.msra.gmra.mxu3 %vm606_vm5, %v8232_v20 }
 0x197   : > { %1282 = vmatpush.bf16.msrb.mxu1 %v1248_v45  ;;  %1269 = vmatpush.bf16.msrb.mxu0 %v1245_v19 }
 0x19b   : > { %1283 = vmatpush.bf16.msrb.mxu1 %v1223_v14  ;;  %1270 = vmatpush.bf16.msrb.mxu0 %v1232_v29  ;;  %v657_v47 = vpop.f32.mrf.mxu1 }
 0x19e   : > { %8234 = vmatmul.msk.bf16.vlgmr.msrb.gmra.mxu0 %vm606_vm5, %v8232_v20  ;;  %8235 = vmatmul.msk.bf16.vlgmr.msrb.gmra.mxu1 %vm606_vm5, %v8232_v20 }
 0x1a3   : > { %v659_v49 = vpop.f32.mrf.mxu1 }
 0x1ab   : > { %v644_v52 = vpop.f32.mrf.mxu0 }
 0x1b1   : > { %v631_v53 = vpop.f32.mrf.mxu3 }
 0x1b3   : > { %v646_v55 = vpop.f32.mrf.mxu0 }
 0x1b9   : > { %v633_v46 = vpop.f32.mrf.mxu3  ;;  %v708_v25 = vpop.f32.mrf.mxu2 }
 0x1ba   : > { %v709_v56 = vadd.f32 %v708_v25, %v631_v53 }
 0x1bb   : > { %v734_v57 = vpop.f32.mrf.mxu0 }
 0x1bc   : > { %v735_v58 = vadd.f32 %v734_v57, %v657_v47  ;;  %v787_v59 = vpop.f32.mrf.mxu1  ;;  %v1296_v57 = vpop.permute.xlu2 %1295 }
 0x1bd   : > { %v817_v60 = vadd.f32 %v787_v59, %v709_v56  ;;  %v1304_v56 = vsel %vm427_vm13, 1, %v9882_v8 }
 0x1c1   : > { %v710_v24 = vpop.f32.mrf.mxu2  ;;  %v721_v62 = vpop.f32.mrf.mxu3 }
 0x1c2   : > { %v722_v63 = vadd.f32 %v721_v62, %v644_v52 }
 0x1c3   : > { %v736_v0 = vpop.f32.mrf.mxu0 }
 0x1c4   : > { %v789_v1 = vpop.f32.mrf.mxu1 }
 0x1c5   : > { %v1306_v1 = vperm.slane %v1304_v56, 1 }
 0x1c7   : > { %vm10379_vm1 = vcmp.eq.s32.totalorder %v1306_v1, 1 }
 0x1c9   : > { %v800_v2 = vpop.f32.mrf.mxu2  ;;  %v723_v3 = vpop.f32.mrf.mxu3 }
 0x1ca   : > { %v818_v4 = vadd.f32 %v800_v2, %v722_v63  ;;  %v1305_v63 = vperm.slane %v1304_v56, 0  ;;  %v1307_v3 = vperm.slane %v1304_v56, 2 }
 0x1cb   : > { %v869_v50 = vpop.f32.mrf.mxu0 }
 0x1cc   : > { %v899_v5 = vadd.f32 %v869_v50, %v817_v60  ;;  %v882_v6 = vpop.f32.mrf.mxu1  ;;  %vm10375_vm14 = vcmp.eq.s32.totalorder %v1305_v63, 1  ;;  %vm10383_vm13 = vcmp.eq.s32.totalorder %v1307_v3, 1 }
 0x1cd   : > { %v900_v7 = vadd.f32 %v882_v6, %v818_v4 }
 0x1d1   : > { %v802_v9 = vpop.f32.mrf.mxu2 }
 0x1d3   : > { %v871_v10 = vpop.f32.mrf.mxu0 }
 0x1d4   : > { %v884_v11 = vpop.f32.mrf.mxu1  ;;  %v2866_v10 = vld [vmem:[#allocation2 + $0x2c] sm:$0x11] }
 0x1d9   : > { %v813_v12 = vpop.f32.mrf.mxu3 }
 0x1da   : > { %v819_v40 = vadd.f32 %v813_v12, %v735_v58 }
 0x1db   : > { %v968_v13 = vpop.f32.mrf.mxu0 }
 0x1dc   : > { %v986_v14 = vadd.f32 %v968_v13, %v900_v7 }
 0x1dd   : > { %v981_v15 = vpop.f32.mrf.mxu1 }
 0x1e1   : > { %v815_v16 = vpop.f32.mrf.mxu3 }
 0x1e3   : > { %v970_v17 = vpop.f32.mrf.mxu0 }
 0x1e5   : > { %v983_v18 = vpop.f32.mrf.mxu1 }
 0x1e9   : > { %v895_v21 = vpop.f32.mrf.mxu2  ;;  %v955_v22 = vpop.f32.mrf.mxu3 }
 0x1ea   : > { %v901_v43 = vadd.f32 %v895_v21, %v819_v40  ;;  %v985_v44 = vadd.f32 %v955_v22, %v899_v5 }
 0x1eb   : > { %v1057_v23 = vpop.f32.mrf.mxu0 }
 0x1ec   : > { %v987_v29 = vadd.f32 %v981_v15, %v901_v43 }
 0x1ee   : > { %v1063_v52 = vadd.f32 %v1057_v23, %v987_v29 }
 0x1f1   : > { %v897_v26 = vpop.f32.mrf.mxu2  ;;  %v957_v27 = vpop.f32.mrf.mxu3 }
 0x1f3   : > { %v1059_v28 = vpop.f32.mrf.mxu0 }
 0x1f5   : > { %v1107_v30 = vpop.f32.mrf.mxu1 }
 0x1f9   : > { %v1031_v31 = vpop.f32.mrf.mxu2  ;;  %v1044_v32 = vpop.f32.mrf.mxu3 }
 0x1fa   : > { %v1061_v47 = vadd.f32 %v1031_v31, %v985_v44  ;;  %v1062_v49 = vadd.f32 %v1044_v32, %v986_v14 }
 0x1fc   : > { %v1137_v53 = vadd.f32 %v1107_v30, %v1061_v47 }
 0x1fd   : > { %v1109_v33 = vpop.f32.mrf.mxu1 }
 0x201   : > { %v1033_v34 = vpop.f32.mrf.mxu2  ;;  %v1046_v35 = vpop.f32.mrf.mxu3 }
 0x205   : > { %v1183_v36 = vpop.f32.mrf.mxu0  ;;  %v1196_v37 = vpop.f32.mrf.mxu1 }
 0x206   : > { %v1213_v46 = vadd.f32 %v1183_v36, %v1137_v53 }
 0x209   : > { %v1120_v38 = vpop.f32.mrf.mxu2  ;;  %v1133_v39 = vpop.f32.mrf.mxu3 }
 0x20a   : > { %v1138_v55 = vadd.f32 %v1120_v38, %v1062_v49  ;;  %v1139_v25 = vadd.f32 %v1133_v39, %v1063_v52 }
 0x20c   : > { %v1214_v60 = vadd.f32 %v1196_v37, %v1138_v55 }
 0x20d   : > { %v1185_v41 = vpop.f32.mrf.mxu0  ;;  %v1198_v20 = vpop.f32.mrf.mxu1 }
 0x211   : > { %v1122_v45 = vpop.f32.mrf.mxu2  ;;  %v1135_v19 = vpop.f32.mrf.mxu3 }
 0x219   : > { %v1209_v58 = vpop.f32.mrf.mxu2  ;;  %v1259_v59 = vpop.f32.mrf.mxu3 }
 0x21a   : > { %v1215_v24 = vadd.f32 %v1209_v58, %v1139_v25  ;;  %v1289_v62 = vadd.f32 %v1259_v59, %v1213_v46  ;;  %v8236_v46 = vld [vmem:[%s14292_s6 + $0x4] sm:$0xf] }
 0x21b   : > { %v1272_v0 = vpop.f32.mrf.mxu0  ;;  %v1285_v2 = vpop.f32.mrf.mxu1 }
 0x21c   : > { %v1298_v4 = vadd.f32 %v1296_v57, %v1289_v62  ;;  %v1290_v50 = vadd.f32 %v1272_v0, %v1214_v60  ;;  %v1291_v5 = vadd.f32 %v1285_v2, %v1215_v24 }
 0x21e   : > { %v1301_v6 = vmax.f32 %v1298_v4, 0.0  ;;  %v1299_v7 = vadd.f32 %v1296_v57, %v1290_v50  ;;  %v1300_v9 = vadd.f32 %v1296_v57, %v1291_v5  ;;  %v1320_v50 = vld [vmem:[%s14292_s6] sm:$0xf] }
 0x220   : > { %v1302_v12 = vmax.f32 %v1299_v7, 0.0  ;;  %v1303_v13 = vmax.f32 %v1300_v9, 0.0  ;;  %v1311_v17 = vsel %vm10375_vm14, %v1301_v6, 0.0 }
 0x221   : > { %v1211_v15 = vpop.f32.mrf.mxu2  ;;  %v1261_v16 = vpop.f32.mrf.mxu3 }
 0x222   : > { %v1312_v18 = vsel %vm10379_vm1, %v1302_v12, 0.0  ;;  %v1313_v21 = vsel %vm10383_vm13, %v1303_v13, 0.0 }
 0x223   : > { %v1314_v22 = vpack.c.bf16 %v1312_v18, %v1311_v17  ;;  %v1315_v23 = vpack.c.bf16 %v1313_v21, %v1313_v21  ;;  %v1274_v26 = vpop.f32.mrf.mxu0  ;;  %v1287_v27 = vpop.f32.mrf.mxu1  ;;  %v8243_v18 = vld [vmem:[%s14292_s6 + $0x8] sm:$0xf] }
 0x225   : > { %1316 = vst [vmem:[#allocation3 + $0x4] sm:$0xff] %v1314_v22  ;;  %v1600_v40 = vunpack.c.h.b16 %v1314_v22  ;;  %v1599_v44 = vunpack.c.l.b16 %v1314_v22 }
 0x226   : > { %1317 = vst.msk [vmem:[#allocation3 + $0xc] sm:$0xf] %vm14299_vm3, %v1315_v23  ;;  %vm1344_vm3 = vcmask 64512  }
 0x227   : > { %v10409_v43 = vpack.c.b16 %v1600_v40, %v1600_v40  ;;  %v10418_v45 = vpack.c.b16 %v1599_v44, %v1599_v44 }
 0x229   : > { %v1609_v21 = vsel %vm1348_vm0, %v10418_v45, 0 }
 0x22c   : > { %v1318_v28 = vld [vmem:[#allocation3] sm:$0xff] }
 0x22d   : > { %v1319_v30 = vld [vmem:[#allocation3 + $0x8] sm:$0xff]  ;;  %v1326_v31 = vunpack.c.h.b16 %v1318_v28  ;;  %v1325_v32 = vunpack.c.l.b16 %v1318_v28 }
 0x22e   : > { %v1327_v33 = vunpack.c.l.b16 %v1319_v30  ;;  %v1328_v37 = vunpack.c.h.b16 %v1319_v30  ;;  %v1594_v39 = vld [vmem:[#allocation3 + $0xc] sm:$0xf] }
 0x22f   : > { %v1330_v34 = vpack.c.b16 %v1326_v31, %v1326_v31  ;;  %v1329_v35 = vpack.c.b16 %v1325_v32, %v1325_v32  ;;  %v1601_v41 = vunpack.c.l.b16 %v1594_v39  ;;  %v1612_v31 = vsel %vm1348_vm0, %v10409_v43, 0 }
 0x230   : > { %v1331_v36 = vpack.c.b16 %v1327_v33, %v1327_v33  ;;  %v1332_v38 = vpack.c.b16 %v1328_v37, %v1328_v37  ;;  %v8247_v33 = vld [vmem:[%s14292_s6 + $0xc] sm:$0xf] }
 0x231   : > { %1335 = vrot.lane.b32.xlu1 %v1330_v34, %s9883_s23  ;;  %1333 = vrot.lane.b32.xlu0 %v1329_v35, %s9883_s23  ;;  %v10411_v20 = vpack.c.b16 %v1601_v41, %v1601_v41 }
 0x232   : > { %1337 = vrot.lane.b32.xlu2 %v1331_v36, %s9883_s23 }
 0x233   : > { %v1615_v32 = vsel %vm1348_vm0, %v10411_v20, 0 }
 0x239   : > { %1399 = vrot.lane.b32.xlu1 %v1330_v34, %s9884_s25  ;;  %1339 = vrot.lane.b32.xlu0 %v1332_v38, %s9883_s23 }
 0x23a   : > { %1401 = vrot.lane.b32.xlu2 %v1331_v36, %s9884_s25 }
 0x241   : > { %1397 = vrot.lane.b32.xlu1 %v1329_v35, %s9884_s25  ;;  %1403 = vrot.lane.b32.xlu0 %v1332_v38, %s9884_s25 }
 0x242   : > { %1461 = vrot.lane.b32.xlu2 %v1329_v35, %s9885_s26 }
 0x249   : > { %1465 = vrot.lane.b32.xlu1 %v1331_v36, %s9885_s26  ;;  %1463 = vrot.lane.b32.xlu0 %v1330_v34, %s9885_s26 }
 0x24a   : > { %1467 = vrot.lane.b32.xlu2 %v1332_v38, %s9885_s26 }
 0x251   : > { %1530 = vrot.lane.b32.xlu1 %v1330_v34, %s9886_s24  ;;  %1528 = vrot.lane.b32.xlu0 %v1329_v35, %s9886_s24 }
 0x252   : > { %1532 = vrot.lane.b32.xlu2 %v1331_v36, %s9886_s24 }
 0x259   : > { %1663 = vrot.lane.b32.xlu1 %v10409_v43, %s9887_s27  ;;  %1534 = vrot.lane.b32.xlu0 %v1332_v38, %s9886_s24 }
 0x25a   : > { %1665 = vrot.lane.b32.xlu2 %v10411_v20, %s9887_s27 }
 0x261   : > { %1725 = vrot.lane.b32.xlu1 %v10418_v45, %s9888_s28  ;;  %1661 = vrot.lane.b32.xlu0 %v10418_v45, %s9887_s27 }
 0x262   : > { %1727 = vrot.lane.b32.xlu2 %v10409_v43, %s9888_s28 }
 0x269   : > { %1791 = vrot.lane.b32.xlu1 %v10409_v43, %s9889_s29  ;;  %1789 = vrot.lane.b32.xlu0 %v10418_v45, %s9889_s29 }
 0x26a   : > { %1729 = vrot.lane.b32.xlu2 %v10411_v20, %s9888_s28 }
 0x271   : > { %1853 = vrot.lane.b32.xlu1 %v10418_v45, %s9890_s30  ;;  %1793 = vrot.lane.b32.xlu0 %v10411_v20, %s9889_s29 }
 0x272   : > { %1855 = vrot.lane.b32.xlu2 %v10409_v43, %s9890_s30 }
 0x279   : > { %1857 = vrot.lane.b32.xlu0 %v10411_v20, %s9890_s30 }
 0x28c   : > { %v1338_v19 = vpop.permute.xlu2 %1337 }
 0x294   : > { %v1402_v14 = vpop.permute.xlu2 %1401 }
 0x29c   : > { %v1462_v29 = vpop.permute.xlu2 %1461 }
 0x2a3   : > { %v1336_v47 = vpop.permute.xlu1 %1335  ;;  %v1334_v48 = vpop.permute.xlu0 %1333 }
 0x2a4   : > { %v1342_v49 = vsel %vm596_vm4, %v1336_v47, %v1338_v19  ;;  %v1341_v52 = vsel %vm596_vm4, %v1334_v48, %v1336_v47  ;;  %v1468_v25 = vpop.permute.xlu2 %1467  ;;  %v8251_v48 = vld [vmem:[%s14292_s6 + $0x10] sm:$0xf] }
 0x2a5   : > { %v1353_v53 = vsel %vm1348_vm0, %v1342_v49, 0  ;;  %v1350_v55 = vsel %vm1348_vm0, %v1341_v52, 0 }
 0x2a6   : > { %1365 = vmatpush.bf16.msrb.mxu2 %v1350_v55  ;;  %1378 = vmatpush.bf16.msrb.mxu3 %v1353_v53 }
 0x2a9   : > { %8237 = vmatmul.msk.bf16.vlgmr.msrb.gmra.mxu2 %vm1344_vm3, %v8236_v46  ;;  %8238 = vmatmul.msk.bf16.vlgmr.msrb.gmra.mxu3 %vm1344_vm3, %v8236_v46 }
 0x2ab   : > { %v1400_v56 = vpop.permute.xlu1 %1399  ;;  %v1340_v57 = vpop.permute.xlu0 %1339 }
 0x2ac   : > { %v1406_v58 = vsel %vm677_vm6, %v1400_v56, %v1402_v14  ;;  %v1343_v59 = vsel %vm596_vm4, %v1338_v19, %v1340_v57  ;;  %v1533_v0 = vpop.permute.xlu2 %1532 }
 0x2ad   : > { %v1415_v60 = vsel %vm1348_vm0, %v1406_v58, 0  ;;  %v1356_v24 = vsel %vm1348_vm0, %v1343_v59, 0 }
 0x2ae   : > { %1391 = vmatpush.bf16.msra.mxu0 %v1356_v24  ;;  %1440 = vmatpush.bf16.msra.mxu2 %v1415_v60  ;;  %v8255_v24 = vld [vmem:[%s14292_s6 + $0x14] sm:$0xf] }
 0x2b1   : > { %8239 = vmatmul.msk.bf16.vlgmr.msra.gmra.mxu0 %vm1344_vm3, %v8236_v46 }
 0x2b3   : > { %v1398_v62 = vpop.permute.xlu1 %1397  ;;  %v1404_v63 = vpop.permute.xlu0 %1403 }
 0x2b4   : > { %v1405_v1 = vsel %vm677_vm6, %v1398_v62, %v1400_v56  ;;  %v1407_v2 = vsel %vm677_vm6, %v1402_v14, %v1404_v63  ;;  %v1666_v17 = vpop.permute.xlu2 %1665 }
 0x2b5   : > { %v1412_v3 = vsel %vm1348_vm0, %v1405_v1, 0  ;;  %v1418_v4 = vsel %vm1348_vm0, %v1407_v2, 0  ;;  %v1679_v35 = vsel %vm1348_vm0, %v1666_v17, 0 }
 0x2b6   : > { %1427 = vmatpush.bf16.msra.mxu1 %v1412_v3  ;;  %1453 = vmatpush.bf16.msra.mxu3 %v1418_v4  ;;  %v8259_v4 = vld [vmem:[%s14292_s6 + $0x18] sm:$0xf] }
 0x2b9   : > { %8240 = vmatmul.msk.bf16.vlgmr.msra.gmra.mxu1 %vm1344_vm3, %v1320_v50  ;;  %8241 = vmatmul.msk.bf16.vlgmr.msra.gmra.mxu2 %vm1344_vm3, %v1320_v50 }
 0x2ba   : > { %8242 = vmatmul.msk.bf16.vlgmr.msra.gmra.mxu3 %vm1344_vm3, %v1320_v50 }
 0x2bb   : > { %v1466_v5 = vpop.permute.xlu1 %1465  ;;  %v1464_v6 = vpop.permute.xlu0 %1463 }
 0x2bc   : > { %v1471_v7 = vsel %vm606_vm5, %v1466_v5, %v1468_v25  ;;  %v1469_v9 = vsel %vm606_vm5, %v1462_v29, %v1464_v6  ;;  %v1470_v12 = vsel %vm606_vm5, %v1464_v6, %v1466_v5  ;;  %v1728_v34 = vpop.permute.xlu2 %1727  ;;  %v1915_v5 = vld [vmem:[%s14293_s7] sm:$0xff]  ;;  %v8263_v6 = vld [vmem:[%s14292_s6 + $0x1c] sm:$0xf] }
 0x2bd   : > { %v1482_v13 = vsel %vm1348_vm0, %v1471_v7, 0  ;;  %v1476_v15 = vsel %vm1348_vm0, %v1469_v9, 0  ;;  %v1479_v16 = vsel %vm1348_vm0, %v1470_v12, 0  ;;  %1918 = vperm.xlu1 %9872, %v1915_v5   ;;  %v8267_v7 = vld [vmem:[%s14292_s6 + $0x20] sm:$0xf] }
 0x2be   : > { %1491 = vmatpush.bf16.msrb.mxu0 %v1476_v15  ;;  %1504 = vmatpush.bf16.msrb.mxu1 %v1479_v16 }
 0x2bf   : > { %1517 = vmatpush.bf16.msrb.mxu2 %v1482_v13 }
 0x2c1   : > { %8244 = vmatmul.msk.bf16.vlgmr.msrb.gmra.mxu0 %vm1344_vm3, %v8243_v18 }
 0x2c3   : > { %1624 = vmatpush.bf16.msra.mxu2 %v1609_v21  ;;  %v1531_v22 = vpop.permute.xlu1 %1530  ;;  %v1529_v23 = vpop.permute.xlu0 %1528 }
 0x2c4   : > { %v1537_v26 = vsel %vm838_vm7, %v1531_v22, %v1533_v0  ;;  %v1536_v27 = vsel %vm838_vm7, %v1529_v23, %v1531_v22  ;;  %v1730_v43 = vpop.permute.xlu2 %1729 }
 0x2c5   : > { %v1546_v28 = vsel %vm1348_vm0, %v1537_v26, 0  ;;  %v1543_v30 = vsel %vm1348_vm0, %v1536_v27, 0  ;;  %v1732_v47 = vsel %vm1078_vm9, %v1728_v34, %v1730_v43  ;;  %v1743_v52 = vsel %vm1348_vm0, %v1730_v43, 0 }
 0x2c6   : > { %1558 = vmatpush.bf16.msrb.mxu3 %v1543_v30  ;;  %1571 = vmatpush.bf16.msra.mxu0 %v1546_v28  ;;  %v1740_v49 = vsel %vm1348_vm0, %v1732_v47, 0 }
 0x2c9   : > { %8245 = vmatmul.msk.bf16.vlgmr.msrb.gmra.mxu1 %vm1344_vm3, %v8243_v18  ;;  %8246 = vmatmul.msk.bf16.vlgmr.msrb.gmra.mxu2 %vm1344_vm3, %v8243_v18 }
 0x2ca   : > { %1637 = vmatpush.bf16.msra.mxu3 %v1612_v31  ;;  %1650 = vmatpush.bf16.msrb.mxu0 %v1615_v32 }
 0x2cb   : > { %8248 = vmatmul.msk.bf16.vlgmr.msrb.gmra.mxu3 %vm1344_vm3, %v8247_v33  ;;  %v1664_v36 = vpop.permute.xlu1 %1663  ;;  %v1535_v37 = vpop.permute.xlu0 %1534 }
 0x2cc   : > { %v1668_v38 = vsel %vm1002_vm8, %v1664_v36, %v1666_v17  ;;  %v1538_v39 = vsel %vm838_vm7, %v1533_v0, %v1535_v37  ;;  %v1856_v60 = vpop.permute.xlu2 %1855 }
 0x2cd   : > { %v1676_v40 = vsel %vm1348_vm0, %v1668_v38, 0  ;;  %v1549_v41 = vsel %vm1348_vm0, %v1538_v39, 0 }
 0x2ce   : > { %1714 = vmatpush.bf16.msrb.mxu3 %v1679_v35  ;;  %1584 = vmatpush.bf16.msra.mxu1 %v1549_v41 }
 0x2cf   : > { %1701 = vmatpush.bf16.msrb.mxu2 %v1676_v40 }
 0x2d1   : > { %8249 = vmatmul.msk.bf16.vlgmr.msra.gmra.mxu0 %vm1344_vm3, %v8247_v33 }
 0x2d3   : > { %v1726_v20 = vpop.permute.xlu1 %1725  ;;  %v1662_v44 = vpop.permute.xlu0 %1661 }
 0x2d4   : > { %v1731_v45 = vsel %vm1078_vm9, %v1726_v20, %v1728_v34  ;;  %v1667_v19 = vsel %vm1002_vm8, %v1662_v44, %v1664_v36 }
 0x2d5   : > { %v1737_v14 = vsel %vm1348_vm0, %v1731_v45, 0  ;;  %v1673_v29 = vsel %vm1348_vm0, %v1667_v19, 0 }
 0x2d6   : > { %1688 = vmatpush.bf16.msrb.mxu1 %v1673_v29  ;;  %1752 = vmatpush.bf16.msra.mxu0 %v1737_v14 }
 0x2d9   : > { %8250 = vmatmul.msk.bf16.vlgmr.msra.gmra.mxu1 %vm1344_vm3, %v8247_v33  ;;  %8252 = vmatmul.msk.bf16.vlgmr.msra.gmra.mxu2 %vm1344_vm3, %v8251_v48 }
 0x2da   : > { %1765 = vmatpush.bf16.msra.mxu1 %v1740_v49  ;;  %1778 = vmatpush.bf16.msra.mxu2 %v1743_v52 }
 0x2db   : > { %8253 = vmatmul.msk.bf16.vlgmr.msra.gmra.mxu3 %vm1344_vm3, %v8251_v48  ;;  %v1792_v53 = vpop.permute.xlu1 %1791  ;;  %v1790_v55 = vpop.permute.xlu0 %1789 }
 0x2dc   : > { %v1795_v46 = vsel %vm14301_vm10, %v1790_v55, %v1792_v53 }
 0x2dd   : > { %v1801_v25 = vsel %vm1348_vm0, %v1795_v46, 0 }
 0x2de   : > { %1816 = vmatpush.bf16.msra.mxu3 %v1801_v25 }
 0x2e1   : > { %8254 = vmatmul.msk.bf16.vlgmr.msrb.gmra.mxu0 %vm1344_vm3, %v8251_v48 }
 0x2e3   : > { %v1794_v56 = vpop.permute.xlu0 %1793  ;;  %v1854_v57 = vpop.permute.xlu1 %1853 }
 0x2e4   : > { %v1796_v58 = vsel %vm14301_vm10, %v1792_v53, %v1794_v56  ;;  %v1859_v62 = vsel %vm14300_vm11, %v1854_v57, %v1856_v60  ;;  %v1807_v63 = vsel %vm1348_vm0, %v1794_v56, 0 }
 0x2e5   : > { %v1804_v59 = vsel %vm1348_vm0, %v1796_v58, 0  ;;  %v1865_v0 = vsel %vm1348_vm0, %v1859_v62, 0 }
 0x2e6   : > { %1829 = vmatpush.bf16.msrb.mxu0 %v1804_v59 }
 0x2e9   : > { %8256 = vmatmul.msk.bf16.vlgmr.msrb.gmra.mxu1 %vm1344_vm3, %v8255_v24  ;;  %8257 = vmatmul.msk.bf16.vlgmr.msrb.gmra.mxu2 %vm1344_vm3, %v8255_v24 }
 0x2ea   : > { %1842 = vmatpush.bf16.msrb.mxu1 %v1807_v63  ;;  %1880 = vmatpush.bf16.msrb.mxu2 %v1865_v0 }
 0x2eb   : > { %8258 = vmatmul.msk.bf16.vlgmr.msrb.gmra.mxu3 %vm1344_vm3, %v8255_v24  ;;  %v1858_v1 = vpop.permute.xlu0 %1857 }
 0x2ec   : > { %v1860_v2 = vsel %vm14300_vm11, %v1856_v60, %v1858_v1  ;;  %v1871_v50 = vsel %vm1348_vm0, %v1858_v1, 0  ;;  %vm14336_vm11 = vcmask 551936  }
 0x2ed   : > { %v1868_v3 = vsel %vm1348_vm0, %v1860_v2, 0 }
 0x2ee   : > { %1893 = vmatpush.bf16.msrb.mxu3 %v1868_v3 }
 0x2f1   : > { %8260 = vmatmul.msk.bf16.vlgmr.msra.gmra.mxu0 %vm1344_vm3, %v8259_v4 }
 0x2f2   : > { %1906 = vmatpush.bf16.msra.mxu0 %v1871_v50 }
 0x2f9   : > { %8261 = vmatmul.msk.bf16.vlgmr.msra.gmra.mxu1 %vm1344_vm3, %v8259_v4  ;;  %8262 = vmatmul.msk.bf16.vlgmr.msra.gmra.mxu2 %vm1344_vm3, %v8259_v4 }
 0x2fb   : > { %8264 = vmatmul.msk.bf16.vlgmr.msra.gmra.mxu3 %vm1344_vm3, %v8263_v6 }
 0x301   : > { %8265 = vmatmul.msk.bf16.vlgmr.msrb.gmra.mxu0 %vm1344_vm3, %v8263_v6 }
 0x309   : > { %8266 = vmatmul.msk.bf16.vlgmr.msrb.gmra.mxu1 %vm1344_vm3, %v8263_v6  ;;  %8268 = vmatmul.msk.bf16.vlgmr.msrb.gmra.mxu2 %vm1344_vm3, %v8267_v7 }
 0x30b   : > { %8269 = vmatmul.msk.bf16.vlgmr.msrb.gmra.mxu3 %vm1344_vm3, %v8267_v7 }
 0x311   : > { %8270 = vmatmul.msk.bf16.vlgmr.msra.gmra.mxu0 %vm1344_vm3, %v8267_v7 }
 0x32c   : > { %v1367_v9 = vpop.f32.mrf.mxu2  ;;  %v1380_v12 = vpop.f32.mrf.mxu3 }
 0x32e   : > { %v1393_v13 = vpop.f32.mrf.mxu0 }
 0x334   : > { %v1369_v15 = vpop.f32.mrf.mxu2  ;;  %v1382_v16 = vpop.f32.mrf.mxu3 }
 0x336   : > { %v1395_v17 = vpop.f32.mrf.mxu0  ;;  %v1429_v18 = vpop.f32.mrf.mxu1 }
 0x337   : > { %v1430_v21 = vadd.f32 %v1429_v18, %v1367_v9 }
 0x33c   : > { %v1442_v22 = vpop.f32.mrf.mxu2 }
 0x33d   : > { %v1443_v23 = vadd.f32 %v1442_v22, %v1380_v12  ;;  %v1455_v26 = vpop.f32.mrf.mxu3 }
 0x33e   : > { %v1456_v27 = vadd.f32 %v1455_v26, %v1393_v13  ;;  %v1431_v28 = vpop.f32.mrf.mxu1  ;;  %v1493_v30 = vpop.f32.mrf.mxu0 }
 0x33f   : > { %v1523_v31 = vadd.f32 %v1493_v30, %v1430_v21 }
 0x344   : > { %v1444_v32 = vpop.f32.mrf.mxu2 }
 0x345   : > { %v1457_v33 = vpop.f32.mrf.mxu3 }
 0x346   : > { %v1495_v34 = vpop.f32.mrf.mxu0  ;;  %v1506_v35 = vpop.f32.mrf.mxu1 }
 0x347   : > { %v1524_v63 = vadd.f32 %v1506_v35, %v1443_v23 }
 0x34c   : > { %v1519_v36 = vpop.f32.mrf.mxu2 }
 0x34d   : > { %v1525_v0 = vadd.f32 %v1519_v36, %v1456_v27  ;;  %v1919_v27 = vpop.permute.xlu1 %1918 }
 0x34e   : > { %v1560_v37 = vpop.f32.mrf.mxu3  ;;  %v1508_v38 = vpop.f32.mrf.mxu1 }
 0x34f   : > { %v1573_v39 = vpop.f32.mrf.mxu0  ;;  %v1590_v1 = vadd.f32 %v1560_v37, %v1523_v31 }
 0x350   : > { %v1591_v2 = vadd.f32 %v1573_v39, %v1524_v63 }
 0x354   : > { %v1521_v40 = vpop.f32.mrf.mxu2 }
 0x356   : > { %v1562_v41 = vpop.f32.mrf.mxu3  ;;  %v1586_v20 = vpop.f32.mrf.mxu1 }
 0x357   : > { %v1575_v43 = vpop.f32.mrf.mxu0  ;;  %v1592_v4 = vadd.f32 %v1586_v20, %v1525_v0 }
 0x35c   : > { %v1626_v44 = vpop.f32.mrf.mxu2 }
 0x35d   : > { %v1656_v50 = vadd.f32 %v1626_v44, %v1590_v1 }
 0x35e   : > { %v1639_v45 = vpop.f32.mrf.mxu3  ;;  %v1588_v19 = vpop.f32.mrf.mxu1 }
 0x35f   : > { %v1652_v14 = vpop.f32.mrf.mxu0  ;;  %v1657_v6 = vadd.f32 %v1639_v45, %v1591_v2 }
 0x360   : > { %v1658_v12 = vadd.f32 %v1652_v14, %v1592_v4 }
 0x364   : > { %v1628_v29 = vpop.f32.mrf.mxu2 }
 0x366   : > { %v1641_v47 = vpop.f32.mrf.mxu3  ;;  %v1690_v49 = vpop.f32.mrf.mxu1 }
 0x367   : > { %v1654_v48 = vpop.f32.mrf.mxu0  ;;  %v1720_v13 = vadd.f32 %v1690_v49, %v1656_v50 }
 0x36c   : > { %v1703_v52 = vpop.f32.mrf.mxu2 }
 0x36d   : > { %v1721_v15 = vadd.f32 %v1703_v52, %v1657_v6 }
 0x36e   : > { %v1716_v53 = vpop.f32.mrf.mxu3  ;;  %v1692_v55 = vpop.f32.mrf.mxu1 }
 0x36f   : > { %v1754_v46 = vpop.f32.mrf.mxu0  ;;  %v1722_v16 = vadd.f32 %v1716_v53, %v1658_v12 }
 0x370   : > { %v1784_v17 = vadd.f32 %v1754_v46, %v1720_v13 }
 0x374   : > { %v1705_v25 = vpop.f32.mrf.mxu2 }
 0x376   : > { %v1718_v56 = vpop.f32.mrf.mxu3  ;;  %v1767_v58 = vpop.f32.mrf.mxu1 }
 0x377   : > { %v1756_v57 = vpop.f32.mrf.mxu0  ;;  %v1785_v18 = vadd.f32 %v1767_v58, %v1721_v15 }
 0x37c   : > { %v1780_v59 = vpop.f32.mrf.mxu2 }
 0x37d   : > { %v1786_v21 = vadd.f32 %v1780_v59, %v1722_v16 }
 0x37e   : > { %v1818_v60 = vpop.f32.mrf.mxu3  ;;  %v1769_v24 = vpop.f32.mrf.mxu1 }
 0x37f   : > { %v1831_v62 = vpop.f32.mrf.mxu0  ;;  %v1848_v22 = vadd.f32 %v1818_v60, %v1784_v17  ;;  %v9687_v17 = vld [vmem:[%s14294_s8 + $0xc] sm:$0xff] }
 0x380   : > { %v1849_v26 = vadd.f32 %v1831_v62, %v1785_v18  ;;  %v9686_v18 = vld [vmem:[%s14294_s8] sm:$0xff] }
 0x384   : > { %v1782_v3 = vpop.f32.mrf.mxu2 }
 0x386   : > { %v1820_v5 = vpop.f32.mrf.mxu3  ;;  %v1844_v9 = vpop.f32.mrf.mxu1 }
 0x387   : > { %v1833_v7 = vpop.f32.mrf.mxu0  ;;  %v1850_v28 = vadd.f32 %v1844_v9, %v1786_v21 }
 0x38c   : > { %v1882_v23 = vpop.f32.mrf.mxu2 }
 0x38d   : > { %v1912_v30 = vadd.f32 %v1882_v23, %v1848_v22 }
 0x38e   : > { %v1895_v31 = vpop.f32.mrf.mxu3  ;;  %v1846_v33 = vpop.f32.mrf.mxu1 }
 0x38f   : > { %v1913_v32 = vadd.f32 %v1895_v31, %v1849_v26  ;;  %v1908_v34 = vpop.f32.mrf.mxu0  ;;  %v1921_v35 = vadd.f32 %v1919_v27, %v1912_v30  ;;  %v1938_v33 = vld [vmem:[%s14294_s8 + $0x8] sm:$0x1] }
 0x390   : > { %v1914_v36 = vadd.f32 %v1908_v34, %v1850_v28 }
 0x391   : > { %v1922_v37 = vadd.f32 %v1919_v27, %v1913_v32  ;;  %v1924_v38 = vmax.f32 %v1921_v35, 0.0  ;;  %v8273_v32 = vld [vmem:[%s14294_s8 + $0x14] sm:$0x1]  ;;  %v2046_v35 = vunpack.c.l.b16 %v1938_v33 }
 0x392   : > { %v1923_v39 = vadd.f32 %v1919_v27, %v1914_v36  ;;  %v1948_v34 = vunpack.c.l.b16 %v8273_v32 }
 0x393   : > { %v1925_v40 = vmax.f32 %v1922_v37, 0.0  ;;  %v1927_v41 = vsel %vm10375_vm14, %v1924_v38, 0.0 }
 0x394   : > { %v1926_v43 = vmax.f32 %v1923_v39, 0.0  ;;  %v1884_v44 = vpop.f32.mrf.mxu2 }
 0x395   : > { %v1928_v20 = vsel %vm10379_vm1, %v1925_v40, 0.0 }
 0x396   : > { %v1930_v45 = vpack.c.bf16 %v1928_v20, %v1927_v41  ;;  %v1929_v19 = vsel %vm10383_vm13, %v1926_v43, 0.0  ;;  %v1897_v14 = vpop.f32.mrf.mxu3  ;;  %v1950_v43 = vpack.c.b16 %v1948_v34, %v1948_v34  ;;  %v2048_v20 = vpack.c.b16 %v2046_v35, %v2046_v35 }
 0x397   : > { %v1931_v29 = vpack.c.bf16 %v1929_v19, %v1929_v19  ;;  %v1910_v47 = vpop.f32.mrf.mxu0 }
 0x398   : > { %1932 = vst [vmem:[#allocation3 + $0x4] sm:$0xff] %v1930_v45  ;;  %v2348_v60 = vunpack.c.h.b16 %v1930_v45  ;;  %v2347_v0 = vunpack.c.l.b16 %v1930_v45 }
 0x399   : > { %1933 = vst.msk [vmem:[#allocation3 + $0xc] sm:$0xf] %vm14336_vm11, %v1931_v29  ;;  %vm14337_vm11 = vcmask 891904  }
 0x39a   : > { %v10569_v62 = vpack.c.b16 %v2348_v60, %v2348_v60  ;;  %v10578_v1 = vpack.c.b16 %v2347_v0, %v2347_v0  ;;  %v8296_v0 = vld [vmem:[%s14294_s8 + $0x20] sm:$0x1] }
 0x39f   : > { %v1934_v48 = vld [vmem:[#allocation3] sm:$0xff] }
 0x3a0   : > { %v1954_v49 = vunpack.c.h.b16 %v1934_v48  ;;  %v1953_v52 = vunpack.c.l.b16 %v1934_v48  ;;  %v1935_v53 = vld [vmem:[#allocation3 + $0x8] sm:$0xff] }
 0x3a1   : > { %v1955_v55 = vunpack.c.l.b16 %v1935_v53  ;;  %v1956_v57 = vunpack.c.h.b16 %v1935_v53  ;;  %v2332_v59 = vld [vmem:[#allocation3 + $0xc] sm:$0xf] }
 0x3a2   : > { %v1958_v46 = vpack.c.b16 %v1954_v49, %v1954_v49  ;;  %v1957_v25 = vpack.c.b16 %v1953_v52, %v1953_v52  ;;  %v2349_v24 = vunpack.c.l.b16 %v2332_v59  ;;  %v2363_v59 = vsel %vm1348_vm0, %v10569_v62, 0 }
 0x3a3   : > { %v1959_v56 = vpack.c.b16 %v1955_v55, %v1955_v55  ;;  %v1960_v58 = vpack.c.b16 %v1956_v57, %v1956_v57 }
 0x3a4   : > { %1963 = vrot.lane.b32.xlu2 %v1958_v46, %s9883_s23  ;;  %1961 = vrot.lane.b32.xlu1 %v1957_v25, %s9883_s23  ;;  %v10571_v63 = vpack.c.b16 %v2349_v24, %v2349_v24 }
 0x3a5   : > { %1965 = vrot.lane.b32.xlu0 %v1959_v56, %s9883_s23 }
 0x3a6   : > { %v2366_v24 = vsel %vm1348_vm0, %v10571_v63, 0 }
 0x3ac   : > { %2055 = vrot.lane.b32.xlu1 %v1960_v58, %s9884_s25  ;;  %1967 = vrot.lane.b32.xlu2 %v1960_v58, %s9883_s23 }
 0x3ad   : > { %2053 = vrot.lane.b32.xlu0 %v1959_v56, %s9884_s25 }
 0x3b4   : > { %2143 = vrot.lane.b32.xlu1 %v1958_v46, %s9885_s26  ;;  %2051 = vrot.lane.b32.xlu2 %v1958_v46, %s9884_s25 }
 0x3b5   : > { %2141 = vrot.lane.b32.xlu0 %v1957_v25, %s9885_s26 }
 0x3bc   : > { %2244 = vrot.lane.b32.xlu1 %v1958_v46, %s9886_s24  ;;  %2049 = vrot.lane.b32.xlu2 %v1957_v25, %s9884_s25 }
 0x3bd   : > { %2242 = vrot.lane.b32.xlu0 %v1957_v25, %s9886_s24 }
 0x3c4   : > { %2246 = vrot.lane.b32.xlu1 %v1959_v56, %s9886_s24  ;;  %2145 = vrot.lane.b32.xlu2 %v1959_v56, %s9885_s26  ;;  %v9688_v56 = vld [vmem:[%s14294_s8 + $0x18] sm:$0xff] }
 0x3c5   : > { %2147 = vrot.lane.b32.xlu0 %v1960_v58, %s9885_s26 }
 0x3cc   : > { %2445 = vrot.lane.b32.xlu1 %v10569_v62, %s9887_s27  ;;  %2248 = vrot.lane.b32.xlu2 %v1960_v58, %s9886_s24  ;;  %v2360_v58 = vsel %vm1348_vm0, %v10578_v1, 0 }
 0x3cd   : > { %2447 = vrot.lane.b32.xlu0 %v10571_v63, %s9887_s27 }
 0x3d4   : > { %2443 = vrot.lane.b32.xlu1 %v10578_v1, %s9887_s27  ;;  %2541 = vrot.lane.b32.xlu2 %v10578_v1, %s9888_s28 }
 0x3d5   : > { %2543 = vrot.lane.b32.xlu0 %v10569_v62, %s9888_s28 }
 0x3dc   : > { %2545 = vrot.lane.b32.xlu1 %v10571_v63, %s9888_s28  ;;  %2639 = vrot.lane.b32.xlu2 %v10578_v1, %s9889_s29 }
 0x3dd   : > { %2641 = vrot.lane.b32.xlu0 %v10569_v62, %s9889_s29 }
 0x3e4   : > { %2741 = vrot.lane.b32.xlu1 %v10571_v63, %s9890_s30  ;;  %2643 = vrot.lane.b32.xlu2 %v10571_v63, %s9889_s29 }
 0x3e5   : > { %2739 = vrot.lane.b32.xlu0 %v10569_v62, %s9890_s30 }
 0x3ec   : > { %2737 = vrot.lane.b32.xlu2 %v10578_v1, %s9890_s30 }
 0x3fe   : > { %v1964_v2 = vpop.permute.xlu2 %1963 }
 0x406   : > { %v1968_v3 = vpop.permute.xlu2 %1967 }
 0x40e   : > { %v2052_v4 = vpop.permute.xlu2 %2051 }
 0x416   : > { %v1962_v50 = vpop.permute.xlu1 %1961  ;;  %v2050_v5 = vpop.permute.xlu2 %2049 }
 0x417   : > { %v1969_v6 = vsel %vm596_vm4, %v1962_v50, %v1964_v2  ;;  %v2057_v7 = vsel %vm677_vm6, %v2050_v5, %v2052_v4  ;;  %v1966_v9 = vpop.permute.xlu0 %1965 }
 0x418   : > { %v1979_v12 = vsel %vm1348_vm0, %v1969_v6, 0  ;;  %v2067_v13 = vsel %vm1348_vm0, %v2057_v7, 0  ;;  %v1970_v15 = vsel %vm596_vm4, %v1964_v2, %v1966_v9  ;;  %v1971_v16 = vsel %vm596_vm4, %v1966_v9, %v1968_v3  ;;  %v9689_v6 = vld [vmem:[%s14294_s8 + $0x24] sm:$0xff] }
 0x419   : > { %v1982_v21 = vsel %vm1348_vm0, %v1970_v15, 0  ;;  %v1985_v22 = vsel %vm1348_vm0, %v1971_v16, 0  ;;  %1994 = vmatpush.bf16.msra.mxu1 %v1979_v12  ;;  %2082 = vmatpush.bf16.msrb.mxu0 %v2067_v13  ;;  %v2138_v2 = vunpack.c.l.b16 %v8296_v0 }
 0x41a   : > { %2012 = vmatpush.bf16.msra.mxu2 %v1982_v21  ;;  %2030 = vmatpush.bf16.msra.mxu3 %v1985_v22  ;;  %v8309_v21 = vld [vmem:[%s14294_s8 + $0x2c] sm:$0x1] }
 0x41b   : > { %v2140_v50 = vpack.c.b16 %v2138_v2, %v2138_v2  ;;  %v2239_v22 = vunpack.c.l.b16 %v8309_v21 }
 0x41c   : > { %8278 = vmatmul.msk.bf16.vlgmr.msra.gmra.mxu1 %vm1344_vm3, %v9687_v17  ;;  %8288 = vmatmul.msk.bf16.vlgmr.msrb.gmra.mxu0 %vm1344_vm3, %v9686_v18 }
 0x41d   : > { %8280 = vmatmul.msk.bf16.vlgmr.msra.gmra.mxu2 %vm1344_vm3, %v9687_v17  ;;  %8282 = vmatmul.msk.bf16.vlgmr.msra.gmra.mxu3 %vm1344_vm3, %v9687_v17 }
 0x41e   : > { %v2056_v26 = vpop.permute.xlu1 %2055  ;;  %v2146_v36 = vpop.permute.xlu2 %2145 }
 0x41f   : > { %v2054_v23 = vpop.permute.xlu0 %2053 }
 0x420   : > { %v2058_v27 = vsel %vm677_vm6, %v2052_v4, %v2054_v23  ;;  %v2059_v28 = vsel %vm677_vm6, %v2054_v23, %v2056_v26  ;;  %v2241_v26 = vpack.c.b16 %v2239_v22, %v2239_v22 }
 0x421   : > { %v2070_v30 = vsel %vm1348_vm0, %v2058_v27, 0  ;;  %v2073_v31 = vsel %vm1348_vm0, %v2059_v28, 0  ;;  %v9690_v28 = vld [vmem:[%s14294_s8 + $0x30] sm:$0xff] }
 0x422   : > { %2100 = vmatpush.bf16.msrb.mxu1 %v2070_v30  ;;  %2118 = vmatpush.bf16.msrb.mxu2 %v2073_v31  ;;  %v9691_v30 = vld [vmem:[%s14294_s8 + $0x3c] sm:$0xff] }
 0x426   : > { %v2144_v37 = vpop.permute.xlu1 %2143  ;;  %v2249_v47 = vpop.permute.xlu2 %2248 }
 0x427   : > { %v2150_v38 = vsel %vm606_vm5, %v2144_v37, %v2146_v36  ;;  %v2142_v39 = vpop.permute.xlu0 %2141 }
 0x428   : > { %v2162_v40 = vsel %vm1348_vm0, %v2150_v38, 0  ;;  %v2149_v41 = vsel %vm606_vm5, %v2142_v39, %v2144_v37  ;;  %v8322_v38 = vld [vmem:[%s14294_s8 + $0x38] sm:$0x1]  ;;  %v8335_v39 = vld [vmem:[%s14294_s8 + $0x44] sm:$0x1] }
 0x429   : > { %v2159_v44 = vsel %vm1348_vm0, %v2149_v41, 0  ;;  %2192 = vmatpush.bf16.msra.mxu0 %v2162_v40  ;;  %v2342_v40 = vunpack.c.l.b16 %v8322_v38  ;;  %v2440_v41 = vunpack.c.l.b16 %v8335_v39 }
 0x42a   : > { %2174 = vmatpush.bf16.msrb.mxu3 %v2159_v44 }
 0x42c   : > { %8279 = vmatmul.msk.bf16.gmra.mxu1 %vm1344_vm3, %v1950_v43  ;;  %8289 = vmatmul.msk.bf16.gmra.mxu0 %vm1344_vm3, %v2048_v20 }
 0x42d   : > { %8281 = vmatmul.msk.bf16.gmra.mxu2 %vm1344_vm3, %v1950_v43  ;;  %8283 = vmatmul.msk.bf16.gmra.mxu3 %vm1344_vm3, %v1950_v43  ;;  %v2344_v43 = vpack.c.b16 %v2342_v40, %v2342_v40 }
 0x42e   : > { %v2245_v45 = vpop.permute.xlu1 %2244  ;;  %v2542_v12 = vpop.permute.xlu2 %2541 }
 0x42f   : > { %v2243_v19 = vpop.permute.xlu0 %2242 }
 0x430   : > { %v2250_v14 = vsel %vm838_vm7, %v2243_v19, %v2245_v45  ;;  %v9692_v19 = vld [vmem:[%s14294_s8 + $0x48] sm:$0xff] }
 0x431   : > { %v2260_v29 = vsel %vm1348_vm0, %v2250_v14, 0 }
 0x432   : > { %2275 = vmatpush.bf16.msra.mxu2 %v2260_v29 }
 0x436   : > { %v2247_v48 = vpop.permute.xlu1 %2246  ;;  %v2640_v23 = vpop.permute.xlu2 %2639 }
 0x437   : > { %v2251_v49 = vsel %vm838_vm7, %v2245_v45, %v2247_v48  ;;  %v2252_v52 = vsel %vm838_vm7, %v2247_v48, %v2249_v47  ;;  %v2148_v53 = vpop.permute.xlu0 %2147 }
 0x438   : > { %v2263_v55 = vsel %vm1348_vm0, %v2251_v49, 0  ;;  %v2266_v46 = vsel %vm1348_vm0, %v2252_v52, 0  ;;  %v2151_v25 = vsel %vm606_vm5, %v2146_v36, %v2148_v53 }
 0x439   : > { %v2165_v57 = vsel %vm1348_vm0, %v2151_v25, 0  ;;  %2293 = vmatpush.bf16.msra.mxu3 %v2263_v55  ;;  %2311 = vmatpush.bf16.msrb.mxu0 %v2266_v46 }
 0x43a   : > { %2210 = vmatpush.bf16.msra.mxu1 %v2165_v57 }
 0x43c   : > { %8290 = vmatmul.msk.bf16.vlgmr.msrb.gmra.mxu1 %vm1344_vm3, %v9686_v18  ;;  %8303 = vmatmul.msk.bf16.vlgmr.msra.gmra.mxu0 %vm1344_vm3, %v9688_v56 }
 0x43d   : > { %8292 = vmatmul.msk.bf16.vlgmr.msrb.gmra.mxu2 %vm1344_vm3, %v9686_v18  ;;  %8301 = vmatmul.msk.bf16.vlgmr.msrb.gmra.mxu3 %vm1344_vm3, %v9688_v56 }
 0x43e   : > { %2375 = vmatpush.bf16.msrb.mxu1 %v2360_v58  ;;  %v2446_v60 = vpop.permute.xlu1 %2445  ;;  %2393 = vmatpush.bf16.msrb.mxu2 %v2363_v59  ;;  %v2644_v31 = vpop.permute.xlu2 %2643  ;;  %v8348_v59 = vld [vmem:[%s14294_s8 + $0x50] sm:$0x1] }
 0x43f   : > { %2411 = vmatpush.bf16.msrb.mxu3 %v2366_v24  ;;  %v2448_v62 = vpop.permute.xlu0 %2447  ;;  %v2660_v34 = vsel %vm1348_vm0, %v2644_v31, 0 }
 0x440   : > { %v2450_v7 = vsel %vm1002_vm8, %v2446_v60, %v2448_v62  ;;  %v2464_v17 = vsel %vm1348_vm0, %v2448_v62, 0 }
 0x441   : > { %v2461_v15 = vsel %vm1348_vm0, %v2450_v7, 0 }
 0x446   : > { %v2444_v1 = vpop.permute.xlu1 %2443  ;;  %v2738_v45 = vpop.permute.xlu2 %2737 }
 0x447   : > { %v2449_v3 = vsel %vm1002_vm8, %v2444_v1, %v2446_v60  ;;  %v2544_v5 = vpop.permute.xlu0 %2543  ;;  %v2538_v60 = vunpack.c.l.b16 %v8348_v59 }
 0x448   : > { %v2458_v4 = vsel %vm1348_vm0, %v2449_v3, 0  ;;  %v2547_v13 = vsel %vm1078_vm9, %v2542_v12, %v2544_v5 }
 0x449   : > { %2473 = vmatpush.bf16.msra.mxu0 %v2458_v4  ;;  %v2556_v18 = vsel %vm1348_vm0, %v2547_v13, 0  ;;  %v2540_v2 = vpack.c.b16 %v2538_v60, %v2538_v60 }
 0x44c   : > { %8291 = vmatmul.msk.bf16.gmra.mxu1 %vm1344_vm3, %v2048_v20  ;;  %8304 = vmatmul.msk.bf16.gmra.mxu0 %vm1344_vm3, %v2140_v50 }
 0x44d   : > { %8293 = vmatmul.msk.bf16.gmra.mxu2 %vm1344_vm3, %v2048_v20  ;;  %8302 = vmatmul.msk.bf16.gmra.mxu3 %vm1344_vm3, %v2140_v50  ;;  %v2442_v20 = vpack.c.b16 %v2440_v41, %v2440_v41 }
 0x44e   : > { %v2546_v63 = vpop.permute.xlu1 %2545 }
 0x44f   : > { %v2548_v9 = vsel %vm1078_vm9, %v2544_v5, %v2546_v63  ;;  %v2642_v27 = vpop.permute.xlu0 %2641  ;;  %v2562_v35 = vsel %vm1348_vm0, %v2546_v63, 0 }
 0x450   : > { %v2559_v16 = vsel %vm1348_vm0, %v2548_v9, 0  ;;  %v2645_v32 = vsel %vm14301_vm10, %v2640_v23, %v2642_v27  ;;  %v2646_v33 = vsel %vm14301_vm10, %v2642_v27, %v2644_v31  ;;  %vm14338_vm10 = vmmov %vm14337_vm11  ;;  %v9693_v9 = vld [vmem:[%s14294_s8 + $0x54] sm:$0xff] }
 0x451   : > { %v2654_v36 = vsel %vm1348_vm0, %v2645_v32, 0  ;;  %v2657_v37 = vsel %vm1348_vm0, %v2646_v33, 0 }
 0x456   : > { %v2742_v48 = vpop.permute.xlu1 %2741 }
 0x457   : > { %v2740_v44 = vpop.permute.xlu0 %2739  ;;  %v2758_v55 = vsel %vm1348_vm0, %v2742_v48, 0 }
 0x458   : > { %v2743_v14 = vsel %vm14337_vm11, %v2738_v45, %v2740_v44  ;;  %v2744_v52 = vsel %vm14338_vm10, %v2740_v44, %v2742_v48  ;;  %v9694_v44 = vld [vmem:[%s14294_s8 + $0x60] sm:$0xff]  ;;  %vm14341_vm10 = vmor %vm10101_vm15, %vm10095_vm12  ;;  %vm14579_vm12 = vcmask 900096  }
 0x459   : > { %v2752_v53 = vsel %vm1348_vm0, %v2743_v14, 0  ;;  %v2755_v46 = vsel %vm1348_vm0, %v2744_v52, 0  ;;  %v8374_v52 = vld [vmem:[%s14294_s8 + $0x68] sm:$0x1]  ;;  %vm14582_vm15 = vmmov %vm14579_vm12 }
 0x45c   : > { %8305 = vmatmul.msk.bf16.vlgmr.msra.gmra.mxu1 %vm1344_vm3, %v9688_v56  ;;  %8318 = vmatmul.msk.bf16.vlgmr.msrb.gmra.mxu0 %vm1344_vm3, %v9689_v6 }
 0x45d   : > { %2491 = vmatpush.bf16.msra.mxu1 %v2461_v15  ;;  %2589 = vmatpush.bf16.msrb.mxu0 %v2559_v16 }
 0x45e   : > { %8314 = vmatmul.msk.bf16.vlgmr.msra.gmra.mxu2 %vm1344_vm3, %v9689_v6  ;;  %8316 = vmatmul.msk.bf16.vlgmr.msra.gmra.mxu3 %vm1344_vm3, %v9689_v6 }
 0x45f   : > { %2509 = vmatpush.bf16.msra.mxu2 %v2464_v17  ;;  %2571 = vmatpush.bf16.msra.mxu3 %v2556_v18 }
 0x46c   : > { %8306 = vmatmul.msk.bf16.gmra.mxu1 %vm1344_vm3, %v2140_v50  ;;  %8319 = vmatmul.msk.bf16.gmra.mxu0 %vm1344_vm3, %v2241_v26 }
 0x46e   : > { %8315 = vmatmul.msk.bf16.gmra.mxu2 %vm1344_vm3, %v2241_v26  ;;  %8317 = vmatmul.msk.bf16.gmra.mxu3 %vm1344_vm3, %v2241_v26  ;;  %v8361_v26 = vld [vmem:[%s14294_s8 + $0x5c] sm:$0x1] }
 0x47c   : > { %8327 = vmatmul.msk.bf16.vlgmr.msrb.gmra.mxu1 %vm1344_vm3, %v9690_v28  ;;  %8340 = vmatmul.msk.bf16.vlgmr.msra.gmra.mxu0 %vm1344_vm3, %v9691_v30 }
 0x47d   : > { %2607 = vmatpush.bf16.msrb.mxu1 %v2562_v35  ;;  %2705 = vmatpush.bf16.msra.mxu0 %v2660_v34 }
 0x47e   : > { %8329 = vmatmul.msk.bf16.vlgmr.msrb.gmra.mxu2 %vm1344_vm3, %v9690_v28  ;;  %8331 = vmatmul.msk.bf16.vlgmr.msrb.gmra.mxu3 %vm1344_vm3, %v9690_v28  ;;  %v2636_v28 = vunpack.c.l.b16 %v8361_v26 }
 0x47f   : > { %2669 = vmatpush.bf16.msrb.mxu2 %v2654_v36  ;;  %2687 = vmatpush.bf16.msrb.mxu3 %v2657_v37 }
 0x480   : > { %v2638_v31 = vpack.c.b16 %v2636_v28, %v2636_v28 }
 0x48c   : > { %8328 = vmatmul.msk.bf16.gmra.mxu1 %vm1344_vm3, %v2344_v43  ;;  %8341 = vmatmul.msk.bf16.gmra.mxu0 %vm1344_vm3, %v2442_v20 }
 0x48e   : > { %8330 = vmatmul.msk.bf16.gmra.mxu2 %vm1344_vm3, %v2344_v43  ;;  %8332 = vmatmul.msk.bf16.gmra.mxu3 %vm1344_vm3, %v2344_v43 }
 0x499   : > { %v1996_v29 = vpop.f32.mrf.mxu1  ;;  %v2084_v47 = vpop.f32.mrf.mxu0 }
 0x49a   : > { %v2085_v49 = vadd.f32 %v2084_v47, %v1996_v29 }
 0x49c   : > { %8342 = vmatmul.msk.bf16.vlgmr.msra.gmra.mxu1 %vm1344_vm3, %v9691_v30  ;;  %8355 = vmatmul.msk.bf16.vlgmr.msrb.gmra.mxu0 %vm1344_vm3, %v9692_v19 }
 0x49d   : > { %2767 = vmatpush.bf16.msra.mxu1 %v2752_v53 }
 0x49e   : > { %8344 = vmatmul.msk.bf16.vlgmr.msra.gmra.mxu2 %vm1344_vm3, %v9691_v30  ;;  %8353 = vmatmul.msk.bf16.vlgmr.msra.gmra.mxu3 %vm1344_vm3, %v9692_v19 }
 0x49f   : > { %2785 = vmatpush.bf16.msra.mxu2 %v2755_v46  ;;  %2803 = vmatpush.bf16.msra.mxu3 %v2758_v55 }
 0x4a0   : > { %v2014_v25 = vpop.f32.mrf.mxu2  ;;  %v2032_v56 = vpop.f32.mrf.mxu3 }
 0x4a1   : > { %v10725_v57 = vpop.f32.mrf.mxu1  ;;  %v10727_v58 = vpop.f32.mrf.mxu0 }
 0x4a8   : > { %v10732_v24 = vpop.f32.mrf.mxu2  ;;  %v10734_v0 = vpop.f32.mrf.mxu3 }
 0x4a9   : > { %v2001_v1 = vpop.f32.mrf.mxu1  ;;  %v2089_v3 = vpop.f32.mrf.mxu0 }
 0x4aa   : > { %v2090_v4 = vadd.f32 %v2089_v3, %v2001_v1 }
 0x4ac   : > { %8343 = vmatmul.msk.bf16.gmra.mxu1 %vm1344_vm3, %v2442_v20  ;;  %8356 = vmatmul.msk.bf16.gmra.mxu0 %vm1344_vm3, %v2540_v2 }
 0x4ae   : > { %8345 = vmatmul.msk.bf16.gmra.mxu2 %vm1344_vm3, %v2442_v20  ;;  %8354 = vmatmul.msk.bf16.gmra.mxu3 %vm1344_vm3, %v2540_v2 }
 0x4b0   : > { %v2019_v50 = vpop.f32.mrf.mxu2  ;;  %v2037_v62 = vpop.f32.mrf.mxu3 }
 0x4b1   : > { %v2003_v63 = vpop.f32.mrf.mxu1  ;;  %v2091_v5 = vpop.f32.mrf.mxu0 }
 0x4b8   : > { %v2021_v6 = vpop.f32.mrf.mxu2  ;;  %v2039_v7 = vpop.f32.mrf.mxu3 }
 0x4b9   : > { %v2102_v12 = vpop.f32.mrf.mxu1  ;;  %v2194_v13 = vpop.f32.mrf.mxu0 }
 0x4ba   : > { %v2103_v15 = vadd.f32 %v2102_v12, %v2014_v25 }
 0x4bc   : > { %v2222_v16 = vadd.f32 %v2194_v13, %v2103_v15  ;;  %8357 = vmatmul.msk.bf16.vlgmr.msrb.gmra.mxu1 %vm1344_vm3, %v9692_v19  ;;  %8370 = vmatmul.msk.bf16.vlgmr.msra.gmra.mxu0 %vm1344_vm3, %v9693_v9 }
 0x4be   : > { %8366 = vmatmul.msk.bf16.vlgmr.msrb.gmra.mxu2 %vm1344_vm3, %v9693_v9  ;;  %8368 = vmatmul.msk.bf16.vlgmr.msrb.gmra.mxu3 %vm1344_vm3, %v9693_v9 }
 0x4c0   : > { %v2120_v17 = vpop.f32.mrf.mxu2  ;;  %v2176_v22 = vpop.f32.mrf.mxu3 }
 0x4c1   : > { %v10747_v18 = vpop.f32.mrf.mxu1  ;;  %v2121_v21 = vadd.f32 %v2120_v17, %v2032_v56  ;;  %v2221_v23 = vadd.f32 %v2176_v22, %v2085_v49  ;;  %v10752_v27 = vpop.f32.mrf.mxu0  ;;  %v2734_v56 = vunpack.c.l.b16 %v8374_v52 }
 0x4c3   : > { %v2736_v59 = vpack.c.b16 %v2734_v56, %v2734_v56 }
 0x4c8   : > { %v10754_v30 = vpop.f32.mrf.mxu2  ;;  %v10756_v33 = vpop.f32.mrf.mxu3 }
 0x4c9   : > { %v2107_v32 = vpop.f32.mrf.mxu1  ;;  %v2199_v35 = vpop.f32.mrf.mxu0 }
 0x4ca   : > { %v2108_v34 = vadd.f32 %v2107_v32, %v2019_v50 }
 0x4cc   : > { %v2228_v36 = vadd.f32 %v2199_v35, %v2108_v34  ;;  %8358 = vmatmul.msk.bf16.gmra.mxu1 %vm1344_vm3, %v2540_v2  ;;  %8371 = vmatmul.msk.bf16.gmra.mxu0 %vm1344_vm3, %v2638_v31 }
 0x4ce   : > { %8367 = vmatmul.msk.bf16.gmra.mxu2 %vm1344_vm3, %v2638_v31  ;;  %8369 = vmatmul.msk.bf16.gmra.mxu3 %vm1344_vm3, %v2638_v31 }
 0x4d0   : > { %v2125_v37 = vpop.f32.mrf.mxu2  ;;  %v2181_v40 = vpop.f32.mrf.mxu3 }
 0x4d1   : > { %v2109_v38 = vpop.f32.mrf.mxu1  ;;  %v2126_v39 = vadd.f32 %v2125_v37, %v2037_v62  ;;  %v2227_v41 = vadd.f32 %v2181_v40, %v2090_v4  ;;  %v2201_v43 = vpop.f32.mrf.mxu0 }
 0x4d8   : > { %v2127_v20 = vpop.f32.mrf.mxu2  ;;  %v2183_v45 = vpop.f32.mrf.mxu3 }
 0x4d9   : > { %v2212_v19 = vpop.f32.mrf.mxu1  ;;  %v2313_v29 = vpop.f32.mrf.mxu0 }
 0x4da   : > { %v2223_v14 = vadd.f32 %v2212_v19, %v2121_v21 }
 0x4dc   : > { %v2324_v47 = vadd.f32 %v2313_v29, %v2223_v14  ;;  %8379 = vmatmul.msk.bf16.vlgmr.msra.gmra.mxu1 %vm1344_vm3, %v9694_v44 }
 0x4de   : > { %8381 = vmatmul.msk.bf16.vlgmr.msra.gmra.mxu2 %vm1344_vm3, %v9694_v44  ;;  %8383 = vmatmul.msk.bf16.vlgmr.msra.gmra.mxu3 %vm1344_vm3, %v9694_v44 }
 0x4e1   : > { %v10768_v48 = vpop.f32.mrf.mxu1  ;;  %v2277_v49 = vpop.f32.mrf.mxu2 }
 0x4e2   : > { %v2322_v53 = vadd.f32 %v2277_v49, %v2221_v23  ;;  %v2295_v55 = vpop.f32.mrf.mxu3  ;;  %v10773_v46 = vpop.f32.mrf.mxu0 }
 0x4e3   : > { %v2323_v25 = vadd.f32 %v2295_v55, %v2222_v16 }
 0x4e9   : > { %v2217_v60 = vpop.f32.mrf.mxu1  ;;  %v10775_v2 = vpop.f32.mrf.mxu2 }
 0x4ea   : > { %v2229_v1 = vadd.f32 %v2217_v60, %v2126_v39  ;;  %v10777_v3 = vpop.f32.mrf.mxu3  ;;  %v2318_v4 = vpop.f32.mrf.mxu0 }
 0x4ec   : > { %v2330_v50 = vadd.f32 %v2318_v4, %v2229_v1  ;;  %8380 = vmatmul.msk.bf16.gmra.mxu1 %vm1344_vm3, %v2736_v59 }
 0x4ee   : > { %8382 = vmatmul.msk.bf16.gmra.mxu2 %vm1344_vm3, %v2736_v59  ;;  %8384 = vmatmul.msk.bf16.gmra.mxu3 %vm1344_vm3, %v2736_v59  ;;  %vm14339_vm3 = vcmask 551936  }
 0x4ef   : > { %vm14340_vm0 = vmmov %vm14339_vm3 }
 0x4f1   : > { %v2219_v62 = vpop.f32.mrf.mxu1  ;;  %v2282_v63 = vpop.f32.mrf.mxu2 }
 0x4f2   : > { %v2328_v5 = vadd.f32 %v2282_v63, %v2227_v41  ;;  %v2300_v6 = vpop.f32.mrf.mxu3  ;;  %v2320_v7 = vpop.f32.mrf.mxu0 }
 0x4f3   : > { %v2329_v9 = vadd.f32 %v2300_v6, %v2228_v36 }
 0x4f9   : > { %v2284_v12 = vpop.f32.mrf.mxu2  ;;  %v2377_v13 = vpop.f32.mrf.mxu1 }
 0x4fa   : > { %v2302_v15 = vpop.f32.mrf.mxu3  ;;  %v2422_v16 = vadd.f32 %v2377_v13, %v2322_v53  ;;  %v2475_v17 = vpop.f32.mrf.mxu0 }
 0x4fc   : > { %v10782_v21 = vadd.f32 %v2475_v17, %v2422_v16 }
 0x501   : > { %v10784_v22 = vpop.f32.mrf.mxu1  ;;  %v2395_v26 = vpop.f32.mrf.mxu2 }
 0x502   : > { %v2423_v23 = vadd.f32 %v2395_v26, %v2323_v25  ;;  %v2413_v28 = vpop.f32.mrf.mxu3  ;;  %v10786_v31 = vpop.f32.mrf.mxu0 }
 0x503   : > { %v2424_v32 = vadd.f32 %v2413_v28, %v2324_v47 }
 0x509   : > { %v2382_v34 = vpop.f32.mrf.mxu1  ;;  %v10788_v35 = vpop.f32.mrf.mxu2 }
 0x50a   : > { %v2428_v37 = vadd.f32 %v2382_v34, %v2328_v5  ;;  %v10790_v36 = vpop.f32.mrf.mxu3  ;;  %v2480_v38 = vpop.f32.mrf.mxu0 }
 0x50c   : > { %v10792_v39 = vadd.f32 %v2480_v38, %v2428_v37 }
 0x511   : > { %v2384_v40 = vpop.f32.mrf.mxu1  ;;  %v2400_v41 = vpop.f32.mrf.mxu2 }
 0x512   : > { %v2429_v43 = vadd.f32 %v2400_v41, %v2329_v9  ;;  %v2418_v20 = vpop.f32.mrf.mxu3  ;;  %v2482_v44 = vpop.f32.mrf.mxu0 }
 0x513   : > { %v10794_v45 = vadd.f32 %v2418_v20, %v2330_v50  ;;  %v2087_v44 = vadd.f32 %v10727_v58, %v10725_v57  ;;  %v8483_v58 = vld [vmem:[#allocation2] sm:$0xf] }
 0x519   : > { %v2402_v19 = vpop.f32.mrf.mxu2  ;;  %v2493_v14 = vpop.f32.mrf.mxu1 }
 0x51a   : > { %v2420_v29 = vpop.f32.mrf.mxu3  ;;  %v2521_v47 = vadd.f32 %v2493_v14, %v2423_v23  ;;  %v2591_v49 = vpop.f32.mrf.mxu0  ;;  %v2105_v19 = vadd.f32 %v10747_v18, %v10732_v24  ;;  %v2123_v14 = vadd.f32 %v10754_v30, %v10734_v0 }
 0x51b   : > { %v2224_v29 = vadd.f32 %v10756_v33, %v2087_v44 }
 0x51c   : > { %v2619_v52 = vadd.f32 %v2591_v49, %v2521_v47 }
 0x521   : > { %v2495_v53 = vpop.f32.mrf.mxu1  ;;  %v2511_v55 = vpop.f32.mrf.mxu2 }
 0x522   : > { %v2573_v25 = vpop.f32.mrf.mxu3  ;;  %v10796_v56 = vpop.f32.mrf.mxu0  ;;  %v2522_v57 = vadd.f32 %v2511_v55, %v2424_v32 }
 0x529   : > { %v2498_v59 = vpop.f32.mrf.mxu1  ;;  %v10798_v60 = vpop.f32.mrf.mxu2 }
 0x52a   : > { %v2527_v1 = vadd.f32 %v2498_v59, %v2429_v43  ;;  %v2575_v4 = vpop.f32.mrf.mxu3  ;;  %v2596_v62 = vpop.f32.mrf.mxu0  ;;  %v2226_v59 = vadd.f32 %v10768_v48, %v2123_v14 }
 0x52c   : > { %v10800_v63 = vadd.f32 %v2596_v62, %v2527_v1  ;;  %v2325_v1 = vadd.f32 %v10775_v2, %v2224_v29  ;;  %v2618_v62 = vadd.f32 %v2573_v25, %v10782_v21  ;;  %v2327_v48 = vadd.f32 %v10773_v46, %v2226_v59  ;;  %v2832_v2 = vld [vmem:[#allocation2 + $0x4] sm:$0xff]  ;;  %v2833_v21 = vld [vmem:[#allocation2 + $0xc] sm:$0xf]  ;;  %v2834_v59 = vld [vmem:[#allocation2 + $0x18] sm:$0xff] }
 0x52d   : > { %v2840_v29 = vunpack.c.l.bf16 %v2833_v21 }
 0x52e   : > { %v2425_v24 = vadd.f32 %v10784_v22, %v2325_v1  ;;  %v2427_v22 = vadd.f32 %v10790_v36, %v2327_v48 }
 0x530   : > { %v2523_v32 = vadd.f32 %v10786_v31, %v2425_v24 }
 0x531   : > { %v2500_v50 = vpop.f32.mrf.mxu1  ;;  %v10802_v5 = vpop.f32.mrf.mxu2 }
 0x532   : > { %v10804_v6 = vpop.f32.mrf.mxu3  ;;  %v2598_v7 = vpop.f32.mrf.mxu0  ;;  %v2621_v46 = vadd.f32 %v2575_v4, %v2523_v32 }
 0x533   : > { %v2225_v7 = vadd.f32 %v10752_v27, %v2105_v19  ;;  %v2624_v24 = vadd.f32 %v10804_v6, %v10792_v39 }
 0x535   : > { %v2326_v30 = vadd.f32 %v10777_v3, %v2225_v7 }
 0x537   : > { %v2426_v27 = vadd.f32 %v10788_v35, %v2326_v30  ;;  %v2525_v35 = vadd.f32 %v10798_v60, %v2427_v22 }
 0x539   : > { %v2518_v9 = vpop.f32.mrf.mxu2  ;;  %v2609_v12 = vpop.f32.mrf.mxu1  ;;  %v2524_v25 = vadd.f32 %v2495_v53, %v2426_v27 }
 0x53a   : > { %v2580_v13 = vpop.f32.mrf.mxu3  ;;  %v2707_v15 = vpop.f32.mrf.mxu0  ;;  %v9697_v9 = vld [vmem:[#allocation2 + $0x10] sm:$0xf0]  ;;  %v2620_v33 = vadd.f32 %v2609_v12, %v2522_v57  ;;  %v2841_v57 = vunpack.c.l.bf16 %v2834_v59 }
 0x53b   : > { %v10828_v0 = vor.u32 %v9697_v9, %v8483_v58  ;;  %v2622_v4 = vadd.f32 %v10796_v56, %v2524_v25  ;;  %v2842_v9 = vunpack.c.h.bf16 %v2834_v59 }
 0x53d   : > { %3049 = vrot.lane.b32.xlu2 %v10828_v0, %s9883_s23 }
 0x541   : > { %v2611_v16 = vpop.f32.mrf.mxu1  ;;  %v2671_v17 = vpop.f32.mrf.mxu2 }
 0x542   : > { %v2689_v26 = vpop.f32.mrf.mxu3  ;;  %v10806_v23 = vpop.f32.mrf.mxu0  ;;  %v2716_v18 = vadd.f32 %v2671_v17, %v2618_v62  ;;  %v2718_v17 = vadd.f32 %v2707_v15, %v2620_v33 }
 0x543   : > { %v2717_v55 = vadd.f32 %v2689_v26, %v2619_v52  ;;  %v2623_v52 = vadd.f32 %v2611_v16, %v2525_v35 }
 0x549   : > { %v10808_v28 = vpop.f32.mrf.mxu1  ;;  %v2673_v34 = vpop.f32.mrf.mxu2 }
 0x54a   : > { %v2691_v37 = vpop.f32.mrf.mxu3  ;;  %v10810_v38 = vpop.f32.mrf.mxu0  ;;  %v2719_v31 = vadd.f32 %v2673_v34, %v2621_v46  ;;  %v2721_v34 = vadd.f32 %v10806_v23, %v2623_v52 }
 0x54b   : > { %v2720_v7 = vadd.f32 %v2691_v37, %v2622_v4  ;;  %v2528_v37 = vadd.f32 %v10802_v5, %v10794_v45  ;;  %v2836_v45 = vld [vmem:[#allocation2 + $0x2c] sm:$0x11] }
 0x54c   : > { %v2845_v46 = vunpack.c.h.bf16 %v2836_v45 }
 0x551   : > { %v2616_v40 = vpop.f32.mrf.mxu1  ;;  %v10812_v41 = vpop.f32.mrf.mxu2 }
 0x552   : > { %v10814_v43 = vpop.f32.mrf.mxu3  ;;  %v2714_v20 = vpop.f32.mrf.mxu0  ;;  %v2838_v40 = vunpack.c.l.bf16 %v2832_v2  ;;  %v2722_v48 = vadd.f32 %v10812_v41, %v2624_v24 }
 0x553   : > { %v2839_v20 = vunpack.c.h.bf16 %v2832_v2  ;;  %v2626_v2 = vadd.f32 %v10808_v28, %v2528_v37 }
 0x555   : > { %v2724_v41 = vadd.f32 %v10810_v38, %v2626_v2 }
 0x559   : > { %v2678_v47 = vpop.f32.mrf.mxu2  ;;  %v2769_v49 = vpop.f32.mrf.mxu1 }
 0x55a   : > { %v2696_v50 = vpop.f32.mrf.mxu3  ;;  %v2814_v13 = vadd.f32 %v2769_v49, %v2716_v18 }
 0x55b   : > { %v2835_v50 = vld [vmem:[#allocation2 + $0x20] sm:$0xf] }
 0x55c   : > { %v2823_v44 = vsel %vm10375_vm14, %v2814_v13, 0.0  ;;  %v2843_v33 = vunpack.c.l.bf16 %v2835_v50 }
 0x55d   : > { %v2847_v53 = vadd.f32 %v2838_v40, %v2823_v44  ;;  %v2837_v40 = vld [vmem:[#allocation2 + $0x34] sm:$0x1] }
 0x561   : > { %v2771_v3 = vpop.f32.mrf.mxu1  ;;  %v2787_v12 = vpop.f32.mrf.mxu2 }
 0x562   : > { %v2815_v19 = vadd.f32 %v2787_v12, %v2717_v55  ;;  %v2805_v14 = vpop.f32.mrf.mxu3  ;;  %v2817_v49 = vadd.f32 %v2771_v3, %v2719_v31  ;;  %v2723_v55 = vadd.f32 %v10814_v43, %v10800_v63  ;;  %v2846_v43 = vunpack.c.l.bf16 %v2837_v40 }
 0x563   : > { %v2816_v47 = vadd.f32 %v2805_v14, %v2718_v17 }
 0x564   : > { %v2824_v36 = vsel %vm10379_vm1, %v2815_v19, 0.0  ;;  %v2826_v56 = vsel %vm10375_vm14, %v2817_v49, 0.0 }
 0x565   : > { %v2848_v15 = vadd.f32 %v2839_v20, %v2824_v36  ;;  %v2825_v26 = vsel %vm10383_vm13, %v2816_v47, 0.0  ;;  %v2850_v39 = vadd.f32 %v2841_v57, %v2826_v56  ;;  %v2844_v20 = vunpack.c.l.bf16 %v2836_v45  ;;  %v2869_v36 = vld [vmem:[#allocation2 + $0x34] sm:$0x1] }
 0x566   : > { %v2849_v1 = vadd.f32 %v2840_v29, %v2825_v26 }
 0x567   : > { %v2856_v62 = vpack.c.bf16 %v2848_v15, %v2847_v53 }
 0x568   : > { %v2857_v60 = vpack.c.bf16 %v2849_v1, %v2849_v1 }
 0x569   : > { %2862 = vst [vmem:[#allocation2 + $0x4] sm:$0xff] %v2856_v62  ;;  %v2774_v58 = vpop.f32.mrf.mxu1  ;;  %v2789_v16 = vpop.f32.mrf.mxu2 }
 0x56a   : > { %2863 = vst.msk [vmem:[#allocation2 + $0xc] sm:$0xf] %vm14339_vm3, %v2857_v60  ;;  %v2818_v18 = vadd.f32 %v2789_v16, %v2720_v7  ;;  %v2807_v30 = vpop.f32.mrf.mxu3  ;;  %v2820_v21 = vadd.f32 %v2774_v58, %v2722_v48 }
 0x56b   : > { %v2819_v23 = vadd.f32 %v2807_v30, %v2721_v34 }
 0x56c   : > { %v2827_v13 = vsel %vm10379_vm1, %v2818_v18, 0.0  ;;  %v2829_v28 = vsel %vm10375_vm14, %v2820_v21, 0.0  ;;  %vm8004_vm14 = vcmask 556032  }
 0x56d   : > { %v2851_v6 = vadd.f32 %v2842_v9, %v2827_v13  ;;  %v2828_v27 = vsel %vm10383_vm13, %v2819_v23, 0.0  ;;  %v2853_v19 = vadd.f32 %v2844_v20, %v2829_v28 }
 0x56e   : > { %v2852_v32 = vadd.f32 %v2843_v33, %v2828_v27 }
 0x56f   : > { %v2858_v22 = vpack.c.bf16 %v2851_v6, %v2850_v39 }
 0x570   : > { %v2859_v5 = vpack.c.bf16 %v2852_v32, %v2852_v32  ;;  %v9695_v61 = vld [vmem:[#allocation2 + $0x4] sm:$0xf]  ;;  %v8491_v58 = vld [vmem:[#allocation2 + $0x8] sm:$0xf] }
 0x571   : > { %2864 = vst [vmem:[#allocation2 + $0x18] sm:$0xff] %v2858_v22  ;;  %v2776_v25 = vpop.f32.mrf.mxu1  ;;  %v2792_v17 = vpop.f32.mrf.mxu2  ;;  %v9696_v57 = vld [vmem:[#allocation2 + $0xc] sm:$0xf]  ;;  %v9763_v2 = vld [vmem:[#allocation2 + $0x8] sm:$0xf] }
 0x572   : > { %2865 = vst.msk [vmem:[#allocation2 + $0x20] sm:$0xf] %vm14340_vm0, %v2859_v5  ;;  %v2821_v3 = vadd.f32 %v2792_v17, %v2723_v55  ;;  %v2810_v12 = vpop.f32.mrf.mxu3  ;;  %v9043_v39 = vld [vmem:[#allocation2 + $0x4] sm:$0xf]  ;;  %v9051_v55 = vld [vmem:[#allocation2 + $0xc] sm:$0xf] }
 0x573   : > { %v2822_v44 = vadd.f32 %v2810_v12, %v2724_v41 }
 0x574   : > { %v2830_v63 = vsel %vm10379_vm1, %v2821_v3, 0.0 }
 0x575   : > { %v2854_v38 = vadd.f32 %v2845_v46, %v2830_v63  ;;  %v2831_v14 = vsel %vm10383_vm13, %v2822_v44, 0.0 }
 0x576   : > { %v2855_v29 = vadd.f32 %v2846_v43, %v2831_v14 }
 0x577   : > { %v2860_v35 = vpack.c.bf16 %v2854_v38, %v2853_v19  ;;  %v9715_v19 = vld [vmem:[%s14295_s9 + $0x80] sm:$0xff] }
 0x578   : > { %v2861_v47 = vpack.c.bf16 %v2855_v29, %v2855_v29  ;;  %v8485_v62 = vld [vmem:[#allocation2 + $0x14] sm:$0xf0]  ;;  %v9698_v34 = vld [vmem:[#allocation2 + $0x18] sm:$0xf0]  ;;  %v10977_v29 = vld [vmem:[%s14295_s9 + $0xe8] sm:$0xff] }
 0x579   : > { %v2867_v31 = vsel %vm14341_vm10, %v2860_v35, %v2866_v10  ;;  %v2794_v52 = vpop.f32.mrf.mxu2  ;;  %v8488_v7 = vor.u32 %v9695_v61, %v8485_v62  ;;  %v8493_v60 = vld [vmem:[#allocation2 + $0x1c] sm:$0xf0]  ;;  %v8492_v9 = vor.u32 %v9698_v34, %v8491_v58  ;;  %v9045_v48 = vld [vmem:[#allocation2 + $0x18] sm:$0xf0]  ;;  %v9764_v13 = vld [vmem:[#allocation2 + $0x14] sm:$0xf0] }
 0x57a   : > { %2868 = vst [vmem:[#allocation2 + $0x2c] sm:$0x11] %v2867_v31  ;;  %v2870_v8 = vsel %vm10115_vm2, %v2861_v47, %v2869_v36  ;;  %v2812_v53 = vpop.f32.mrf.mxu3  ;;  %v8496_v16 = vor.u32 %v9696_v57, %v8493_v60  ;;  %v10918_v6 = vor.u32 %v9763_v2, %v9045_v48  ;;  %v10920_v27 = vor.u32 %v9764_v13, %v9043_v39  ;;  %v9765_v22 = vld [vmem:[#allocation2 + $0x1c] sm:$0xf0]  ;;  %v7719_v60 = vld [vmem:[%s14296_s10 + $0x28] sm:$0xff]  ;;  %v7721_v2 = vld [vmem:[%s14296_s10 + $0x38] sm:$0xff] }
 0x57b   : > { %2871 = vst [vmem:[#allocation2 + $0x34] sm:$0x1] %v2870_v8  ;;  %v10930_v45 = vor.u32 %v9765_v22, %v9051_v55  ;;  %v7714_v8 = vld [vmem:[%s14296_s10] sm:$0xff]  ;;  %v7725_v39 = vld [vmem:[%s14296_s10 + $0x58] sm:$0xff]  ;;  %vm14587_vm2 = vmmov %vm14579_vm12 }
 0x581   : > { %v2876_v11 = vld [vmem:[#allocation2 + $0x28] sm:$0x11] }
 0x582   : > { %v2877_v15 = vld [vmem:[#allocation2 + $0x30] sm:$0x11]  ;;  %v3038_v26 = vunpack.c.h.b16 %v2876_v11  ;;  %v3037_v4 = vunpack.c.l.b16 %v2876_v11 }
 0x583   : > { %v3040_v49 = vunpack.c.h.b16 %v2877_v15  ;;  %v3039_v51 = vunpack.c.l.b16 %v2877_v15  ;;  %v4947_v24 = vld [vmem:[#allocation2 + $0x2c] sm:$0x11]  ;;  %v4948_v37 = vld [vmem:[#allocation2 + $0x34] sm:$0x1] }
 0x584   : > { %v3046_v59 = vpack.c.b16 %v3038_v26, %v3038_v26  ;;  %v3045_v1 = vpack.c.b16 %v3037_v4, %v3037_v4  ;;  %v5074_v56 = vunpack.c.l.b16 %v4947_v24  ;;  %v5075_v30 = vunpack.c.h.b16 %v4947_v24  ;;  %v9716_v26 = vld [vmem:[%s14295_s9 + $0x88] sm:$0xff] }
 0x585   : > { %v3048_v54 = vpack.c.b16 %v3040_v49, %v3040_v49  ;;  %v3047_v50 = vpack.c.b16 %v3039_v51, %v3039_v51  ;;  %v5076_v23 = vunpack.c.l.b16 %v4948_v37  ;;  %v11023_v49 = vld [vmem:[%s14295_s9 + $0xf0] sm:$0xff]  ;;  %v7722_v37 = vld [vmem:[%s14296_s10 + $0x40] sm:$0xff] }
 0x586   : > { %3059 = vrot.lane.b32.xlu1 %v3046_v59, %s9883_s23  ;;  %3057 = vrot.lane.b32.xlu0 %v3045_v1, %s9883_s23  ;;  %v10906_v18 = vpack.c.b16 %v5074_v56, %v5074_v56  ;;  %v10912_v33 = vpack.c.b16 %v5075_v30, %v5075_v30  ;;  %v11060_v56 = vld [vmem:[%s14295_s9 + $0xf8] sm:$0xff]  ;;  %v7718_v30 = vld [vmem:[%s14296_s10 + $0x20] sm:$0xff] }
 0x587   : > { %3063 = vrot.lane.b32.xlu2 %v3048_v54, %s9883_s23  ;;  %v10922_v21 = vpack.c.b16 %v5076_v23, %v5076_v23 }
 0x58e   : > { %3061 = vrot.lane.b32.xlu1 %v3047_v50, %s9883_s23  ;;  %3051 = vrot.lane.b32.xlu0 %v8488_v7, %s9883_s23 }
 0x58f   : > { %3486 = vrot.lane.b32.xlu2 %v3045_v1, %s9884_s25 }
 0x596   : > { %3055 = vrot.lane.b32.xlu1 %v8496_v16, %s9883_s23  ;;  %3053 = vrot.lane.b32.xlu0 %v8492_v9, %s9883_s23 }
 0x597   : > { %3950 = vrot.lane.b32.xlu2 %v3046_v59, %s9885_s26 }
 0x59e   : > { %3480 = vrot.lane.b32.xlu1 %v8488_v7, %s9884_s25  ;;  %3478 = vrot.lane.b32.xlu0 %v10828_v0, %s9884_s25 }
 0x59f   : > { %3490 = vrot.lane.b32.xlu2 %v3047_v50, %s9884_s25 }
 0x5a6   : > { %3948 = vrot.lane.b32.xlu1 %v3045_v1, %s9885_s26  ;;  %3488 = vrot.lane.b32.xlu0 %v3046_v59, %s9884_s25 }
 0x5a7   : > { %3942 = vrot.lane.b32.xlu2 %v8488_v7, %s9885_s26 }
 0x5ae   : > { %3940 = vrot.lane.b32.xlu1 %v10828_v0, %s9885_s26  ;;  %3492 = vrot.lane.b32.xlu0 %v3048_v54, %s9884_s25 }
 0x5af   : > { %3944 = vrot.lane.b32.xlu2 %v8492_v9, %s9885_s26 }
 0x5b6   : > { %3484 = vrot.lane.b32.xlu1 %v8496_v16, %s9884_s25  ;;  %3482 = vrot.lane.b32.xlu0 %v8492_v9, %s9884_s25 }
 0x5b7   : > { %3952 = vrot.lane.b32.xlu2 %v3047_v50, %s9885_s26 }
 0x5be   : > { %4510 = vrot.lane.b32.xlu1 %v3047_v50, %s9886_s24  ;;  %4508 = vrot.lane.b32.xlu0 %v3046_v59, %s9886_s24  ;;  %v7717_v59 = vld [vmem:[%s14296_s10 + $0x18] sm:$0xff] }
 0x5bf   : > { %4502 = vrot.lane.b32.xlu2 %v8492_v9, %s9886_s24  ;;  %v9717_v9 = vld [vmem:[%s14295_s9 + $0x90] sm:$0xff] }
 0x5c6   : > { %4500 = vrot.lane.b32.xlu1 %v8488_v7, %s9886_s24  ;;  %3954 = vrot.lane.b32.xlu0 %v3048_v54, %s9885_s26  ;;  %v7716_v7 = vld [vmem:[%s14296_s10 + $0x10] sm:$0xff] }
 0x5c7   : > { %4498 = vrot.lane.b32.xlu2 %v10828_v0, %s9886_s24  ;;  %v3050_v0 = vpop.permute.xlu2 %3049 }
 0x5ce   : > { %3946 = vrot.lane.b32.xlu1 %v8496_v16, %s9885_s26  ;;  %4506 = vrot.lane.b32.xlu0 %v3045_v1, %s9886_s24 }
 0x5cf   : > { %5625 = vrot.lane.b32.xlu2 %v10906_v18, %s9887_s27 }
 0x5d6   : > { %4504 = vrot.lane.b32.xlu1 %v8496_v16, %s9886_s24  ;;  %4512 = vrot.lane.b32.xlu0 %v3048_v54, %s9886_s24  ;;  %s9853_s24 = smul.u32 768, %s15077_s18 }
 0x5d7   : > { %6179 = vrot.lane.b32.xlu2 %v10912_v33, %s9888_s28 }
 0x5d8   : > { %s13989_s22 = scalar_lea.vmem %s14297_s11, %s9853_s24 }
 0x5de   : > { %5621 = vrot.lane.b32.xlu1 %v10918_v6, %s9887_s27  ;;  %5619 = vrot.lane.b32.xlu0 %v10920_v27, %s9887_s27 }
 0x5df   : > { %5629 = vrot.lane.b32.xlu2 %v10922_v21, %s9887_s27 }
 0x5e1   : > { %v3064_v32 = vpop.permute.xlu2 %3063 }
 0x5e6   : > { %6177 = vrot.lane.b32.xlu1 %v10906_v18, %s9888_s28  ;;  %5627 = vrot.lane.b32.xlu0 %v10912_v33, %s9887_s27 }
 0x5e7   : > { %5623 = vrot.lane.b32.xlu2 %v10930_v45, %s9887_s27 }
 0x5e9   : > { %v10938_v5 = vpop.permute.xlu2 %3486 }
 0x5ee   : > { %6173 = vrot.lane.b32.xlu1 %v10918_v6, %s9888_s28  ;;  %6171 = vrot.lane.b32.xlu0 %v10920_v27, %s9888_s28 }
 0x5ef   : > { %6733 = vrot.lane.b32.xlu2 %v10922_v21, %s9889_s29 }
 0x5f1   : > { %v10946_v41 = vpop.permute.xlu2 %3950 }
 0x5f6   : > { %6731 = vrot.lane.b32.xlu1 %v10912_v33, %s9889_s29  ;;  %6175 = vrot.lane.b32.xlu0 %v10930_v45, %s9888_s28 }
 0x5f7   : > { %6727 = vrot.lane.b32.xlu2 %v10930_v45, %s9889_s29 }
 0x5f8   : > { %v3060_v25 = vpop.permute.xlu1 %3059  ;;  %v3058_v17 = vpop.permute.xlu0 %3057 }
 0x5f9   : > { %v10954_v40 = vpop.permute.xlu2 %3490  ;;  %v3068_v28 = vsel %vm596_vm4, %v3058_v17, %v3060_v25 }
 0x5fa   : > { %v3123_v3 = vand.u32 %v3068_v28, %v10213_v42  ;;  %v7724_v28 = vld [vmem:[%s14296_s10 + $0x50] sm:$0xff] }
 0x5fc   : > { %3137 = vmatpush.bf16.msrb.mxu0 %v3123_v3  ;;  %9846 = vmatpush.bf16.msrb.mxu3 %v3123_v3  ;;  %v7728_v3 = vld [vmem:[%s14296_s10 + $0x70] sm:$0xff] }
 0x5fe   : > { %6725 = vrot.lane.b32.xlu1 %v10918_v6, %s9889_s29  ;;  %6181 = vrot.lane.b32.xlu0 %v10922_v21, %s9888_s28 }
 0x5ff   : > { %7285 = vrot.lane.b32.xlu2 %v10922_v21, %s9890_s30 }
 0x600   : > { %v3062_v12 = vpop.permute.xlu1 %3061  ;;  %v3052_v20 = vpop.permute.xlu0 %3051 }
 0x601   : > { %v3069_v46 = vsel %vm596_vm4, %v3060_v25, %v3062_v12  ;;  %v3070_v44 = vsel %vm596_vm4, %v3062_v12, %v3064_v32  ;;  %v10966_v63 = vpop.permute.xlu2 %3942  ;;  %v3065_v43 = vsel %vm596_vm4, %v3050_v0, %v3052_v20 }
 0x602   : > { %v3126_v38 = vand.u32 %v3069_v46, %v10213_v42  ;;  %v3129_v14 = vand.u32 %v3070_v44, %v10213_v42  ;;  %3138 = vmatpush.bf16.msrb.mxu0 %v3065_v43  ;;  %9847 = vmatpush.bf16.msrb.mxu3 %v3065_v43 }
 0x604   : > { %3226 = vmatpush.bf16.msrb.mxu1 %v3126_v38  ;;  %3315 = vmatpush.bf16.msrb.mxu2 %v3129_v14 }
 0x605   : > { %8497 = vmatmul.msk.bf16.vlgmr.msrb.gmra.mxu0 %vm606_vm5, %v9715_v19  ;;  %8510 = vmatmul.msk.bf16.vlgmr.msrb.gmra.mxu3 %vm606_vm5, %v10977_v29 }
 0x606   : > { %9848 = vmatpush.bf16.msra.mxu3 %v3126_v38  ;;  %6723 = vrot.lane.b32.xlu1 %v10920_v27, %s9889_s29  ;;  %v7727_v38 = vld [vmem:[%s14296_s10 + $0x68] sm:$0xff] }
 0x607   : > { %7279 = vrot.lane.b32.xlu2 %v10930_v45, %s9890_s30  ;;  %6729 = vrot.lane.b32.xlu0 %v10906_v18, %s9889_s29 }
 0x608   : > { %v3056_v35 = vpop.permute.xlu1 %3055  ;;  %v3054_v10 = vpop.permute.xlu0 %3053 }
 0x609   : > { %v10988_v47 = vpop.permute.xlu2 %3944  ;;  %v3066_v31 = vsel %vm596_vm4, %v3052_v20, %v3054_v10  ;;  %v3067_v36 = vsel %vm596_vm4, %v3054_v10, %v3056_v35  ;;  %vm14588_vm4 = vmmov %vm14587_vm2 }
 0x60a   : > { %3227 = vmatpush.bf16.msrb.mxu1 %v3066_v31  ;;  %9849 = vmatpush.bf16.msra.mxu3 %v3066_v31  ;;  %v10995_v52 = vsel %vm606_vm5, %v10966_v63, %v10988_v47 }
 0x60b   : > { %3316 = vmatpush.bf16.msrb.mxu2 %v3067_v36 }
 0x60d   : > { %8513 = vmatmul.msk.bf16.vlgmr.msrb.gmra.mxu1 %vm606_vm5, %v9715_v19 }
 0x60e   : > { %9850 = vmatpush.bf16.msrb.mxu3 %v3129_v14  ;;  %8529 = vmatmul.msk.bf16.vlgmr.msrb.gmra.mxu2 %vm606_vm5, %v9715_v19  ;;  %v7731_v14 = vld [vmem:[%s14296_s10 + $0x88] sm:$0xff] }
 0x60f   : > { %7283 = vrot.lane.b32.xlu1 %v10912_v33, %s9890_s30  ;;  %7748 = vperm.xlu2 %9871, %v7714_v8   ;;  %v9719_v8 = vld [vmem:[%s14295_s9 + $0xa0] sm:$0xff] }
 0x610   : > { %7281 = vrot.lane.b32.xlu0 %v10906_v18, %s9890_s30  ;;  %v11006_v53 = vpop.permute.xlu1 %3480  ;;  %v11008_v11 = vpop.permute.xlu0 %3478 }
 0x611   : > { %v11010_v15 = vpop.permute.xlu2 %3952  ;;  %v3494_v19 = vsel %vm677_vm6, %v11008_v11, %v11006_v53  ;;  %v7730_v11 = vld [vmem:[%s14296_s10 + $0x80] sm:$0xff] }
 0x612   : > { %9851 = vmatpush.bf16.msrb.mxu3 %v3067_v36  ;;  %v11018_v4 = vsel %vm606_vm5, %v10946_v41, %v11010_v15 }
 0x615   : > { %8498 = vmatmul.msk.bf16.gmra.mxu0 %vm606_vm5, %v9716_v26  ;;  %8511 = vmatmul.msk.bf16.gmra.mxu3 %vm606_vm5, %v11023_v49 }
 0x617   : > { %7277 = vrot.lane.b32.xlu1 %v10918_v6, %s9890_s30  ;;  %7763 = vperm.xlu2 %9871, %v7717_v59   ;;  %v7733_v59 = vld [vmem:[%s14296_s10 + $0x98] sm:$0xff] }
 0x618   : > { %7275 = vrot.lane.b32.xlu0 %v10920_v27, %s9890_s30  ;;  %v3949_v1 = vpop.permute.xlu1 %3948  ;;  %v3489_v54 = vpop.permute.xlu0 %3488 }
 0x619   : > { %v3959_v51 = vsel %vm606_vm5, %v3949_v1, %v10946_v41  ;;  %v3498_v62 = vsel %vm677_vm6, %v3489_v54, %v10954_v40  ;;  %v9718_v41 = vld [vmem:[%s14295_s9 + $0x98] sm:$0xff]  ;;  %v3497_v25 = vsel %vm677_vm6, %v10938_v5, %v3489_v54  ;;  %v11107_v5 = vpop.permute.xlu2 %4502  ;;  %v9720_v54 = vld [vmem:[%s14295_s9 + $0xa8] sm:$0xff] }
 0x61a   : > { %v4014_v61 = vand.u32 %v3959_v51, %v10213_v42  ;;  %v3555_v50 = vand.u32 %v3498_v62, %v10213_v42  ;;  %v3552_v12 = vand.u32 %v3497_v25, %v10213_v42  ;;  %v7737_v1 = vld [vmem:[%s14296_s10 + $0xb8] sm:$0xff]  ;;  %v7736_v51 = vld [vmem:[%s14296_s10 + $0xb0] sm:$0xff] }
 0x61b   : > { %v7740_v62 = vld [vmem:[%s14296_s10 + $0xd0] sm:$0xff] }
 0x61c   : > { %3655 = vmatpush.bf16.msra.mxu0 %v3555_v50  ;;  %4028 = vmatpush.bf16.msra.mxu2 %v4014_v61  ;;  %v7739_v61 = vld [vmem:[%s14296_s10 + $0xc8] sm:$0xff] }
 0x61d   : > { %8514 = vmatmul.msk.bf16.gmra.mxu1 %vm606_vm5, %v9716_v26  ;;  %v7743_v50 = vld [vmem:[%s14296_s10 + $0xe8] sm:$0xff] }
 0x61e   : > { %8530 = vmatmul.msk.bf16.gmra.mxu2 %vm606_vm5, %v9716_v26 }
 0x61f   : > { %7758 = vperm.xlu1 %9872, %v7716_v7   ;;  %7773 = vperm.xlu2 %9871, %v7719_v60   ;;  %v9721_v7 = vld [vmem:[%s14295_s9 + $0xb0] sm:$0xff]  ;;  %v7742_v60 = vld [vmem:[%s14296_s10 + $0xe0] sm:$0xff] }
 0x620   : > { %v3941_v34 = vpop.permute.xlu1 %3940  ;;  %v3493_v57 = vpop.permute.xlu0 %3492 }
 0x621   : > { %v3499_v58 = vsel %vm677_vm6, %v10954_v40, %v3493_v57  ;;  %v3956_v16 = vsel %vm606_vm5, %v3941_v34, %v10966_v63  ;;  %v11095_v40 = vld [vmem:[%s14295_s9 + $0xe0] sm:$0xff]  ;;  %v4499_v26 = vpop.permute.xlu2 %4498  ;;  %v7745_v34 = vld [vmem:[%s14296_s10 + $0xf8] sm:$0xff] }
 0x622   : > { %v3558_v24 = vand.u32 %v3499_v58, %v10213_v42  ;;  %4029 = vmatpush.bf16.msra.mxu2 %v3956_v16  ;;  %v9722_v57 = vld [vmem:[%s14295_s9 + $0xb8] sm:$0xff]  ;;  %v4017_v58 = vand.u32 %v11018_v4, %v10213_v42  ;;  %v9723_v16 = vld [vmem:[%s14295_s9 + $0xc0] sm:$0xff] }
 0x624   : > { %3744 = vmatpush.bf16.msra.mxu1 %v3558_v24 }
 0x625   : > { %8499 = vmatmul.msk.bf16.gmra.mxu0 %vm606_vm5, %v9717_v9  ;;  %8512 = vmatmul.msk.bf16.gmra.mxu3 %vm606_vm5, %v11060_v56 }
 0x627   : > { %7768 = vperm.xlu1 %9872, %v7718_v30   ;;  %7788 = vperm.xlu2 %9871, %v7722_v37   ;;  %v9724_v37 = vld [vmem:[%s14295_s9 + $0xc8] sm:$0xff] }
 0x628   : > { %v3485_v0 = vpop.permute.xlu1 %3484  ;;  %v3483_v23 = vpop.permute.xlu0 %3482 }
 0x629   : > { %v3495_v48 = vsel %vm677_vm6, %v11006_v53, %v3483_v23  ;;  %v3496_v13 = vsel %vm677_vm6, %v3483_v23, %v3485_v0  ;;  %vm14728_vm6 = vmmov %vm14337_vm11 }
 0x62a   : > { %3656 = vmatpush.bf16.msra.mxu0 %v3495_v48  ;;  %3745 = vmatpush.bf16.msra.mxu1 %v3496_v13 }
 0x62d   : > { %8515 = vmatmul.msk.bf16.gmra.mxu1 %vm606_vm5, %v9717_v9 }
 0x62e   : > { %8531 = vmatmul.msk.bf16.gmra.mxu2 %vm606_vm5, %v9717_v9 }
 0x62f   : > { %7783 = vperm.xlu1 %9872, %v7721_v2   ;;  %7803 = vperm.xlu2 %9871, %v7725_v39  }
 0x630   : > { %v11082_v32 = vpop.permute.xlu1 %4510  ;;  %v4509_v22 = vpop.permute.xlu0 %4508 }
 0x631   : > { %v4518_v55 = vsel %vm838_vm7, %v4509_v22, %v11082_v32 }
 0x632   : > { %v4575_v17 = vand.u32 %v4518_v55, %v10213_v42  ;;  %v9725_v55 = vld [vmem:[%s14295_s9 + $0xd0] sm:$0xff] }
 0x634   : > { %4675 = vmatpush.bf16.msrb.mxu2 %v4575_v17 }
 0x635   : > { %8500 = vmatmul.msk.bf16.gmra.mxu0 %vm606_vm5, %v9718_v41  ;;  %8525 = vmatmul.msk.bf16.vlgmr.msra.gmra.mxu3 %vm606_vm5, %v11095_v40 }
 0x636   : > { %3566 = vmatpush.bf16.msra.mxu3 %v3552_v12 }
 0x637   : > { %7798 = vperm.xlu1 %9872, %v7724_v28   ;;  %7818 = vperm.xlu2 %9871, %v7728_v3  }
 0x638   : > { %v4501_v20 = vpop.permute.xlu1 %4500  ;;  %v3955_v46 = vpop.permute.xlu0 %3954 }
 0x639   : > { %v3961_v44 = vsel %vm606_vm5, %v11010_v15, %v3955_v46  ;;  %v4515_v63 = vsel %vm838_vm7, %v4501_v20, %v11107_v5  ;;  %v7734_v15 = vld [vmem:[%s14296_s10 + $0xa0] sm:$0xff] }
 0x63a   : > { %v4020_v43 = vand.u32 %v3961_v44, %v10213_v42  ;;  %4676 = vmatpush.bf16.msrb.mxu2 %v4515_v63  ;;  %3567 = vmatpush.bf16.msra.mxu3 %v3494_v19  ;;  %v9726_v44 = vld [vmem:[%s14295_s9 + $0xd8] sm:$0xff]  ;;  %v9699_v19 = vld [vmem:[%s14295_s9] sm:$0xff] }
 0x63c   : > { %4206 = vmatpush.bf16.msrb.mxu0 %v4020_v43 }
 0x63d   : > { %8516 = vmatmul.msk.bf16.gmra.mxu1 %vm606_vm5, %v9718_v41 }
 0x63e   : > { %8532 = vmatmul.msk.bf16.gmra.mxu2 %vm606_vm5, %v9718_v41 }
 0x63f   : > { %7813 = vperm.xlu1 %9872, %v7727_v38   ;;  %7833 = vperm.xlu2 %9871, %v7731_v14  }
 0x640   : > { %v3947_v35 = vpop.permute.xlu1 %3946  ;;  %v4507_v10 = vpop.permute.xlu0 %4506 }
 0x641   : > { %v4517_v31 = vsel %vm838_vm7, %v4507_v10, %v4509_v22  ;;  %v3958_v36 = vsel %vm606_vm5, %v10988_v47, %v3947_v35  ;;  %v4514_v47 = vsel %vm838_vm7, %v4499_v26, %v4501_v20  ;;  %v9700_v26 = vld [vmem:[%s14295_s9 + $0x8] sm:$0xff] }
 0x642   : > { %v4572_v53 = vand.u32 %v4517_v31, %v10213_v42  ;;  %4207 = vmatpush.bf16.msrb.mxu0 %v3958_v36 }
 0x644   : > { %4586 = vmatpush.bf16.msrb.mxu1 %v4572_v53 }
 0x645   : > { %8501 = vmatmul.msk.bf16.gmra.mxu0 %vm606_vm5, %v9719_v8  ;;  %8526 = vmatmul.msk.bf16.gmra.mxu3 %vm606_vm5, %v10977_v29 }
 0x647   : > { %7828 = vperm.xlu1 %9872, %v7730_v11   ;;  %7848 = vperm.xlu2 %9871, %v7734_v15  }
 0x648   : > { %4587 = vmatpush.bf16.msrb.mxu1 %v4514_v47  ;;  %v4513_v20 = vpop.permute.xlu0 %4512  ;;  %v4505_v35 = vpop.permute.xlu1 %4504 }
 0x649   : > { %v4516_v31 = vsel %vm838_vm7, %v11107_v5, %v4505_v35 }
 0x64d   : > { %8517 = vmatmul.msk.bf16.gmra.mxu1 %vm606_vm5, %v9719_v8 }
 0x64e   : > { %8533 = vmatmul.msk.bf16.gmra.mxu2 %vm606_vm5, %v9719_v8 }
 0x64f   : > { %7843 = vperm.xlu1 %9872, %v7733_v59   ;;  %7863 = vperm.xlu2 %9871, %v7737_v1  }
 0x655   : > { %8502 = vmatmul.msk.bf16.gmra.mxu0 %vm606_vm5, %v9720_v54  ;;  %8527 = vmatmul.msk.bf16.gmra.mxu3 %vm606_vm5, %v11023_v49 }
 0x657   : > { %7858 = vperm.xlu1 %9872, %v7736_v51   ;;  %7878 = vperm.xlu2 %9871, %v7740_v62   ;;  %v5138_v62 = vand.u32 %v10912_v33, %v10213_v42  ;;  %v9701_v33 = vld [vmem:[%s14295_s9 + $0x10] sm:$0xff] }
 0x65d   : > { %8518 = vmatmul.msk.bf16.gmra.mxu1 %vm606_vm5, %v9720_v54 }
 0x65e   : > { %8534 = vmatmul.msk.bf16.gmra.mxu2 %vm606_vm5, %v9720_v54  ;;  %v11313_v54 = vld [vmem:[%s14295_s9 + $0x100] sm:$0xff] }
 0x65f   : > { %7873 = vperm.xlu1 %9872, %v7739_v61   ;;  %7893 = vperm.xlu2 %9871, %v7743_v50  }
 0x665   : > { %8503 = vmatmul.msk.bf16.gmra.mxu0 %vm606_vm5, %v9721_v7  ;;  %8528 = vmatmul.msk.bf16.gmra.mxu3 %vm606_vm5, %v11060_v56 }
 0x667   : > { %7888 = vperm.xlu1 %9872, %v7742_v60   ;;  %v5135_v60 = vand.u32 %v10906_v18, %v10213_v42 }
 0x66d   : > { %8519 = vmatmul.msk.bf16.gmra.mxu1 %vm606_vm5, %v9721_v7 }
 0x66e   : > { %8535 = vmatmul.msk.bf16.gmra.mxu2 %vm606_vm5, %v9721_v7 }
 0x66f   : > { %7903 = vperm.xlu1 %9872, %v7745_v34  }
 0x675   : > { %8504 = vmatmul.msk.bf16.gmra.mxu0 %vm606_vm5, %v9722_v57  ;;  %8541 = vmatmul.msk.bf16.vlgmr.msrb.gmra.mxu3 %vm606_vm5, %v11095_v40 }
 0x676   : > { %4117 = vmatpush.bf16.msrb.mxu3 %v4017_v58 }
 0x67a   : > { %4118 = vmatpush.bf16.msrb.mxu3 %v10995_v52 }
 0x67d   : > { %8520 = vmatmul.msk.bf16.gmra.mxu1 %vm606_vm5, %v9722_v57 }
 0x67e   : > { %8536 = vmatmul.msk.bf16.gmra.mxu2 %vm606_vm5, %v9722_v57 }
 0x682   : > { %v11198_v9 = vpop.f32.mrf.mxu0 }
 0x685   : > { %8505 = vmatmul.msk.bf16.gmra.mxu0 %vm606_vm5, %v9723_v16  ;;  %8542 = vmatmul.msk.bf16.gmra.mxu3 %vm606_vm5, %v10977_v29 }
 0x688   : > { %v11203_v4 = vpop.f32.mrf.mxu3 }
 0x68a   : > { %v11205_v24 = vpop.f32.mrf.mxu0  ;;  %v11207_v52 = vpop.f32.mrf.mxu1 }
 0x68d   : > { %8521 = vmatmul.msk.bf16.gmra.mxu1 %vm606_vm5, %v9723_v16 }
 0x68e   : > { %8537 = vmatmul.msk.bf16.gmra.mxu2 %vm606_vm5, %v9723_v16 }
 0x690   : > { %v11211_v30 = vpop.f32.mrf.mxu3 }
 0x691   : > { %v11216_v0 = vpop.f32.mrf.mxu2 }
 0x692   : > { %14342 = vst [vmem:[#allocation4_spill] sm:$0xff] %v11216_v0  ;;  %v11218_v23 = vpop.f32.mrf.mxu0  ;;  %v11220_v29 = vpop.f32.mrf.mxu1 }
 0x695   : > { %8506 = vmatmul.msk.bf16.gmra.mxu0 %vm606_vm5, %v9724_v37  ;;  %8543 = vmatmul.msk.bf16.gmra.mxu3 %vm606_vm5, %v11023_v49 }
 0x698   : > { %v11225_v48 = vpop.f32.mrf.mxu3 }
 0x699   : > { %v11227_v13 = vpop.f32.mrf.mxu2 }
 0x69a   : > { %14343 = vst [vmem:[#allocation5_spill] sm:$0xff] %v11227_v13  ;;  %v11229_v2 = vpop.f32.mrf.mxu0  ;;  %v11231_v39 = vpop.f32.mrf.mxu1  ;;  %v11573_v13 = vld [vmem:[%s14295_s9 + $0x148] sm:$0xff] }
 0x69d   : > { %8522 = vmatmul.msk.bf16.gmra.mxu1 %vm606_vm5, %v9724_v37 }
 0x69e   : > { %8538 = vmatmul.msk.bf16.gmra.mxu2 %vm606_vm5, %v9724_v37 }
 0x6a0   : > { %v11235_v22 = vpop.f32.mrf.mxu3 }
 0x6a1   : > { %v11240_v41 = vpop.f32.mrf.mxu2 }
 0x6a2   : > { %14344 = vst [vmem:[#allocation6_spill] sm:$0xff] %v11240_v41  ;;  %v11242_v49 = vpop.f32.mrf.mxu0  ;;  %v11244_v25 = vpop.f32.mrf.mxu1 }
 0x6a5   : > { %8507 = vmatmul.msk.bf16.gmra.mxu0 %vm606_vm5, %v9725_v55  ;;  %8544 = vmatmul.msk.bf16.gmra.mxu3 %vm606_vm5, %v11060_v56  ;;  %v4519_v56 = vsel %vm838_vm7, %v11082_v32, %v4513_v20  ;;  %vm14732_vm7 = vmmov %vm14728_vm6 }
 0x6a6   : > { %v4578_v14 = vand.u32 %v4519_v56, %v10213_v42 }
 0x6a8   : > { %v11249_v17 = vpop.f32.mrf.mxu3 }
 0x6a9   : > { %v11251_v28 = vpop.f32.mrf.mxu2 }
 0x6aa   : > { %14345 = vst [vmem:[#allocation7_spill] sm:$0xff] %v11251_v28  ;;  %v11253_v3 = vpop.f32.mrf.mxu0  ;;  %v11255_v12 = vpop.f32.mrf.mxu1 }
 0x6ab   : > { %14346 = vst [vmem:[#allocation8_spill] sm:$0xff] %v11255_v12 }
 0x6ad   : > { %8523 = vmatmul.msk.bf16.gmra.mxu1 %vm606_vm5, %v9725_v55 }
 0x6ae   : > { %8539 = vmatmul.msk.bf16.gmra.mxu2 %vm606_vm5, %v9725_v55 }
 0x6b0   : > { %v11259_v46 = vpop.f32.mrf.mxu3 }
 0x6b1   : > { %v11266_v63 = vpop.f32.mrf.mxu2 }
 0x6b2   : > { %14347 = vst [vmem:[#allocation9_spill] sm:$0xff] %v11266_v63  ;;  %v11268_v43 = vpop.f32.mrf.mxu0  ;;  %v11273_v38 = vpop.f32.mrf.mxu1 }
 0x6b3   : > { %14348 = vst [vmem:[#allocation10_spill] sm:$0xff] %v11273_v38 }
 0x6b5   : > { %8508 = vmatmul.msk.bf16.gmra.mxu0 %vm606_vm5, %v9726_v44  ;;  %8609 = vmatmul.msk.bf16.vlgmr.msra.gmra.mxu3 %vm606_vm5, %v9699_v19 }
 0x6b6   : > { %4764 = vmatpush.bf16.msra.mxu3 %v4578_v14 }
 0x6b8   : > { %v11278_v10 = vpop.f32.mrf.mxu3 }
 0x6b9   : > { %14349 = vst [vmem:[#allocation11_spill] sm:$0xff] %v11278_v10  ;;  %v11280_v32 = vpop.f32.mrf.mxu2 }
 0x6ba   : > { %14350 = vst [vmem:[#allocation12_spill] sm:$0xff] %v11280_v32  ;;  %v11284_v36 = vpop.f32.mrf.mxu0  ;;  %4765 = vmatpush.bf16.msra.mxu3 %v4516_v31  ;;  %v11286_v8 = vpop.f32.mrf.mxu1 }
 0x6bb   : > { %14351 = vst [vmem:[#allocation13_spill] sm:$0xff] %v11286_v8 }
 0x6bd   : > { %8524 = vmatmul.msk.bf16.gmra.mxu1 %vm606_vm5, %v9726_v44 }
 0x6be   : > { %8540 = vmatmul.msk.bf16.gmra.mxu2 %vm606_vm5, %v9726_v44 }
 0x6c0   : > { %v11290_v53 = vpop.f32.mrf.mxu3 }
 0x6c1   : > { %14352 = vst [vmem:[#allocation14_spill] sm:$0xff] %v11290_v53  ;;  %v11292_v11 = vpop.f32.mrf.mxu2 }
 0x6c2   : > { %14353 = vst [vmem:[#allocation15_spill] sm:$0xff] %v11292_v11  ;;  %v11294_v15 = vpop.f32.mrf.mxu0  ;;  %v11299_v5 = vpop.f32.mrf.mxu1 }
 0x6c3   : > { %14354 = vst [vmem:[#allocation16_spill] sm:$0xff] %v11299_v5 }
 0x6c5   : > { %8509 = vmatmul.msk.bf16.gmra.mxu0 %vm606_vm5, %v11095_v40  ;;  %8610 = vmatmul.msk.bf16.gmra.mxu3 %vm606_vm5, %v9700_v26  ;;  %v5141_v40 = vand.u32 %v10922_v21, %v10213_v42 }
 0x6c8   : > { %v11304_v47 = vpop.f32.mrf.mxu3 }
 0x6c9   : > { %14355 = vst [vmem:[#allocation17_spill] sm:$0xff] %v11304_v47  ;;  %v11306_v59 = vpop.f32.mrf.mxu2  ;;  %v9704_v47 = vld [vmem:[%s14295_s9 + $0x28] sm:$0xff] }
 0x6ca   : > { %14356 = vst [vmem:[#allocation18_spill] sm:$0xff] %v11306_v59  ;;  %v11308_v1 = vpop.f32.mrf.mxu0  ;;  %v11315_v51 = vpop.f32.mrf.mxu1 }
 0x6cb   : > { %14357 = vst [vmem:[#allocation19_spill] sm:$0xff] %v11315_v51 }
 0x6cd   : > { %8641 = vmatmul.msk.bf16.vlgmr.msra.gmra.mxu1 %vm606_vm5, %v9699_v19 }
 0x6ce   : > { %8753 = vmatmul.msk.bf16.vlgmr.msra.gmra.mxu2 %vm606_vm5, %v11313_v54  ;;  %5238 = vmatpush.bf16.msra.mxu1 %v5138_v62  ;;  %v9703_v62 = vld [vmem:[%s14295_s9 + $0x20] sm:$0xff] }
 0x6cf   : > { %5327 = vmatpush.bf16.msra.mxu2 %v5141_v40 }
 0x6d0   : > { %v11324_v61 = vpop.f32.mrf.mxu3 }
 0x6d1   : > { %14358 = vst [vmem:[#allocation20_spill] sm:$0xff] %v11324_v61  ;;  %v11326_v50 = vpop.f32.mrf.mxu2 }
 0x6d2   : > { %14359 = vst [vmem:[#allocation21_spill] sm:$0xff] %v11326_v50  ;;  %5239 = vmatpush.bf16.msra.mxu1 %v10918_v6  ;;  %v11329_v7 = vpop.f32.mrf.mxu0  ;;  %v11335_v21 = vpop.f32.mrf.mxu1 }
 0x6d3   : > { %5328 = vmatpush.bf16.msra.mxu2 %v10930_v45  ;;  %14360 = vst [vmem:[#allocation22_spill] sm:$0xff] %v11335_v21  ;;  %v11351_v45 = vld [vmem:[%s14295_s9 + $0x108] sm:$0xff] }
 0x6d5   : > { %8625 = vmatmul.msk.bf16.vlgmr.msra.gmra.mxu0 %vm606_vm5, %v9699_v19  ;;  %8611 = vmatmul.msk.bf16.gmra.mxu3 %vm606_vm5, %v9701_v33  ;;  %v11380_v19 = vld [vmem:[%s14295_s9 + $0x110] sm:$0xff] }
 0x6d6   : > { %5149 = vmatpush.bf16.msra.mxu0 %v5135_v60 }
 0x6d8   : > { %v11341_v34 = vpop.f32.mrf.mxu3 }
 0x6d9   : > { %14361 = vst [vmem:[#allocation23_spill] sm:$0xff] %v11341_v34  ;;  %v11343_v6 = vpop.f32.mrf.mxu2 }
 0x6da   : > { %14362 = vst [vmem:[#allocation24_spill] sm:$0xff] %v11343_v6  ;;  %5150 = vmatpush.bf16.msra.mxu0 %v10920_v27  ;;  %v11346_v57 = vpop.f32.mrf.mxu0  ;;  %v11353_v58 = vpop.f32.mrf.mxu1  ;;  %v9702_v27 = vld [vmem:[%s14295_s9 + $0x18] sm:$0xff] }
 0x6db   : > { %14363 = vst [vmem:[#allocation25_spill] sm:$0xff] %v11353_v58 }
 0x6dd   : > { %8642 = vmatmul.msk.bf16.gmra.mxu1 %vm606_vm5, %v9700_v26 }
 0x6de   : > { %8754 = vmatmul.msk.bf16.gmra.mxu2 %vm606_vm5, %v11351_v45 }
 0x6e0   : > { %v11358_v18 = vpop.f32.mrf.mxu3 }
 0x6e1   : > { %14364 = vst [vmem:[#allocation26_spill] sm:$0xff] %v11358_v18  ;;  %v11360_v16 = vpop.f32.mrf.mxu2 }
 0x6e2   : > { %14365 = vst [vmem:[#allocation27_spill] sm:$0xff] %v11360_v16  ;;  %v11362_v37 = vpop.f32.mrf.mxu0  ;;  %v11367_v55 = vpop.f32.mrf.mxu1 }
 0x6e3   : > { %14366 = vst [vmem:[#allocation28_spill] sm:$0xff] %v11367_v55 }
 0x6e5   : > { %8626 = vmatmul.msk.bf16.gmra.mxu0 %vm606_vm5, %v9700_v26  ;;  %8612 = vmatmul.msk.bf16.gmra.mxu3 %vm606_vm5, %v9702_v27 }
 0x6e8   : > { %v11371_v20 = vpop.f32.mrf.mxu3 }
 0x6e9   : > { %14367 = vst [vmem:[#allocation29_spill] sm:$0xff] %v11371_v20  ;;  %v11373_v44 = vpop.f32.mrf.mxu2 }
 0x6ea   : > { %14368 = vst [vmem:[#allocation30_spill] sm:$0xff] %v11373_v44  ;;  %v11375_v56 = vpop.f32.mrf.mxu0  ;;  %v11382_v14 = vpop.f32.mrf.mxu1 }
 0x6eb   : > { %14369 = vst [vmem:[#allocation31_spill] sm:$0xff] %v11382_v14 }
 0x6ed   : > { %8643 = vmatmul.msk.bf16.gmra.mxu1 %vm606_vm5, %v9701_v33 }
 0x6ee   : > { %8755 = vmatmul.msk.bf16.gmra.mxu2 %vm606_vm5, %v11380_v19 }
 0x6f0   : > { %v11387_v35 = vpop.f32.mrf.mxu3 }
 0x6f1   : > { %14370 = vst [vmem:[#allocation32_spill] sm:$0xff] %v11387_v35  ;;  %v11389_v31 = vpop.f32.mrf.mxu2  ;;  %v11409_v35 = vld [vmem:[%s14295_s9 + $0x118] sm:$0xff] }
 0x6f2   : > { %14371 = vst [vmem:[#allocation33_spill] sm:$0xff] %v11389_v31  ;;  %v11391_v26 = vpop.f32.mrf.mxu0  ;;  %v11396_v40 = vpop.f32.mrf.mxu1 }
 0x6f3   : > { %14372 = vst [vmem:[#allocation34_spill] sm:$0xff] %v11396_v40 }
 0x6f5   : > { %8627 = vmatmul.msk.bf16.gmra.mxu0 %vm606_vm5, %v9701_v33  ;;  %8613 = vmatmul.msk.bf16.gmra.mxu3 %vm606_vm5, %v9703_v62 }
 0x6f8   : > { %v11400_v60 = vpop.f32.mrf.mxu3 }
 0x6f9   : > { %14373 = vst [vmem:[#allocation35_spill] sm:$0xff] %v11400_v60  ;;  %v11402_v20 = vpop.f32.mrf.mxu2 }
 0x6fa   : > { %14374 = vst [vmem:[#allocation36_spill] sm:$0xff] %v11402_v20  ;;  %v11404_v18 = vpop.f32.mrf.mxu0  ;;  %v11411_v34 = vpop.f32.mrf.mxu1 }
 0x6fb   : > { %14375 = vst [vmem:[#allocation37_spill] sm:$0xff] %v11411_v34 }
 0x6fd   : > { %8644 = vmatmul.msk.bf16.gmra.mxu1 %vm606_vm5, %v9702_v27 }
 0x6fe   : > { %8756 = vmatmul.msk.bf16.gmra.mxu2 %vm606_vm5, %v11409_v35 }
 0x700   : > { %v11416_v33 = vpop.f32.mrf.mxu3 }
 0x701   : > { %14376 = vst [vmem:[#allocation38_spill] sm:$0xff] %v11416_v33  ;;  %v11418_v61 = vpop.f32.mrf.mxu2  ;;  %v11438_v33 = vld [vmem:[%s14295_s9 + $0x120] sm:$0xff] }
 0x702   : > { %14377 = vst [vmem:[#allocation39_spill] sm:$0xff] %v11418_v61  ;;  %v11420_v60 = vpop.f32.mrf.mxu0  ;;  %v11425_v53 = vpop.f32.mrf.mxu1 }
 0x703   : > { %14378 = vst [vmem:[#allocation40_spill] sm:$0xff] %v11425_v53 }
 0x705   : > { %8628 = vmatmul.msk.bf16.gmra.mxu0 %vm606_vm5, %v9702_v27  ;;  %8614 = vmatmul.msk.bf16.gmra.mxu3 %vm606_vm5, %v9704_v47 }
 0x708   : > { %v11429_v10 = vpop.f32.mrf.mxu3 }
 0x709   : > { %14379 = vst [vmem:[#allocation41_spill] sm:$0xff] %v11429_v10  ;;  %v11431_v20 = vpop.f32.mrf.mxu2 }
 0x70a   : > { %14380 = vst [vmem:[#allocation42_spill] sm:$0xff] %v11431_v20  ;;  %v11433_v31 = vpop.f32.mrf.mxu0  ;;  %v11440_v61 = vpop.f32.mrf.mxu1  ;;  %v9705_v20 = vld [vmem:[%s14295_s9 + $0x30] sm:$0xff] }
 0x70b   : > { %14381 = vst [vmem:[#allocation43_spill] sm:$0xff] %v11440_v61 }
 0x70d   : > { %8645 = vmatmul.msk.bf16.gmra.mxu1 %vm606_vm5, %v9703_v62 }
 0x70e   : > { %8757 = vmatmul.msk.bf16.gmra.mxu2 %vm606_vm5, %v11438_v33 }
 0x710   : > { %v11445_v27 = vpop.f32.mrf.mxu3 }
 0x711   : > { %14382 = vst [vmem:[#allocation44_spill] sm:$0xff] %v11445_v27  ;;  %v11447_v53 = vpop.f32.mrf.mxu2  ;;  %v11467_v27 = vld [vmem:[%s14295_s9 + $0x128] sm:$0xff] }
 0x712   : > { %14383 = vst [vmem:[#allocation45_spill] sm:$0xff] %v11447_v53  ;;  %v11449_v10 = vpop.f32.mrf.mxu0  ;;  %v11454_v44 = vpop.f32.mrf.mxu1 }
 0x713   : > { %14384 = vst [vmem:[#allocation46_spill] sm:$0xff] %v11454_v44 }
 0x715   : > { %8629 = vmatmul.msk.bf16.gmra.mxu0 %vm606_vm5, %v9703_v62  ;;  %8615 = vmatmul.msk.bf16.gmra.mxu3 %vm606_vm5, %v9705_v20 }
 0x718   : > { %v11458_v61 = vpop.f32.mrf.mxu3 }
 0x719   : > { %14385 = vst [vmem:[#allocation47_spill] sm:$0xff] %v11458_v61  ;;  %v11460_v34 = vpop.f32.mrf.mxu2 }
 0x71a   : > { %14386 = vst [vmem:[#allocation48_spill] sm:$0xff] %v11460_v34  ;;  %v11462_v16 = vpop.f32.mrf.mxu0  ;;  %v11469_v53 = vpop.f32.mrf.mxu1  ;;  %v9706_v34 = vld [vmem:[%s14295_s9 + $0x38] sm:$0xff] }
 0x71b   : > { %14387 = vst [vmem:[#allocation49_spill] sm:$0xff] %v11469_v53 }
 0x71d   : > { %8646 = vmatmul.msk.bf16.gmra.mxu1 %vm606_vm5, %v9704_v47 }
 0x71e   : > { %8758 = vmatmul.msk.bf16.gmra.mxu2 %vm606_vm5, %v11467_v27 }
 0x720   : > { %v11474_v62 = vpop.f32.mrf.mxu3 }
 0x721   : > { %14388 = vst [vmem:[#allocation50_spill] sm:$0xff] %v11474_v62  ;;  %v11476_v44 = vpop.f32.mrf.mxu2  ;;  %v11496_v62 = vld [vmem:[%s14295_s9 + $0x130] sm:$0xff] }
 0x722   : > { %14389 = vst [vmem:[#allocation51_spill] sm:$0xff] %v11476_v44  ;;  %v11478_v61 = vpop.f32.mrf.mxu0  ;;  %v11483_v40 = vpop.f32.mrf.mxu1 }
 0x723   : > { %14390 = vst [vmem:[#allocation52_spill] sm:$0xff] %v11483_v40 }
 0x725   : > { %8630 = vmatmul.msk.bf16.gmra.mxu0 %vm606_vm5, %v9704_v47  ;;  %8616 = vmatmul.msk.bf16.gmra.mxu3 %vm606_vm5, %v9706_v34 }
 0x728   : > { %v11487_v53 = vpop.f32.mrf.mxu3 }
 0x729   : > { %14391 = vst [vmem:[#allocation53_spill] sm:$0xff] %v11487_v53  ;;  %v11489_v6 = vpop.f32.mrf.mxu2 }
 0x72a   : > { %14392 = vst [vmem:[#allocation54_spill] sm:$0xff] %v11489_v6  ;;  %v11491_v14 = vpop.f32.mrf.mxu0  ;;  %v11498_v44 = vpop.f32.mrf.mxu1  ;;  %v9707_v6 = vld [vmem:[%s14295_s9 + $0x40] sm:$0xff] }
 0x72b   : > { %14393 = vst [vmem:[#allocation55_spill] sm:$0xff] %v11498_v44 }
 0x72d   : > { %8647 = vmatmul.msk.bf16.gmra.mxu1 %vm606_vm5, %v9705_v20 }
 0x72e   : > { %8759 = vmatmul.msk.bf16.gmra.mxu2 %vm606_vm5, %v11496_v62 }
 0x730   : > { %v11503_v47 = vpop.f32.mrf.mxu3 }
 0x731   : > { %14394 = vst [vmem:[#allocation56_spill] sm:$0xff] %v11503_v47  ;;  %v11505_v40 = vpop.f32.mrf.mxu2  ;;  %v11523_v47 = vld [vmem:[%s14295_s9 + $0x138] sm:$0xff] }
 0x732   : > { %14395 = vst [vmem:[#allocation57_spill] sm:$0xff] %v11505_v40  ;;  %v11507_v53 = vpop.f32.mrf.mxu0  ;;  %v11512_v50 = vpop.f32.mrf.mxu1 }
 0x733   : > { %14396 = vst [vmem:[#allocation58_spill] sm:$0xff] %v11512_v50 }
 0x735   : > { %8631 = vmatmul.msk.bf16.gmra.mxu0 %vm606_vm5, %v9705_v20  ;;  %8617 = vmatmul.msk.bf16.gmra.mxu3 %vm606_vm5, %v9707_v6 }
 0x738   : > { %v3569_v44 = vpop.f32.mrf.mxu3 }
 0x739   : > { %v11516_v55 = vpop.f32.mrf.mxu2 }
 0x73a   : > { %14397 = vst [vmem:[#allocation59_spill] sm:$0xff] %v11516_v55  ;;  %v11518_v59 = vpop.f32.mrf.mxu0  ;;  %v11525_v40 = vpop.f32.mrf.mxu1  ;;  %v9708_v55 = vld [vmem:[%s14295_s9 + $0x48] sm:$0xff] }
 0x73b   : > { %14398 = vst [vmem:[#allocation60_spill] sm:$0xff] %v11525_v40 }
 0x73d   : > { %8648 = vmatmul.msk.bf16.gmra.mxu1 %vm606_vm5, %v9706_v34 }
 0x73e   : > { %8760 = vmatmul.msk.bf16.gmra.mxu2 %vm606_vm5, %v11523_v47 }
 0x740   : > { %v3571_v20 = vpop.f32.mrf.mxu3 }
 0x741   : > { %v11530_v50 = vpop.f32.mrf.mxu2  ;;  %v3572_v41 = vadd.f32 %v3571_v20, %v11205_v24 }
 0x742   : > { %14399 = vst [vmem:[#allocation61_spill] sm:$0xff] %v11530_v50  ;;  %v11532_v58 = vpop.f32.mrf.mxu0  ;;  %v11537_v11 = vpop.f32.mrf.mxu1  ;;  %v11548_v50 = vld [vmem:[%s14295_s9 + $0x140] sm:$0xff] }
 0x743   : > { %14400 = vst [vmem:[#allocation62_spill] sm:$0xff] %v11537_v11 }
 0x745   : > { %8632 = vmatmul.msk.bf16.gmra.mxu0 %vm606_vm5, %v9706_v34  ;;  %8618 = vmatmul.msk.bf16.gmra.mxu3 %vm606_vm5, %v9708_v55  ;;  %v3570_v34 = vadd.f32 %v3569_v44, %v11198_v9 }
 0x748   : > { %v3574_v40 = vpop.f32.mrf.mxu3 }
 0x749   : > { %v11541_v21 = vpop.f32.mrf.mxu2  ;;  %v3575_v24 = vadd.f32 %v3574_v40, %v11218_v23 }
 0x74a   : > { %14401 = vst [vmem:[#allocation63_spill] sm:$0xff] %v11541_v21  ;;  %v11543_v32 = vpop.f32.mrf.mxu0  ;;  %v11550_v51 = vpop.f32.mrf.mxu1  ;;  %v9709_v21 = vld [vmem:[%s14295_s9 + $0x50] sm:$0xff] }
 0x74b   : > { %14402 = vst [vmem:[#allocation64_spill] sm:$0xff] %v11550_v51 }
 0x74d   : > { %8649 = vmatmul.msk.bf16.gmra.mxu1 %vm606_vm5, %v9707_v6 }
 0x74e   : > { %8761 = vmatmul.msk.bf16.gmra.mxu2 %vm606_vm5, %v11548_v50 }
 0x750   : > { %v3576_v11 = vpop.f32.mrf.mxu3 }
 0x751   : > { %v4031_v63 = vpop.f32.mrf.mxu2 }
 0x752   : > { %v11556_v5 = vpop.f32.mrf.mxu0  ;;  %v11561_v28 = vadd.f32 %v4031_v63, %v3570_v34  ;;  %v11563_v8 = vpop.f32.mrf.mxu1 }
 0x753   : > { %14403 = vst [vmem:[#allocation65_spill] sm:$0xff] %v11563_v8  ;;  %v9710_v8 = vld [vmem:[%s14295_s9 + $0x58] sm:$0xff] }
 0x755   : > { %8633 = vmatmul.msk.bf16.gmra.mxu0 %vm606_vm5, %v9707_v6  ;;  %8619 = vmatmul.msk.bf16.gmra.mxu3 %vm606_vm5, %v9709_v21 }
 0x758   : > { %v3579_v38 = vpop.f32.mrf.mxu3 }
 0x759   : > { %v4033_v9 = vpop.f32.mrf.mxu2 }
 0x75a   : > { %v11568_v44 = vpop.f32.mrf.mxu0  ;;  %v11575_v12 = vadd.f32 %v4033_v9, %v3572_v41  ;;  %v11577_v63 = vpop.f32.mrf.mxu1  ;;  %v3577_v9 = vadd.f32 %v3576_v11, %v11229_v2  ;;  %v3580_v2 = vadd.f32 %v3579_v38, %v11242_v49 }
 0x75b   : > { %14405 = vst [vmem:[#allocation67_spill] sm:$0xff] %v11577_v63 }
 0x75c   : > { %14404 = vst [vmem:[#allocation66_spill] sm:$0xff] %v11575_v12  ;;  %v11600_v12 = vld [vmem:[%s14295_s9 + $0x150] sm:$0xff] }
 0x75d   : > { %8650 = vmatmul.msk.bf16.gmra.mxu1 %vm606_vm5, %v9708_v55 }
 0x75e   : > { %8762 = vmatmul.msk.bf16.gmra.mxu2 %vm606_vm5, %v11573_v13 }
 0x760   : > { %v3581_v6 = vpop.f32.mrf.mxu3 }
 0x761   : > { %v4036_v20 = vpop.f32.mrf.mxu2 }
 0x762   : > { %v11583_v34 = vpop.f32.mrf.mxu0  ;;  %v11588_v51 = vadd.f32 %v4036_v20, %v3575_v24  ;;  %v11590_v41 = vpop.f32.mrf.mxu1 }
 0x763   : > { %14407 = vst [vmem:[#allocation69_spill] sm:$0xff] %v11590_v41  ;;  %v9711_v41 = vld [vmem:[%s14295_s9 + $0x60] sm:$0xff] }
 0x764   : > { %14406 = vst [vmem:[#allocation68_spill] sm:$0xff] %v11588_v51 }
 0x765   : > { %8634 = vmatmul.msk.bf16.gmra.mxu0 %vm606_vm5, %v9708_v55  ;;  %8620 = vmatmul.msk.bf16.gmra.mxu3 %vm606_vm5, %v9710_v8 }
 0x768   : > { %v3584_v63 = vpop.f32.mrf.mxu3 }
 0x769   : > { %v4038_v23 = vpop.f32.mrf.mxu2 }
 0x76a   : > { %v11595_v40 = vpop.f32.mrf.mxu0  ;;  %v11602_v0 = vadd.f32 %v4038_v23, %v3577_v9  ;;  %v11604_v24 = vpop.f32.mrf.mxu1  ;;  %v3582_v23 = vadd.f32 %v3581_v6, %v11253_v3  ;;  %v3585_v3 = vadd.f32 %v3584_v63, %v11268_v43 }
 0x76b   : > { %14409 = vst [vmem:[#allocation71_spill] sm:$0xff] %v11604_v24 }
 0x76c   : > { %14408 = vst [vmem:[#allocation70_spill] sm:$0xff] %v11602_v0  ;;  %v11627_v0 = vld [vmem:[%s14295_s9 + $0x158] sm:$0xff] }
 0x76d   : > { %8651 = vmatmul.msk.bf16.gmra.mxu1 %vm606_vm5, %v9709_v21 }
 0x76e   : > { %8763 = vmatmul.msk.bf16.gmra.mxu2 %vm606_vm5, %v11600_v12 }
 0x770   : > { %v3586_v11 = vpop.f32.mrf.mxu3 }
 0x771   : > { %v4041_v55 = vpop.f32.mrf.mxu2 }
 0x772   : > { %v11610_v20 = vpop.f32.mrf.mxu0  ;;  %v11615_v51 = vadd.f32 %v4041_v55, %v3580_v2  ;;  %v11617_v9 = vpop.f32.mrf.mxu1 }
 0x773   : > { %14410 = vst [vmem:[#allocation72_spill] sm:$0xff] %v11610_v20 }
 0x774   : > { %14411 = vst [vmem:[#allocation73_spill] sm:$0xff] %v11615_v51 }
 0x775   : > { %14412 = vst [vmem:[#allocation74_spill] sm:$0xff] %v11617_v9  ;;  %8635 = vmatmul.msk.bf16.gmra.mxu0 %vm606_vm5, %v9709_v21  ;;  %8621 = vmatmul.msk.bf16.gmra.mxu3 %vm606_vm5, %v9711_v41  ;;  %v9712_v9 = vld [vmem:[%s14295_s9 + $0x68] sm:$0xff] }
 0x778   : > { %v3589_v24 = vpop.f32.mrf.mxu3 }
 0x779   : > { %v4043_v49 = vpop.f32.mrf.mxu2 }
 0x77a   : > { %v11622_v38 = vpop.f32.mrf.mxu0  ;;  %v11629_v20 = vadd.f32 %v4043_v49, %v3582_v23  ;;  %v11631_v2 = vpop.f32.mrf.mxu1  ;;  %v3587_v49 = vadd.f32 %v3586_v11, %v11284_v36  ;;  %v3590_v36 = vadd.f32 %v3589_v24, %v11294_v15 }
 0x77b   : > { %14414 = vst [vmem:[#allocation76_spill] sm:$0xff] %v11631_v2 }
 0x77c   : > { %14413 = vst [vmem:[#allocation75_spill] sm:$0xff] %v11629_v20  ;;  %v11654_v20 = vld [vmem:[%s14295_s9 + $0x160] sm:$0xff] }
 0x77d   : > { %8652 = vmatmul.msk.bf16.gmra.mxu1 %vm606_vm5, %v9710_v8 }
 0x77e   : > { %8764 = vmatmul.msk.bf16.gmra.mxu2 %vm606_vm5, %v11627_v0 }
 0x780   : > { %v3591_v21 = vpop.f32.mrf.mxu3 }
 0x781   : > { %v4046_v6 = vpop.f32.mrf.mxu2 }
 0x782   : > { %v11637_v55 = vpop.f32.mrf.mxu0  ;;  %v11642_v51 = vadd.f32 %v4046_v6, %v3585_v3  ;;  %v11644_v23 = vpop.f32.mrf.mxu1 }
 0x783   : > { %14415 = vst [vmem:[#allocation77_spill] sm:$0xff] %v11637_v55 }
 0x784   : > { %14416 = vst [vmem:[#allocation78_spill] sm:$0xff] %v11642_v51 }
 0x785   : > { %14417 = vst [vmem:[#allocation79_spill] sm:$0xff] %v11644_v23  ;;  %8636 = vmatmul.msk.bf16.gmra.mxu0 %vm606_vm5, %v9710_v8  ;;  %8622 = vmatmul.msk.bf16.gmra.mxu3 %vm606_vm5, %v9712_v9  ;;  %v9713_v23 = vld [vmem:[%s14295_s9 + $0x70] sm:$0xff] }
 0x788   : > { %v3594_v2 = vpop.f32.mrf.mxu3 }
 0x789   : > { %v4048_v43 = vpop.f32.mrf.mxu2 }
 0x78a   : > { %v11649_v63 = vpop.f32.mrf.mxu0  ;;  %v11656_v55 = vadd.f32 %v4048_v43, %v3587_v49  ;;  %v11658_v3 = vpop.f32.mrf.mxu1  ;;  %v3592_v43 = vadd.f32 %v3591_v21, %v11308_v1  ;;  %v3595_v1 = vadd.f32 %v3594_v2, %v11329_v7 }
 0x78b   : > { %14419 = vst [vmem:[#allocation81_spill] sm:$0xff] %v11658_v3 }
 0x78c   : > { %14418 = vst [vmem:[#allocation80_spill] sm:$0xff] %v11656_v55  ;;  %v11681_v55 = vld [vmem:[%s14295_s9 + $0x168] sm:$0xff] }
 0x78d   : > { %8653 = vmatmul.msk.bf16.gmra.mxu1 %vm606_vm5, %v9711_v41  ;;  %14424 = vst [vmem:[#allocation86_spill] sm:$0xff] %v11681_v55 }
 0x78e   : > { %8765 = vmatmul.msk.bf16.gmra.mxu2 %vm606_vm5, %v11654_v20 }
 0x790   : > { %v3596_v8 = vpop.f32.mrf.mxu3 }
 0x791   : > { %v4051_v11 = vpop.f32.mrf.mxu2 }
 0x792   : > { %v11664_v6 = vpop.f32.mrf.mxu0  ;;  %v11669_v51 = vadd.f32 %v4051_v11, %v3590_v36  ;;  %v11671_v49 = vpop.f32.mrf.mxu1 }
 0x793   : > { %14420 = vst [vmem:[#allocation82_spill] sm:$0xff] %v11664_v6 }
 0x794   : > { %14421 = vst [vmem:[#allocation83_spill] sm:$0xff] %v11669_v51 }
 0x795   : > { %14422 = vst [vmem:[#allocation84_spill] sm:$0xff] %v11671_v49  ;;  %8637 = vmatmul.msk.bf16.gmra.mxu0 %vm606_vm5, %v9711_v41  ;;  %8623 = vmatmul.msk.bf16.gmra.mxu3 %vm606_vm5, %v9713_v23  ;;  %v9714_v49 = vld [vmem:[%s14295_s9 + $0x78] sm:$0xff] }
 0x798   : > { %v3599_v3 = vpop.f32.mrf.mxu3 }
 0x799   : > { %v4053_v15 = vpop.f32.mrf.mxu2 }
 0x79a   : > { %v11676_v24 = vpop.f32.mrf.mxu0  ;;  %v11683_v6 = vadd.f32 %v4053_v15, %v3592_v43  ;;  %v11685_v36 = vpop.f32.mrf.mxu1 }
 0x79b   : > { %14423 = vst [vmem:[#allocation85_spill] sm:$0xff] %v11676_v24  ;;  %v5620_v15 = vpop.permute.xlu0 %5619 }
 0x79c   : > { %14425 = vst [vmem:[#allocation87_spill] sm:$0xff] %v11683_v6 }
 0x79d   : > { %14426 = vst [vmem:[#allocation88_spill] sm:$0xff] %v11685_v36  ;;  %8654 = vmatmul.msk.bf16.gmra.mxu1 %vm606_vm5, %v9712_v9  ;;  %v3597_v36 = vadd.f32 %v3596_v8, %v11346_v57  ;;  %v5626_v57 = vpop.permute.xlu2 %5625  ;;  %v3600_v8 = vadd.f32 %v3599_v3, %v11362_v37 }
 0x79e   : > { %8766 = vmatmul.msk.bf16.gmra.mxu2 %vm606_vm5, %v11681_v55 }
 0x7a0   : > { %v3601_v41 = vpop.f32.mrf.mxu3 }
 0x7a1   : > { %v4056_v21 = vpop.f32.mrf.mxu2  ;;  %v3602_v37 = vadd.f32 %v3601_v41, %v11375_v56 }
 0x7a2   : > { %v11691_v11 = vpop.f32.mrf.mxu0  ;;  %v11696_v51 = vadd.f32 %v4056_v21, %v3595_v1  ;;  %v11698_v43 = vpop.f32.mrf.mxu1 }
 0x7a3   : > { %14427 = vst [vmem:[#allocation89_spill] sm:$0xff] %v11691_v11  ;;  %v11708_v11 = vld [vmem:[%s14295_s9 + $0x170] sm:$0xff] }
 0x7a4   : > { %14428 = vst [vmem:[#allocation90_spill] sm:$0xff] %v11696_v51 }
 0x7a5   : > { %14429 = vst [vmem:[#allocation91_spill] sm:$0xff] %v11698_v43  ;;  %8638 = vmatmul.msk.bf16.gmra.mxu0 %vm606_vm5, %v9712_v9  ;;  %8624 = vmatmul.msk.bf16.gmra.mxu3 %vm606_vm5, %v9714_v49  ;;  %v5628_v9 = vpop.permute.xlu0 %5627 }
 0x7a6   : > { %v5633_v51 = vsel %vm1002_vm8, %v5626_v57, %v5628_v9 }
 0x7a8   : > { %v3604_v7 = vpop.f32.mrf.mxu3 }
 0x7a9   : > { %v4058_v2 = vpop.f32.mrf.mxu2  ;;  %v3605_v56 = vadd.f32 %v3604_v7, %v11391_v26  ;;  %v11761_v26 = vld [vmem:[%s14295_s9 + $0x180] sm:$0xff] }
 0x7aa   : > { %v11703_v6 = vpop.f32.mrf.mxu0  ;;  %v11710_v1 = vadd.f32 %v4058_v2, %v3597_v36  ;;  %v11712_v21 = vpop.f32.mrf.mxu1  ;;  %v5687_v2 = vand.u32 %v5633_v51, %v10213_v42 }
 0x7ab   : > { %14430 = vst [vmem:[#allocation92_spill] sm:$0xff] %v11703_v6 }
 0x7ac   : > { %14431 = vst [vmem:[#allocation93_spill] sm:$0xff] %v11710_v1 }
 0x7ad   : > { %14432 = vst [vmem:[#allocation94_spill] sm:$0xff] %v11712_v21  ;;  %8655 = vmatmul.msk.bf16.gmra.mxu1 %vm606_vm5, %v9713_v23  ;;  %v5622_v21 = vpop.permute.xlu1 %5621 }
 0x7ae   : > { %8767 = vmatmul.msk.bf16.gmra.mxu2 %vm606_vm5, %v11708_v11  ;;  %v5631_v1 = vsel %vm1002_vm8, %v5620_v15, %v5622_v21 }
 0x7b0   : > { %v3606_v43 = vpop.f32.mrf.mxu3 }
 0x7b1   : > { %v4061_v6 = vpop.f32.mrf.mxu2 }
 0x7b2   : > { %v11719_v55 = vpop.f32.mrf.mxu0  ;;  %v11721_v24 = vadd.f32 %v4061_v6, %v3600_v8  ;;  %v11723_v36 = vpop.f32.mrf.mxu1  ;;  %v11736_v6 = vld [vmem:[%s14295_s9 + $0x178] sm:$0xff] }
 0x7b3   : > { %14433 = vst [vmem:[#allocation95_spill] sm:$0xff] %v11719_v55  ;;  %v11742_v8 = vpop.permute.xlu2 %6179 }
 0x7b4   : > { %14434 = vst [vmem:[#allocation96_spill] sm:$0xff] %v11721_v24 }
 0x7b5   : > { %14435 = vst [vmem:[#allocation97_spill] sm:$0xff] %v11723_v36  ;;  %8639 = vmatmul.msk.bf16.gmra.mxu0 %vm606_vm5, %v9713_v23  ;;  %8769 = vmatmul.msk.bf16.vlgmr.msrb.gmra.mxu3 %vm606_vm5, %v11313_v54 }
 0x7b6   : > { %5701 = vmatpush.bf16.msrb.mxu3 %v5687_v2  ;;  %14438 = vst [vmem:[#allocation100_spill] sm:$0xff] %v11742_v8 }
 0x7b8   : > { %v3609_v3 = vpop.f32.mrf.mxu3 }
 0x7b9   : > { %v4063_v57 = vpop.f32.mrf.mxu2 }
 0x7ba   : > { %v11731_v55 = vpop.f32.mrf.mxu0  ;;  %v11738_v51 = vadd.f32 %v4063_v57, %v3602_v37  ;;  %5702 = vmatpush.bf16.msrb.mxu3 %v5631_v1  ;;  %v11740_v23 = vpop.f32.mrf.mxu1 }
 0x7bb   : > { %14437 = vst [vmem:[#allocation99_spill] sm:$0xff] %v11740_v23  ;;  %v6178_v1 = vpop.permute.xlu1 %6177  ;;  %v5630_v57 = vpop.permute.xlu2 %5629  ;;  %v3607_v23 = vadd.f32 %v3606_v43, %v11404_v18 }
 0x7bc   : > { %14436 = vst [vmem:[#allocation98_spill] sm:$0xff] %v11738_v51  ;;  %v6185_v7 = vsel %vm1078_vm9, %v6178_v1, %v11742_v8  ;;  %v6172_v1 = vpop.permute.xlu0 %6171 }
 0x7bd   : > { %8656 = vmatmul.msk.bf16.gmra.mxu1 %vm606_vm5, %v9714_v49  ;;  %v6239_v18 = vand.u32 %v6185_v7, %v10213_v42 }
 0x7be   : > { %8768 = vmatmul.msk.bf16.gmra.mxu2 %vm606_vm5, %v11736_v6 }
 0x7c0   : > { %v3611_v41 = vpop.f32.mrf.mxu3 }
 0x7c1   : > { %v4066_v15 = vpop.f32.mrf.mxu2 }
 0x7c2   : > { %v11748_v2 = vpop.f32.mrf.mxu0  ;;  %v11750_v36 = vadd.f32 %v4066_v15, %v3605_v56  ;;  %v11752_v37 = vpop.f32.mrf.mxu1 }
 0x7c3   : > { %14440 = vst [vmem:[#allocation102_spill] sm:$0xff] %v11752_v37  ;;  %v11777_v43 = vpop.permute.xlu1 %6173  ;;  %v5624_v8 = vpop.permute.xlu2 %5623 }
 0x7c4   : > { %14439 = vst [vmem:[#allocation101_spill] sm:$0xff] %v11750_v36  ;;  %v5693_v36 = vand.u32 %v5630_v57, %v10213_v42  ;;  %v6183_v7 = vsel %vm1078_vm9, %v6172_v1, %v11777_v43 }
 0x7c5   : > { %8640 = vmatmul.msk.bf16.gmra.mxu0 %vm606_vm5, %v9714_v49  ;;  %8770 = vmatmul.msk.bf16.gmra.mxu3 %vm606_vm5, %v11351_v45 }
 0x7c8   : > { %v3614_v51 = vpop.f32.mrf.mxu3 }
 0x7c9   : > { %v4068_v56 = vpop.f32.mrf.mxu2 }
 0x7ca   : > { %v11765_v15 = vpop.f32.mrf.mxu0  ;;  %v11767_v37 = vadd.f32 %v4068_v56, %v3607_v23  ;;  %v11769_v49 = vpop.f32.mrf.mxu1  ;;  %v5634_v23 = vsel %vm1002_vm8, %v5628_v9, %v5630_v57  ;;  %v3610_v56 = vadd.f32 %v3609_v3, %v11420_v60  ;;  %v3612_v60 = vadd.f32 %v3611_v41, %v11433_v31 }
 0x7cb   : > { %14441 = vst [vmem:[#allocation103_spill] sm:$0xff] %v11765_v15  ;;  %v5632_v3 = vsel %vm1002_vm8, %v5622_v21, %v5624_v8  ;;  %v3615_v31 = vadd.f32 %v3614_v51, %v11449_v10  ;;  %v11826_v10 = vld [vmem:[%s14295_s9 + $0x190] sm:$0xff]  ;;  %vm14733_vm8 = vmmov %vm14728_vm6 }
 0x7cc   : > { %14442 = vst [vmem:[#allocation104_spill] sm:$0xff] %v11767_v37 }
 0x7cd   : > { %14443 = vst [vmem:[#allocation105_spill] sm:$0xff] %v11769_v49  ;;  %8897 = vmatmul.msk.bf16.vlgmr.msrb.gmra.mxu1 %vm606_vm5, %v11761_v26 }
 0x7ce   : > { %8913 = vmatmul.msk.bf16.vlgmr.msrb.gmra.mxu2 %vm606_vm5, %v11761_v26  ;;  %5879 = vmatpush.bf16.msrb.mxu1 %v5693_v36 }
 0x7cf   : > { %6253 = vmatpush.bf16.msrb.mxu2 %v6239_v18  ;;  %v5690_v18 = vand.u32 %v5634_v23, %v10213_v42 }
 0x7d0   : > { %v3616_v49 = vpop.f32.mrf.mxu3 }
 0x7d1   : > { %v4071_v37 = vpop.f32.mrf.mxu2 }
 0x7d2   : > { %5880 = vmatpush.bf16.msrb.mxu1 %v5624_v8  ;;  %v11783_v15 = vpop.f32.mrf.mxu0  ;;  %v11785_v24 = vadd.f32 %v4071_v37, %v3610_v56  ;;  %v11787_v36 = vpop.f32.mrf.mxu1  ;;  %v11799_v37 = vld [vmem:[%s14295_s9 + $0x188] sm:$0xff] }
 0x7d3   : > { %6254 = vmatpush.bf16.msrb.mxu2 %v6183_v7 }
 0x7d5   : > { %8785 = vmatmul.msk.bf16.vlgmr.msrb.gmra.mxu0 %vm606_vm5, %v11313_v54  ;;  %8771 = vmatmul.msk.bf16.gmra.mxu3 %vm606_vm5, %v11380_v19 }
 0x7d6   : > { %5790 = vmatpush.bf16.msrb.mxu0 %v5690_v18  ;;  %v3617_v18 = vadd.f32 %v3616_v49, %v11462_v16 }
 0x7d8   : > { %v3619_v9 = vpop.f32.mrf.mxu3 }
 0x7d9   : > { %v4073_v57 = vpop.f32.mrf.mxu2 }
 0x7da   : > { %5791 = vmatpush.bf16.msrb.mxu0 %v5632_v3  ;;  %v11801_v1 = vpop.f32.mrf.mxu0  ;;  %v11803_v23 = vadd.f32 %v4073_v57, %v3612_v60  ;;  %v11805_v54 = vpop.f32.mrf.mxu1 }
 0x7db   : > { %14444 = vst [vmem:[#allocation106_spill] sm:$0xff] %v11805_v54 }
 0x7dd   : > { %8898 = vmatmul.msk.bf16.gmra.mxu1 %vm606_vm5, %v11799_v37 }
 0x7de   : > { %8914 = vmatmul.msk.bf16.gmra.mxu2 %vm606_vm5, %v11799_v37 }
 0x7e0   : > { %v3621_v21 = vpop.f32.mrf.mxu3 }
 0x7e1   : > { %v4076_v8 = vpop.f32.mrf.mxu2 }
 0x7e2   : > { %v11812_v41 = vpop.f32.mrf.mxu0  ;;  %v11814_v56 = vadd.f32 %v4076_v8, %v3615_v31  ;;  %v11816_v7 = vpop.f32.mrf.mxu1 }
 0x7e3   : > { %14445 = vst [vmem:[#allocation107_spill] sm:$0xff] %v11816_v7 }
 0x7e5   : > { %8786 = vmatmul.msk.bf16.gmra.mxu0 %vm606_vm5, %v11351_v45  ;;  %8772 = vmatmul.msk.bf16.gmra.mxu3 %vm606_vm5, %v11409_v35  ;;  %v3620_v45 = vadd.f32 %v3619_v9, %v11478_v61  ;;  %v11853_v61 = vld [vmem:[%s14295_s9 + $0x198] sm:$0xff] }
 0x7e8   : > { %v3624_v60 = vpop.f32.mrf.mxu3 }
 0x7e9   : > { %v4078_v51 = vpop.f32.mrf.mxu2 }
 0x7ea   : > { %v11828_v3 = vpop.f32.mrf.mxu0  ;;  %v11830_v57 = vadd.f32 %v4078_v51, %v3617_v18  ;;  %v11832_v31 = vpop.f32.mrf.mxu1  ;;  %v3622_v18 = vadd.f32 %v3621_v21, %v11491_v14 }
 0x7eb   : > { %14447 = vst [vmem:[#allocation109_spill] sm:$0xff] %v11832_v31 }
 0x7ec   : > { %14446 = vst [vmem:[#allocation108_spill] sm:$0xff] %v11830_v57 }
 0x7ed   : > { %8899 = vmatmul.msk.bf16.gmra.mxu1 %vm606_vm5, %v11826_v10 }
 0x7ee   : > { %8915 = vmatmul.msk.bf16.gmra.mxu2 %vm606_vm5, %v11826_v10 }
 0x7f0   : > { %v3626_v16 = vpop.f32.mrf.mxu3 }
 0x7f1   : > { %v4081_v49 = vpop.f32.mrf.mxu2 }
 0x7f2   : > { %v11839_v8 = vpop.f32.mrf.mxu0  ;;  %v11841_v7 = vadd.f32 %v4081_v49, %v3620_v45  ;;  %v11843_v54 = vpop.f32.mrf.mxu1 }
 0x7f3   : > { %14449 = vst [vmem:[#allocation111_spill] sm:$0xff] %v11843_v54 }
 0x7f4   : > { %14448 = vst [vmem:[#allocation110_spill] sm:$0xff] %v11841_v7 }
 0x7f5   : > { %8787 = vmatmul.msk.bf16.gmra.mxu0 %vm606_vm5, %v11380_v19  ;;  %8773 = vmatmul.msk.bf16.gmra.mxu3 %vm606_vm5, %v11438_v33  ;;  %v3625_v19 = vadd.f32 %v3624_v60, %v11507_v53  ;;  %v11880_v53 = vld [vmem:[%s14295_s9 + $0x1a0] sm:$0xff] }
 0x7f8   : > { %v3629_v51 = vpop.f32.mrf.mxu3 }
 0x7f9   : > { %v4083_v9 = vpop.f32.mrf.mxu2 }
 0x7fa   : > { %v11855_v31 = vpop.f32.mrf.mxu0  ;;  %v11857_v45 = vadd.f32 %v4083_v9, %v3622_v18  ;;  %v11859_v49 = vpop.f32.mrf.mxu1  ;;  %v3627_v18 = vadd.f32 %v3626_v16, %v11518_v59  ;;  %v3630_v59 = vadd.f32 %v3629_v51, %v11532_v58  ;;  %v11907_v58 = vld [vmem:[%s14295_s9 + $0x1a8] sm:$0xff] }
 0x7fb   : > { %14451 = vst [vmem:[#allocation113_spill] sm:$0xff] %v11859_v49 }
 0x7fc   : > { %14450 = vst [vmem:[#allocation112_spill] sm:$0xff] %v11857_v45 }
 0x7fd   : > { %8900 = vmatmul.msk.bf16.gmra.mxu1 %vm606_vm5, %v11853_v61 }
 0x7fe   : > { %8916 = vmatmul.msk.bf16.gmra.mxu2 %vm606_vm5, %v11853_v61 }
 0x800   : > { %v3631_v14 = vpop.f32.mrf.mxu3 }
 0x801   : > { %v4086_v21 = vpop.f32.mrf.mxu2 }
 0x802   : > { %v11866_v54 = vpop.f32.mrf.mxu0  ;;  %v11868_v7 = vadd.f32 %v4086_v21, %v3625_v19  ;;  %v11870_v57 = vpop.f32.mrf.mxu1 }
 0x803   : > { %14453 = vst [vmem:[#allocation115_spill] sm:$0xff] %v11870_v57 }
 0x804   : > { %14452 = vst [vmem:[#allocation114_spill] sm:$0xff] %v11868_v7 }
 0x805   : > { %8788 = vmatmul.msk.bf16.gmra.mxu0 %vm606_vm5, %v11409_v35  ;;  %8774 = vmatmul.msk.bf16.gmra.mxu3 %vm606_vm5, %v11467_v27 }
 0x808   : > { %v3634_v9 = vpop.f32.mrf.mxu3 }
 0x809   : > { %v4088_v60 = vpop.f32.mrf.mxu2 }
 0x80a   : > { %v11882_v49 = vpop.f32.mrf.mxu0  ;;  %v11884_v19 = vadd.f32 %v4088_v60, %v3627_v18  ;;  %v11886_v21 = vpop.f32.mrf.mxu1  ;;  %v3632_v18 = vadd.f32 %v3631_v14, %v11543_v32  ;;  %v3635_v32 = vadd.f32 %v3634_v9, %v11203_v4  ;;  %v11934_v4 = vld [vmem:[%s14295_s9 + $0x1b0] sm:$0xff] }
 0x80b   : > { %14455 = vst [vmem:[#allocation117_spill] sm:$0xff] %v11886_v21 }
 0x80c   : > { %14454 = vst [vmem:[#allocation116_spill] sm:$0xff] %v11884_v19 }
 0x80d   : > { %8901 = vmatmul.msk.bf16.gmra.mxu1 %vm606_vm5, %v11880_v53 }
 0x80e   : > { %8917 = vmatmul.msk.bf16.gmra.mxu2 %vm606_vm5, %v11880_v53 }
 0x810   : > { %v3636_v35 = vpop.f32.mrf.mxu3 }
 0x811   : > { %v4091_v16 = vpop.f32.mrf.mxu2 }
 0x812   : > { %v11893_v57 = vpop.f32.mrf.mxu0  ;;  %v11895_v7 = vadd.f32 %v4091_v16, %v3630_v59  ;;  %v11897_v45 = vpop.f32.mrf.mxu1 }
 0x813   : > { %14457 = vst [vmem:[#allocation119_spill] sm:$0xff] %v11897_v45 }
 0x814   : > { %14456 = vst [vmem:[#allocation118_spill] sm:$0xff] %v11895_v7 }
 0x815   : > { %8789 = vmatmul.msk.bf16.gmra.mxu0 %vm606_vm5, %v11438_v33  ;;  %8775 = vmatmul.msk.bf16.gmra.mxu3 %vm606_vm5, %v11496_v62 }
 0x818   : > { %v3639_v60 = vpop.f32.mrf.mxu3 }
 0x819   : > { %v4093_v51 = vpop.f32.mrf.mxu2 }
 0x81a   : > { %v11909_v21 = vpop.f32.mrf.mxu0  ;;  %v11911_v59 = vadd.f32 %v4093_v51, %v3632_v18  ;;  %v11913_v16 = vpop.f32.mrf.mxu1  ;;  %v3637_v18 = vadd.f32 %v3636_v35, %v11211_v30  ;;  %v3640_v30 = vadd.f32 %v3639_v60, %v11225_v48  ;;  %v11963_v60 = vld [vmem:[%s14295_s9 + $0x1b8] sm:$0xff] }
 0x81b   : > { %14459 = vst [vmem:[#allocation121_spill] sm:$0xff] %v11913_v16 }
 0x81c   : > { %14458 = vst [vmem:[#allocation120_spill] sm:$0xff] %v11911_v59 }
 0x81d   : > { %8902 = vmatmul.msk.bf16.gmra.mxu1 %vm606_vm5, %v11907_v58 }
 0x81e   : > { %8918 = vmatmul.msk.bf16.gmra.mxu2 %vm606_vm5, %v11907_v58 }
 0x820   : > { %v3641_v33 = vpop.f32.mrf.mxu3 }
 0x821   : > { %v4096_v14 = vpop.f32.mrf.mxu2 }
 0x822   : > { %v11920_v45 = vpop.f32.mrf.mxu0  ;;  %v11922_v7 = vadd.f32 %v4096_v14, %v3635_v32  ;;  %v11924_v19 = vpop.f32.mrf.mxu1 }
 0x823   : > { %14461 = vst [vmem:[#allocation123_spill] sm:$0xff] %v11924_v19 }
 0x824   : > { %14460 = vst [vmem:[#allocation122_spill] sm:$0xff] %v11922_v7 }
 0x825   : > { %8790 = vmatmul.msk.bf16.gmra.mxu0 %vm606_vm5, %v11467_v27  ;;  %8776 = vmatmul.msk.bf16.gmra.mxu3 %vm606_vm5, %v11523_v47 }
 0x828   : > { %v3644_v51 = vpop.f32.mrf.mxu3 }
 0x829   : > { %v4098_v9 = vpop.f32.mrf.mxu2 }
 0x82a   : > { %v11936_v16 = vpop.f32.mrf.mxu0  ;;  %v11938_v32 = vadd.f32 %v4098_v9, %v3637_v18  ;;  %v11940_v14 = vpop.f32.mrf.mxu1  ;;  %v3659_v18 = vadd.f32 %v11556_v5, %v11207_v52  ;;  %v3642_v9 = vadd.f32 %v3641_v33, %v11235_v22  ;;  %v3661_v52 = vadd.f32 %v11568_v44, %v11220_v29 }
 0x82b   : > { %14462 = vst [vmem:[#allocation124_spill] sm:$0xff] %v11940_v14  ;;  %v3645_v22 = vadd.f32 %v3644_v51, %v11249_v17  ;;  %v3664_v29 = vadd.f32 %v11583_v34, %v11231_v39  ;;  %v11994_v51 = vld [vmem:[%s14295_s9 + $0x1c0] sm:$0xff]  ;;  %v3666_v39 = vadd.f32 %v11595_v40, %v11244_v25  ;;  %v14470_v34 = vld [vmem:[#allocation64_spill] sm:$0xff] }
 0x82c   : > { %v14474_v25 = vld [vmem:[#allocation8_spill] sm:$0xff] }
 0x82d   : > { %8903 = vmatmul.msk.bf16.gmra.mxu1 %vm606_vm5, %v11934_v4  ;;  %v14475_v40 = vld [vmem:[#allocation72_spill] sm:$0xff] }
 0x82e   : > { %8919 = vmatmul.msk.bf16.gmra.mxu2 %vm606_vm5, %v11934_v4 }
 0x830   : > { %v3646_v27 = vpop.f32.mrf.mxu3 }
 0x831   : > { %v4101_v35 = vpop.f32.mrf.mxu2  ;;  %v3647_v17 = vadd.f32 %v3646_v27, %v11259_v46  ;;  %v14469_v46 = vld [vmem:[#allocation4_spill] sm:$0xff] }
 0x832   : > { %v11947_v19 = vpop.f32.mrf.mxu0  ;;  %v11949_v7 = vadd.f32 %v4101_v35, %v3640_v30  ;;  %v11951_v59 = vpop.f32.mrf.mxu1  ;;  %v3748_v27 = vadd.f32 %v14470_v34, %v14469_v46  ;;  %v3669_v46 = vadd.f32 %v14475_v40, %v14474_v25  ;;  %v14477_v34 = vld [vmem:[#allocation65_spill] sm:$0xff]  ;;  %v14481_v25 = vld [vmem:[#allocation10_spill] sm:$0xff] }
 0x833   : > { %14463 = vst [vmem:[#allocation125_spill] sm:$0xff] %v11951_v59  ;;  %v3671_v40 = vadd.f32 %v11622_v38, %v14481_v25  ;;  %v14488_v38 = vld [vmem:[#allocation13_spill] sm:$0xff] }
 0x834   : > { %v14489_v25 = vld [vmem:[#allocation77_spill] sm:$0xff] }
 0x835   : > { %8791 = vmatmul.msk.bf16.gmra.mxu0 %vm606_vm5, %v11496_v62  ;;  %8777 = vmatmul.msk.bf16.gmra.mxu3 %vm606_vm5, %v11548_v50 }
 0x838   : > { %v4120_v48 = vpop.f32.mrf.mxu3 }
 0x839   : > { %v4103_v30 = vpop.f32.mrf.mxu2  ;;  %v4290_v35 = vadd.f32 %v4120_v48, %v3659_v18 }
 0x83a   : > { %v11965_v59 = vpop.f32.mrf.mxu0  ;;  %v11967_v14 = vadd.f32 %v4103_v30, %v3642_v9  ;;  %v11969_v62 = vpop.f32.mrf.mxu1 }
 0x83b   : > { %14464 = vst [vmem:[#allocation126_spill] sm:$0xff] %v11969_v62 }
 0x83d   : > { %8904 = vmatmul.msk.bf16.gmra.mxu1 %vm606_vm5, %v11963_v60 }
 0x83e   : > { %8920 = vmatmul.msk.bf16.gmra.mxu2 %vm606_vm5, %v11963_v60 }
 0x840   : > { %v4122_v5 = vpop.f32.mrf.mxu3 }
 0x841   : > { %v4106_v33 = vpop.f32.mrf.mxu2  ;;  %v4293_v18 = vadd.f32 %v4122_v5, %v3661_v52 }
 0x842   : > { %v11978_v48 = vpop.f32.mrf.mxu0  ;;  %v11980_v9 = vadd.f32 %v4106_v33, %v3645_v22  ;;  %v11982_v30 = vpop.f32.mrf.mxu1 }
 0x843   : > { %14466 = vst [vmem:[#allocation128_spill] sm:$0xff] %v11982_v30 }
 0x844   : > { %14465 = vst [vmem:[#allocation127_spill] sm:$0xff] %v11980_v9 }
 0x845   : > { %8792 = vmatmul.msk.bf16.gmra.mxu0 %vm606_vm5, %v11523_v47  ;;  %8778 = vmatmul.msk.bf16.gmra.mxu3 %vm606_vm5, %v11573_v13 }
 0x848   : > { %v4125_v44 = vpop.f32.mrf.mxu3 }
 0x849   : > { %v4108_v52 = vpop.f32.mrf.mxu2  ;;  %v4296_v22 = vadd.f32 %v4125_v44, %v3664_v29 }
 0x84a   : > { %v11996_v5 = vpop.f32.mrf.mxu0  ;;  %v11998_v33 = vadd.f32 %v4108_v52, %v3647_v17  ;;  %v4589_v47 = vpop.f32.mrf.mxu1 }
 0x84b   : > { %v12001_v30 = vadd.f32 %v4589_v47, %v11561_v28 }
 0x84c   : > { %14467 = vst [vmem:[#allocation129_spill] sm:$0xff] %v11998_v33 }
 0x84d   : > { %14468 = vst [vmem:[#allocation130_spill] sm:$0xff] %v12001_v30  ;;  %8905 = vmatmul.msk.bf16.gmra.mxu1 %vm606_vm5, %v11994_v51  ;;  %v14472_v30 = vld [vmem:[#allocation66_spill] sm:$0xff] }
 0x84e   : > { %8921 = vmatmul.msk.bf16.gmra.mxu2 %vm606_vm5, %v11994_v51 }
 0x850   : > { %v4127_v29 = vpop.f32.mrf.mxu3 }
 0x851   : > { %v4299_v44 = vadd.f32 %v4127_v29, %v3666_v39  ;;  %v4678_v17 = vpop.f32.mrf.mxu2  ;;  %v14476_v39 = vld [vmem:[#allocation5_spill] sm:$0xff] }
 0x852   : > { %v4209_v52 = vpop.f32.mrf.mxu0  ;;  %v12011_v33 = vadd.f32 %v4678_v17, %v4290_v35  ;;  %v4591_v47 = vpop.f32.mrf.mxu1  ;;  %v3750_v29 = vadd.f32 %v14477_v34, %v14476_v39  ;;  %v14483_v39 = vld [vmem:[#allocation67_spill] sm:$0xff] }
 0x853   : > { %v12013_v28 = vadd.f32 %v4209_v52, %v3748_v27  ;;  %v12016_v62 = vadd.f32 %v4591_v47, %v14472_v30  ;;  %v12029_v27 = vld [vmem:[%s14295_s9 + $0x1c8] sm:$0xff] }
 0x854   : > { %14471 = vst [vmem:[#allocation4_spill] sm:$0xff] %v12011_v33  ;;  %v14479_v33 = vld [vmem:[#allocation68_spill] sm:$0xff] }
 0x855   : > { %14473 = vst [vmem:[#allocation64_spill] sm:$0xff] %v12016_v62  ;;  %8793 = vmatmul.msk.bf16.gmra.mxu0 %vm606_vm5, %v11548_v50  ;;  %8779 = vmatmul.msk.bf16.gmra.mxu3 %vm606_vm5, %v11600_v12 }
 0x858   : > { %v4130_v35 = vpop.f32.mrf.mxu3 }
 0x859   : > { %v4302_v30 = vadd.f32 %v4130_v35, %v3669_v46  ;;  %v4680_v17 = vpop.f32.mrf.mxu2  ;;  %v14482_v46 = vld [vmem:[#allocation6_spill] sm:$0xff] }
 0x85a   : > { %v4211_v52 = vpop.f32.mrf.mxu0  ;;  %v12031_v47 = vadd.f32 %v4680_v17, %v4293_v18  ;;  %v4594_v62 = vpop.f32.mrf.mxu1  ;;  %v3753_v34 = vadd.f32 %v14483_v39, %v14482_v46  ;;  %v3674_v46 = vadd.f32 %v14489_v25, %v14488_v38  ;;  %v14491_v39 = vld [vmem:[#allocation69_spill] sm:$0xff]  ;;  %v14495_v38 = vld [vmem:[#allocation16_spill] sm:$0xff] }
 0x85b   : > { %v12033_v50 = vadd.f32 %v4211_v52, %v3750_v29  ;;  %v12036_v9 = vadd.f32 %v4594_v62, %v14479_v33  ;;  %v3676_v25 = vadd.f32 %v11649_v63, %v14495_v38  ;;  %v14502_v63 = vld [vmem:[#allocation19_spill] sm:$0xff]  ;;  %v14503_v38 = vld [vmem:[#allocation82_spill] sm:$0xff] }
 0x85c   : > { %14478 = vst [vmem:[#allocation66_spill] sm:$0xff] %v12031_v47 }
 0x85d   : > { %14480 = vst [vmem:[#allocation8_spill] sm:$0xff] %v12036_v9  ;;  %8906 = vmatmul.msk.bf16.gmra.mxu1 %vm606_vm5, %v12029_v27  ;;  %v14486_v9 = vld [vmem:[#allocation70_spill] sm:$0xff] }
 0x85e   : > { %8922 = vmatmul.msk.bf16.gmra.mxu2 %vm606_vm5, %v12029_v27 }
 0x860   : > { %v4132_v18 = vpop.f32.mrf.mxu3 }
 0x861   : > { %v4305_v35 = vadd.f32 %v4132_v18, %v3671_v40  ;;  %v4683_v29 = vpop.f32.mrf.mxu2  ;;  %v14490_v40 = vld [vmem:[#allocation7_spill] sm:$0xff] }
 0x862   : > { %v4214_v17 = vpop.f32.mrf.mxu0  ;;  %v12046_v52 = vadd.f32 %v4683_v29, %v4296_v22  ;;  %v4596_v33 = vpop.f32.mrf.mxu1  ;;  %v3755_v18 = vadd.f32 %v14491_v39, %v14490_v40  ;;  %v14497_v40 = vld [vmem:[#allocation71_spill] sm:$0xff] }
 0x863   : > { %v12048_v62 = vadd.f32 %v4214_v17, %v3753_v34  ;;  %v12051_v47 = vadd.f32 %v4596_v33, %v14486_v9  ;;  %v12064_v34 = vld [vmem:[%s14295_s9 + $0x1d0] sm:$0xff] }
 0x864   : > { %14484 = vst [vmem:[#allocation72_spill] sm:$0xff] %v12046_v52  ;;  %v14493_v52 = vld [vmem:[#allocation73_spill] sm:$0xff] }
 0x865   : > { %14485 = vst [vmem:[#allocation5_spill] sm:$0xff] %v12048_v62  ;;  %8794 = vmatmul.msk.bf16.gmra.mxu0 %vm606_vm5, %v11573_v13  ;;  %8780 = vmatmul.msk.bf16.gmra.mxu3 %vm606_vm5, %v11627_v0 }
 0x866   : > { %14487 = vst [vmem:[#allocation65_spill] sm:$0xff] %v12051_v47 }
 0x868   : > { %v4135_v22 = vpop.f32.mrf.mxu3 }
 0x869   : > { %v4308_v9 = vadd.f32 %v4135_v22, %v3674_v46  ;;  %v4685_v29 = vpop.f32.mrf.mxu2  ;;  %v14496_v46 = vld [vmem:[#allocation9_spill] sm:$0xff] }
 0x86a   : > { %v4216_v17 = vpop.f32.mrf.mxu0  ;;  %v12066_v33 = vadd.f32 %v4685_v29, %v4299_v44  ;;  %v4599_v47 = vpop.f32.mrf.mxu1  ;;  %v3758_v39 = vadd.f32 %v14497_v40, %v14496_v46  ;;  %v3679_v46 = vadd.f32 %v14503_v38, %v14502_v63  ;;  %v14505_v40 = vld [vmem:[#allocation74_spill] sm:$0xff]  ;;  %v14512_v38 = vld [vmem:[#allocation85_spill] sm:$0xff] }
 0x86b   : > { %v12068_v13 = vadd.f32 %v4216_v17, %v3755_v18  ;;  %v12071_v62 = vadd.f32 %v4599_v47, %v14493_v52  ;;  %v14511_v63 = vld [vmem:[#allocation22_spill] sm:$0xff] }
 0x86c   : > { %14492 = vst [vmem:[#allocation68_spill] sm:$0xff] %v12066_v33 }
 0x86d   : > { %14494 = vst [vmem:[#allocation10_spill] sm:$0xff] %v12071_v62  ;;  %8907 = vmatmul.msk.bf16.gmra.mxu1 %vm606_vm5, %v12064_v34  ;;  %v14500_v62 = vld [vmem:[#allocation75_spill] sm:$0xff] }
 0x86e   : > { %8923 = vmatmul.msk.bf16.gmra.mxu2 %vm606_vm5, %v12064_v34 }
 0x870   : > { %v4137_v44 = vpop.f32.mrf.mxu3 }
 0x871   : > { %v4311_v22 = vadd.f32 %v4137_v44, %v3676_v25  ;;  %v4688_v18 = vpop.f32.mrf.mxu2  ;;  %v14504_v25 = vld [vmem:[#allocation12_spill] sm:$0xff] }
 0x872   : > { %v4219_v29 = vpop.f32.mrf.mxu0  ;;  %v12081_v17 = vadd.f32 %v4688_v18, %v4302_v30  ;;  %v4601_v52 = vpop.f32.mrf.mxu1  ;;  %v3760_v44 = vadd.f32 %v14505_v40, %v14504_v25  ;;  %v3681_v25 = vadd.f32 %v14512_v38, %v14511_v63  ;;  %v14514_v40 = vld [vmem:[#allocation76_spill] sm:$0xff]  ;;  %v14520_v63 = vld [vmem:[#allocation25_spill] sm:$0xff] }
 0x873   : > { %v12083_v47 = vadd.f32 %v4219_v29, %v3758_v39  ;;  %v12086_v33 = vadd.f32 %v4601_v52, %v14500_v62  ;;  %v12099_v39 = vld [vmem:[%s14295_s9 + $0x1d8] sm:$0xff] }
 0x874   : > { %14498 = vst [vmem:[#allocation6_spill] sm:$0xff] %v12081_v17  ;;  %v14509_v17 = vld [vmem:[#allocation78_spill] sm:$0xff]  ;;  %v14521_v38 = vld [vmem:[#allocation89_spill] sm:$0xff] }
 0x875   : > { %14499 = vst [vmem:[#allocation67_spill] sm:$0xff] %v12083_v47  ;;  %8795 = vmatmul.msk.bf16.gmra.mxu0 %vm606_vm5, %v11600_v12  ;;  %8781 = vmatmul.msk.bf16.gmra.mxu3 %vm606_vm5, %v11654_v20 }
 0x876   : > { %14501 = vst [vmem:[#allocation70_spill] sm:$0xff] %v12086_v33 }
 0x877   : > { %14506 = vst [vmem:[#allocation13_spill] sm:$0xff] %v12099_v39 }
 0x878   : > { %v4140_v30 = vpop.f32.mrf.mxu3 }
 0x879   : > { %v4314_v62 = vadd.f32 %v4140_v30, %v3679_v46  ;;  %v4690_v18 = vpop.f32.mrf.mxu2  ;;  %v14513_v46 = vld [vmem:[#allocation15_spill] sm:$0xff] }
 0x87a   : > { %v4221_v29 = vpop.f32.mrf.mxu0  ;;  %v12101_v52 = vadd.f32 %v4690_v18, %v4305_v35  ;;  %v4604_v33 = vpop.f32.mrf.mxu1  ;;  %v3763_v30 = vadd.f32 %v14514_v40, %v14513_v46  ;;  %v3684_v46 = vadd.f32 %v14521_v38, %v14520_v63  ;;  %v14523_v40 = vld [vmem:[#allocation79_spill] sm:$0xff]  ;;  %v14528_v63 = vld [vmem:[#allocation28_spill] sm:$0xff] }
 0x87b   : > { %v12103_v12 = vadd.f32 %v4221_v29, %v3760_v44  ;;  %v12106_v47 = vadd.f32 %v4604_v33, %v14509_v17  ;;  %v14529_v38 = vld [vmem:[#allocation92_spill] sm:$0xff] }
 0x87c   : > { %14507 = vst [vmem:[#allocation77_spill] sm:$0xff] %v12101_v52 }
 0x87d   : > { %14508 = vst [vmem:[#allocation7_spill] sm:$0xff] %v12103_v12  ;;  %8908 = vmatmul.msk.bf16.gmra.mxu1 %vm606_vm5, %v12099_v39 }
 0x87e   : > { %14510 = vst [vmem:[#allocation69_spill] sm:$0xff] %v12106_v47  ;;  %8924 = vmatmul.msk.bf16.gmra.mxu2 %vm606_vm5, %v12099_v39  ;;  %v14517_v47 = vld [vmem:[#allocation80_spill] sm:$0xff]  ;;  %v14519_v39 = vld [vmem:[#allocation86_spill] sm:$0xff] }
 0x880   : > { %v4142_v35 = vpop.f32.mrf.mxu3 }
 0x881   : > { %v4317_v18 = vadd.f32 %v4142_v35, %v3681_v25  ;;  %v4693_v44 = vpop.f32.mrf.mxu2  ;;  %v14522_v25 = vld [vmem:[#allocation18_spill] sm:$0xff] }
 0x882   : > { %v4224_v29 = vpop.f32.mrf.mxu0  ;;  %v12116_v52 = vadd.f32 %v4693_v44, %v4308_v9  ;;  %v4606_v17 = vpop.f32.mrf.mxu1  ;;  %v3765_v35 = vadd.f32 %v14523_v40, %v14522_v25  ;;  %v3686_v25 = vadd.f32 %v14529_v38, %v14528_v63  ;;  %v14531_v40 = vld [vmem:[#allocation81_spill] sm:$0xff]  ;;  %v14536_v63 = vld [vmem:[#allocation31_spill] sm:$0xff] }
 0x883   : > { %v12118_v33 = vadd.f32 %v4224_v29, %v3763_v30  ;;  %v12121_v12 = vadd.f32 %v4606_v17, %v14517_v47  ;;  %v12134_v30 = vld [vmem:[%s14295_s9 + $0x1e0] sm:$0xff]  ;;  %v14537_v38 = vld [vmem:[#allocation95_spill] sm:$0xff] }
 0x884   : > { %14515 = vst [vmem:[#allocation73_spill] sm:$0xff] %v12116_v52  ;;  %v14526_v52 = vld [vmem:[#allocation83_spill] sm:$0xff] }
 0x885   : > { %14516 = vst [vmem:[#allocation16_spill] sm:$0xff] %v12118_v33  ;;  %8796 = vmatmul.msk.bf16.gmra.mxu0 %vm606_vm5, %v11627_v0  ;;  %8782 = vmatmul.msk.bf16.gmra.mxu3 %vm606_vm5, %v14519_v39 }
 0x886   : > { %14518 = vst [vmem:[#allocation9_spill] sm:$0xff] %v12121_v12 }
 0x888   : > { %v4145_v9 = vpop.f32.mrf.mxu3 }
 0x889   : > { %v4320_v47 = vadd.f32 %v4145_v9, %v3684_v46  ;;  %v4695_v44 = vpop.f32.mrf.mxu2  ;;  %v14530_v46 = vld [vmem:[#allocation21_spill] sm:$0xff] }
 0x88a   : > { %v4226_v29 = vpop.f32.mrf.mxu0  ;;  %v12136_v17 = vadd.f32 %v4695_v44, %v4311_v22  ;;  %v4609_v12 = vpop.f32.mrf.mxu1  ;;  %v3768_v9 = vadd.f32 %v14531_v40, %v14530_v46  ;;  %v3689_v46 = vadd.f32 %v14537_v38, %v14536_v63  ;;  %v14539_v40 = vld [vmem:[#allocation84_spill] sm:$0xff]  ;;  %v14545_v63 = vld [vmem:[#allocation34_spill] sm:$0xff] }
 0x88b   : > { %v12138_v0 = vadd.f32 %v4226_v29, %v3765_v35  ;;  %v12141_v33 = vadd.f32 %v4609_v12, %v14526_v52  ;;  %v3691_v38 = vadd.f32 %v11731_v55, %v14545_v63  ;;  %v14552_v55 = vld [vmem:[#allocation37_spill] sm:$0xff] }
 0x88c   : > { %14524 = vst [vmem:[#allocation71_spill] sm:$0xff] %v12136_v17  ;;  %v3694_v63 = vadd.f32 %v11748_v2, %v14552_v55  ;;  %v14560_v55 = vld [vmem:[#allocation40_spill] sm:$0xff] }
 0x88d   : > { %14525 = vst [vmem:[#allocation75_spill] sm:$0xff] %v12138_v0  ;;  %8909 = vmatmul.msk.bf16.gmra.mxu1 %vm606_vm5, %v12134_v30 }
 0x88e   : > { %14527 = vst [vmem:[#allocation19_spill] sm:$0xff] %v12141_v33  ;;  %8925 = vmatmul.msk.bf16.gmra.mxu2 %vm606_vm5, %v12134_v30  ;;  %v14534_v33 = vld [vmem:[#allocation87_spill] sm:$0xff] }
 0x890   : > { %v4147_v22 = vpop.f32.mrf.mxu3 }
 0x891   : > { %v4323_v44 = vadd.f32 %v4147_v22, %v3686_v25  ;;  %v4698_v35 = vpop.f32.mrf.mxu2  ;;  %v14538_v25 = vld [vmem:[#allocation24_spill] sm:$0xff] }
 0x892   : > { %v4229_v29 = vpop.f32.mrf.mxu0  ;;  %v12151_v17 = vadd.f32 %v4698_v35, %v4314_v62  ;;  %v4611_v12 = vpop.f32.mrf.mxu1  ;;  %v3770_v22 = vadd.f32 %v14539_v40, %v14538_v25  ;;  %v14547_v25 = vld [vmem:[#allocation88_spill] sm:$0xff] }
 0x893   : > { %v12153_v52 = vadd.f32 %v4229_v29, %v3768_v9  ;;  %v12156_v0 = vadd.f32 %v4611_v12, %v14534_v33  ;;  %v12169_v9 = vld [vmem:[%s14295_s9 + $0x1e8] sm:$0xff] }
 0x894   : > { %14532 = vst [vmem:[#allocation82_spill] sm:$0xff] %v12151_v17  ;;  %v14543_v17 = vld [vmem:[#allocation90_spill] sm:$0xff] }
 0x895   : > { %14533 = vst [vmem:[#allocation12_spill] sm:$0xff] %v12153_v52  ;;  %8797 = vmatmul.msk.bf16.gmra.mxu0 %vm606_vm5, %v11654_v20  ;;  %8783 = vmatmul.msk.bf16.gmra.mxu3 %vm606_vm5, %v11708_v11 }
 0x896   : > { %14535 = vst [vmem:[#allocation74_spill] sm:$0xff] %v12156_v0 }
 0x897   : > { %14540 = vst [vmem:[#allocation78_spill] sm:$0xff] %v12169_v9 }
 0x898   : > { %v4150_v62 = vpop.f32.mrf.mxu3 }
 0x899   : > { %v4326_v33 = vadd.f32 %v4150_v62, %v3689_v46  ;;  %v4700_v35 = vpop.f32.mrf.mxu2  ;;  %v14546_v46 = vld [vmem:[#allocation27_spill] sm:$0xff] }
 0x89a   : > { %v4231_v29 = vpop.f32.mrf.mxu0  ;;  %v12171_v12 = vadd.f32 %v4700_v35, %v4317_v18  ;;  %v4614_v0 = vpop.f32.mrf.mxu1  ;;  %v3773_v40 = vadd.f32 %v14547_v25, %v14546_v46 }
 0x89b   : > { %v12173_v20 = vadd.f32 %v4231_v29, %v3770_v22  ;;  %v12176_v52 = vadd.f32 %v4614_v0, %v14543_v17 }
 0x89c   : > { %14541 = vst [vmem:[#allocation22_spill] sm:$0xff] %v12171_v12 }
 0x89d   : > { %14542 = vst [vmem:[#allocation85_spill] sm:$0xff] %v12173_v20  ;;  %8910 = vmatmul.msk.bf16.gmra.mxu1 %vm606_vm5, %v12169_v9  ;;  %v12193_v20 = vpop.permute.xlu0 %6175 }
 0x89e   : > { %14544 = vst [vmem:[#allocation15_spill] sm:$0xff] %v12176_v52  ;;  %8926 = vmatmul.msk.bf16.gmra.mxu2 %vm606_vm5, %v12169_v9  ;;  %v14550_v52 = vld [vmem:[#allocation93_spill] sm:$0xff] }
 0x8a0   : > { %v4152_v18 = vpop.f32.mrf.mxu3 }
 0x8a1   : > { %v4329_v62 = vadd.f32 %v4152_v18, %v3691_v38  ;;  %v4703_v22 = vpop.f32.mrf.mxu2  ;;  %v14553_v38 = vld [vmem:[#allocation30_spill] sm:$0xff] }
 0x8a2   : > { %v4234_v35 = vpop.f32.mrf.mxu0  ;;  %v12186_v29 = vadd.f32 %v4703_v22, %v4320_v47  ;;  %v4616_v0 = vpop.f32.mrf.mxu1  ;;  %v14554_v47 = vld [vmem:[#allocation91_spill] sm:$0xff] }
 0x8a3   : > { %v12188_v17 = vadd.f32 %v4234_v35, %v3773_v40  ;;  %v12191_v12 = vadd.f32 %v4616_v0, %v14550_v52  ;;  %v3775_v46 = vadd.f32 %v14554_v47, %v14553_v38  ;;  %v12206_v52 = vld [vmem:[%s14295_s9 + $0x1f0] sm:$0xff]  ;;  %v14562_v47 = vld [vmem:[#allocation33_spill] sm:$0xff] }
 0x8a4   : > { %14548 = vst [vmem:[#allocation76_spill] sm:$0xff] %v12186_v29 }
 0x8a5   : > { %14549 = vst [vmem:[#allocation80_spill] sm:$0xff] %v12188_v17  ;;  %8798 = vmatmul.msk.bf16.gmra.mxu0 %vm606_vm5, %v14519_v39  ;;  %8784 = vmatmul.msk.bf16.gmra.mxu3 %vm606_vm5, %v11736_v6  ;;  %v12219_v2 = vpop.permute.xlu0 %6181  ;;  %v14565_v17 = vld [vmem:[#allocation98_spill] sm:$0xff] }
 0x8a6   : > { %14551 = vst [vmem:[#allocation86_spill] sm:$0xff] %v12191_v12  ;;  %v14558_v12 = vld [vmem:[#allocation96_spill] sm:$0xff] }
 0x8a7   : > { %14555 = vst [vmem:[#allocation25_spill] sm:$0xff] %v12206_v52 }
 0x8a8   : > { %v4155_v25 = vpop.f32.mrf.mxu3 }
 0x8a9   : > { %v4332_v40 = vadd.f32 %v4155_v25, %v3694_v63  ;;  %v4705_v18 = vpop.f32.mrf.mxu2  ;;  %v14561_v63 = vld [vmem:[#allocation103_spill] sm:$0xff] }
 0x8aa   : > { %v4236_v22 = vpop.f32.mrf.mxu0  ;;  %v12208_v35 = vadd.f32 %v4705_v18, %v4323_v44  ;;  %v4619_v0 = vpop.f32.mrf.mxu1  ;;  %v3696_v38 = vadd.f32 %v14561_v63, %v14560_v55  ;;  %v14563_v44 = vld [vmem:[#allocation94_spill] sm:$0xff]  ;;  %v14564_v18 = vld [vmem:[#allocation100_spill] sm:$0xff]  ;;  %v14567_v63 = vld [vmem:[#allocation43_spill] sm:$0xff] }
 0x8ab   : > { %v12210_v39 = vadd.f32 %v4236_v22, %v3775_v46  ;;  %v12213_v29 = vadd.f32 %v4619_v0, %v14558_v12  ;;  %v3778_v25 = vadd.f32 %v14563_v44, %v14562_v47  ;;  %v6186_v12 = vsel %vm1078_vm9, %v14564_v18, %v12219_v2  ;;  %v14568_v47 = vld [vmem:[#allocation36_spill] sm:$0xff] }
 0x8ac   : > { %14556 = vst [vmem:[#allocation89_spill] sm:$0xff] %v12208_v35  ;;  %v6242_v55 = vand.u32 %v6186_v12, %v10213_v42 }
 0x8ad   : > { %14557 = vst [vmem:[#allocation18_spill] sm:$0xff] %v12210_v39  ;;  %8911 = vmatmul.msk.bf16.gmra.mxu1 %vm606_vm5, %v12206_v52 }
 0x8ae   : > { %14559 = vst [vmem:[#allocation79_spill] sm:$0xff] %v12213_v29  ;;  %8927 = vmatmul.msk.bf16.gmra.mxu2 %vm606_vm5, %v12206_v52 }
 0x8b0   : > { %v4157_v46 = vpop.f32.mrf.mxu3 }
 0x8b1   : > { %v4335_v22 = vadd.f32 %v4157_v46, %v3696_v38  ;;  %v4708_v0 = vpop.f32.mrf.mxu2  ;;  %v3699_v38 = vadd.f32 %v11783_v15, %v14567_v63  ;;  %v14572_v63 = vld [vmem:[#allocation46_spill] sm:$0xff] }
 0x8b2   : > { %v4239_v29 = vpop.f32.mrf.mxu0  ;;  %v12228_v35 = vadd.f32 %v4708_v0, %v4326_v33  ;;  %v4621_v52 = vpop.f32.mrf.mxu1  ;;  %v14570_v0 = vld [vmem:[#allocation101_spill] sm:$0xff] }
 0x8b3   : > { %v12230_v39 = vadd.f32 %v4239_v29, %v3778_v25  ;;  %v12233_v9 = vadd.f32 %v4621_v52, %v14565_v17  ;;  %v6732_v33 = vpop.permute.xlu1 %6731  ;;  %v14569_v29 = vld [vmem:[#allocation97_spill] sm:$0xff] }
 0x8b4   : > { %v3780_v44 = vadd.f32 %v14569_v29, %v14568_v47  ;;  %v12247_v17 = vld [vmem:[%s14295_s9 + $0x1f8] sm:$0xff]  ;;  %v14574_v47 = vld [vmem:[#allocation99_spill] sm:$0xff] }
 0x8b5   : > { %14566 = vst [vmem:[#allocation83_spill] sm:$0xff] %v12233_v9  ;;  %8799 = vmatmul.msk.bf16.gmra.mxu0 %vm606_vm5, %v11708_v11  ;;  %8929 = vmatmul.msk.bf16.vlgmr.msra.gmra.mxu3 %vm606_vm5, %v11761_v26  ;;  %v6184_v11 = vsel %vm1078_vm9, %v11777_v43, %v12193_v20  ;;  %v14573_v43 = vld [vmem:[#allocation39_spill] sm:$0xff]  ;;  %vm14735_vm9 = vmmov %vm14728_vm6 }
 0x8b6   : > { %6342 = vmatpush.bf16.msra.mxu3 %v6242_v55 }
 0x8b8   : > { %v4160_v25 = vpop.f32.mrf.mxu3 }
 0x8b9   : > { %v4338_v52 = vadd.f32 %v4160_v25, %v3699_v38  ;;  %v4710_v46 = vpop.f32.mrf.mxu2  ;;  %v3701_v38 = vadd.f32 %v11801_v1, %v14572_v63  ;;  %v6730_v1 = vpop.permute.xlu0 %6729 }
 0x8ba   : > { %v4241_v26 = vpop.f32.mrf.mxu0  ;;  %v12252_v18 = vadd.f32 %v4710_v46, %v4329_v62  ;;  %6343 = vmatpush.bf16.msra.mxu3 %v6184_v11  ;;  %v4624_v12 = vpop.f32.mrf.mxu1  ;;  %v3783_v62 = vadd.f32 %v14574_v47, %v14573_v43  ;;  %v6737_v43 = vsel %vm14579_vm12, %v6730_v1, %v6732_v33  ;;  %v14580_v47 = vld [vmem:[#allocation42_spill] sm:$0xff] }
 0x8bb   : > { %v12254_v15 = vadd.f32 %v4241_v26, %v3780_v44  ;;  %v12257_v55 = vadd.f32 %v4624_v12, %v14570_v0  ;;  %v6726_v0 = vpop.permute.xlu1 %6725  ;;  %v12278_v63 = vpop.permute.xlu2 %6733  ;;  %v6791_v1 = vand.u32 %v6737_v43, %v10213_v42 }
 0x8bd   : > { %14571 = vst [vmem:[#allocation28_spill] sm:$0xff] %v12257_v55  ;;  %8912 = vmatmul.msk.bf16.gmra.mxu1 %vm606_vm5, %v12247_v17  ;;  %v14576_v55 = vld [vmem:[#allocation104_spill] sm:$0xff] }
 0x8be   : > { %8928 = vmatmul.msk.bf16.gmra.mxu2 %vm606_vm5, %v12247_v17 }
 0x8c0   : > { %v4162_v29 = vpop.f32.mrf.mxu3 }
 0x8c1   : > { %v4341_v25 = vadd.f32 %v4162_v29, %v3701_v38  ;;  %v4713_v44 = vpop.f32.mrf.mxu2  ;;  %v14578_v38 = vld [vmem:[#allocation49_spill] sm:$0xff] }
 0x8c2   : > { %v4244_v46 = vpop.f32.mrf.mxu0  ;;  %v12267_v11 = vadd.f32 %v4713_v44, %v4332_v40  ;;  %v4626_v12 = vpop.f32.mrf.mxu1  ;;  %v3704_v40 = vadd.f32 %v11812_v41, %v14578_v38 }
 0x8c3   : > { %v12269_v26 = vadd.f32 %v4244_v46, %v3783_v62  ;;  %v12272_v9 = vadd.f32 %v4626_v12, %v14576_v55  ;;  %v14581_v62 = vld [vmem:[#allocation102_spill] sm:$0xff] }
 0x8c4   : > { %14575 = vst [vmem:[#allocation92_spill] sm:$0xff] %v12267_v11  ;;  %v3785_v29 = vadd.f32 %v14581_v62, %v14580_v47  ;;  %v9766_v55 = vld [vmem:[%s14295_s9 + $0x200] sm:$0xff]  ;;  %v6724_v62 = vpop.permute.xlu1 %6723 }
 0x8c5   : > { %14577 = vst [vmem:[#allocation21_spill] sm:$0xff] %v12272_v9  ;;  %8800 = vmatmul.msk.bf16.gmra.mxu0 %vm606_vm5, %v11736_v6  ;;  %8930 = vmatmul.msk.bf16.gmra.mxu3 %vm606_vm5, %v11799_v37  ;;  %v6738_v6 = vsel %vm14582_vm15, %v6732_v33, %v12278_v63  ;;  %v14584_v33 = vld [vmem:[#allocation52_spill] sm:$0xff] }
 0x8c6   : > { %v6794_v47 = vand.u32 %v6738_v6, %v10213_v42 }
 0x8c8   : > { %v4165_v44 = vpop.f32.mrf.mxu3 }
 0x8c9   : > { %v4344_v46 = vadd.f32 %v4165_v44, %v3704_v40  ;;  %v4715_v37 = vpop.f32.mrf.mxu2  ;;  %v12303_v40 = vpop.permute.xlu2 %6727  ;;  %v14586_v44 = vld [vmem:[#allocation105_spill] sm:$0xff] }
 0x8ca   : > { %v4246_v12 = vpop.f32.mrf.mxu0  ;;  %v12290_v9 = vadd.f32 %v4715_v37, %v4335_v22  ;;  %v4629_v41 = vpop.f32.mrf.mxu1  ;;  %v3706_v22 = vadd.f32 %v11828_v3, %v14584_v33  ;;  %v6245_v33 = vand.u32 %v12219_v2, %v10213_v42  ;;  %v9767_v2 = vld [vmem:[%s14295_s9 + $0x208] sm:$0xff] }
 0x8cb   : > { %v12292_v11 = vadd.f32 %v4246_v12, %v3785_v29  ;;  %v12296_v38 = vadd.f32 %v4629_v41, %v11785_v24  ;;  %v14585_v29 = vld [vmem:[#allocation45_spill] sm:$0xff]  ;;  %v6735_v24 = vsel %vm14587_vm2, %v6724_v62, %v6726_v0  ;;  %v6736_v41 = vsel %vm14588_vm4, %v6726_v0, %v12303_v40  ;;  %v14589_v0 = vld [vmem:[#allocation55_spill] sm:$0xff]  ;;  %v14590_v62 = vld [vmem:[#allocation48_spill] sm:$0xff] }
 0x8cc   : > { %v3788_v43 = vadd.f32 %v14586_v44, %v14585_v29 }
 0x8cd   : > { %14583 = vst [vmem:[#allocation81_spill] sm:$0xff] %v12296_v38  ;;  %9069 = vmatmul.msk.bf16.vlgmr.msra.gmra.mxu1 %vm606_vm5, %v9766_v55 }
 0x8ce   : > { %9085 = vmatmul.msk.bf16.vlgmr.msra.gmra.mxu2 %vm606_vm5, %v9766_v55  ;;  %6805 = vmatpush.bf16.msra.mxu1 %v6791_v1 }
 0x8cf   : > { %6894 = vmatpush.bf16.msra.mxu2 %v6794_v47 }
 0x8d0   : > { %v4167_v37 = vpop.f32.mrf.mxu3 }
 0x8d1   : > { %v4347_v12 = vadd.f32 %v4167_v37, %v3706_v22  ;;  %v4718_v6 = vpop.f32.mrf.mxu2 }
 0x8d2   : > { %6806 = vmatpush.bf16.msra.mxu1 %v6735_v24  ;;  %v4249_v38 = vpop.f32.mrf.mxu0  ;;  %v12310_v1 = vadd.f32 %v4718_v6, %v4338_v52  ;;  %v4631_v3 = vpop.f32.mrf.mxu1  ;;  %v3709_v52 = vadd.f32 %v11839_v8, %v14589_v0  ;;  %v14592_v6 = vld [vmem:[#allocation51_spill] sm:$0xff] }
 0x8d3   : > { %6895 = vmatpush.bf16.msra.mxu2 %v6736_v41  ;;  %v12312_v47 = vadd.f32 %v4249_v38, %v3788_v43  ;;  %v12317_v29 = vadd.f32 %v4631_v3, %v11803_v23  ;;  %v3790_v38 = vadd.f32 %v11787_v36, %v14590_v62  ;;  %v14591_v36 = vld [vmem:[#allocation58_spill] sm:$0xff] }
 0x8d4   : > { %v3711_v24 = vadd.f32 %v11855_v31, %v14591_v36  ;;  %v14593_v41 = vld [vmem:[#allocation106_spill] sm:$0xff]  ;;  %v14595_v31 = vld [vmem:[#allocation60_spill] sm:$0xff] }
 0x8d5   : > { %9053 = vmatmul.msk.bf16.vlgmr.msra.gmra.mxu0 %vm606_vm5, %v9766_v55  ;;  %8931 = vmatmul.msk.bf16.gmra.mxu3 %vm606_vm5, %v11826_v10  ;;  %v3793_v3 = vadd.f32 %v14593_v41, %v14592_v6 }
 0x8d6   : > { %6431 = vmatpush.bf16.msra.mxu0 %v6245_v33 }
 0x8d8   : > { %v4170_v22 = vpop.f32.mrf.mxu3 }
 0x8d9   : > { %v4350_v44 = vadd.f32 %v4170_v22, %v3709_v52  ;;  %v4720_v23 = vpop.f32.mrf.mxu2 }
 0x8da   : > { %6432 = vmatpush.bf16.msra.mxu0 %v12193_v20  ;;  %v4251_v55 = vpop.f32.mrf.mxu0  ;;  %v12330_v43 = vadd.f32 %v4720_v23, %v4341_v25  ;;  %v4634_v37 = vpop.f32.mrf.mxu1  ;;  %v3714_v23 = vadd.f32 %v11866_v54, %v14595_v31  ;;  %v14600_v54 = vld [vmem:[#allocation62_spill] sm:$0xff]  ;;  %v14602_v31 = vld [vmem:[#allocation109_spill] sm:$0xff] }
 0x8db   : > { %v12332_v10 = vadd.f32 %v4251_v55, %v3790_v38  ;;  %v12335_v8 = vadd.f32 %v4634_v37, %v11814_v56  ;;  %v14594_v38 = vld [vmem:[#allocation108_spill] sm:$0xff]  ;;  %v14596_v55 = vld [vmem:[#allocation54_spill] sm:$0xff]  ;;  %v14597_v37 = vld [vmem:[#allocation107_spill] sm:$0xff] }
 0x8dc   : > { %v3795_v36 = vadd.f32 %v14597_v37, %v14596_v55 }
 0x8dd   : > { %9070 = vmatmul.msk.bf16.gmra.mxu1 %vm606_vm5, %v9767_v2 }
 0x8de   : > { %9086 = vmatmul.msk.bf16.gmra.mxu2 %vm606_vm5, %v9767_v2 }
 0x8e0   : > { %v4172_v20 = vpop.f32.mrf.mxu3 }
 0x8e1   : > { %v4353_v33 = vadd.f32 %v4172_v20, %v3711_v24  ;;  %v4723_v25 = vpop.f32.mrf.mxu2 }
 0x8e2   : > { %v4254_v0 = vpop.f32.mrf.mxu0  ;;  %v12343_v52 = vadd.f32 %v4723_v25, %v4344_v46  ;;  %v4636_v56 = vpop.f32.mrf.mxu1  ;;  %v9768_v46 = vld [vmem:[%s14295_s9 + $0x210] sm:$0xff] }
 0x8e3   : > { %v12345_v62 = vadd.f32 %v4254_v0, %v3793_v3  ;;  %v12348_v22 = vadd.f32 %v4636_v56, %v14594_v38  ;;  %v3716_v56 = vadd.f32 %v11882_v49, %v14600_v54  ;;  %v14601_v38 = vld [vmem:[#allocation57_spill] sm:$0xff]  ;;  %v14605_v49 = vld [vmem:[#allocation11_spill] sm:$0xff] }
 0x8e4   : > { %v3719_v54 = vadd.f32 %v11893_v57, %v14605_v49  ;;  %v14610_v57 = vld [vmem:[#allocation14_spill] sm:$0xff] }
 0x8e5   : > { %9054 = vmatmul.msk.bf16.gmra.mxu0 %vm606_vm5, %v9767_v2  ;;  %8932 = vmatmul.msk.bf16.gmra.mxu3 %vm606_vm5, %v11853_v61  ;;  %v14598_v61 = vld [vmem:[#allocation110_spill] sm:$0xff]  ;;  %v3721_v49 = vadd.f32 %v11909_v21, %v14610_v57  ;;  %v14616_v21 = vld [vmem:[#allocation17_spill] sm:$0xff] }
 0x8e6   : > { %v3724_v57 = vadd.f32 %v11920_v45, %v14616_v21  ;;  %v14621_v45 = vld [vmem:[#allocation20_spill] sm:$0xff] }
 0x8e7   : > { %v3726_v21 = vadd.f32 %v11936_v16, %v14621_v45  ;;  %v14627_v16 = vld [vmem:[#allocation23_spill] sm:$0xff] }
 0x8e8   : > { %v4175_v24 = vpop.f32.mrf.mxu3  ;;  %v3729_v45 = vadd.f32 %v11947_v19, %v14627_v16  ;;  %v14631_v19 = vld [vmem:[#allocation26_spill] sm:$0xff] }
 0x8e9   : > { %v4356_v6 = vadd.f32 %v4175_v24, %v3714_v23  ;;  %v4725_v41 = vpop.f32.mrf.mxu2  ;;  %v3798_v23 = vadd.f32 %v14602_v31, %v14601_v38  ;;  %v14606_v38 = vld [vmem:[#allocation59_spill] sm:$0xff]  ;;  %v3731_v16 = vadd.f32 %v11965_v59, %v14631_v19  ;;  %v14635_v59 = vld [vmem:[#allocation29_spill] sm:$0xff] }
 0x8ea   : > { %v4256_v3 = vpop.f32.mrf.mxu0  ;;  %v12360_v20 = vadd.f32 %v4725_v41, %v4347_v12  ;;  %v4639_v25 = vpop.f32.mrf.mxu1  ;;  %v3734_v19 = vadd.f32 %v11978_v48, %v14635_v59  ;;  %v14639_v48 = vld [vmem:[#allocation32_spill] sm:$0xff] }
 0x8eb   : > { %v12362_v2 = vadd.f32 %v4256_v3, %v3795_v36  ;;  %v12365_v0 = vadd.f32 %v4639_v25, %v14598_v61  ;;  %v14603_v25 = vld [vmem:[#allocation112_spill] sm:$0xff]  ;;  %v3736_v59 = vadd.f32 %v11996_v5, %v14639_v48  ;;  %v14643_v5 = vld [vmem:[#allocation50_spill] sm:$0xff]  ;;  %v14644_v48 = vld [vmem:[#allocation125_spill] sm:$0xff] }
 0x8ed   : > { %14599 = vst [vmem:[#allocation87_spill] sm:$0xff] %v12365_v0  ;;  %9071 = vmatmul.msk.bf16.gmra.mxu1 %vm606_vm5, %v9768_v46 }
 0x8ee   : > { %9087 = vmatmul.msk.bf16.gmra.mxu2 %vm606_vm5, %v9768_v46 }
 0x8f0   : > { %v4177_v55 = vpop.f32.mrf.mxu3 }
 0x8f1   : > { %v4359_v37 = vadd.f32 %v4177_v55, %v3716_v56  ;;  %v4728_v12 = vpop.f32.mrf.mxu2  ;;  %v14607_v56 = vld [vmem:[#allocation111_spill] sm:$0xff] }
 0x8f2   : > { %v4259_v24 = vpop.f32.mrf.mxu0  ;;  %v12373_v36 = vadd.f32 %v4728_v12, %v4350_v44  ;;  %v4641_v3 = vpop.f32.mrf.mxu1  ;;  %v3800_v31 = vadd.f32 %v14607_v56, %v14606_v38  ;;  %v9769_v44 = vld [vmem:[%s14295_s9 + $0x218] sm:$0xff] }
 0x8f3   : > { %v12375_v41 = vadd.f32 %v4259_v24, %v3798_v23  ;;  %v12378_v61 = vadd.f32 %v4641_v3, %v14603_v25  ;;  %v14611_v38 = vld [vmem:[#allocation61_spill] sm:$0xff] }
 0x8f4   : > { %v14612_v56 = vld [vmem:[#allocation113_spill] sm:$0xff] }
 0x8f5   : > { %14604 = vst [vmem:[#allocation31_spill] sm:$0xff] %v12378_v61  ;;  %9055 = vmatmul.msk.bf16.gmra.mxu0 %vm606_vm5, %v9768_v46  ;;  %8933 = vmatmul.msk.bf16.gmra.mxu3 %vm606_vm5, %v11880_v53  ;;  %v14608_v53 = vld [vmem:[#allocation114_spill] sm:$0xff] }
 0x8f8   : > { %v4180_v55 = vpop.f32.mrf.mxu3 }
 0x8f9   : > { %v4362_v23 = vadd.f32 %v4180_v55, %v3719_v54  ;;  %v4730_v12 = vpop.f32.mrf.mxu2  ;;  %v3803_v54 = vadd.f32 %v14612_v56, %v14611_v38  ;;  %v14617_v38 = vld [vmem:[#allocation63_spill] sm:$0xff] }
 0x8fa   : > { %v4261_v24 = vpop.f32.mrf.mxu0  ;;  %v12390_v3 = vadd.f32 %v4730_v12, %v4353_v33  ;;  %v4644_v25 = vpop.f32.mrf.mxu1 }
 0x8fb   : > { %v12392_v46 = vadd.f32 %v4261_v24, %v3800_v31  ;;  %v12395_v61 = vadd.f32 %v4644_v25, %v14608_v53  ;;  %v14614_v53 = vld [vmem:[#allocation116_spill] sm:$0xff] }
 0x8fd   : > { %14609 = vst [vmem:[#allocation95_spill] sm:$0xff] %v12395_v61  ;;  %9072 = vmatmul.msk.bf16.gmra.mxu1 %vm606_vm5, %v9769_v44 }
 0x8fe   : > { %9088 = vmatmul.msk.bf16.gmra.mxu2 %vm606_vm5, %v9769_v44 }
 0x900   : > { %v4182_v55 = vpop.f32.mrf.mxu3 }
 0x901   : > { %v4365_v0 = vadd.f32 %v4182_v55, %v3721_v49  ;;  %v4733_v33 = vpop.f32.mrf.mxu2  ;;  %v14618_v49 = vld [vmem:[#allocation115_spill] sm:$0xff] }
 0x902   : > { %v4264_v12 = vpop.f32.mrf.mxu0  ;;  %v12403_v31 = vadd.f32 %v4733_v33, %v4356_v6  ;;  %v4646_v25 = vpop.f32.mrf.mxu1  ;;  %v3805_v56 = vadd.f32 %v14618_v49, %v14617_v38  ;;  %v9770_v6 = vld [vmem:[%s14295_s9 + $0x220] sm:$0xff]  ;;  %v14622_v38 = vld [vmem:[#allocation35_spill] sm:$0xff]  ;;  %v14623_v49 = vld [vmem:[#allocation117_spill] sm:$0xff] }
 0x903   : > { %v12405_v24 = vadd.f32 %v4264_v12, %v3803_v54  ;;  %v12408_v61 = vadd.f32 %v4646_v25, %v14614_v53 }
 0x904   : > { %14613 = vst [vmem:[#allocation24_spill] sm:$0xff] %v12403_v31 }
 0x905   : > { %14615 = vst [vmem:[#allocation84_spill] sm:$0xff] %v12408_v61  ;;  %9056 = vmatmul.msk.bf16.gmra.mxu0 %vm606_vm5, %v9769_v44  ;;  %8934 = vmatmul.msk.bf16.gmra.mxu3 %vm606_vm5, %v11907_v58  ;;  %v14619_v58 = vld [vmem:[#allocation118_spill] sm:$0xff] }
 0x908   : > { %v4185_v55 = vpop.f32.mrf.mxu3 }
 0x909   : > { %v4368_v54 = vadd.f32 %v4185_v55, %v3724_v57  ;;  %v4735_v33 = vpop.f32.mrf.mxu2  ;;  %v3808_v57 = vadd.f32 %v14623_v49, %v14622_v38  ;;  %v14628_v38 = vld [vmem:[#allocation38_spill] sm:$0xff] }
 0x90a   : > { %v4266_v12 = vpop.f32.mrf.mxu0  ;;  %v12420_v25 = vadd.f32 %v4735_v33, %v4359_v37  ;;  %v4649_v53 = vpop.f32.mrf.mxu1 }
 0x90b   : > { %v12422_v44 = vadd.f32 %v4266_v12, %v3805_v56  ;;  %v12425_v61 = vadd.f32 %v4649_v53, %v14619_v58  ;;  %v14625_v58 = vld [vmem:[#allocation120_spill] sm:$0xff] }
 0x90d   : > { %14620 = vst [vmem:[#allocation90_spill] sm:$0xff] %v12425_v61  ;;  %9073 = vmatmul.msk.bf16.gmra.mxu1 %vm606_vm5, %v9770_v6 }
 0x90e   : > { %9089 = vmatmul.msk.bf16.gmra.mxu2 %vm606_vm5, %v9770_v6 }
 0x910   : > { %v4187_v55 = vpop.f32.mrf.mxu3 }
 0x911   : > { %v4371_v31 = vadd.f32 %v4187_v55, %v3726_v21  ;;  %v4738_v37 = vpop.f32.mrf.mxu2  ;;  %v14629_v21 = vld [vmem:[#allocation119_spill] sm:$0xff] }
 0x912   : > { %v4269_v33 = vpop.f32.mrf.mxu0  ;;  %v12433_v56 = vadd.f32 %v4738_v37, %v4362_v23  ;;  %v4651_v53 = vpop.f32.mrf.mxu1  ;;  %v3810_v49 = vadd.f32 %v14629_v21, %v14628_v38  ;;  %v9771_v23 = vld [vmem:[%s14295_s9 + $0x228] sm:$0xff]  ;;  %v14632_v38 = vld [vmem:[#allocation41_spill] sm:$0xff] }
 0x913   : > { %v12435_v12 = vadd.f32 %v4269_v33, %v3808_v57  ;;  %v12438_v61 = vadd.f32 %v4651_v53, %v14625_v58  ;;  %v14633_v21 = vld [vmem:[#allocation121_spill] sm:$0xff] }
 0x914   : > { %14624 = vst [vmem:[#allocation34_spill] sm:$0xff] %v12433_v56 }
 0x915   : > { %14626 = vst [vmem:[#allocation27_spill] sm:$0xff] %v12438_v61  ;;  %9057 = vmatmul.msk.bf16.gmra.mxu0 %vm606_vm5, %v9770_v6  ;;  %8935 = vmatmul.msk.bf16.gmra.mxu3 %vm606_vm5, %v11934_v4  ;;  %v14630_v4 = vld [vmem:[#allocation122_spill] sm:$0xff] }
 0x918   : > { %v4190_v55 = vpop.f32.mrf.mxu3 }
 0x919   : > { %v4374_v57 = vadd.f32 %v4190_v55, %v3729_v45  ;;  %v4740_v37 = vpop.f32.mrf.mxu2  ;;  %v3813_v45 = vadd.f32 %v14633_v21, %v14632_v38  ;;  %v14636_v38 = vld [vmem:[#allocation44_spill] sm:$0xff] }
 0x91a   : > { %v4271_v33 = vpop.f32.mrf.mxu0  ;;  %v12450_v53 = vadd.f32 %v4740_v37, %v4365_v0  ;;  %v4654_v58 = vpop.f32.mrf.mxu1 }
 0x91b   : > { %v12452_v6 = vadd.f32 %v4271_v33, %v3810_v49  ;;  %v12455_v61 = vadd.f32 %v4654_v58, %v14630_v4 }
 0x91d   : > { %9074 = vmatmul.msk.bf16.gmra.mxu1 %vm606_vm5, %v9771_v23 }
 0x91e   : > { %9090 = vmatmul.msk.bf16.gmra.mxu2 %vm606_vm5, %v9771_v23 }
 0x920   : > { %v4192_v55 = vpop.f32.mrf.mxu3 }
 0x921   : > { %v4377_v56 = vadd.f32 %v4192_v55, %v3731_v16  ;;  %v4743_v0 = vpop.f32.mrf.mxu2  ;;  %v14637_v16 = vld [vmem:[#allocation123_spill] sm:$0xff] }
 0x922   : > { %v4274_v37 = vpop.f32.mrf.mxu0  ;;  %v12463_v49 = vadd.f32 %v4743_v0, %v4368_v54  ;;  %v4656_v58 = vpop.f32.mrf.mxu1  ;;  %v3815_v21 = vadd.f32 %v14637_v16, %v14636_v38  ;;  %v9772_v54 = vld [vmem:[%s14295_s9 + $0x230] sm:$0xff]  ;;  %v14640_v38 = vld [vmem:[#allocation47_spill] sm:$0xff] }
 0x923   : > { %v12465_v33 = vadd.f32 %v4274_v37, %v3813_v45  ;;  %v12468_v4 = vadd.f32 %v4656_v58, %v11938_v32  ;;  %v14641_v16 = vld [vmem:[#allocation124_spill] sm:$0xff] }
 0x925   : > { %14634 = vst [vmem:[#allocation88_spill] sm:$0xff] %v12468_v4  ;;  %9058 = vmatmul.msk.bf16.gmra.mxu0 %vm606_vm5, %v9771_v23  ;;  %8936 = vmatmul.msk.bf16.gmra.mxu3 %vm606_vm5, %v11963_v60 }
 0x928   : > { %v4195_v55 = vpop.f32.mrf.mxu3 }
 0x929   : > { %v4380_v45 = vadd.f32 %v4195_v55, %v3734_v19  ;;  %v4745_v0 = vpop.f32.mrf.mxu2  ;;  %v3818_v19 = vadd.f32 %v14641_v16, %v14640_v38  ;;  %v3820_v38 = vadd.f32 %v14644_v48, %v14643_v5  ;;  %v14649_v5 = vld [vmem:[#allocation126_spill] sm:$0xff] }
 0x92a   : > { %v4276_v32 = vpop.f32.mrf.mxu0  ;;  %v12480_v37 = vadd.f32 %v4745_v0, %v4371_v31  ;;  %v4659_v58 = vpop.f32.mrf.mxu1 }
 0x92b   : > { %v12482_v23 = vadd.f32 %v4276_v32, %v3815_v21  ;;  %v12485_v60 = vadd.f32 %v4659_v58, %v11949_v7 }
 0x92d   : > { %14638 = vst [vmem:[#allocation93_spill] sm:$0xff] %v12485_v60  ;;  %9075 = vmatmul.msk.bf16.gmra.mxu1 %vm606_vm5, %v9772_v54 }
 0x92e   : > { %9091 = vmatmul.msk.bf16.gmra.mxu2 %vm606_vm5, %v9772_v54 }
 0x930   : > { %v4197_v55 = vpop.f32.mrf.mxu3 }
 0x931   : > { %v4383_v4 = vadd.f32 %v4197_v55, %v3736_v59  ;;  %v4748_v31 = vpop.f32.mrf.mxu2 }
 0x932   : > { %v4279_v0 = vpop.f32.mrf.mxu0  ;;  %v12493_v21 = vadd.f32 %v4748_v31, %v4374_v57  ;;  %v4661_v7 = vpop.f32.mrf.mxu1  ;;  %v9773_v57 = vld [vmem:[%s14295_s9 + $0x238] sm:$0xff] }
 0x933   : > { %v12495_v32 = vadd.f32 %v4279_v0, %v3818_v19  ;;  %v12498_v58 = vadd.f32 %v4661_v7, %v11967_v14  ;;  %v14646_v0 = vld [vmem:[#allocation127_spill] sm:$0xff] }
 0x935   : > { %14642 = vst [vmem:[#allocation37_spill] sm:$0xff] %v12498_v58  ;;  %9059 = vmatmul.msk.bf16.gmra.mxu0 %vm606_vm5, %v9772_v54  ;;  %8937 = vmatmul.msk.bf16.gmra.mxu3 %vm606_vm5, %v11994_v51  ;;  %v14648_v51 = vld [vmem:[#allocation53_spill] sm:$0xff] }
 0x936   : > { %v3823_v48 = vadd.f32 %v14649_v5, %v14648_v51  ;;  %v14654_v51 = vld [vmem:[#allocation128_spill] sm:$0xff] }
 0x938   : > { %v4767_v16 = vpop.f32.mrf.mxu3 }
 0x939   : > { %v4750_v59 = vpop.f32.mrf.mxu2  ;;  %v4849_v19 = vadd.f32 %v4767_v16, %v12013_v28 }
 0x93a   : > { %v4281_v55 = vpop.f32.mrf.mxu0  ;;  %v12509_v31 = vadd.f32 %v4750_v59, %v4377_v56  ;;  %v4664_v54 = vpop.f32.mrf.mxu1 }
 0x93b   : > { %v12511_v14 = vadd.f32 %v4281_v55, %v3820_v38  ;;  %v12514_v7 = vadd.f32 %v4664_v54, %v14646_v0  ;;  %v14651_v55 = vld [vmem:[#allocation129_spill] sm:$0xff]  ;;  %v14653_v0 = vld [vmem:[#allocation56_spill] sm:$0xff] }
 0x93c   : > { %14645 = vst [vmem:[#allocation30_spill] sm:$0xff] %v12509_v31  ;;  %v3825_v5 = vadd.f32 %v14654_v51, %v14653_v0 }
 0x93d   : > { %14647 = vst [vmem:[#allocation91_spill] sm:$0xff] %v12514_v7  ;;  %9076 = vmatmul.msk.bf16.gmra.mxu1 %vm606_vm5, %v9773_v57 }
 0x93e   : > { %9092 = vmatmul.msk.bf16.gmra.mxu2 %vm606_vm5, %v9773_v57 }
 0x940   : > { %v4769_v58 = vpop.f32.mrf.mxu3 }
 0x941   : > { %v4753_v60 = vpop.f32.mrf.mxu2  ;;  %v4852_v28 = vadd.f32 %v4769_v58, %v12033_v50  ;;  %v9774_v50 = vld [vmem:[%s14295_s9 + $0x240] sm:$0xff] }
 0x942   : > { %v4284_v16 = vpop.f32.mrf.mxu0  ;;  %v12521_v56 = vadd.f32 %v4753_v60, %v4380_v45  ;;  %v4666_v59 = vpop.f32.mrf.mxu1  ;;  %v14655_v60 = vld [vmem:[#allocation5_spill] sm:$0xff] }
 0x943   : > { %v12523_v38 = vadd.f32 %v4284_v16, %v3823_v48  ;;  %v12526_v54 = vadd.f32 %v4666_v59, %v14651_v55  ;;  %v14657_v55 = vld [vmem:[#allocation4_spill] sm:$0xff] }
 0x944   : > { %14650 = vst [vmem:[#allocation96_spill] sm:$0xff] %v12521_v56 }
 0x945   : > { %14652 = vst [vmem:[#allocation40_spill] sm:$0xff] %v12526_v54  ;;  %9060 = vmatmul.msk.bf16.gmra.mxu0 %vm606_vm5, %v9773_v57  ;;  %8938 = vmatmul.msk.bf16.gmra.mxu3 %vm606_vm5, %v12029_v27 }
 0x948   : > { %v4772_v7 = vpop.f32.mrf.mxu3 }
 0x949   : > { %v4755_v45 = vpop.f32.mrf.mxu2  ;;  %v4855_v58 = vadd.f32 %v4772_v7, %v14655_v60  ;;  %v14660_v7 = vld [vmem:[#allocation130_spill] sm:$0xff] }
 0x94a   : > { %v4286_v48 = vpop.f32.mrf.mxu0  ;;  %v12537_v16 = vadd.f32 %v4755_v45, %v4383_v4  ;;  %v5241_v57 = vpop.f32.mrf.mxu1  ;;  %v14661_v45 = vld [vmem:[#allocation66_spill] sm:$0xff] }
 0x94b   : > { %v12539_v59 = vadd.f32 %v4286_v48, %v3825_v5  ;;  %v12542_v54 = vadd.f32 %v5241_v57, %v14657_v55  ;;  %v14663_v57 = vld [vmem:[#allocation67_spill] sm:$0xff] }
 0x94c   : > { %14656 = vst [vmem:[#allocation103_spill] sm:$0xff] %v12537_v16 }
 0x94d   : > { %14658 = vst [vmem:[#allocation33_spill] sm:$0xff] %v12542_v54  ;;  %9077 = vmatmul.msk.bf16.gmra.mxu1 %vm606_vm5, %v9774_v50 }
 0x94e   : > { %9093 = vmatmul.msk.bf16.gmra.mxu2 %vm606_vm5, %v9774_v50 }
 0x950   : > { %v4774_v27 = vpop.f32.mrf.mxu3 }
 0x951   : > { %v4858_v0 = vadd.f32 %v4774_v27, %v12068_v13  ;;  %v5330_v51 = vpop.f32.mrf.mxu2  ;;  %v9775_v13 = vld [vmem:[%s14295_s9 + $0x248] sm:$0xff] }
 0x952   : > { %v5152_v56 = vpop.f32.mrf.mxu0  ;;  %v12547_v31 = vadd.f32 %v5330_v51, %v4849_v19  ;;  %v5243_v5 = vpop.f32.mrf.mxu1  ;;  %v14665_v51 = vld [vmem:[#allocation64_spill] sm:$0xff] }
 0x953   : > { %v12550_v4 = vadd.f32 %v5152_v56, %v14660_v7  ;;  %v12553_v60 = vadd.f32 %v5243_v5, %v14661_v45  ;;  %v14666_v45 = vld [vmem:[#allocation72_spill] sm:$0xff] }
 0x954   : > { %14659 = vst [vmem:[#allocation94_spill] sm:$0xff] %v12547_v31 }
 0x955   : > { %14662 = vst [vmem:[#allocation100_spill] sm:$0xff] %v12553_v60  ;;  %9061 = vmatmul.msk.bf16.gmra.mxu0 %vm606_vm5, %v9774_v50  ;;  %8939 = vmatmul.msk.bf16.gmra.mxu3 %vm606_vm5, %v12064_v34  ;;  %v14668_v60 = vld [vmem:[#allocation7_spill] sm:$0xff] }
 0x958   : > { %v4777_v48 = vpop.f32.mrf.mxu3 }
 0x959   : > { %v4861_v19 = vadd.f32 %v4777_v48, %v14663_v57  ;;  %v5332_v55 = vpop.f32.mrf.mxu2 }
 0x95a   : > { %v5154_v27 = vpop.f32.mrf.mxu0  ;;  %v12562_v56 = vadd.f32 %v5332_v55, %v4852_v28  ;;  %v5246_v5 = vpop.f32.mrf.mxu1  ;;  %v14670_v28 = vld [vmem:[#allocation8_spill] sm:$0xff] }
 0x95b   : > { %v12565_v7 = vadd.f32 %v5154_v27, %v14665_v51  ;;  %v12568_v50 = vadd.f32 %v5246_v5, %v14666_v45  ;;  %v14672_v51 = vld [vmem:[#allocation68_spill] sm:$0xff]  ;;  %v14674_v5 = vld [vmem:[#allocation13_spill] sm:$0xff] }
 0x95c   : > { %14664 = vst [vmem:[#allocation98_spill] sm:$0xff] %v12562_v56 }
 0x95d   : > { %14667 = vst [vmem:[#allocation43_spill] sm:$0xff] %v12568_v50  ;;  %9078 = vmatmul.msk.bf16.gmra.mxu1 %vm606_vm5, %v9775_v13 }
 0x95e   : > { %9094 = vmatmul.msk.bf16.gmra.mxu2 %vm606_vm5, %v9775_v13 }
 0x960   : > { %v4779_v34 = vpop.f32.mrf.mxu3 }
 0x961   : > { %v4864_v54 = vadd.f32 %v4779_v34, %v14668_v60  ;;  %v5335_v31 = vpop.f32.mrf.mxu2  ;;  %v9776_v60 = vld [vmem:[%s14295_s9 + $0x250] sm:$0xff] }
 0x962   : > { %v5157_v48 = vpop.f32.mrf.mxu0  ;;  %v12573_v57 = vadd.f32 %v5335_v31, %v4855_v58  ;;  %v5248_v27 = vpop.f32.mrf.mxu1  ;;  %v14675_v34 = vld [vmem:[#allocation16_spill] sm:$0xff] }
 0x963   : > { %v12576_v55 = vadd.f32 %v5157_v48, %v14670_v28  ;;  %v12579_v56 = vadd.f32 %v5248_v27, %v14672_v51  ;;  %v14677_v28 = vld [vmem:[#allocation65_spill] sm:$0xff]  ;;  %v14678_v51 = vld [vmem:[#allocation6_spill] sm:$0xff] }
 0x964   : > { %14669 = vst [vmem:[#allocation36_spill] sm:$0xff] %v12573_v57 }
 0x965   : > { %14671 = vst [vmem:[#allocation97_spill] sm:$0xff] %v12576_v55  ;;  %9062 = vmatmul.msk.bf16.gmra.mxu0 %vm606_vm5, %v9775_v13  ;;  %8940 = vmatmul.msk.bf16.gmra.mxu3 %vm606_vm5, %v14674_v5 }
 0x966   : > { %14673 = vst [vmem:[#allocation101_spill] sm:$0xff] %v12579_v56  ;;  %v14680_v56 = vld [vmem:[#allocation75_spill] sm:$0xff] }
 0x968   : > { %v4782_v45 = vpop.f32.mrf.mxu3 }
 0x969   : > { %v4867_v31 = vadd.f32 %v4782_v45, %v14675_v34  ;;  %v5337_v58 = vpop.f32.mrf.mxu2 }
 0x96a   : > { %v5159_v50 = vpop.f32.mrf.mxu0  ;;  %v12588_v48 = vadd.f32 %v5337_v58, %v4858_v0  ;;  %v5251_v27 = vpop.f32.mrf.mxu1  ;;  %v14682_v0 = vld [vmem:[#allocation10_spill] sm:$0xff] }
 0x96b   : > { %v12591_v57 = vadd.f32 %v5159_v50, %v14677_v28  ;;  %v12594_v13 = vadd.f32 %v5251_v27, %v14678_v51  ;;  %v14684_v28 = vld [vmem:[#allocation77_spill] sm:$0xff]  ;;  %v14686_v51 = vld [vmem:[#allocation12_spill] sm:$0xff] }
 0x96c   : > { %14676 = vst [vmem:[#allocation46_spill] sm:$0xff] %v12588_v48 }
 0x96d   : > { %14679 = vst [vmem:[#allocation39_spill] sm:$0xff] %v12594_v13  ;;  %9079 = vmatmul.msk.bf16.gmra.mxu1 %vm606_vm5, %v9776_v60 }
 0x96e   : > { %9095 = vmatmul.msk.bf16.gmra.mxu2 %vm606_vm5, %v9776_v60 }
 0x970   : > { %v4784_v5 = vpop.f32.mrf.mxu3 }
 0x971   : > { %v4870_v55 = vadd.f32 %v4784_v5, %v14680_v56  ;;  %v5340_v16 = vpop.f32.mrf.mxu2  ;;  %v9777_v56 = vld [vmem:[%s14295_s9 + $0x258] sm:$0xff] }
 0x972   : > { %v5162_v45 = vpop.f32.mrf.mxu0  ;;  %v12599_v34 = vadd.f32 %v5340_v16, %v4861_v19  ;;  %v5253_v50 = vpop.f32.mrf.mxu1 }
 0x973   : > { %v12602_v58 = vadd.f32 %v5162_v45, %v14682_v0  ;;  %v12605_v48 = vadd.f32 %v5253_v50, %v14684_v28  ;;  %v14688_v0 = vld [vmem:[#allocation70_spill] sm:$0xff]  ;;  %v14690_v28 = vld [vmem:[#allocation73_spill] sm:$0xff] }
 0x974   : > { %14681 = vst [vmem:[#allocation99_spill] sm:$0xff] %v12599_v34 }
 0x975   : > { %14683 = vst [vmem:[#allocation104_spill] sm:$0xff] %v12602_v58  ;;  %9063 = vmatmul.msk.bf16.gmra.mxu0 %vm606_vm5, %v9776_v60  ;;  %8941 = vmatmul.msk.bf16.gmra.mxu3 %vm606_vm5, %v12134_v30 }
 0x976   : > { %14685 = vst [vmem:[#allocation49_spill] sm:$0xff] %v12605_v48  ;;  %v14692_v48 = vld [vmem:[#allocation85_spill] sm:$0xff] }
 0x978   : > { %v4787_v27 = vpop.f32.mrf.mxu3 }
 0x979   : > { %v4873_v16 = vadd.f32 %v4787_v27, %v14686_v51  ;;  %v5342_v19 = vpop.f32.mrf.mxu2 }
 0x97a   : > { %v5164_v5 = vpop.f32.mrf.mxu0  ;;  %v12614_v45 = vadd.f32 %v5342_v19, %v4864_v54  ;;  %v5256_v50 = vpop.f32.mrf.mxu1  ;;  %v14694_v54 = vld [vmem:[#allocation69_spill] sm:$0xff] }
 0x97b   : > { %v12617_v13 = vadd.f32 %v5164_v5, %v14688_v0  ;;  %v12620_v60 = vadd.f32 %v5256_v50, %v14690_v28  ;;  %v14696_v0 = vld [vmem:[#allocation71_spill] sm:$0xff]  ;;  %v14698_v50 = vld [vmem:[#allocation78_spill] sm:$0xff] }
 0x97c   : > { %14687 = vst [vmem:[#allocation42_spill] sm:$0xff] %v12614_v45 }
 0x97d   : > { %14689 = vst [vmem:[#allocation102_spill] sm:$0xff] %v12617_v13  ;;  %9080 = vmatmul.msk.bf16.gmra.mxu1 %vm606_vm5, %v9777_v56 }
 0x97e   : > { %14691 = vst [vmem:[#allocation52_spill] sm:$0xff] %v12620_v60  ;;  %9096 = vmatmul.msk.bf16.gmra.mxu2 %vm606_vm5, %v9777_v56 }
 0x980   : > { %v4789_v30 = vpop.f32.mrf.mxu3 }
 0x981   : > { %v4876_v34 = vadd.f32 %v4789_v30, %v14692_v48  ;;  %v5345_v58 = vpop.f32.mrf.mxu2  ;;  %v9778_v48 = vld [vmem:[%s14295_s9 + $0x260] sm:$0xff]  ;;  %v14699_v30 = vld [vmem:[#allocation80_spill] sm:$0xff] }
 0x982   : > { %v5167_v27 = vpop.f32.mrf.mxu0  ;;  %v12625_v51 = vadd.f32 %v5345_v58, %v4867_v31  ;;  %v5258_v5 = vpop.f32.mrf.mxu1 }
 0x983   : > { %v12628_v19 = vadd.f32 %v5167_v27, %v14694_v54  ;;  %v12631_v45 = vadd.f32 %v5258_v5, %v14696_v0  ;;  %v14701_v54 = vld [vmem:[#allocation9_spill] sm:$0xff]  ;;  %v14702_v0 = vld [vmem:[#allocation82_spill] sm:$0xff] }
 0x984   : > { %14693 = vst [vmem:[#allocation45_spill] sm:$0xff] %v12625_v51 }
 0x985   : > { %14695 = vst [vmem:[#allocation105_spill] sm:$0xff] %v12628_v19  ;;  %9064 = vmatmul.msk.bf16.gmra.mxu0 %vm606_vm5, %v9777_v56  ;;  %8942 = vmatmul.msk.bf16.gmra.mxu3 %vm606_vm5, %v14698_v50 }
 0x986   : > { %14697 = vst [vmem:[#allocation55_spill] sm:$0xff] %v12631_v45  ;;  %v14704_v45 = vld [vmem:[#allocation18_spill] sm:$0xff] }
 0x988   : > { %v4792_v28 = vpop.f32.mrf.mxu3 }
 0x989   : > { %v4879_v31 = vadd.f32 %v4792_v28, %v14699_v30  ;;  %v5347_v58 = vpop.f32.mrf.mxu2 }
 0x98a   : > { %v5169_v60 = vpop.f32.mrf.mxu0  ;;  %v12640_v27 = vadd.f32 %v5347_v58, %v4870_v55  ;;  %v5261_v5 = vpop.f32.mrf.mxu1  ;;  %v14706_v55 = vld [vmem:[#allocation19_spill] sm:$0xff] }
 0x98b   : > { %v12643_v51 = vadd.f32 %v5169_v60, %v14701_v54  ;;  %v12646_v56 = vadd.f32 %v5261_v5, %v14702_v0  ;;  %v14707_v54 = vld [vmem:[#allocation22_spill] sm:$0xff]  ;;  %v14709_v5 = vld [vmem:[#allocation25_spill] sm:$0xff] }
 0x98c   : > { %14700 = vst [vmem:[#allocation48_spill] sm:$0xff] %v12640_v27 }
 0x98d   : > { %14703 = vst [vmem:[#allocation58_spill] sm:$0xff] %v12646_v56  ;;  %9081 = vmatmul.msk.bf16.gmra.mxu1 %vm606_vm5, %v9778_v48 }
 0x98e   : > { %9097 = vmatmul.msk.bf16.gmra.mxu2 %vm606_vm5, %v9778_v48 }
 0x990   : > { %v4794_v50 = vpop.f32.mrf.mxu3 }
 0x991   : > { %v4882_v19 = vadd.f32 %v4794_v50, %v14704_v45  ;;  %v5350_v13 = vpop.f32.mrf.mxu2  ;;  %v9779_v45 = vld [vmem:[%s14295_s9 + $0x268] sm:$0xff] }
 0x992   : > { %v5172_v28 = vpop.f32.mrf.mxu0  ;;  %v12651_v30 = vadd.f32 %v5350_v13, %v4873_v16  ;;  %v5263_v60 = vpop.f32.mrf.mxu1 }
 0x993   : > { %v12654_v58 = vadd.f32 %v5172_v28, %v14706_v55  ;;  %v12657_v27 = vadd.f32 %v5263_v60, %v14707_v54  ;;  %v14711_v55 = vld [vmem:[#allocation74_spill] sm:$0xff]  ;;  %v14712_v54 = vld [vmem:[#allocation76_spill] sm:$0xff] }
 0x994   : > { %14705 = vst [vmem:[#allocation51_spill] sm:$0xff] %v12651_v30 }
 0x995   : > { %14708 = vst [vmem:[#allocation106_spill] sm:$0xff] %v12657_v27  ;;  %9065 = vmatmul.msk.bf16.gmra.mxu0 %vm606_vm5, %v9778_v48  ;;  %8943 = vmatmul.msk.bf16.gmra.mxu3 %vm606_vm5, %v14709_v5 }
 0x998   : > { %v4797_v0 = vpop.f32.mrf.mxu3 }
 0x999   : > { %v4885_v13 = vadd.f32 %v4797_v0, %v12230_v39  ;;  %v5352_v16 = vpop.f32.mrf.mxu2 }
 0x99a   : > { %v5174_v50 = vpop.f32.mrf.mxu0  ;;  %v12666_v28 = vadd.f32 %v5352_v16, %v4876_v34  ;;  %v5266_v60 = vpop.f32.mrf.mxu1  ;;  %v14713_v34 = vld [vmem:[#allocation15_spill] sm:$0xff] }
 0x99b   : > { %v12669_v56 = vadd.f32 %v5174_v50, %v14711_v55  ;;  %v12672_v48 = vadd.f32 %v5266_v60, %v14712_v54  ;;  %v14714_v55 = vld [vmem:[#allocation89_spill] sm:$0xff] }
 0x99c   : > { %14710 = vst [vmem:[#allocation108_spill] sm:$0xff] %v12666_v28 }
 0x99d   : > { %9082 = vmatmul.msk.bf16.gmra.mxu1 %vm606_vm5, %v9779_v45 }
 0x99e   : > { %9098 = vmatmul.msk.bf16.gmra.mxu2 %vm606_vm5, %v9779_v45 }
 0x9a0   : > { %v4799_v5 = vpop.f32.mrf.mxu3 }
 0x9a1   : > { %v4888_v27 = vadd.f32 %v4799_v5, %v12254_v15  ;;  %v5355_v30 = vpop.f32.mrf.mxu2  ;;  %v9780_v15 = vld [vmem:[%s14295_s9 + $0x270] sm:$0xff] }
 0x9a2   : > { %v5177_v39 = vpop.f32.mrf.mxu0  ;;  %v12677_v0 = vadd.f32 %v5355_v30, %v4879_v31  ;;  %v5268_v50 = vpop.f32.mrf.mxu1 }
 0x9a3   : > { %v12680_v16 = vadd.f32 %v5177_v39, %v14713_v34  ;;  %v12683_v28 = vadd.f32 %v5268_v50, %v14714_v55  ;;  %v14716_v39 = vld [vmem:[#allocation86_spill] sm:$0xff] }
 0x9a5   : > { %14715 = vst [vmem:[#allocation60_spill] sm:$0xff] %v12683_v28  ;;  %9066 = vmatmul.msk.bf16.gmra.mxu0 %vm606_vm5, %v9779_v45  ;;  %8944 = vmatmul.msk.bf16.gmra.mxu3 %vm606_vm5, %v12247_v17 }
 0x9a8   : > { %v4802_v60 = vpop.f32.mrf.mxu3 }
 0x9a9   : > { %v4891_v31 = vadd.f32 %v4802_v60, %v12269_v26  ;;  %v5357_v30 = vpop.f32.mrf.mxu2 }
 0x9aa   : > { %v5179_v54 = vpop.f32.mrf.mxu0  ;;  %v12692_v5 = vadd.f32 %v5357_v30, %v4882_v19  ;;  %v5271_v50 = vpop.f32.mrf.mxu1  ;;  %v12706_v19 = vld [vmem:[%s14295_s9 + $0x280] sm:$0xff]  ;;  %v14719_v30 = vld [vmem:[#allocation79_spill] sm:$0xff] }
 0x9ab   : > { %v12695_v34 = vadd.f32 %v5179_v54, %v14716_v39  ;;  %v12698_v45 = vadd.f32 %v5271_v50, %v12228_v35  ;;  %v6797_v50 = vand.u32 %v12278_v63, %v10213_v42  ;;  %v14722_v63 = vld [vmem:[#allocation83_spill] sm:$0xff] }
 0x9ad   : > { %14717 = vst [vmem:[#allocation54_spill] sm:$0xff] %v12698_v45  ;;  %9083 = vmatmul.msk.bf16.gmra.mxu1 %vm606_vm5, %v9780_v15 }
 0x9ae   : > { %9099 = vmatmul.msk.bf16.gmra.mxu2 %vm606_vm5, %v9780_v15 }
 0x9b0   : > { %v4804_v17 = vpop.f32.mrf.mxu3 }
 0x9b1   : > { %v4894_v55 = vadd.f32 %v4804_v17, %v12292_v11  ;;  %v5360_v28 = vpop.f32.mrf.mxu2 }
 0x9b2   : > { %v5182_v26 = vpop.f32.mrf.mxu0  ;;  %v12708_v60 = vadd.f32 %v5360_v28, %v4885_v13  ;;  %v5273_v35 = vpop.f32.mrf.mxu1  ;;  %v9781_v13 = vld [vmem:[%s14295_s9 + $0x278] sm:$0xff] }
 0x9b3   : > { %v12711_v54 = vadd.f32 %v5182_v26, %v14719_v30  ;;  %v12714_v39 = vadd.f32 %v5273_v35, %v12252_v18  ;;  %v14723_v35 = vld [vmem:[#allocation92_spill] sm:$0xff] }
 0x9b4   : > { %14718 = vst [vmem:[#allocation107_spill] sm:$0xff] %v12708_v60 }
 0x9b5   : > { %14720 = vst [vmem:[#allocation110_spill] sm:$0xff] %v12714_v39  ;;  %9067 = vmatmul.msk.bf16.gmra.mxu0 %vm606_vm5, %v9780_v15  ;;  %9197 = vmatmul.msk.bf16.vlgmr.msrb.gmra.mxu3 %vm606_vm5, %v12706_v19 }
 0x9b6   : > { %6983 = vmatpush.bf16.msrb.mxu3 %v6797_v50 }
 0x9b8   : > { %v4807_v11 = vpop.f32.mrf.mxu3 }
 0x9b9   : > { %v4897_v28 = vadd.f32 %v4807_v11, %v12312_v47  ;;  %v5362_v17 = vpop.f32.mrf.mxu2 }
 0x9ba   : > { %v5184_v26 = vpop.f32.mrf.mxu0  ;;  %v12725_v18 = vadd.f32 %v5362_v17, %v4888_v27  ;;  %6984 = vmatpush.bf16.msrb.mxu3 %v12303_v40  ;;  %v5276_v15 = vpop.f32.mrf.mxu1  ;;  %v12740_v40 = vld [vmem:[%s14295_s9 + $0x288] sm:$0xff]  ;;  %v14726_v17 = vld [vmem:[#allocation28_spill] sm:$0xff] }
 0x9bb   : > { %v12729_v30 = vadd.f32 %v5184_v26, %v14722_v63  ;;  %v12732_v39 = vadd.f32 %v5276_v15, %v14723_v35  ;;  %v7284_v15 = vpop.permute.xlu1 %7283 }
 0x9bc   : > { %14721 = vst [vmem:[#allocation62_spill] sm:$0xff] %v12725_v18  ;;  %v7282_v18 = vpop.permute.xlu0 %7281 }
 0x9bd   : > { %14724 = vst [vmem:[#allocation57_spill] sm:$0xff] %v12732_v39  ;;  %9084 = vmatmul.msk.bf16.gmra.mxu1 %vm606_vm5, %v9781_v13 }
 0x9be   : > { %9100 = vmatmul.msk.bf16.gmra.mxu2 %vm606_vm5, %v9781_v13 }
 0x9c0   : > { %v4809_v50 = vpop.f32.mrf.mxu3 }
 0x9c1   : > { %v4900_v47 = vadd.f32 %v4809_v50, %v12332_v10  ;;  %v5365_v11 = vpop.f32.mrf.mxu2  ;;  %v7286_v10 = vpop.permute.xlu2 %7285 }
 0x9c2   : > { %v5187_v45 = vpop.f32.mrf.mxu0  ;;  %v12742_v27 = vadd.f32 %v5365_v11, %v4891_v31  ;;  %v5278_v63 = vpop.f32.mrf.mxu1  ;;  %v7290_v50 = vsel %vm14728_vm6, %v7284_v15, %v7286_v10 }
 0x9c3   : > { %v12745_v26 = vadd.f32 %v5187_v45, %v14726_v17  ;;  %v12748_v35 = vadd.f32 %v5278_v63, %v12290_v9  ;;  %v12758_v45 = vld [vmem:[%s14295_s9 + $0x300] sm:$0xff]  ;;  %v14730_v17 = vld [vmem:[#allocation21_spill] sm:$0xff] }
 0x9c4   : > { %14725 = vst [vmem:[#allocation109_spill] sm:$0xff] %v12742_v27 }
 0x9c5   : > { %14727 = vst [vmem:[#allocation112_spill] sm:$0xff] %v12748_v35  ;;  %9068 = vmatmul.msk.bf16.gmra.mxu0 %vm606_vm5, %v9781_v13  ;;  %9198 = vmatmul.msk.bf16.gmra.mxu3 %vm606_vm5, %v12740_v40  ;;  %v7346_v35 = vand.u32 %v7290_v50, %v10213_v42 }
 0x9c8   : > { %v4812_v39 = vpop.f32.mrf.mxu3 }
 0x9c9   : > { %v4903_v31 = vadd.f32 %v4812_v39, %v12345_v62  ;;  %v5367_v11 = vpop.f32.mrf.mxu2  ;;  %v7349_v62 = vand.u32 %v7286_v10, %v10213_v42  ;;  %v7278_v39 = vpop.permute.xlu1 %7277 }
 0x9ca   : > { %v5189_v27 = vpop.f32.mrf.mxu0  ;;  %v12760_v9 = vadd.f32 %v5367_v11, %v4894_v55  ;;  %v5281_v63 = vpop.f32.mrf.mxu1 }
 0x9cb   : > { %v12763_v13 = vadd.f32 %v5189_v27, %v14730_v17  ;;  %v12767_v60 = vadd.f32 %v5281_v63, %v12310_v1  ;;  %v7280_v55 = vpop.permute.xlu2 %7279  ;;  %v7289_v27 = vsel %vm14732_vm7, %v7282_v18, %v7284_v15  ;;  %v9784_v63 = vld [vmem:[%s14295_s9 + $0x290] sm:$0xff] }
 0x9cc   : > { %14729 = vst [vmem:[#allocation11_spill] sm:$0xff] %v12760_v9  ;;  %v7288_v50 = vsel %vm14733_vm8, %v7278_v39, %v7280_v55  ;;  %v7343_v18 = vand.u32 %v7289_v27, %v10213_v42  ;;  %v12797_v42 = vld [vmem:[%s14295_s9 + $0x308] sm:$0xff] }
 0x9cd   : > { %14731 = vst [vmem:[#allocation59_spill] sm:$0xff] %v12767_v60  ;;  %9229 = vmatmul.msk.bf16.vlgmr.msrb.gmra.mxu1 %vm606_vm5, %v12706_v19 }
 0x9ce   : > { %9341 = vmatmul.msk.bf16.vlgmr.msrb.gmra.mxu2 %vm606_vm5, %v12758_v45  ;;  %7446 = vmatpush.bf16.msrb.mxu1 %v7346_v35  ;;  %v14734_v35 = vld [vmem:[#allocation81_spill] sm:$0xff] }
 0x9cf   : > { %7535 = vmatpush.bf16.msrb.mxu2 %v7349_v62 }
 0x9d0   : > { %v4814_v11 = vpop.f32.mrf.mxu3 }
 0x9d1   : > { %v4906_v1 = vadd.f32 %v4814_v11, %v12362_v2  ;;  %v5370_v17 = vpop.f32.mrf.mxu2  ;;  %v7276_v2 = vpop.permute.xlu0 %7275 }
 0x9d2   : > { %7447 = vmatpush.bf16.msrb.mxu1 %v7288_v50  ;;  %v5192_v10 = vpop.f32.mrf.mxu0  ;;  %v12780_v60 = vadd.f32 %v5370_v17, %v4897_v28  ;;  %v5283_v9 = vpop.f32.mrf.mxu1  ;;  %v7287_v28 = vsel %vm14735_vm9, %v7276_v2, %v7278_v39 }
 0x9d3   : > { %7536 = vmatpush.bf16.msrb.mxu2 %v7280_v55  ;;  %v12783_v62 = vadd.f32 %v5192_v10, %v14734_v35  ;;  %v12787_v15 = vadd.f32 %v5283_v9, %v12330_v43 }
 0x9d5   : > { %9213 = vmatmul.msk.bf16.vlgmr.msrb.gmra.mxu0 %vm606_vm5, %v12706_v19  ;;  %9199 = vmatmul.msk.bf16.gmra.mxu3 %vm606_vm5, %v9784_v63 }
 0x9d6   : > { %7357 = vmatpush.bf16.msrb.mxu0 %v7343_v18 }
 0x9d8   : > { %v4817_v11 = vpop.f32.mrf.mxu3 }
 0x9d9   : > { %v4909_v55 = vadd.f32 %v4817_v11, %v12375_v41  ;;  %v5372_v50 = vpop.f32.mrf.mxu2 }
 0x9da   : > { %7358 = vmatpush.bf16.msrb.mxu0 %v7287_v28  ;;  %v5194_v17 = vpop.f32.mrf.mxu0  ;;  %v12799_v43 = vadd.f32 %v5372_v50, %v4900_v47  ;;  %v5286_v9 = vpop.f32.mrf.mxu1 }
 0x9db   : > { %v12802_v19 = vadd.f32 %v5194_v17, %v12317_v29  ;;  %v12805_v27 = vadd.f32 %v5286_v9, %v12343_v52  ;;  %v9785_v29 = vld [vmem:[%s14295_s9 + $0x298] sm:$0xff] }
 0x9dd   : > { %9230 = vmatmul.msk.bf16.gmra.mxu1 %vm606_vm5, %v12740_v40 }
 0x9de   : > { %9342 = vmatmul.msk.bf16.gmra.mxu2 %vm606_vm5, %v12797_v42 }
 0x9e0   : > { %v4819_v41 = vpop.f32.mrf.mxu3 }
 0x9e1   : > { %v4912_v39 = vadd.f32 %v4819_v41, %v12392_v46  ;;  %v5375_v10 = vpop.f32.mrf.mxu2 }
 0x9e2   : > { %v5197_v35 = vpop.f32.mrf.mxu0  ;;  %v12815_v47 = vadd.f32 %v5375_v10, %v4903_v31  ;;  %v5288_v18 = vpop.f32.mrf.mxu1  ;;  %v12830_v31 = vld [vmem:[%s14295_s9 + $0x310] sm:$0xff] }
 0x9e3   : > { %v12818_v52 = vadd.f32 %v5197_v35, %v12335_v8  ;;  %v12821_v2 = vadd.f32 %v5288_v18, %v12360_v20  ;;  %v14736_v35 = vld [vmem:[#allocation87_spill] sm:$0xff] }
 0x9e5   : > { %9214 = vmatmul.msk.bf16.gmra.mxu0 %vm606_vm5, %v12740_v40  ;;  %9200 = vmatmul.msk.bf16.gmra.mxu3 %vm606_vm5, %v9785_v29 }
 0x9e8   : > { %v4822_v46 = vpop.f32.mrf.mxu3 }
 0x9e9   : > { %v4915_v11 = vadd.f32 %v4822_v46, %v12405_v24  ;;  %v5377_v28 = vpop.f32.mrf.mxu2 }
 0x9ea   : > { %v5199_v50 = vpop.f32.mrf.mxu0  ;;  %v12832_v8 = vadd.f32 %v5377_v28, %v4906_v1  ;;  %v5291_v17 = vpop.f32.mrf.mxu1  ;;  %v9786_v1 = vld [vmem:[%s14295_s9 + $0x2a0] sm:$0xff] }
 0x9eb   : > { %v12835_v20 = vadd.f32 %v5199_v50, %v12348_v22  ;;  %v12838_v40 = vadd.f32 %v5291_v17, %v12373_v36 }
 0x9ed   : > { %9231 = vmatmul.msk.bf16.gmra.mxu1 %vm606_vm5, %v9784_v63 }
 0x9ee   : > { %9343 = vmatmul.msk.bf16.gmra.mxu2 %vm606_vm5, %v12830_v31 }
 0x9f0   : > { %v4824_v24 = vpop.f32.mrf.mxu3 }
 0x9f1   : > { %v4918_v9 = vadd.f32 %v4824_v24, %v12422_v44  ;;  %v5380_v41 = vpop.f32.mrf.mxu2 }
 0x9f2   : > { %v5202_v10 = vpop.f32.mrf.mxu0  ;;  %v12847_v22 = vadd.f32 %v5380_v41, %v4909_v55  ;;  %v5293_v36 = vpop.f32.mrf.mxu1  ;;  %v12861_v55 = vld [vmem:[%s14295_s9 + $0x318] sm:$0xff]  ;;  %v14739_v41 = vld [vmem:[#allocation31_spill] sm:$0xff] }
 0x9f3   : > { %v12850_v18 = vadd.f32 %v5202_v10, %v14736_v35  ;;  %v12853_v46 = vadd.f32 %v5293_v36, %v12390_v3  ;;  %v14740_v35 = vld [vmem:[#allocation24_spill] sm:$0xff] }
 0x9f5   : > { %14737 = vst [vmem:[#allocation111_spill] sm:$0xff] %v12853_v46  ;;  %9215 = vmatmul.msk.bf16.gmra.mxu0 %vm606_vm5, %v9784_v63  ;;  %9201 = vmatmul.msk.bf16.gmra.mxu3 %vm606_vm5, %v9786_v1 }
 0x9f8   : > { %v4827_v44 = vpop.f32.mrf.mxu3 }
 0x9f9   : > { %v4921_v28 = vadd.f32 %v4827_v44, %v12435_v12  ;;  %v5382_v50 = vpop.f32.mrf.mxu2 }
 0x9fa   : > { %v5204_v17 = vpop.f32.mrf.mxu0  ;;  %v12863_v24 = vadd.f32 %v5382_v50, %v4912_v39  ;;  %v5296_v3 = vpop.f32.mrf.mxu1  ;;  %v9787_v39 = vld [vmem:[%s14295_s9 + $0x2a8] sm:$0xff] }
 0x9fb   : > { %v12866_v10 = vadd.f32 %v5204_v17, %v14739_v41  ;;  %v12869_v63 = vadd.f32 %v5296_v3, %v14740_v35  ;;  %v14743_v17 = vld [vmem:[#allocation95_spill] sm:$0xff] }
 0x9fc   : > { %14738 = vst [vmem:[#allocation114_spill] sm:$0xff] %v12863_v24 }
 0x9fd   : > { %14741 = vst [vmem:[#allocation14_spill] sm:$0xff] %v12869_v63  ;;  %9232 = vmatmul.msk.bf16.gmra.mxu1 %vm606_vm5, %v9785_v29 }
 0x9fe   : > { %9344 = vmatmul.msk.bf16.gmra.mxu2 %vm606_vm5, %v12861_v55 }
 0xa00   : > { %v4829_v12 = vpop.f32.mrf.mxu3 }
 0xa01   : > { %v4924_v36 = vadd.f32 %v4829_v12, %v12452_v6  ;;  %v5385_v44 = vpop.f32.mrf.mxu2 }
 0xa02   : > { %v5207_v46 = vpop.f32.mrf.mxu0  ;;  %v12878_v50 = vadd.f32 %v5385_v44, %v4915_v11  ;;  %v5298_v3 = vpop.f32.mrf.mxu1  ;;  %v12892_v11 = vld [vmem:[%s14295_s9 + $0x320] sm:$0xff]  ;;  %v14746_v44 = vld [vmem:[#allocation84_spill] sm:$0xff] }
 0xa03   : > { %v12881_v41 = vadd.f32 %v5207_v46, %v14743_v17  ;;  %v12884_v35 = vadd.f32 %v5298_v3, %v12420_v25  ;;  %v14747_v3 = vld [vmem:[#allocation34_spill] sm:$0xff] }
 0xa04   : > { %14742 = vst [vmem:[#allocation61_spill] sm:$0xff] %v12878_v50 }
 0xa05   : > { %14744 = vst [vmem:[#allocation113_spill] sm:$0xff] %v12884_v35  ;;  %9216 = vmatmul.msk.bf16.gmra.mxu0 %vm606_vm5, %v9785_v29  ;;  %9202 = vmatmul.msk.bf16.gmra.mxu3 %vm606_vm5, %v9787_v39 }
 0xa08   : > { %v4832_v6 = vpop.f32.mrf.mxu3 }
 0xa09   : > { %v4927_v12 = vadd.f32 %v4832_v6, %v12465_v33  ;;  %v5387_v63 = vpop.f32.mrf.mxu2 }
 0xa0a   : > { %v5209_v24 = vpop.f32.mrf.mxu0  ;;  %v12894_v46 = vadd.f32 %v5387_v63, %v4918_v9  ;;  %v5301_v25 = vpop.f32.mrf.mxu1  ;;  %v9788_v9 = vld [vmem:[%s14295_s9 + $0x2b0] sm:$0xff]  ;;  %v14749_v63 = vld [vmem:[#allocation90_spill] sm:$0xff] }
 0xa0b   : > { %v12897_v17 = vadd.f32 %v5209_v24, %v14746_v44  ;;  %v12900_v29 = vadd.f32 %v5301_v25, %v14747_v3 }
 0xa0c   : > { %14745 = vst [vmem:[#allocation116_spill] sm:$0xff] %v12894_v46 }
 0xa0d   : > { %14748 = vst [vmem:[#allocation17_spill] sm:$0xff] %v12900_v29  ;;  %9233 = vmatmul.msk.bf16.gmra.mxu1 %vm606_vm5, %v9786_v1 }
 0xa0e   : > { %9345 = vmatmul.msk.bf16.gmra.mxu2 %vm606_vm5, %v12892_v11 }
 0xa10   : > { %v4834_v33 = vpop.f32.mrf.mxu3 }
 0xa11   : > { %v4930_v6 = vadd.f32 %v4834_v33, %v12482_v23  ;;  %v5390_v35 = vpop.f32.mrf.mxu2 }
 0xa12   : > { %v5212_v50 = vpop.f32.mrf.mxu0  ;;  %v12909_v24 = vadd.f32 %v5390_v35, %v4921_v28  ;;  %v5303_v25 = vpop.f32.mrf.mxu1  ;;  %v12923_v28 = vld [vmem:[%s14295_s9 + $0x328] sm:$0xff] }
 0xa13   : > { %v12912_v44 = vadd.f32 %v5212_v50, %v14749_v63  ;;  %v12915_v3 = vadd.f32 %v5303_v25, %v12450_v53  ;;  %v14751_v35 = vld [vmem:[#allocation27_spill] sm:$0xff] }
 0xa15   : > { %14750 = vst [vmem:[#allocation63_spill] sm:$0xff] %v12915_v3  ;;  %9217 = vmatmul.msk.bf16.gmra.mxu0 %vm606_vm5, %v9786_v1  ;;  %9203 = vmatmul.msk.bf16.gmra.mxu3 %vm606_vm5, %v9788_v9 }
 0xa18   : > { %v4837_v23 = vpop.f32.mrf.mxu3 }
 0xa19   : > { %v4933_v33 = vadd.f32 %v4837_v23, %v12495_v32  ;;  %v5392_v29 = vpop.f32.mrf.mxu2 }
 0xa1a   : > { %v5214_v46 = vpop.f32.mrf.mxu0  ;;  %v12925_v50 = vadd.f32 %v5392_v29, %v4924_v36  ;;  %v5306_v53 = vpop.f32.mrf.mxu1  ;;  %v9789_v36 = vld [vmem:[%s14295_s9 + $0x2b8] sm:$0xff] }
 0xa1b   : > { %v12928_v63 = vadd.f32 %v5214_v46, %v14751_v35  ;;  %v12931_v1 = vadd.f32 %v5306_v53, %v12463_v49 }
 0xa1d   : > { %14752 = vst [vmem:[#allocation115_spill] sm:$0xff] %v12931_v1  ;;  %9234 = vmatmul.msk.bf16.gmra.mxu1 %vm606_vm5, %v9787_v39 }
 0xa1e   : > { %9346 = vmatmul.msk.bf16.gmra.mxu2 %vm606_vm5, %v12923_v28 }
 0xa20   : > { %v4839_v32 = vpop.f32.mrf.mxu3 }
 0xa21   : > { %v4936_v25 = vadd.f32 %v4839_v32, %v12511_v14  ;;  %v5395_v23 = vpop.f32.mrf.mxu2 }
 0xa22   : > { %v5217_v3 = vpop.f32.mrf.mxu0  ;;  %v12940_v46 = vadd.f32 %v5395_v23, %v4927_v12  ;;  %v5308_v49 = vpop.f32.mrf.mxu1  ;;  %v12954_v12 = vld [vmem:[%s14295_s9 + $0x330] sm:$0xff] }
 0xa23   : > { %v12943_v29 = vadd.f32 %v5217_v3, %v12455_v61  ;;  %v12946_v35 = vadd.f32 %v5308_v49, %v12480_v37  ;;  %v14756_v3 = vld [vmem:[#allocation88_spill] sm:$0xff] }
 0xa24   : > { %14753 = vst [vmem:[#allocation118_spill] sm:$0xff] %v12940_v46 }
 0xa25   : > { %14754 = vst [vmem:[#allocation20_spill] sm:$0xff] %v12946_v35  ;;  %9218 = vmatmul.msk.bf16.gmra.mxu0 %vm606_vm5, %v9787_v39  ;;  %9204 = vmatmul.msk.bf16.gmra.mxu3 %vm606_vm5, %v9789_v36 }
 0xa28   : > { %v4842_v14 = vpop.f32.mrf.mxu3 }
 0xa29   : > { %v4939_v53 = vadd.f32 %v4842_v14, %v12523_v38  ;;  %v5397_v32 = vpop.f32.mrf.mxu2 }
 0xa2a   : > { %v5219_v1 = vpop.f32.mrf.mxu0  ;;  %v12956_v61 = vadd.f32 %v5397_v32, %v4930_v6  ;;  %v5311_v37 = vpop.f32.mrf.mxu1  ;;  %v9790_v6 = vld [vmem:[%s14295_s9 + $0x2c0] sm:$0xff]  ;;  %v14759_v32 = vld [vmem:[#allocation93_spill] sm:$0xff] }
 0xa2b   : > { %v12959_v23 = vadd.f32 %v5219_v1, %v14756_v3  ;;  %v12962_v39 = vadd.f32 %v5311_v37, %v12493_v21  ;;  %v14760_v37 = vld [vmem:[#allocation30_spill] sm:$0xff] }
 0xa2c   : > { %14755 = vst [vmem:[#allocation35_spill] sm:$0xff] %v12956_v61 }
 0xa2d   : > { %14757 = vst [vmem:[#allocation117_spill] sm:$0xff] %v12962_v39  ;;  %9235 = vmatmul.msk.bf16.gmra.mxu1 %vm606_vm5, %v9788_v9 }
 0xa2e   : > { %9347 = vmatmul.msk.bf16.gmra.mxu2 %vm606_vm5, %v12954_v12 }
 0xa30   : > { %v4844_v38 = vpop.f32.mrf.mxu3 }
 0xa31   : > { %v4942_v49 = vadd.f32 %v4844_v38, %v12539_v59  ;;  %v5400_v14 = vpop.f32.mrf.mxu2 }
 0xa32   : > { %v5222_v35 = vpop.f32.mrf.mxu0  ;;  %v12971_v1 = vadd.f32 %v5400_v14, %v4933_v33  ;;  %v5313_v21 = vpop.f32.mrf.mxu1  ;;  %v12985_v33 = vld [vmem:[%s14295_s9 + $0x338] sm:$0xff] }
 0xa33   : > { %v12974_v3 = vadd.f32 %v5222_v35, %v14759_v32  ;;  %v12977_v39 = vadd.f32 %v5313_v21, %v14760_v37  ;;  %14762 = vst [vmem:[#allocation38_spill] sm:$0xff] %v12985_v33  ;;  %v14764_v14 = vld [vmem:[#allocation37_spill] sm:$0xff]  ;;  %v14766_v37 = vld [vmem:[#allocation96_spill] sm:$0xff] }
 0xa34   : > { %14758 = vst [vmem:[#allocation120_spill] sm:$0xff] %v12971_v1 }
 0xa35   : > { %14761 = vst [vmem:[#allocation23_spill] sm:$0xff] %v12977_v39  ;;  %9219 = vmatmul.msk.bf16.gmra.mxu0 %vm606_vm5, %v9788_v9  ;;  %9205 = vmatmul.msk.bf16.gmra.mxu3 %vm606_vm5, %v9790_v6 }
 0xa38   : > { %v5704_v59 = vpop.f32.mrf.mxu3 }
 0xa39   : > { %v5402_v38 = vpop.f32.mrf.mxu2  ;;  %v5962_v61 = vadd.f32 %v5704_v59, %v12550_v4 }
 0xa3a   : > { %v5224_v46 = vpop.f32.mrf.mxu0  ;;  %v12987_v35 = vadd.f32 %v5402_v38, %v4936_v25  ;;  %v5316_v21 = vpop.f32.mrf.mxu1  ;;  %v9791_v25 = vld [vmem:[%s14295_s9 + $0x2c8] sm:$0xff] }
 0xa3b   : > { %v12990_v32 = vadd.f32 %v5224_v46, %v14764_v14  ;;  %v12993_v9 = vadd.f32 %v5316_v21, %v14766_v37  ;;  %v14769_v38 = vld [vmem:[#allocation91_spill] sm:$0xff] }
 0xa3c   : > { %14763 = vst [vmem:[#allocation119_spill] sm:$0xff] %v12987_v35  ;;  %v14770_v37 = vld [vmem:[#allocation103_spill] sm:$0xff] }
 0xa3d   : > { %14765 = vst [vmem:[#allocation122_spill] sm:$0xff] %v12990_v32  ;;  %9236 = vmatmul.msk.bf16.gmra.mxu1 %vm606_vm5, %v9789_v36 }
 0xa3e   : > { %14767 = vst [vmem:[#allocation26_spill] sm:$0xff] %v12993_v9  ;;  %9348 = vmatmul.msk.bf16.gmra.mxu2 %vm606_vm5, %v12985_v33 }
 0xa40   : > { %v5706_v4 = vpop.f32.mrf.mxu3 }
 0xa41   : > { %v5405_v59 = vpop.f32.mrf.mxu2  ;;  %v5965_v39 = vadd.f32 %v5706_v4, %v12565_v7  ;;  %v14772_v4 = vld [vmem:[#allocation97_spill] sm:$0xff] }
 0xa42   : > { %v5227_v1 = vpop.f32.mrf.mxu0  ;;  %v13002_v46 = vadd.f32 %v5405_v59, %v4939_v53  ;;  %v5318_v21 = vpop.f32.mrf.mxu1  ;;  %v13016_v53 = vld [vmem:[%s14295_s9 + $0x340] sm:$0xff]  ;;  %v14775_v59 = vld [vmem:[#allocation40_spill] sm:$0xff] }
 0xa43   : > { %v13005_v14 = vadd.f32 %v5227_v1, %v14769_v38  ;;  %v13008_v9 = vadd.f32 %v5318_v21, %v14770_v37  ;;  %14773 = vst [vmem:[#allocation29_spill] sm:$0xff] %v13016_v53  ;;  %v14777_v37 = vld [vmem:[#allocation94_spill] sm:$0xff] }
 0xa44   : > { %14768 = vst [vmem:[#allocation41_spill] sm:$0xff] %v13002_v46 }
 0xa45   : > { %14771 = vst [vmem:[#allocation121_spill] sm:$0xff] %v13008_v9  ;;  %9220 = vmatmul.msk.bf16.gmra.mxu0 %vm606_vm5, %v9789_v36  ;;  %9206 = vmatmul.msk.bf16.gmra.mxu3 %vm606_vm5, %v9791_v25 }
 0xa48   : > { %v5709_v35 = vpop.f32.mrf.mxu3 }
 0xa49   : > { %v5407_v7 = vpop.f32.mrf.mxu2  ;;  %v5968_v33 = vadd.f32 %v5709_v35, %v14772_v4 }
 0xa4a   : > { %v5229_v32 = vpop.f32.mrf.mxu0  ;;  %v13018_v1 = vadd.f32 %v5407_v7, %v4942_v49  ;;  %v5882_v21 = vpop.f32.mrf.mxu1  ;;  %v9792_v49 = vld [vmem:[%s14295_s9 + $0x2d0] sm:$0xff]  ;;  %v14780_v7 = vld [vmem:[#allocation33_spill] sm:$0xff] }
 0xa4b   : > { %v13021_v38 = vadd.f32 %v5229_v32, %v14775_v59  ;;  %v13024_v36 = vadd.f32 %v5882_v21, %v14777_v37  ;;  %v14782_v37 = vld [vmem:[#allocation98_spill] sm:$0xff] }
 0xa4c   : > { %14774 = vst [vmem:[#allocation44_spill] sm:$0xff] %v13018_v1 }
 0xa4d   : > { %14776 = vst [vmem:[#allocation123_spill] sm:$0xff] %v13021_v38  ;;  %9237 = vmatmul.msk.bf16.gmra.mxu1 %vm606_vm5, %v9790_v6 }
 0xa4e   : > { %14778 = vst [vmem:[#allocation32_spill] sm:$0xff] %v13024_v36  ;;  %9349 = vmatmul.msk.bf16.gmra.mxu2 %vm606_vm5, %v13016_v53 }
 0xa50   : > { %v5711_v35 = vpop.f32.mrf.mxu3 }
 0xa51   : > { %v5971_v4 = vadd.f32 %v5711_v35, %v12591_v57  ;;  %v6256_v9 = vpop.f32.mrf.mxu2  ;;  %v14784_v35 = vld [vmem:[#allocation104_spill] sm:$0xff] }
 0xa52   : > { %v5793_v46 = vpop.f32.mrf.mxu0  ;;  %v13033_v32 = vadd.f32 %v6256_v9, %v5962_v61  ;;  %v5884_v21 = vpop.f32.mrf.mxu1  ;;  %v13047_v61 = vld [vmem:[%s14295_s9 + $0x348] sm:$0xff] }
 0xa53   : > { %v13036_v59 = vadd.f32 %v5793_v46, %v14780_v7  ;;  %v13039_v36 = vadd.f32 %v5884_v21, %v14782_v37  ;;  %14785 = vst [vmem:[#allocation125_spill] sm:$0xff] %v13047_v61  ;;  %v14787_v46 = vld [vmem:[#allocation100_spill] sm:$0xff] }
 0xa54   : > { %14779 = vst [vmem:[#allocation47_spill] sm:$0xff] %v13033_v32  ;;  %v14789_v37 = vld [vmem:[#allocation36_spill] sm:$0xff] }
 0xa55   : > { %14781 = vst [vmem:[#allocation124_spill] sm:$0xff] %v13036_v59  ;;  %9221 = vmatmul.msk.bf16.gmra.mxu0 %vm606_vm5, %v9790_v6  ;;  %9207 = vmatmul.msk.bf16.gmra.mxu3 %vm606_vm5, %v9792_v49 }
 0xa56   : > { %14783 = vst [vmem:[#allocation50_spill] sm:$0xff] %v13039_v36 }
 0xa58   : > { %v5714_v57 = vpop.f32.mrf.mxu3 }
 0xa59   : > { %v5974_v1 = vadd.f32 %v5714_v57, %v14784_v35  ;;  %v6258_v53 = vpop.f32.mrf.mxu2  ;;  %v14791_v35 = vld [vmem:[#allocation102_spill] sm:$0xff] }
 0xa5a   : > { %v5795_v38 = vpop.f32.mrf.mxu0  ;;  %v13049_v9 = vadd.f32 %v6258_v53, %v5965_v39  ;;  %v5887_v21 = vpop.f32.mrf.mxu1  ;;  %v9793_v39 = vld [vmem:[%s14295_s9 + $0x2d8] sm:$0xff] }
 0xa5b   : > { %v13052_v7 = vadd.f32 %v5795_v38, %v14787_v46  ;;  %v13055_v6 = vadd.f32 %v5887_v21, %v14789_v37  ;;  %v14793_v38 = vld [vmem:[#allocation43_spill] sm:$0xff]  ;;  %v14794_v37 = vld [vmem:[#allocation46_spill] sm:$0xff] }
 0xa5c   : > { %14786 = vst [vmem:[#allocation127_spill] sm:$0xff] %v13049_v9 }
 0xa5d   : > { %14788 = vst [vmem:[#allocation53_spill] sm:$0xff] %v13052_v7  ;;  %9238 = vmatmul.msk.bf16.gmra.mxu1 %vm606_vm5, %v9791_v25 }
 0xa5e   : > { %14790 = vst [vmem:[#allocation126_spill] sm:$0xff] %v13055_v6  ;;  %9350 = vmatmul.msk.bf16.gmra.mxu2 %vm606_vm5, %v13047_v61 }
 0xa60   : > { %v5716_v57 = vpop.f32.mrf.mxu3 }
 0xa61   : > { %v5977_v36 = vadd.f32 %v5716_v57, %v14791_v35  ;;  %v6261_v32 = vpop.f32.mrf.mxu2  ;;  %v14796_v35 = vld [vmem:[#allocation105_spill] sm:$0xff] }
 0xa62   : > { %v5798_v59 = vpop.f32.mrf.mxu0  ;;  %v13064_v53 = vadd.f32 %v6261_v32, %v5968_v33  ;;  %v5889_v21 = vpop.f32.mrf.mxu1  ;;  %v13078_v33 = vld [vmem:[%s14295_s9 + $0x350] sm:$0xff] }
 0xa63   : > { %v13067_v46 = vadd.f32 %v5798_v59, %v14793_v38  ;;  %v13070_v6 = vadd.f32 %v5889_v21, %v14794_v37  ;;  %14797 = vst [vmem:[#allocation128_spill] sm:$0xff] %v13078_v33  ;;  %v14799_v59 = vld [vmem:[#allocation101_spill] sm:$0xff]  ;;  %v14800_v37 = vld [vmem:[#allocation99_spill] sm:$0xff] }
 0xa64   : > { %14792 = vst [vmem:[#allocation129_spill] sm:$0xff] %v13064_v53 }
 0xa65   : > { %14795 = vst [vmem:[#allocation56_spill] sm:$0xff] %v13070_v6  ;;  %9222 = vmatmul.msk.bf16.gmra.mxu0 %vm606_vm5, %v9791_v25  ;;  %9208 = vmatmul.msk.bf16.gmra.mxu3 %vm606_vm5, %v9793_v39 }
 0xa68   : > { %v5719_v57 = vpop.f32.mrf.mxu3 }
 0xa69   : > { %v5980_v9 = vadd.f32 %v5719_v57, %v14796_v35  ;;  %v6263_v61 = vpop.f32.mrf.mxu2 }
 0xa6a   : > { %v5800_v7 = vpop.f32.mrf.mxu0  ;;  %v13080_v32 = vadd.f32 %v6263_v61, %v5971_v4  ;;  %v5892_v21 = vpop.f32.mrf.mxu1  ;;  %v9794_v4 = vld [vmem:[%s14295_s9 + $0x2e0] sm:$0xff] }
 0xa6b   : > { %v13083_v38 = vadd.f32 %v5800_v7, %v14799_v59  ;;  %v13086_v25 = vadd.f32 %v5892_v21, %v14800_v37  ;;  %v14803_v7 = vld [vmem:[#allocation39_spill] sm:$0xff]  ;;  %v14804_v37 = vld [vmem:[#allocation42_spill] sm:$0xff] }
 0xa6c   : > { %14798 = vst [vmem:[#allocation5_spill] sm:$0xff] %v13080_v32 }
 0xa6d   : > { %14801 = vst [vmem:[#allocation4_spill] sm:$0xff] %v13086_v25  ;;  %9239 = vmatmul.msk.bf16.gmra.mxu1 %vm606_vm5, %v9792_v49 }
 0xa6e   : > { %9351 = vmatmul.msk.bf16.gmra.mxu2 %vm606_vm5, %v13078_v33 }
 0xa70   : > { %v5721_v57 = vpop.f32.mrf.mxu3 }
 0xa71   : > { %v5983_v35 = vadd.f32 %v5721_v57, %v12643_v51  ;;  %v6266_v6 = vpop.f32.mrf.mxu2 }
 0xa72   : > { %v5803_v53 = vpop.f32.mrf.mxu0  ;;  %v13095_v61 = vadd.f32 %v6266_v6, %v5974_v1  ;;  %v5894_v21 = vpop.f32.mrf.mxu1  ;;  %v13109_v1 = vld [vmem:[%s14295_s9 + $0x358] sm:$0xff] }
 0xa73   : > { %v13098_v59 = vadd.f32 %v5803_v53, %v14803_v7  ;;  %v13101_v25 = vadd.f32 %v5894_v21, %v14804_v37  ;;  %14806 = vst [vmem:[#allocation67_spill] sm:$0xff] %v13109_v1  ;;  %v14808_v53 = vld [vmem:[#allocation49_spill] sm:$0xff] }
 0xa74   : > { %14802 = vst [vmem:[#allocation130_spill] sm:$0xff] %v13095_v61  ;;  %v14809_v37 = vld [vmem:[#allocation45_spill] sm:$0xff] }
 0xa75   : > { %14805 = vst [vmem:[#allocation66_spill] sm:$0xff] %v13101_v25  ;;  %9223 = vmatmul.msk.bf16.gmra.mxu0 %vm606_vm5, %v9792_v49  ;;  %9209 = vmatmul.msk.bf16.gmra.mxu3 %vm606_vm5, %v9794_v4 }
 0xa78   : > { %v5724_v51 = vpop.f32.mrf.mxu3 }
 0xa79   : > { %v5986_v57 = vadd.f32 %v5724_v51, %v12654_v58  ;;  %v6268_v32 = vpop.f32.mrf.mxu2 }
 0xa7a   : > { %v5805_v33 = vpop.f32.mrf.mxu0  ;;  %v13111_v6 = vadd.f32 %v6268_v32, %v5977_v36  ;;  %v5897_v21 = vpop.f32.mrf.mxu1  ;;  %v9795_v36 = vld [vmem:[%s14295_s9 + $0x2e8] sm:$0xff]  ;;  %v14812_v32 = vld [vmem:[#allocation52_spill] sm:$0xff] }
 0xa7b   : > { %v13114_v7 = vadd.f32 %v5805_v33, %v14808_v53  ;;  %v13117_v49 = vadd.f32 %v5897_v21, %v14809_v37  ;;  %v14813_v37 = vld [vmem:[#allocation48_spill] sm:$0xff] }
 0xa7c   : > { %14807 = vst [vmem:[#allocation64_spill] sm:$0xff] %v13111_v6 }
 0xa7d   : > { %14810 = vst [vmem:[#allocation72_spill] sm:$0xff] %v13117_v49  ;;  %9240 = vmatmul.msk.bf16.gmra.mxu1 %vm606_vm5, %v9793_v39 }
 0xa7e   : > { %9352 = vmatmul.msk.bf16.gmra.mxu2 %vm606_vm5, %v13109_v1 }
 0xa80   : > { %v5726_v58 = vpop.f32.mrf.mxu3 }
 0xa81   : > { %v5989_v51 = vadd.f32 %v5726_v58, %v12669_v56  ;;  %v6271_v25 = vpop.f32.mrf.mxu2 }
 0xa82   : > { %v5808_v61 = vpop.f32.mrf.mxu0  ;;  %v13126_v33 = vadd.f32 %v6271_v25, %v5980_v9  ;;  %v5899_v21 = vpop.f32.mrf.mxu1  ;;  %v13140_v9 = vld [vmem:[%s14295_s9 + $0x360] sm:$0xff] }
 0xa83   : > { %v13129_v53 = vadd.f32 %v5808_v61, %v14812_v32  ;;  %v13132_v49 = vadd.f32 %v5899_v21, %v14813_v37  ;;  %14815 = vst [vmem:[#allocation68_spill] sm:$0xff] %v13140_v9  ;;  %v14817_v61 = vld [vmem:[#allocation55_spill] sm:$0xff] }
 0xa84   : > { %14811 = vst [vmem:[#allocation7_spill] sm:$0xff] %v13126_v33  ;;  %v14818_v37 = vld [vmem:[#allocation51_spill] sm:$0xff] }
 0xa85   : > { %14814 = vst [vmem:[#allocation8_spill] sm:$0xff] %v13132_v49  ;;  %9224 = vmatmul.msk.bf16.gmra.mxu0 %vm606_vm5, %v9793_v39  ;;  %9210 = vmatmul.msk.bf16.gmra.mxu3 %vm606_vm5, %v9795_v36 }
 0xa88   : > { %v5729_v56 = vpop.f32.mrf.mxu3 }
 0xa89   : > { %v5992_v58 = vadd.f32 %v5729_v56, %v12680_v16  ;;  %v6273_v6 = vpop.f32.mrf.mxu2 }
 0xa8a   : > { %v5810_v1 = vpop.f32.mrf.mxu0  ;;  %v13142_v25 = vadd.f32 %v6273_v6, %v5983_v35  ;;  %v5902_v21 = vpop.f32.mrf.mxu1  ;;  %v9796_v35 = vld [vmem:[%s14295_s9 + $0x2f0] sm:$0xff]  ;;  %v14820_v6 = vld [vmem:[#allocation58_spill] sm:$0xff] }
 0xa8b   : > { %v13145_v32 = vadd.f32 %v5810_v1, %v14817_v61  ;;  %v13148_v39 = vadd.f32 %v5902_v21, %v14818_v37  ;;  %v14821_v37 = vld [vmem:[#allocation108_spill] sm:$0xff] }
 0xa8c   : > { %14816 = vst [vmem:[#allocation13_spill] sm:$0xff] %v13142_v25 }
 0xa8d   : > { %14819 = vst [vmem:[#allocation16_spill] sm:$0xff] %v13148_v39  ;;  %9241 = vmatmul.msk.bf16.gmra.mxu1 %vm606_vm5, %v9794_v4 }
 0xa8e   : > { %9353 = vmatmul.msk.bf16.gmra.mxu2 %vm606_vm5, %v13140_v9 }
 0xa90   : > { %v5731_v16 = vpop.f32.mrf.mxu3 }
 0xa91   : > { %v5995_v56 = vadd.f32 %v5731_v16, %v12695_v34  ;;  %v6276_v49 = vpop.f32.mrf.mxu2 }
 0xa92   : > { %v5813_v33 = vpop.f32.mrf.mxu0  ;;  %v13157_v1 = vadd.f32 %v6276_v49, %v5986_v57  ;;  %v5904_v21 = vpop.f32.mrf.mxu1  ;;  %v13171_v57 = vld [vmem:[%s14295_s9 + $0x368] sm:$0xff] }
 0xa93   : > { %v13160_v61 = vadd.f32 %v5813_v33, %v14820_v6  ;;  %v13163_v39 = vadd.f32 %v5904_v21, %v14821_v37  ;;  %v14824_v33 = vld [vmem:[#allocation106_spill] sm:$0xff] }
 0xa95   : > { %14822 = vst [vmem:[#allocation65_spill] sm:$0xff] %v13163_v39  ;;  %9225 = vmatmul.msk.bf16.gmra.mxu0 %vm606_vm5, %v9794_v4  ;;  %9211 = vmatmul.msk.bf16.gmra.mxu3 %vm606_vm5, %v9796_v35 }
 0xa98   : > { %v5734_v34 = vpop.f32.mrf.mxu3 }
 0xa99   : > { %v5998_v16 = vadd.f32 %v5734_v34, %v12711_v54  ;;  %v6278_v25 = vpop.f32.mrf.mxu2 }
 0xa9a   : > { %v5815_v9 = vpop.f32.mrf.mxu0  ;;  %v13173_v49 = vadd.f32 %v6278_v25, %v5989_v51  ;;  %v5907_v21 = vpop.f32.mrf.mxu1  ;;  %v9797_v51 = vld [vmem:[%s14295_s9 + $0x2f8] sm:$0xff] }
 0xa9b   : > { %v13176_v6 = vadd.f32 %v5815_v9, %v14824_v33  ;;  %v13179_v4 = vadd.f32 %v5907_v21, %v12677_v0 }
 0xa9c   : > { %14823 = vst [vmem:[#allocation6_spill] sm:$0xff] %v13173_v49 }
 0xa9d   : > { %14825 = vst [vmem:[#allocation75_spill] sm:$0xff] %v13179_v4  ;;  %9242 = vmatmul.msk.bf16.gmra.mxu1 %vm606_vm5, %v9795_v36 }
 0xa9e   : > { %9354 = vmatmul.msk.bf16.gmra.mxu2 %vm606_vm5, %v13171_v57 }
 0xaa0   : > { %v5736_v54 = vpop.f32.mrf.mxu3 }
 0xaa1   : > { %v6001_v37 = vadd.f32 %v5736_v54, %v12729_v30  ;;  %v6281_v34 = vpop.f32.mrf.mxu2 }
 0xaa2   : > { %v5818_v39 = vpop.f32.mrf.mxu0  ;;  %v13188_v9 = vadd.f32 %v6281_v34, %v5992_v58  ;;  %v5909_v0 = vpop.f32.mrf.mxu1  ;;  %v13202_v58 = vld [vmem:[%s14295_s9 + $0x370] sm:$0xff] }
 0xaa3   : > { %v13191_v25 = vadd.f32 %v5818_v39, %v12672_v48  ;;  %v13194_v33 = vadd.f32 %v5909_v0, %v12692_v5  ;;  %v14829_v39 = vld [vmem:[#allocation60_spill] sm:$0xff]  ;;  %v14830_v0 = vld [vmem:[#allocation107_spill] sm:$0xff] }
 0xaa4   : > { %14826 = vst [vmem:[#allocation10_spill] sm:$0xff] %v13188_v9 }
 0xaa5   : > { %14827 = vst [vmem:[#allocation77_spill] sm:$0xff] %v13194_v33  ;;  %9226 = vmatmul.msk.bf16.gmra.mxu0 %vm606_vm5, %v9795_v36  ;;  %9212 = vmatmul.msk.bf16.gmra.mxu3 %vm606_vm5, %v9797_v51 }
 0xaa8   : > { %v5739_v30 = vpop.f32.mrf.mxu3 }
 0xaa9   : > { %v6004_v21 = vadd.f32 %v5739_v30, %v12745_v26  ;;  %v6283_v54 = vpop.f32.mrf.mxu2 }
 0xaaa   : > { %v5820_v4 = vpop.f32.mrf.mxu0  ;;  %v13204_v48 = vadd.f32 %v6283_v54, %v5995_v56  ;;  %v5912_v5 = vpop.f32.mrf.mxu1  ;;  %v14833_v56 = vld [vmem:[#allocation54_spill] sm:$0xff] }
 0xaab   : > { %v13207_v34 = vadd.f32 %v5820_v4, %v14829_v39  ;;  %v13210_v36 = vadd.f32 %v5912_v5, %v14830_v0  ;;  %v14834_v39 = vld [vmem:[#allocation62_spill] sm:$0xff] }
 0xaac   : > { %14828 = vst [vmem:[#allocation12_spill] sm:$0xff] %v13204_v48 }
 0xaad   : > { %14831 = vst [vmem:[#allocation70_spill] sm:$0xff] %v13210_v36  ;;  %9243 = vmatmul.msk.bf16.gmra.mxu1 %vm606_vm5, %v9796_v35 }
 0xaae   : > { %9355 = vmatmul.msk.bf16.gmra.mxu2 %vm606_vm5, %v13202_v58 }
 0xab0   : > { %v5741_v26 = vpop.f32.mrf.mxu3 }
 0xab1   : > { %v6007_v30 = vadd.f32 %v5741_v26, %v12763_v13  ;;  %v6286_v33 = vpop.f32.mrf.mxu2 }
 0xab2   : > { %v5823_v9 = vpop.f32.mrf.mxu0  ;;  %v13216_v49 = vadd.f32 %v6286_v33, %v5998_v16  ;;  %v5914_v4 = vpop.f32.mrf.mxu1  ;;  %v13231_v16 = vld [vmem:[%s14295_s9 + $0x378] sm:$0xff]  ;;  %v14837_v33 = vld [vmem:[#allocation110_spill] sm:$0xff] }
 0xab3   : > { %v13219_v54 = vadd.f32 %v5823_v9, %v14833_v56  ;;  %v13222_v48 = vadd.f32 %v5914_v4, %v14834_v39 }
 0xab4   : > { %14832 = vst [vmem:[#allocation73_spill] sm:$0xff] %v13216_v49 }
 0xab5   : > { %14835 = vst [vmem:[#allocation85_spill] sm:$0xff] %v13222_v48  ;;  %9227 = vmatmul.msk.bf16.gmra.mxu0 %vm606_vm5, %v9796_v35  ;;  %9357 = vmatmul.msk.bf16.vlgmr.msra.gmra.mxu3 %vm606_vm5, %v12758_v45  ;;  %v14838_v35 = vld [vmem:[#allocation109_spill] sm:$0xff] }
 0xab8   : > { %v5744_v5 = vpop.f32.mrf.mxu3 }
 0xab9   : > { %v6010_v0 = vadd.f32 %v5744_v5, %v12783_v62  ;;  %v6288_v13 = vpop.f32.mrf.mxu2 }
 0xaba   : > { %v5825_v26 = vpop.f32.mrf.mxu0  ;;  %v13233_v9 = vadd.f32 %v6288_v13, %v6001_v37  ;;  %v5917_v4 = vpop.f32.mrf.mxu1  ;;  %v14839_v37 = vld [vmem:[#allocation57_spill] sm:$0xff] }
 0xabb   : > { %v13236_v56 = vadd.f32 %v5825_v26, %v14837_v33  ;;  %v13239_v39 = vadd.f32 %v5917_v4, %v14838_v35  ;;  %v14840_v33 = vld [vmem:[#allocation11_spill] sm:$0xff] }
 0xabc   : > { %14836 = vst [vmem:[#allocation69_spill] sm:$0xff] %v13233_v9 }
 0xabd   : > { %9244 = vmatmul.msk.bf16.gmra.mxu1 %vm606_vm5, %v9797_v51 }
 0xabe   : > { %9356 = vmatmul.msk.bf16.gmra.mxu2 %vm606_vm5, %v13231_v16 }
 0xac0   : > { %v5746_v62 = vpop.f32.mrf.mxu3 }
 0xac1   : > { %v6013_v5 = vadd.f32 %v5746_v62, %v12802_v19  ;;  %v6291_v48 = vpop.f32.mrf.mxu2  ;;  %v13259_v19 = vld [vmem:[%s14295_s9 + $0x380] sm:$0xff]  ;;  %v14842_v62 = vld [vmem:[#allocation112_spill] sm:$0xff] }
 0xac2   : > { %v5828_v36 = vpop.f32.mrf.mxu0  ;;  %v13245_v49 = vadd.f32 %v6291_v48, %v6004_v21  ;;  %v5919_v26 = vpop.f32.mrf.mxu1 }
 0xac3   : > { %v13248_v13 = vadd.f32 %v5828_v36, %v14839_v37  ;;  %v13251_v9 = vadd.f32 %v5919_v26, %v14840_v33 }
 0xac5   : > { %14841 = vst [vmem:[#allocation71_spill] sm:$0xff] %v13251_v9  ;;  %9228 = vmatmul.msk.bf16.gmra.mxu0 %vm606_vm5, %v9797_v51  ;;  %9358 = vmatmul.msk.bf16.gmra.mxu3 %vm606_vm5, %v12797_v42 }
 0xac8   : > { %v5749_v4 = vpop.f32.mrf.mxu3 }
 0xac9   : > { %v6016_v21 = vadd.f32 %v5749_v4, %v12818_v52  ;;  %v6293_v48 = vpop.f32.mrf.mxu2 }
 0xaca   : > { %v5830_v36 = vpop.f32.mrf.mxu0  ;;  %v13262_v35 = vadd.f32 %v6293_v48, %v6007_v30  ;;  %v5922_v26 = vpop.f32.mrf.mxu1  ;;  %v14843_v48 = vld [vmem:[#allocation59_spill] sm:$0xff] }
 0xacb   : > { %v13265_v37 = vadd.f32 %v5830_v36, %v14842_v62  ;;  %v13268_v51 = vadd.f32 %v5922_v26, %v12780_v60 }
 0xacd   : > { %9485 = vmatmul.msk.bf16.vlgmr.msra.gmra.mxu1 %vm606_vm5, %v13259_v19 }
 0xace   : > { %9501 = vmatmul.msk.bf16.vlgmr.msra.gmra.mxu2 %vm606_vm5, %v13259_v19 }
 0xad0   : > { %v5751_v33 = vpop.f32.mrf.mxu3 }
 0xad1   : > { %v6019_v52 = vadd.f32 %v5751_v33, %v12835_v20  ;;  %v6296_v4 = vpop.f32.mrf.mxu2  ;;  %v13290_v20 = vld [vmem:[%s14295_s9 + $0x388] sm:$0xff] }
 0xad2   : > { %v5833_v9 = vpop.f32.mrf.mxu0  ;;  %v13275_v30 = vadd.f32 %v6296_v4, %v6010_v0  ;;  %v5924_v62 = vpop.f32.mrf.mxu1 }
 0xad3   : > { %v13278_v36 = vadd.f32 %v5833_v9, %v14843_v48  ;;  %v13281_v60 = vadd.f32 %v5924_v62, %v12799_v43 }
 0xad5   : > { %14844 = vst [vmem:[#allocation78_spill] sm:$0xff] %v13281_v60  ;;  %9373 = vmatmul.msk.bf16.vlgmr.msra.gmra.mxu0 %vm606_vm5, %v12758_v45  ;;  %9359 = vmatmul.msk.bf16.gmra.mxu3 %vm606_vm5, %v12830_v31 }
 0xad8   : > { %v5754_v26 = vpop.f32.mrf.mxu3 }
 0xad9   : > { %v6022_v0 = vadd.f32 %v5754_v26, %v12850_v18  ;;  %v6298_v9 = vpop.f32.mrf.mxu2 }
 0xada   : > { %v5835_v33 = vpop.f32.mrf.mxu0  ;;  %v13293_v4 = vadd.f32 %v6298_v9, %v6013_v5  ;;  %v5927_v48 = vpop.f32.mrf.mxu1 }
 0xadb   : > { %v13296_v43 = vadd.f32 %v5835_v33, %v12787_v15  ;;  %v13299_v45 = vadd.f32 %v5927_v48, %v12815_v47 }
 0xadd   : > { %9486 = vmatmul.msk.bf16.gmra.mxu1 %vm606_vm5, %v13290_v20 }
 0xade   : > { %9502 = vmatmul.msk.bf16.gmra.mxu2 %vm606_vm5, %v13290_v20 }
 0xae0   : > { %v5756_v62 = vpop.f32.mrf.mxu3 }
 0xae1   : > { %v6025_v18 = vadd.f32 %v5756_v62, %v12866_v10  ;;  %v6301_v26 = vpop.f32.mrf.mxu2  ;;  %v13321_v10 = vld [vmem:[%s14295_s9 + $0x390] sm:$0xff] }
 0xae2   : > { %v5838_v60 = vpop.f32.mrf.mxu0  ;;  %v13306_v5 = vadd.f32 %v6301_v26, %v6016_v21  ;;  %v5929_v9 = vpop.f32.mrf.mxu1 }
 0xae3   : > { %v13309_v15 = vadd.f32 %v5838_v60, %v12805_v27  ;;  %v13312_v47 = vadd.f32 %v5929_v9, %v12832_v8 }
 0xae5   : > { %9374 = vmatmul.msk.bf16.gmra.mxu0 %vm606_vm5, %v12797_v42  ;;  %9360 = vmatmul.msk.bf16.gmra.mxu3 %vm606_vm5, %v12861_v55 }
 0xae8   : > { %v5759_v33 = vpop.f32.mrf.mxu3 }
 0xae9   : > { %v6028_v21 = vadd.f32 %v5759_v33, %v12881_v41  ;;  %v6303_v27 = vpop.f32.mrf.mxu2 }
 0xaea   : > { %v5840_v60 = vpop.f32.mrf.mxu0  ;;  %v13324_v48 = vadd.f32 %v6303_v27, %v6019_v52  ;;  %v5932_v62 = vpop.f32.mrf.mxu1 }
 0xaeb   : > { %v13327_v8 = vadd.f32 %v5840_v60, %v12821_v2  ;;  %v13330_v42 = vadd.f32 %v5932_v62, %v12847_v22  ;;  %v14847_v60 = vld [vmem:[#allocation114_spill] sm:$0xff] }
 0xaed   : > { %14845 = vst [vmem:[#allocation80_spill] sm:$0xff] %v13330_v42  ;;  %9487 = vmatmul.msk.bf16.gmra.mxu1 %vm606_vm5, %v13321_v10 }
 0xaee   : > { %9503 = vmatmul.msk.bf16.gmra.mxu2 %vm606_vm5, %v13321_v10 }
 0xaf0   : > { %v5761_v26 = vpop.f32.mrf.mxu3 }
 0xaf1   : > { %v6031_v41 = vadd.f32 %v5761_v26, %v12897_v17  ;;  %v6306_v9 = vpop.f32.mrf.mxu2  ;;  %v13352_v17 = vld [vmem:[%s14295_s9 + $0x398] sm:$0xff] }
 0xaf2   : > { %v5843_v33 = vpop.f32.mrf.mxu0  ;;  %v13337_v52 = vadd.f32 %v6306_v9, %v6022_v0  ;;  %v5934_v27 = vpop.f32.mrf.mxu1 }
 0xaf3   : > { %v13340_v2 = vadd.f32 %v5843_v33, %v12838_v40  ;;  %v13343_v22 = vadd.f32 %v5934_v27, %v14847_v60  ;;  %v14850_v33 = vld [vmem:[#allocation111_spill] sm:$0xff] }
 0xaf4   : > { %14846 = vst [vmem:[#allocation9_spill] sm:$0xff] %v13337_v52 }
 0xaf5   : > { %14848 = vst [vmem:[#allocation82_spill] sm:$0xff] %v13343_v22  ;;  %9375 = vmatmul.msk.bf16.gmra.mxu0 %vm606_vm5, %v12830_v31  ;;  %9361 = vmatmul.msk.bf16.gmra.mxu3 %vm606_vm5, %v12892_v11  ;;  %v14851_v31 = vld [vmem:[#allocation61_spill] sm:$0xff] }
 0xaf8   : > { %v5764_v62 = vpop.f32.mrf.mxu3 }
 0xaf9   : > { %v6034_v0 = vadd.f32 %v5764_v62, %v12912_v44  ;;  %v6308_v40 = vpop.f32.mrf.mxu2 }
 0xafa   : > { %v5845_v26 = vpop.f32.mrf.mxu0  ;;  %v13355_v9 = vadd.f32 %v6308_v40, %v6025_v18  ;;  %v5937_v60 = vpop.f32.mrf.mxu1  ;;  %v14853_v40 = vld [vmem:[#allocation14_spill] sm:$0xff] }
 0xafb   : > { %v13358_v27 = vadd.f32 %v5845_v26, %v14850_v33  ;;  %v13361_v22 = vadd.f32 %v5937_v60, %v14851_v31 }
 0xafc   : > { %14849 = vst [vmem:[#allocation18_spill] sm:$0xff] %v13355_v9  ;;  %v14854_v9 = vld [vmem:[#allocation116_spill] sm:$0xff] }
 0xafd   : > { %14852 = vst [vmem:[#allocation19_spill] sm:$0xff] %v13361_v22  ;;  %9488 = vmatmul.msk.bf16.gmra.mxu1 %vm606_vm5, %v13352_v17 }
 0xafe   : > { %9504 = vmatmul.msk.bf16.gmra.mxu2 %vm606_vm5, %v13352_v17 }
 0xb00   : > { %v5766_v42 = vpop.f32.mrf.mxu3 }
 0xb01   : > { %v6037_v44 = vadd.f32 %v5766_v42, %v12928_v63  ;;  %v6311_v62 = vpop.f32.mrf.mxu2  ;;  %v13383_v63 = vld [vmem:[%s14295_s9 + $0x3a0] sm:$0xff] }
 0xb02   : > { %v5848_v52 = vpop.f32.mrf.mxu0  ;;  %v13368_v18 = vadd.f32 %v6311_v62, %v6028_v21  ;;  %v5939_v33 = vpop.f32.mrf.mxu1 }
 0xb03   : > { %v13371_v26 = vadd.f32 %v5848_v52, %v14853_v40  ;;  %v13374_v60 = vadd.f32 %v5939_v33, %v14854_v9  ;;  %v14857_v9 = vld [vmem:[#allocation113_spill] sm:$0xff] }
 0xb05   : > { %14855 = vst [vmem:[#allocation22_spill] sm:$0xff] %v13374_v60  ;;  %9376 = vmatmul.msk.bf16.gmra.mxu0 %vm606_vm5, %v12861_v55  ;;  %9362 = vmatmul.msk.bf16.gmra.mxu3 %vm606_vm5, %v12923_v28 }
 0xb08   : > { %v5769_v31 = vpop.f32.mrf.mxu3 }
 0xb09   : > { %v6040_v21 = vadd.f32 %v5769_v31, %v12943_v29  ;;  %v6313_v42 = vpop.f32.mrf.mxu2 }
 0xb0a   : > { %v5850_v52 = vpop.f32.mrf.mxu0  ;;  %v13386_v62 = vadd.f32 %v6313_v42, %v6031_v41  ;;  %v5942_v33 = vpop.f32.mrf.mxu1  ;;  %v14860_v42 = vld [vmem:[#allocation17_spill] sm:$0xff] }
 0xb0b   : > { %v13389_v40 = vadd.f32 %v5850_v52, %v14857_v9  ;;  %v13392_v55 = vadd.f32 %v5942_v33, %v12909_v24 }
 0xb0c   : > { %14856 = vst [vmem:[#allocation25_spill] sm:$0xff] %v13386_v62 }
 0xb0d   : > { %14858 = vst [vmem:[#allocation74_spill] sm:$0xff] %v13392_v55  ;;  %9489 = vmatmul.msk.bf16.gmra.mxu1 %vm606_vm5, %v13383_v63 }
 0xb0e   : > { %9505 = vmatmul.msk.bf16.gmra.mxu2 %vm606_vm5, %v13383_v63 }
 0xb10   : > { %v5771_v60 = vpop.f32.mrf.mxu3 }
 0xb11   : > { %v6043_v29 = vadd.f32 %v5771_v60, %v12959_v23  ;;  %v6316_v31 = vpop.f32.mrf.mxu2  ;;  %v13414_v23 = vld [vmem:[%s14295_s9 + $0x3a8] sm:$0xff] }
 0xb12   : > { %v5853_v22 = vpop.f32.mrf.mxu0  ;;  %v13399_v41 = vadd.f32 %v6316_v31, %v6034_v0  ;;  %v5944_v9 = vpop.f32.mrf.mxu1  ;;  %14862 = vst [vmem:[#allocation89_spill] sm:$0xff] %v13414_v23 }
 0xb13   : > { %v13402_v52 = vadd.f32 %v5853_v22, %v14860_v42  ;;  %v13405_v24 = vadd.f32 %v5944_v9, %v12925_v50  ;;  %v14864_v50 = vld [vmem:[#allocation63_spill] sm:$0xff] }
 0xb14   : > { %14859 = vst [vmem:[#allocation76_spill] sm:$0xff] %v13399_v41  ;;  %v14867_v41 = vld [vmem:[#allocation122_spill] sm:$0xff] }
 0xb15   : > { %14861 = vst [vmem:[#allocation15_spill] sm:$0xff] %v13405_v24  ;;  %9377 = vmatmul.msk.bf16.gmra.mxu0 %vm606_vm5, %v12892_v11  ;;  %9363 = vmatmul.msk.bf16.gmra.mxu3 %vm606_vm5, %v12954_v12  ;;  %v14865_v11 = vld [vmem:[#allocation118_spill] sm:$0xff] }
 0xb18   : > { %v5774_v33 = vpop.f32.mrf.mxu3 }
 0xb19   : > { %v6046_v0 = vadd.f32 %v5774_v33, %v12974_v3  ;;  %v6318_v22 = vpop.f32.mrf.mxu2 }
 0xb1a   : > { %v5855_v60 = vpop.f32.mrf.mxu0  ;;  %v13417_v31 = vadd.f32 %v6318_v22, %v6037_v44  ;;  %v5947_v9 = vpop.f32.mrf.mxu1  ;;  %v14869_v22 = vld [vmem:[#allocation115_spill] sm:$0xff] }
 0xb1b   : > { %v13420_v42 = vadd.f32 %v5855_v60, %v14864_v50  ;;  %v13423_v24 = vadd.f32 %v5947_v9, %v14865_v11  ;;  %v14873_v11 = vld [vmem:[#allocation38_spill] sm:$0xff] }
 0xb1c   : > { %14863 = vst [vmem:[#allocation86_spill] sm:$0xff] %v13417_v31  ;;  %v14871_v31 = vld [vmem:[#allocation35_spill] sm:$0xff] }
 0xb1d   : > { %14866 = vst [vmem:[#allocation79_spill] sm:$0xff] %v13423_v24  ;;  %9490 = vmatmul.msk.bf16.gmra.mxu1 %vm606_vm5, %v13414_v23 }
 0xb1e   : > { %9506 = vmatmul.msk.bf16.gmra.mxu2 %vm606_vm5, %v13414_v23 }
 0xb20   : > { %v5776_v55 = vpop.f32.mrf.mxu3 }
 0xb21   : > { %v6049_v3 = vadd.f32 %v5776_v55, %v14867_v41  ;;  %v6321_v33 = vpop.f32.mrf.mxu2  ;;  %v13445_v55 = vld [vmem:[%s14295_s9 + $0x3b0] sm:$0xff] }
 0xb22   : > { %v5858_v62 = vpop.f32.mrf.mxu0  ;;  %v13430_v44 = vadd.f32 %v6321_v33, %v6040_v21  ;;  %v5949_v50 = vpop.f32.mrf.mxu1  ;;  %14874 = vst [vmem:[#allocation21_spill] sm:$0xff] %v13445_v55 }
 0xb23   : > { %v13433_v60 = vadd.f32 %v5858_v62, %v14869_v22  ;;  %v13436_v9 = vadd.f32 %v5949_v50, %v14871_v31  ;;  %v14876_v31 = vld [vmem:[#allocation20_spill] sm:$0xff] }
 0xb24   : > { %14868 = vst [vmem:[#allocation83_spill] sm:$0xff] %v13430_v44 }
 0xb25   : > { %14870 = vst [vmem:[#allocation92_spill] sm:$0xff] %v13433_v60  ;;  %9378 = vmatmul.msk.bf16.gmra.mxu0 %vm606_vm5, %v12923_v28  ;;  %9364 = vmatmul.msk.bf16.gmra.mxu3 %vm606_vm5, %v14873_v11  ;;  %v14878_v28 = vld [vmem:[#allocation120_spill] sm:$0xff]  ;;  %v14880_v60 = vld [vmem:[#allocation123_spill] sm:$0xff] }
 0xb26   : > { %14872 = vst [vmem:[#allocation28_spill] sm:$0xff] %v13436_v9 }
 0xb28   : > { %v5779_v24 = vpop.f32.mrf.mxu3 }
 0xb29   : > { %v6052_v21 = vadd.f32 %v5779_v24, %v13005_v14  ;;  %v6323_v62 = vpop.f32.mrf.mxu2 }
 0xb2a   : > { %v5860_v41 = vpop.f32.mrf.mxu0  ;;  %v13448_v33 = vadd.f32 %v6323_v62, %v6043_v29  ;;  %v5952_v50 = vpop.f32.mrf.mxu1  ;;  %v14882_v62 = vld [vmem:[#allocation117_spill] sm:$0xff] }
 0xb2b   : > { %v13451_v22 = vadd.f32 %v5860_v41, %v14876_v31  ;;  %v13454_v9 = vadd.f32 %v5952_v50, %v14878_v28  ;;  %v14886_v28 = vld [vmem:[#allocation29_spill] sm:$0xff] }
 0xb2c   : > { %14875 = vst [vmem:[#allocation81_spill] sm:$0xff] %v13448_v33  ;;  %v14884_v33 = vld [vmem:[#allocation119_spill] sm:$0xff] }
 0xb2d   : > { %14877 = vst [vmem:[#allocation87_spill] sm:$0xff] %v13451_v22  ;;  %9491 = vmatmul.msk.bf16.gmra.mxu1 %vm606_vm5, %v13445_v55  ;;  %v14892_v22 = vld [vmem:[#allocation53_spill] sm:$0xff] }
 0xb2e   : > { %14879 = vst [vmem:[#allocation31_spill] sm:$0xff] %v13454_v9  ;;  %9507 = vmatmul.msk.bf16.gmra.mxu2 %vm606_vm5, %v13445_v55 }
 0xb30   : > { %v5781_v44 = vpop.f32.mrf.mxu3 }
 0xb31   : > { %v6055_v14 = vadd.f32 %v5781_v44, %v14880_v60  ;;  %v6326_v24 = vpop.f32.mrf.mxu2  ;;  %v13476_v44 = vld [vmem:[%s14295_s9 + $0x3b8] sm:$0xff]  ;;  %v14887_v60 = vld [vmem:[#allocation124_spill] sm:$0xff] }
 0xb32   : > { %v5863_v23 = vpop.f32.mrf.mxu0  ;;  %v13461_v29 = vadd.f32 %v6326_v24, %v6046_v0  ;;  %v5954_v31 = vpop.f32.mrf.mxu1 }
 0xb33   : > { %v13464_v41 = vadd.f32 %v5863_v23, %v14882_v62  ;;  %v13467_v50 = vadd.f32 %v5954_v31, %v14884_v33  ;;  %v14889_v33 = vld [vmem:[#allocation23_spill] sm:$0xff] }
 0xb34   : > { %14881 = vst [vmem:[#allocation24_spill] sm:$0xff] %v13461_v29 }
 0xb35   : > { %14883 = vst [vmem:[#allocation95_spill] sm:$0xff] %v13464_v41  ;;  %9379 = vmatmul.msk.bf16.gmra.mxu0 %vm606_vm5, %v12954_v12  ;;  %9365 = vmatmul.msk.bf16.gmra.mxu3 %vm606_vm5, %v14886_v28  ;;  %v14890_v12 = vld [vmem:[#allocation41_spill] sm:$0xff] }
 0xb36   : > { %14885 = vst [vmem:[#allocation84_spill] sm:$0xff] %v13467_v50 }
 0xb38   : > { %v6345_v9 = vpop.f32.mrf.mxu3 }
 0xb39   : > { %v6328_v0 = vpop.f32.mrf.mxu2  ;;  %v6515_v23 = vadd.f32 %v6345_v9, %v14887_v60 }
 0xb3a   : > { %v5865_v24 = vpop.f32.mrf.mxu0  ;;  %v13479_v62 = vadd.f32 %v6328_v0, %v6049_v3  ;;  %v5957_v50 = vpop.f32.mrf.mxu1  ;;  %v14894_v0 = vld [vmem:[#allocation26_spill] sm:$0xff] }
 0xb3b   : > { %v13482_v31 = vadd.f32 %v5865_v24, %v14889_v33  ;;  %v13485_v29 = vadd.f32 %v5957_v50, %v14890_v12  ;;  %v14898_v12 = vld [vmem:[#allocation125_spill] sm:$0xff] }
 0xb3c   : > { %14888 = vst [vmem:[#allocation34_spill] sm:$0xff] %v13479_v62  ;;  %v14896_v62 = vld [vmem:[#allocation44_spill] sm:$0xff] }
 0xb3d   : > { %14891 = vst [vmem:[#allocation90_spill] sm:$0xff] %v13485_v29  ;;  %9492 = vmatmul.msk.bf16.gmra.mxu1 %vm606_vm5, %v13476_v44 }
 0xb3e   : > { %9508 = vmatmul.msk.bf16.gmra.mxu2 %vm606_vm5, %v13476_v44 }
 0xb40   : > { %v6347_v41 = vpop.f32.mrf.mxu3 }
 0xb41   : > { %v6331_v55 = vpop.f32.mrf.mxu2  ;;  %v6518_v9 = vadd.f32 %v6347_v41, %v14892_v22  ;;  %v13507_v22 = vld [vmem:[%s14295_s9 + $0x3c0] sm:$0xff] }
 0xb42   : > { %v5868_v60 = vpop.f32.mrf.mxu0  ;;  %v13492_v3 = vadd.f32 %v6331_v55, %v6052_v21  ;;  %v5959_v33 = vpop.f32.mrf.mxu1 }
 0xb43   : > { %v13495_v24 = vadd.f32 %v5868_v60, %v14894_v0  ;;  %v13498_v50 = vadd.f32 %v5959_v33, %v14896_v62  ;;  %v14900_v62 = vld [vmem:[#allocation121_spill] sm:$0xff] }
 0xb44   : > { %14893 = vst [vmem:[#allocation27_spill] sm:$0xff] %v13492_v3 }
 0xb45   : > { %14895 = vst [vmem:[#allocation88_spill] sm:$0xff] %v13495_v24  ;;  %9380 = vmatmul.msk.bf16.gmra.mxu0 %vm606_vm5, %v14873_v11  ;;  %9366 = vmatmul.msk.bf16.gmra.mxu3 %vm606_vm5, %v14898_v12  ;;  %v14901_v11 = vld [vmem:[#allocation47_spill] sm:$0xff] }
 0xb46   : > { %14897 = vst [vmem:[#allocation93_spill] sm:$0xff] %v13498_v50 }
 0xb48   : > { %v6350_v29 = vpop.f32.mrf.mxu3 }
 0xb49   : > { %v6333_v55 = vpop.f32.mrf.mxu2  ;;  %v6521_v21 = vadd.f32 %v6350_v29, %v13067_v46 }
 0xb4a   : > { %v5870_v41 = vpop.f32.mrf.mxu0  ;;  %v13510_v60 = vadd.f32 %v6333_v55, %v6055_v14  ;;  %v6808_v33 = vpop.f32.mrf.mxu1  ;;  %v14904_v55 = vld [vmem:[#allocation32_spill] sm:$0xff] }
 0xb4b   : > { %v13513_v0 = vadd.f32 %v5870_v41, %v14900_v62  ;;  %v13516_v50 = vadd.f32 %v6808_v33, %v14901_v11  ;;  %v14908_v11 = vld [vmem:[#allocation128_spill] sm:$0xff] }
 0xb4c   : > { %14899 = vst [vmem:[#allocation30_spill] sm:$0xff] %v13510_v60  ;;  %v14906_v60 = vld [vmem:[#allocation127_spill] sm:$0xff] }
 0xb4d   : > { %14902 = vst [vmem:[#allocation37_spill] sm:$0xff] %v13516_v50  ;;  %9493 = vmatmul.msk.bf16.gmra.mxu1 %vm606_vm5, %v13507_v22 }
 0xb4e   : > { %9509 = vmatmul.msk.bf16.gmra.mxu2 %vm606_vm5, %v13507_v22 }
 0xb50   : > { %v6352_v3 = vpop.f32.mrf.mxu3 }
 0xb51   : > { %v6524_v24 = vadd.f32 %v6352_v3, %v13083_v38  ;;  %v6897_v46 = vpop.f32.mrf.mxu2  ;;  %v13538_v38 = vld [vmem:[%s14295_s9 + $0x3c8] sm:$0xff] }
 0xb52   : > { %v6434_v29 = vpop.f32.mrf.mxu0  ;;  %v13523_v14 = vadd.f32 %v6897_v46, %v6515_v23  ;;  %v6810_v62 = vpop.f32.mrf.mxu1 }
 0xb53   : > { %v13526_v41 = vadd.f32 %v6434_v29, %v14904_v55  ;;  %v13529_v33 = vadd.f32 %v6810_v62, %v14906_v60  ;;  %v14909_v60 = vld [vmem:[#allocation50_spill] sm:$0xff] }
 0xb54   : > { %14903 = vst [vmem:[#allocation96_spill] sm:$0xff] %v13523_v14 }
 0xb55   : > { %14905 = vst [vmem:[#allocation91_spill] sm:$0xff] %v13526_v41  ;;  %9381 = vmatmul.msk.bf16.gmra.mxu0 %vm606_vm5, %v14886_v28  ;;  %9367 = vmatmul.msk.bf16.gmra.mxu3 %vm606_vm5, %v14908_v11  ;;  %v14911_v28 = vld [vmem:[#allocation129_spill] sm:$0xff] }
 0xb56   : > { %14907 = vst [vmem:[#allocation103_spill] sm:$0xff] %v13529_v33 }
 0xb58   : > { %v6355_v50 = vpop.f32.mrf.mxu3 }
 0xb59   : > { %v6527_v23 = vadd.f32 %v6355_v50, %v13098_v59  ;;  %v6899_v3 = vpop.f32.mrf.mxu2 }
 0xb5a   : > { %v6436_v46 = vpop.f32.mrf.mxu0  ;;  %v13541_v29 = vadd.f32 %v6899_v3, %v6518_v9  ;;  %v6813_v62 = vpop.f32.mrf.mxu1  ;;  %v14914_v3 = vld [vmem:[#allocation126_spill] sm:$0xff] }
 0xb5b   : > { %v13544_v55 = vadd.f32 %v6436_v46, %v14909_v60  ;;  %v13547_v33 = vadd.f32 %v6813_v62, %v14911_v28  ;;  %v14918_v28 = vld [vmem:[#allocation67_spill] sm:$0xff] }
 0xb5d   : > { %14910 = vst [vmem:[#allocation97_spill] sm:$0xff] %v13544_v55  ;;  %9494 = vmatmul.msk.bf16.gmra.mxu1 %vm606_vm5, %v13538_v38  ;;  %v14916_v55 = vld [vmem:[#allocation5_spill] sm:$0xff] }
 0xb5e   : > { %14912 = vst [vmem:[#allocation40_spill] sm:$0xff] %v13547_v33  ;;  %9510 = vmatmul.msk.bf16.gmra.mxu2 %vm606_vm5, %v13538_v38 }
 0xb60   : > { %v6357_v41 = vpop.f32.mrf.mxu3 }
 0xb61   : > { %v6530_v59 = vadd.f32 %v6357_v41, %v13114_v7  ;;  %v6902_v50 = vpop.f32.mrf.mxu2  ;;  %v13569_v7 = vld [vmem:[%s14295_s9 + $0x3d0] sm:$0xff] }
 0xb62   : > { %v6439_v14 = vpop.f32.mrf.mxu0  ;;  %v13554_v9 = vadd.f32 %v6902_v50, %v6521_v21  ;;  %v6815_v60 = vpop.f32.mrf.mxu1 }
 0xb63   : > { %v13557_v46 = vadd.f32 %v6439_v14, %v14914_v3  ;;  %v13560_v62 = vadd.f32 %v6815_v60, %v14916_v55  ;;  %v14919_v55 = vld [vmem:[#allocation56_spill] sm:$0xff] }
 0xb64   : > { %14913 = vst [vmem:[#allocation94_spill] sm:$0xff] %v13554_v9 }
 0xb65   : > { %14915 = vst [vmem:[#allocation33_spill] sm:$0xff] %v13557_v46  ;;  %9382 = vmatmul.msk.bf16.gmra.mxu0 %vm606_vm5, %v14898_v12  ;;  %9368 = vmatmul.msk.bf16.gmra.mxu3 %vm606_vm5, %v14918_v28  ;;  %v14921_v12 = vld [vmem:[#allocation130_spill] sm:$0xff] }
 0xb66   : > { %14917 = vst [vmem:[#allocation98_spill] sm:$0xff] %v13560_v62 }
 0xb68   : > { %v6360_v33 = vpop.f32.mrf.mxu3 }
 0xb69   : > { %v6533_v21 = vadd.f32 %v6360_v33, %v13129_v53  ;;  %v6904_v14 = vpop.f32.mrf.mxu2 }
 0xb6a   : > { %v6441_v41 = vpop.f32.mrf.mxu0  ;;  %v13572_v50 = vadd.f32 %v6904_v14, %v6524_v24  ;;  %v6818_v60 = vpop.f32.mrf.mxu1  ;;  %v14924_v14 = vld [vmem:[#allocation4_spill] sm:$0xff] }
 0xb6b   : > { %v13575_v3 = vadd.f32 %v6441_v41, %v14919_v55  ;;  %v13578_v62 = vadd.f32 %v6818_v60, %v14921_v12  ;;  %v14928_v12 = vld [vmem:[#allocation68_spill] sm:$0xff] }
 0xb6d   : > { %14920 = vst [vmem:[#allocation104_spill] sm:$0xff] %v13575_v3  ;;  %9495 = vmatmul.msk.bf16.gmra.mxu1 %vm606_vm5, %v13569_v7  ;;  %v14926_v3 = vld [vmem:[#allocation64_spill] sm:$0xff] }
 0xb6e   : > { %14922 = vst [vmem:[#allocation100_spill] sm:$0xff] %v13578_v62  ;;  %9511 = vmatmul.msk.bf16.gmra.mxu2 %vm606_vm5, %v13569_v7 }
 0xb70   : > { %v6362_v46 = vpop.f32.mrf.mxu3 }
 0xb71   : > { %v6536_v53 = vadd.f32 %v6362_v46, %v13145_v32  ;;  %v6907_v33 = vpop.f32.mrf.mxu2  ;;  %v13600_v32 = vld [vmem:[%s14295_s9 + $0x3d8] sm:$0xff] }
 0xb72   : > { %v6444_v9 = vpop.f32.mrf.mxu0  ;;  %v13585_v24 = vadd.f32 %v6907_v33, %v6527_v23  ;;  %v6820_v55 = vpop.f32.mrf.mxu1 }
 0xb73   : > { %v13588_v41 = vadd.f32 %v6444_v9, %v14924_v14  ;;  %v13591_v60 = vadd.f32 %v6820_v55, %v14926_v3  ;;  %v14929_v3 = vld [vmem:[#allocation66_spill] sm:$0xff] }
 0xb74   : > { %14923 = vst [vmem:[#allocation36_spill] sm:$0xff] %v13585_v24 }
 0xb75   : > { %14925 = vst [vmem:[#allocation102_spill] sm:$0xff] %v13588_v41  ;;  %9383 = vmatmul.msk.bf16.gmra.mxu0 %vm606_vm5, %v14908_v11  ;;  %9369 = vmatmul.msk.bf16.gmra.mxu3 %vm606_vm5, %v14928_v12  ;;  %v14931_v11 = vld [vmem:[#allocation7_spill] sm:$0xff] }
 0xb76   : > { %14927 = vst [vmem:[#allocation43_spill] sm:$0xff] %v13591_v60 }
 0xb78   : > { %v6365_v62 = vpop.f32.mrf.mxu3 }
 0xb79   : > { %v6539_v23 = vadd.f32 %v6365_v62, %v13160_v61  ;;  %v6909_v9 = vpop.f32.mrf.mxu2 }
 0xb7a   : > { %v6446_v46 = vpop.f32.mrf.mxu0  ;;  %v13603_v33 = vadd.f32 %v6909_v9, %v6530_v59  ;;  %v6823_v55 = vpop.f32.mrf.mxu1  ;;  %v14933_v9 = vld [vmem:[#allocation72_spill] sm:$0xff] }
 0xb7b   : > { %v13606_v14 = vadd.f32 %v6446_v46, %v14929_v3  ;;  %v13609_v60 = vadd.f32 %v6823_v55, %v14931_v11 }
 0xb7d   : > { %14930 = vst [vmem:[#allocation46_spill] sm:$0xff] %v13606_v14  ;;  %9496 = vmatmul.msk.bf16.gmra.mxu1 %vm606_vm5, %v13600_v32  ;;  %v14934_v14 = vld [vmem:[#allocation13_spill] sm:$0xff] }
 0xb7e   : > { %14932 = vst [vmem:[#allocation105_spill] sm:$0xff] %v13609_v60  ;;  %9512 = vmatmul.msk.bf16.gmra.mxu2 %vm606_vm5, %v13600_v32 }
 0xb80   : > { %v6367_v41 = vpop.f32.mrf.mxu3 }
 0xb81   : > { %v6542_v61 = vadd.f32 %v6367_v41, %v13176_v6  ;;  %v6912_v62 = vpop.f32.mrf.mxu2  ;;  %v13631_v6 = vld [vmem:[%s14295_s9 + $0x3e0] sm:$0xff] }
 0xb82   : > { %v6449_v24 = vpop.f32.mrf.mxu0  ;;  %v13616_v59 = vadd.f32 %v6912_v62, %v6533_v21  ;;  %v6825_v3 = vpop.f32.mrf.mxu1 }
 0xb83   : > { %v13619_v46 = vadd.f32 %v6449_v24, %v14933_v9  ;;  %v13622_v55 = vadd.f32 %v6825_v3, %v14934_v14  ;;  %v14936_v14 = vld [vmem:[#allocation8_spill] sm:$0xff] }
 0xb85   : > { %14935 = vst [vmem:[#allocation101_spill] sm:$0xff] %v13622_v55  ;;  %9384 = vmatmul.msk.bf16.gmra.mxu0 %vm606_vm5, %v14918_v28  ;;  %9370 = vmatmul.msk.bf16.gmra.mxu3 %vm606_vm5, %v13171_v57 }
 0xb88   : > { %v6370_v11 = vpop.f32.mrf.mxu3 }
 0xb89   : > { %v6545_v21 = vadd.f32 %v6370_v11, %v13191_v25  ;;  %v6914_v24 = vpop.f32.mrf.mxu2 }
 0xb8a   : > { %v6451_v41 = vpop.f32.mrf.mxu0  ;;  %v13634_v62 = vadd.f32 %v6914_v24, %v6536_v53  ;;  %v6828_v3 = vpop.f32.mrf.mxu1  ;;  %v14939_v24 = vld [vmem:[#allocation16_spill] sm:$0xff] }
 0xb8b   : > { %v13637_v9 = vadd.f32 %v6451_v41, %v14936_v14  ;;  %v13640_v28 = vadd.f32 %v6828_v3, %v13157_v1 }
 0xb8d   : > { %14937 = vst [vmem:[#allocation99_spill] sm:$0xff] %v13637_v9  ;;  %9497 = vmatmul.msk.bf16.gmra.mxu1 %vm606_vm5, %v13631_v6  ;;  %v14941_v9 = vld [vmem:[#allocation6_spill] sm:$0xff] }
 0xb8e   : > { %14938 = vst [vmem:[#allocation39_spill] sm:$0xff] %v13640_v28  ;;  %9513 = vmatmul.msk.bf16.gmra.mxu2 %vm606_vm5, %v13631_v6 }
 0xb90   : > { %v6372_v55 = vpop.f32.mrf.mxu3 }
 0xb91   : > { %v6548_v25 = vadd.f32 %v6372_v55, %v13207_v34  ;;  %v6917_v11 = vpop.f32.mrf.mxu2  ;;  %v13662_v34 = vld [vmem:[%s14295_s9 + $0x3e8] sm:$0xff] }
 0xb92   : > { %v6454_v60 = vpop.f32.mrf.mxu0  ;;  %v13647_v53 = vadd.f32 %v6917_v11, %v6539_v23  ;;  %v6830_v14 = vpop.f32.mrf.mxu1 }
 0xb93   : > { %v13650_v41 = vadd.f32 %v6454_v60, %v14939_v24  ;;  %v13653_v1 = vadd.f32 %v6830_v14, %v14941_v9  ;;  %v14943_v9 = vld [vmem:[#allocation65_spill] sm:$0xff] }
 0xb95   : > { %14940 = vst [vmem:[#allocation42_spill] sm:$0xff] %v13650_v41  ;;  %9385 = vmatmul.msk.bf16.gmra.mxu0 %vm606_vm5, %v14928_v12  ;;  %9371 = vmatmul.msk.bf16.gmra.mxu3 %vm606_vm5, %v13202_v58  ;;  %v14945_v12 = vld [vmem:[#allocation10_spill] sm:$0xff] }
 0xb96   : > { %14942 = vst [vmem:[#allocation49_spill] sm:$0xff] %v13653_v1 }
 0xb98   : > { %v6375_v3 = vpop.f32.mrf.mxu3 }
 0xb99   : > { %v6551_v23 = vadd.f32 %v6375_v3, %v13219_v54  ;;  %v6919_v60 = vpop.f32.mrf.mxu2 }
 0xb9a   : > { %v6456_v55 = vpop.f32.mrf.mxu0  ;;  %v13665_v11 = vadd.f32 %v6919_v60, %v6542_v61  ;;  %v6833_v14 = vpop.f32.mrf.mxu1  ;;  %v14947_v60 = vld [vmem:[#allocation75_spill] sm:$0xff] }
 0xb9b   : > { %v13668_v24 = vadd.f32 %v6456_v55, %v14943_v9  ;;  %v13671_v1 = vadd.f32 %v6833_v14, %v14945_v12 }
 0xb9d   : > { %14944 = vst [vmem:[#allocation45_spill] sm:$0xff] %v13668_v24  ;;  %9498 = vmatmul.msk.bf16.gmra.mxu1 %vm606_vm5, %v13662_v34  ;;  %v14949_v24 = vld [vmem:[#allocation12_spill] sm:$0xff] }
 0xb9e   : > { %14946 = vst [vmem:[#allocation52_spill] sm:$0xff] %v13671_v1  ;;  %9514 = vmatmul.msk.bf16.gmra.mxu2 %vm606_vm5, %v13662_v34 }
 0xba0   : > { %v6377_v28 = vpop.f32.mrf.mxu3 }
 0xba1   : > { %v6554_v54 = vadd.f32 %v6377_v28, %v13236_v56  ;;  %v6922_v3 = vpop.f32.mrf.mxu2  ;;  %v13693_v56 = vld [vmem:[%s14295_s9 + $0x3f0] sm:$0xff] }
 0xba2   : > { %v6459_v41 = vpop.f32.mrf.mxu0  ;;  %v13678_v61 = vadd.f32 %v6922_v3, %v6545_v21  ;;  %v6835_v9 = vpop.f32.mrf.mxu1 }
 0xba3   : > { %v13681_v55 = vadd.f32 %v6459_v41, %v14947_v60  ;;  %v13684_v14 = vadd.f32 %v6835_v9, %v14949_v24  ;;  %v14951_v24 = vld [vmem:[#allocation77_spill] sm:$0xff] }
 0xba5   : > { %14948 = vst [vmem:[#allocation48_spill] sm:$0xff] %v13681_v55  ;;  %9386 = vmatmul.msk.bf16.gmra.mxu0 %vm606_vm5, %v13171_v57  ;;  %9372 = vmatmul.msk.bf16.gmra.mxu3 %vm606_vm5, %v13231_v16  ;;  %v14953_v57 = vld [vmem:[#allocation73_spill] sm:$0xff] }
 0xba6   : > { %14950 = vst [vmem:[#allocation55_spill] sm:$0xff] %v13684_v14 }
 0xba8   : > { %v6380_v12 = vpop.f32.mrf.mxu3 }
 0xba9   : > { %v6557_v21 = vadd.f32 %v6380_v12, %v13248_v13  ;;  %v6924_v28 = vpop.f32.mrf.mxu2 }
 0xbaa   : > { %v6461_v41 = vpop.f32.mrf.mxu0  ;;  %v13696_v3 = vadd.f32 %v6924_v28, %v6548_v25  ;;  %v6838_v9 = vpop.f32.mrf.mxu1  ;;  %v14954_v28 = vld [vmem:[#allocation70_spill] sm:$0xff] }
 0xbab   : > { %v13699_v60 = vadd.f32 %v6461_v41, %v14951_v24  ;;  %v13702_v14 = vadd.f32 %v6838_v9, %v14953_v57 }
 0xbad   : > { %14952 = vst [vmem:[#allocation51_spill] sm:$0xff] %v13699_v60  ;;  %9499 = vmatmul.msk.bf16.gmra.mxu1 %vm606_vm5, %v13693_v56  ;;  %v14955_v60 = vld [vmem:[#allocation69_spill] sm:$0xff] }
 0xbae   : > { %9515 = vmatmul.msk.bf16.gmra.mxu2 %vm606_vm5, %v13693_v56 }
 0xbb0   : > { %v6382_v1 = vpop.f32.mrf.mxu3 }
 0xbb1   : > { %v6560_v13 = vadd.f32 %v6382_v1, %v13265_v37  ;;  %v6927_v12 = vpop.f32.mrf.mxu2  ;;  %v13724_v37 = vld [vmem:[%s14295_s9 + $0x3f8] sm:$0xff] }
 0xbb2   : > { %v6464_v55 = vpop.f32.mrf.mxu0  ;;  %v13709_v25 = vadd.f32 %v6927_v12, %v6551_v23  ;;  %v6840_v24 = vpop.f32.mrf.mxu1 }
 0xbb3   : > { %v13712_v41 = vadd.f32 %v6464_v55, %v14954_v28  ;;  %v13715_v9 = vadd.f32 %v6840_v24, %v14955_v60  ;;  %v14957_v60 = vld [vmem:[#allocation85_spill] sm:$0xff] }
 0xbb5   : > { %14956 = vst [vmem:[#allocation58_spill] sm:$0xff] %v13715_v9  ;;  %9387 = vmatmul.msk.bf16.gmra.mxu0 %vm606_vm5, %v13202_v58  ;;  %9517 = vmatmul.msk.bf16.vlgmr.msrb.gmra.mxu3 %vm606_vm5, %v13259_v19 }
 0xbb8   : > { %v6385_v57 = vpop.f32.mrf.mxu3 }
 0xbb9   : > { %v6563_v1 = vadd.f32 %v6385_v57, %v13278_v36  ;;  %v6929_v23 = vpop.f32.mrf.mxu2 }
 0xbba   : > { %v6466_v55 = vpop.f32.mrf.mxu0  ;;  %v13727_v12 = vadd.f32 %v6929_v23, %v6554_v54  ;;  %v6843_v24 = vpop.f32.mrf.mxu1 }
 0xbbb   : > { %v13730_v28 = vadd.f32 %v6466_v55, %v14957_v60  ;;  %v13733_v58 = vadd.f32 %v6843_v24, %v13245_v49  ;;  %v7715_v49 = vld [vmem:[%s14296_s10 + $0x8] sm:$0xff] }
 0xbbc   : > { %7753 = vperm.xlu0 %9873, %v7715_v49  }
 0xbbd   : > { %9500 = vmatmul.msk.bf16.gmra.mxu1 %vm606_vm5, %v13724_v37 }
 0xbbe   : > { %9516 = vmatmul.msk.bf16.gmra.mxu2 %vm606_vm5, %v13724_v37 }
 0xbc0   : > { %v6387_v19 = vpop.f32.mrf.mxu3 }
 0xbc1   : > { %v6566_v36 = vadd.f32 %v6387_v19, %v13296_v43  ;;  %v6932_v57 = vpop.f32.mrf.mxu2 }
 0xbc2   : > { %v6469_v9 = vpop.f32.mrf.mxu0  ;;  %v13740_v54 = vadd.f32 %v6932_v57, %v6557_v21  ;;  %v6845_v55 = vpop.f32.mrf.mxu1 }
 0xbc3   : > { %v13743_v23 = vadd.f32 %v6469_v9, %v13239_v39  ;;  %v13749_v60 = vadd.f32 %v6845_v55, %v13262_v35  ;;  %v9830_v39 = vld [vmem:[%s14295_s9 + $0x400] sm:$0xff]  ;;  %v14959_v35 = vld [vmem:[#allocation71_spill] sm:$0xff] }
 0xbc5   : > { %14958 = vst [vmem:[#allocation108_spill] sm:$0xff] %v13749_v60  ;;  %9388 = vmatmul.msk.bf16.gmra.mxu0 %vm606_vm5, %v13231_v16  ;;  %9518 = vmatmul.msk.bf16.gmra.mxu3 %vm606_vm5, %v13290_v20 }
 0xbc8   : > { %v6390_v43 = vpop.f32.mrf.mxu3 }
 0xbc9   : > { %v6569_v21 = vadd.f32 %v6390_v43, %v13309_v15  ;;  %v6934_v9 = vpop.f32.mrf.mxu2 }
 0xbca   : > { %v6471_v24 = vpop.f32.mrf.mxu0  ;;  %v13759_v19 = vadd.f32 %v6934_v9, %v6560_v13  ;;  %v6848_v55 = vpop.f32.mrf.mxu1 }
 0xbcb   : > { %v13762_v57 = vadd.f32 %v6471_v24, %v14959_v35  ;;  %v13765_v16 = vadd.f32 %v6848_v55, %v13275_v30  ;;  %v14960_v55 = vld [vmem:[#allocation78_spill] sm:$0xff] }
 0xbcd   : > { %9645 = vmatmul.msk.bf16.vlgmr.msrb.gmra.mxu1 %vm606_vm5, %v9830_v39 }
 0xbce   : > { %9661 = vmatmul.msk.bf16.vlgmr.msrb.gmra.mxu2 %vm606_vm5, %v9830_v39 }
 0xbd0   : > { %v6392_v20 = vpop.f32.mrf.mxu3 }
 0xbd1   : > { %v6572_v49 = vadd.f32 %v6392_v20, %v13327_v8  ;;  %v6937_v60 = vpop.f32.mrf.mxu2  ;;  %v9831_v8 = vld [vmem:[%s14295_s9 + $0x408] sm:$0xff] }
 0xbd2   : > { %v6474_v15 = vpop.f32.mrf.mxu0  ;;  %v13770_v43 = vadd.f32 %v6937_v60, %v6563_v1  ;;  %v6850_v9 = vpop.f32.mrf.mxu1 }
 0xbd3   : > { %v13773_v13 = vadd.f32 %v6474_v15, %v13268_v51  ;;  %v13776_v24 = vadd.f32 %v6850_v9, %v13293_v4 }
 0xbd5   : > { %9629 = vmatmul.msk.bf16.vlgmr.msrb.gmra.mxu0 %vm606_vm5, %v9830_v39  ;;  %9519 = vmatmul.msk.bf16.gmra.mxu3 %vm606_vm5, %v13321_v10 }
 0xbd8   : > { %v6395_v30 = vpop.f32.mrf.mxu3 }
 0xbd9   : > { %v6575_v1 = vadd.f32 %v6395_v30, %v13340_v2  ;;  %v6939_v60 = vpop.f32.mrf.mxu2 }
 0xbda   : > { %v6476_v35 = vpop.f32.mrf.mxu0  ;;  %v13785_v51 = vadd.f32 %v6939_v60, %v6566_v36  ;;  %v6853_v4 = vpop.f32.mrf.mxu1 }
 0xbdb   : > { %v13788_v20 = vadd.f32 %v6476_v35, %v14960_v55  ;;  %v13791_v39 = vadd.f32 %v6853_v4, %v13306_v5 }
 0xbdd   : > { %9646 = vmatmul.msk.bf16.gmra.mxu1 %vm606_vm5, %v9831_v8 }
 0xbde   : > { %9662 = vmatmul.msk.bf16.gmra.mxu2 %vm606_vm5, %v9831_v8 }
 0xbe0   : > { %v6397_v10 = vpop.f32.mrf.mxu3 }
 0xbe1   : > { %v6578_v15 = vadd.f32 %v6397_v10, %v13358_v27  ;;  %v6942_v9 = vpop.f32.mrf.mxu2  ;;  %v9832_v27 = vld [vmem:[%s14295_s9 + $0x410] sm:$0xff] }
 0xbe2   : > { %v6479_v2 = vpop.f32.mrf.mxu0  ;;  %v13796_v30 = vadd.f32 %v6942_v9, %v6569_v21  ;;  %v6855_v60 = vpop.f32.mrf.mxu1 }
 0xbe3   : > { %v13799_v36 = vadd.f32 %v6479_v2, %v13299_v45  ;;  %v13802_v35 = vadd.f32 %v6855_v60, %v13324_v48 }
 0xbe5   : > { %14961 = vst [vmem:[#allocation106_spill] sm:$0xff] %v13802_v35  ;;  %9630 = vmatmul.msk.bf16.gmra.mxu0 %vm606_vm5, %v9831_v8  ;;  %9520 = vmatmul.msk.bf16.gmra.mxu3 %vm606_vm5, %v13352_v17  ;;  %v7720_v8 = vld [vmem:[%s14296_s10 + $0x30] sm:$0xff]  ;;  %v14963_v17 = vld [vmem:[#allocation9_spill] sm:$0xff]  ;;  %v14965_v35 = vld [vmem:[#allocation18_spill] sm:$0xff] }
 0xbe6   : > { %7778 = vperm.xlu0 %9873, %v7720_v8  }
 0xbe8   : > { %v6400_v5 = vpop.f32.mrf.mxu3 }
 0xbe9   : > { %v6581_v21 = vadd.f32 %v6400_v5, %v13371_v26  ;;  %v6944_v55 = vpop.f32.mrf.mxu2  ;;  %v14964_v5 = vld [vmem:[#allocation80_spill] sm:$0xff] }
 0xbea   : > { %v6481_v4 = vpop.f32.mrf.mxu0  ;;  %v13811_v45 = vadd.f32 %v6944_v55, %v6572_v49  ;;  %v6858_v48 = vpop.f32.mrf.mxu1 }
 0xbeb   : > { %v13814_v10 = vadd.f32 %v6481_v4, %v13312_v47  ;;  %v13820_v9 = vadd.f32 %v6858_v48, %v14963_v17 }
 0xbed   : > { %14962 = vst [vmem:[#allocation60_spill] sm:$0xff] %v13814_v10  ;;  %9647 = vmatmul.msk.bf16.gmra.mxu1 %vm606_vm5, %v9832_v27 }
 0xbee   : > { %9663 = vmatmul.msk.bf16.gmra.mxu2 %vm606_vm5, %v9832_v27 }
 0xbf0   : > { %v6402_v26 = vpop.f32.mrf.mxu3 }
 0xbf1   : > { %v6584_v49 = vadd.f32 %v6402_v26, %v13389_v40  ;;  %v6947_v2 = vpop.f32.mrf.mxu2  ;;  %v9833_v40 = vld [vmem:[%s14295_s9 + $0x418] sm:$0xff] }
 0xbf2   : > { %v6484_v60 = vpop.f32.mrf.mxu0  ;;  %v13825_v47 = vadd.f32 %v6947_v2, %v6575_v1  ;;  %v6860_v4 = vpop.f32.mrf.mxu1  ;;  %v14967_v2 = vld [vmem:[#allocation82_spill] sm:$0xff] }
 0xbf3   : > { %v13828_v55 = vadd.f32 %v6484_v60, %v14964_v5  ;;  %v13831_v10 = vadd.f32 %v6860_v4, %v14965_v35 }
 0xbf5   : > { %14966 = vst [vmem:[#allocation107_spill] sm:$0xff] %v13831_v10  ;;  %9631 = vmatmul.msk.bf16.gmra.mxu0 %vm606_vm5, %v9832_v27  ;;  %9521 = vmatmul.msk.bf16.gmra.mxu3 %vm606_vm5, %v13383_v63 }
 0xbf8   : > { %v6405_v48 = vpop.f32.mrf.mxu3 }
 0xbf9   : > { %v6587_v1 = vadd.f32 %v6405_v48, %v13402_v52  ;;  %v6949_v8 = vpop.f32.mrf.mxu2 }
 0xbfa   : > { %v6486_v17 = vpop.f32.mrf.mxu0  ;;  %v13840_v26 = vadd.f32 %v6949_v8, %v6578_v15  ;;  %v6863_v35 = vpop.f32.mrf.mxu1  ;;  %v14971_v15 = vld [vmem:[#allocation19_spill] sm:$0xff] }
 0xbfb   : > { %v13843_v60 = vadd.f32 %v6486_v17, %v14967_v2  ;;  %v13846_v27 = vadd.f32 %v6863_v35, %v13368_v18  ;;  %v7723_v18 = vld [vmem:[%s14296_s10 + $0x48] sm:$0xff]  ;;  %v14973_v2 = vld [vmem:[#allocation25_spill] sm:$0xff] }
 0xbfc   : > { %7793 = vperm.xlu0 %9873, %v7723_v18  }
 0xbfd   : > { %14968 = vst [vmem:[#allocation54_spill] sm:$0xff] %v13843_v60  ;;  %9648 = vmatmul.msk.bf16.gmra.mxu1 %vm606_vm5, %v9833_v40 }
 0xbfe   : > { %14969 = vst [vmem:[#allocation62_spill] sm:$0xff] %v13846_v27  ;;  %9664 = vmatmul.msk.bf16.gmra.mxu2 %vm606_vm5, %v9833_v40  ;;  %v14975_v27 = vld [vmem:[#allocation89_spill] sm:$0xff] }
 0xc00   : > { %v6407_v63 = vpop.f32.mrf.mxu3 }
 0xc01   : > { %v6590_v5 = vadd.f32 %v6407_v63, %v13420_v42  ;;  %v6952_v4 = vpop.f32.mrf.mxu2  ;;  %v14976_v63 = vld [vmem:[#allocation92_spill] sm:$0xff] }
 0xc02   : > { %v6489_v52 = vpop.f32.mrf.mxu0  ;;  %v13851_v48 = vadd.f32 %v6952_v4, %v6581_v21  ;;  %v6865_v17 = vpop.f32.mrf.mxu1  ;;  %v9834_v21 = vld [vmem:[%s14295_s9 + $0x420] sm:$0xff] }
 0xc03   : > { %v13854_v8 = vadd.f32 %v6489_v52, %v14971_v15  ;;  %v13860_v35 = vadd.f32 %v6865_v17, %v14973_v2  ;;  %v14979_v2 = vld [vmem:[#allocation76_spill] sm:$0xff] }
 0xc04   : > { %14970 = vst [vmem:[#allocation110_spill] sm:$0xff] %v13851_v48  ;;  %v14977_v48 = vld [vmem:[#allocation22_spill] sm:$0xff] }
 0xc05   : > { %14972 = vst [vmem:[#allocation109_spill] sm:$0xff] %v13854_v8  ;;  %9632 = vmatmul.msk.bf16.gmra.mxu0 %vm606_vm5, %v9833_v40  ;;  %9522 = vmatmul.msk.bf16.gmra.mxu3 %vm606_vm5, %v14975_v27 }
 0xc06   : > { %14974 = vst [vmem:[#allocation57_spill] sm:$0xff] %v13860_v35  ;;  %v14981_v35 = vld [vmem:[#allocation87_spill] sm:$0xff] }
 0xc08   : > { %v6410_v42 = vpop.f32.mrf.mxu3 }
 0xc09   : > { %v6593_v4 = vadd.f32 %v6410_v42, %v14976_v63  ;;  %v6954_v52 = vpop.f32.mrf.mxu2 }
 0xc0a   : > { %v6491_v15 = vpop.f32.mrf.mxu0  ;;  %v13869_v8 = vadd.f32 %v6954_v52, %v6584_v49  ;;  %v6868_v18 = vpop.f32.mrf.mxu1  ;;  %v14983_v49 = vld [vmem:[#allocation74_spill] sm:$0xff] }
 0xc0b   : > { %v13872_v17 = vadd.f32 %v6491_v15, %v14977_v48  ;;  %v13875_v40 = vadd.f32 %v6868_v18, %v14979_v2  ;;  %v14985_v15 = vld [vmem:[#allocation86_spill] sm:$0xff]  ;;  %v14987_v18 = vld [vmem:[#allocation21_spill] sm:$0xff] }
 0xc0d   : > { %14978 = vst [vmem:[#allocation11_spill] sm:$0xff] %v13872_v17  ;;  %9649 = vmatmul.msk.bf16.gmra.mxu1 %vm606_vm5, %v9834_v21 }
 0xc0e   : > { %14980 = vst [vmem:[#allocation112_spill] sm:$0xff] %v13875_v40  ;;  %9665 = vmatmul.msk.bf16.gmra.mxu2 %vm606_vm5, %v9834_v21 }
 0xc10   : > { %v6412_v27 = vpop.f32.mrf.mxu3 }
 0xc11   : > { %v6596_v10 = vadd.f32 %v6412_v27, %v14981_v35  ;;  %v6957_v60 = vpop.f32.mrf.mxu2  ;;  %v9835_v35 = vld [vmem:[%s14295_s9 + $0x428] sm:$0xff] }
 0xc12   : > { %v6494_v42 = vpop.f32.mrf.mxu0  ;;  %v13880_v63 = vadd.f32 %v6957_v60, %v6587_v1  ;;  %v6870_v48 = vpop.f32.mrf.mxu1  ;;  %v14988_v27 = vld [vmem:[#allocation95_spill] sm:$0xff] }
 0xc13   : > { %v13883_v52 = vadd.f32 %v6494_v42, %v14983_v49  ;;  %v13886_v17 = vadd.f32 %v6870_v48, %v14985_v15  ;;  %v14990_v49 = vld [vmem:[#allocation15_spill] sm:$0xff] }
 0xc14   : > { %14982 = vst [vmem:[#allocation59_spill] sm:$0xff] %v13880_v63  ;;  %v14992_v15 = vld [vmem:[#allocation83_spill] sm:$0xff] }
 0xc15   : > { %14984 = vst [vmem:[#allocation114_spill] sm:$0xff] %v13883_v52  ;;  %9633 = vmatmul.msk.bf16.gmra.mxu0 %vm606_vm5, %v9834_v21  ;;  %9523 = vmatmul.msk.bf16.gmra.mxu3 %vm606_vm5, %v14987_v18  ;;  %v7726_v21 = vld [vmem:[%s14296_s10 + $0x60] sm:$0xff] }
 0xc16   : > { %14986 = vst [vmem:[#allocation111_spill] sm:$0xff] %v13886_v17  ;;  %7808 = vperm.xlu0 %9873, %v7726_v21   ;;  %v14997_v21 = vld [vmem:[#allocation88_spill] sm:$0xff] }
 0xc18   : > { %v6415_v2 = vpop.f32.mrf.mxu3 }
 0xc19   : > { %v6599_v1 = vadd.f32 %v6415_v2, %v14988_v27  ;;  %v6959_v60 = vpop.f32.mrf.mxu2 }
 0xc1a   : > { %v6496_v40 = vpop.f32.mrf.mxu0  ;;  %v13895_v42 = vadd.f32 %v6959_v60, %v6590_v5  ;;  %v6873_v48 = vpop.f32.mrf.mxu1 }
 0xc1b   : > { %v13898_v52 = vadd.f32 %v6496_v40, %v14990_v49  ;;  %v13904_v18 = vadd.f32 %v6873_v48, %v14992_v15  ;;  %v14994_v49 = vld [vmem:[#allocation79_spill] sm:$0xff] }
 0xc1c   : > { %14989 = vst [vmem:[#allocation61_spill] sm:$0xff] %v13895_v42  ;;  %v14995_v42 = vld [vmem:[#allocation81_spill] sm:$0xff] }
 0xc1d   : > { %14991 = vst [vmem:[#allocation14_spill] sm:$0xff] %v13898_v52  ;;  %9650 = vmatmul.msk.bf16.gmra.mxu1 %vm606_vm5, %v9835_v35 }
 0xc1e   : > { %14993 = vst [vmem:[#allocation116_spill] sm:$0xff] %v13904_v18  ;;  %9666 = vmatmul.msk.bf16.gmra.mxu2 %vm606_vm5, %v9835_v35 }
 0xc20   : > { %v6417_v2 = vpop.f32.mrf.mxu3 }
 0xc21   : > { %v6602_v5 = vadd.f32 %v6417_v2, %v13482_v31  ;;  %v6962_v27 = vpop.f32.mrf.mxu2  ;;  %v9836_v31 = vld [vmem:[%s14295_s9 + $0x430] sm:$0xff] }
 0xc22   : > { %v6499_v60 = vpop.f32.mrf.mxu0  ;;  %v13909_v40 = vadd.f32 %v6962_v27, %v6593_v4  ;;  %v6875_v52 = vpop.f32.mrf.mxu1 }
 0xc23   : > { %v13912_v17 = vadd.f32 %v6499_v60, %v14994_v49  ;;  %v13915_v63 = vadd.f32 %v6875_v52, %v14995_v42  ;;  %v14998_v60 = vld [vmem:[#allocation28_spill] sm:$0xff] }
 0xc24   : > { %v15000_v42 = vld [vmem:[#allocation24_spill] sm:$0xff] }
 0xc25   : > { %14996 = vst [vmem:[#allocation113_spill] sm:$0xff] %v13915_v63  ;;  %9634 = vmatmul.msk.bf16.gmra.mxu0 %vm606_vm5, %v9835_v35  ;;  %9524 = vmatmul.msk.bf16.gmra.mxu3 %vm606_vm5, %v13476_v44 }
 0xc28   : > { %v6420_v48 = vpop.f32.mrf.mxu3 }
 0xc29   : > { %v6605_v4 = vadd.f32 %v6420_v48, %v14997_v21  ;;  %v6964_v15 = vpop.f32.mrf.mxu2 }
 0xc2a   : > { %v6501_v2 = vpop.f32.mrf.mxu0  ;;  %v13924_v27 = vadd.f32 %v6964_v15, %v6596_v10  ;;  %v6878_v52 = vpop.f32.mrf.mxu1  ;;  %v15003_v10 = vld [vmem:[#allocation31_spill] sm:$0xff] }
 0xc2b   : > { %v13927_v49 = vadd.f32 %v6501_v2, %v14998_v60  ;;  %v13930_v35 = vadd.f32 %v6878_v52, %v15000_v42  ;;  %v7729_v60 = vld [vmem:[%s14296_s10 + $0x78] sm:$0xff]  ;;  %v15005_v52 = vld [vmem:[#allocation34_spill] sm:$0xff] }
 0xc2c   : > { %7823 = vperm.xlu0 %9873, %v7729_v60   ;;  %v15009_v60 = vld [vmem:[#allocation27_spill] sm:$0xff] }
 0xc2d   : > { %14999 = vst [vmem:[#allocation17_spill] sm:$0xff] %v13927_v49  ;;  %9651 = vmatmul.msk.bf16.gmra.mxu1 %vm606_vm5, %v9836_v31 }
 0xc2e   : > { %15001 = vst [vmem:[#allocation63_spill] sm:$0xff] %v13930_v35  ;;  %9667 = vmatmul.msk.bf16.gmra.mxu2 %vm606_vm5, %v9836_v31 }
 0xc30   : > { %v6422_v44 = vpop.f32.mrf.mxu3 }
 0xc31   : > { %v6608_v63 = vadd.f32 %v6422_v44, %v13513_v0  ;;  %v6967_v18 = vpop.f32.mrf.mxu2 }
 0xc32   : > { %v6504_v48 = vpop.f32.mrf.mxu0  ;;  %v13935_v21 = vadd.f32 %v6967_v18, %v6599_v1  ;;  %v6880_v2 = vpop.f32.mrf.mxu1  ;;  %v9837_v1 = vld [vmem:[%s14295_s9 + $0x438] sm:$0xff] }
 0xc33   : > { %v13938_v15 = vadd.f32 %v6504_v48, %v15003_v10  ;;  %v13944_v42 = vadd.f32 %v6880_v2, %v15005_v52  ;;  %v15007_v10 = vld [vmem:[#allocation84_spill] sm:$0xff] }
 0xc34   : > { %15002 = vst [vmem:[#allocation118_spill] sm:$0xff] %v13935_v21  ;;  %v15012_v21 = vld [vmem:[#allocation90_spill] sm:$0xff] }
 0xc35   : > { %15004 = vst [vmem:[#allocation122_spill] sm:$0xff] %v13938_v15  ;;  %9635 = vmatmul.msk.bf16.gmra.mxu0 %vm606_vm5, %v9836_v31  ;;  %9525 = vmatmul.msk.bf16.gmra.mxu3 %vm606_vm5, %v13507_v22 }
 0xc36   : > { %15006 = vst [vmem:[#allocation115_spill] sm:$0xff] %v13944_v42 }
 0xc38   : > { %v6986_v0 = vpop.f32.mrf.mxu3 }
 0xc39   : > { %v6969_v18 = vpop.f32.mrf.mxu2 }
 0xc3a   : > { %v6506_v44 = vpop.f32.mrf.mxu0  ;;  %v13952_v48 = vadd.f32 %v6969_v18, %v6602_v5  ;;  %v6883_v2 = vpop.f32.mrf.mxu1  ;;  %v15014_v18 = vld [vmem:[#allocation30_spill] sm:$0xff] }
 0xc3b   : > { %v13955_v35 = vadd.f32 %v6506_v44, %v15007_v10  ;;  %v13958_v52 = vadd.f32 %v6883_v2, %v15009_v60  ;;  %v9838_v2 = vld [vmem:[%s14295_s9 + $0x440] sm:$0xff] }
 0xc3d   : > { %15008 = vst [vmem:[#allocation35_spill] sm:$0xff] %v13955_v35  ;;  %9652 = vmatmul.msk.bf16.gmra.mxu1 %vm606_vm5, %v9837_v1 }
 0xc3e   : > { %15010 = vst [vmem:[#allocation38_spill] sm:$0xff] %v13958_v52  ;;  %9668 = vmatmul.msk.bf16.gmra.mxu2 %vm606_vm5, %v9837_v1 }
 0xc40   : > { %v6988_v22 = vpop.f32.mrf.mxu3 }
 0xc41   : > { %v6972_v31 = vpop.f32.mrf.mxu2 }
 0xc42   : > { %v6509_v42 = vpop.f32.mrf.mxu0  ;;  %v13962_v15 = vadd.f32 %v6972_v31, %v6605_v4  ;;  %v6885_v5 = vpop.f32.mrf.mxu1 }
 0xc43   : > { %v13965_v49 = vadd.f32 %v6509_v42, %v15012_v21  ;;  %v13968_v44 = vadd.f32 %v6885_v5, %v15014_v18  ;;  %v15017_v21 = vld [vmem:[#allocation93_spill] sm:$0xff]  ;;  %v15019_v18 = vld [vmem:[#allocation96_spill] sm:$0xff] }
 0xc44   : > { %15011 = vst [vmem:[#allocation20_spill] sm:$0xff] %v13962_v15 }
 0xc45   : > { %15013 = vst [vmem:[#allocation120_spill] sm:$0xff] %v13965_v49  ;;  %9636 = vmatmul.msk.bf16.gmra.mxu0 %vm606_vm5, %v9837_v1  ;;  %9526 = vmatmul.msk.bf16.gmra.mxu3 %vm606_vm5, %v13538_v38  ;;  %v7732_v1 = vld [vmem:[%s14296_s10 + $0x90] sm:$0xff]  ;;  %v7754_v49 = vpop.permute.xlu0 %7753 }
 0xc46   : > { %15015 = vst [vmem:[#allocation123_spill] sm:$0xff] %v13968_v44  ;;  %7838 = vperm.xlu0 %9873, %v7732_v1   ;;  %v7749_v44 = vpop.permute.xlu2 %7748 }
 0xc48   : > { %v6991_v10 = vpop.f32.mrf.mxu3 }
 0xc49   : > { %v6974_v4 = vpop.f32.mrf.mxu2 }
 0xc4a   : > { %v6511_v60 = vpop.f32.mrf.mxu0  ;;  %v13977_v31 = vadd.f32 %v6974_v4, %v6608_v63  ;;  %v7449_v5 = vpop.f32.mrf.mxu1  ;;  %v15020_v4 = vld [vmem:[#allocation91_spill] sm:$0xff] }
 0xc4b   : > { %v13980_v42 = vadd.f32 %v6511_v60, %v15017_v21  ;;  %v7619_v38 = vadd.f32 %v7449_v5, %v15019_v18  ;;  %v7068_v60 = vadd.f32 %v6986_v0, %v15020_v4  ;;  %v15022_v0 = vld [vmem:[#allocation97_spill] sm:$0xff] }
 0xc4c   : > { %15016 = vst [vmem:[#allocation117_spill] sm:$0xff] %v13977_v31  ;;  %v7071_v4 = vadd.f32 %v6988_v22, %v15022_v0  ;;  %v15024_v22 = vld [vmem:[#allocation94_spill] sm:$0xff] }
 0xc4d   : > { %15018 = vst [vmem:[#allocation119_spill] sm:$0xff] %v13980_v42  ;;  %9653 = vmatmul.msk.bf16.gmra.mxu1 %vm606_vm5, %v9838_v2  ;;  %v7907_v63 = vadd.f32 %v7749_v44, %v7619_v38  ;;  %v15021_v42 = vld [vmem:[#allocation37_spill] sm:$0xff] }
 0xc4e   : > { %9669 = vmatmul.msk.bf16.gmra.mxu2 %vm606_vm5, %v9838_v2 }
 0xc4f   : > { %8003 = vst [vmem:[%s13989_s22 + $0x8] sm:$0xff] %v7907_v63 }
 0xc50   : > { %v6993_v21 = vpop.f32.mrf.mxu3 }
 0xc51   : > { %v7538_v5 = vpop.f32.mrf.mxu2 }
 0xc52   : > { %v7360_v1 = vpop.f32.mrf.mxu0  ;;  %v7620_v18 = vadd.f32 %v7538_v5, %v7068_v60  ;;  %v7451_v52 = vpop.f32.mrf.mxu1 }
 0xc53   : > { %v7618_v31 = vadd.f32 %v7360_v1, %v15021_v42  ;;  %v7622_v15 = vadd.f32 %v7451_v52, %v13541_v29  ;;  %v9839_v29 = vld [vmem:[%s14295_s9 + $0x448] sm:$0xff]  ;;  %v7759_v5 = vpop.permute.xlu1 %7758 }
 0xc54   : > { %v7908_v38 = vadd.f32 %v7749_v44, %v7620_v18 }
 0xc55   : > { %v7906_v35 = vadd.f32 %v7749_v44, %v7618_v31  ;;  %9637 = vmatmul.msk.bf16.gmra.mxu0 %vm606_vm5, %v9838_v2  ;;  %v7910_v63 = vadd.f32 %v7754_v49, %v7622_v15  ;;  %9527 = vmatmul.msk.bf16.gmra.mxu3 %vm606_vm5, %v13569_v7  ;;  %v15023_v2 = vld [vmem:[#allocation103_spill] sm:$0xff] }
 0xc56   : > { %8005 = vst.msk [vmem:[%s13989_s22 + $0x10] sm:$0xff] %vm8004_vm14, %v7908_v38 }
 0xc57   : > { %8002 = vst [vmem:[%s13989_s22] sm:$0xff] %v7906_v35  ;;  %v7735_v35 = vld [vmem:[%s14296_s10 + $0xa8] sm:$0xff] }
 0xc58   : > { %8007 = vst [vmem:[%s13989_s22 + $0x20] sm:$0xff] %v7910_v63  ;;  %v6996_v42 = vpop.f32.mrf.mxu3  ;;  %7853 = vperm.xlu0 %9873, %v7735_v35   ;;  %v15025_v63 = vld [vmem:[#allocation33_spill] sm:$0xff] }
 0xc59   : > { %v7540_v52 = vpop.f32.mrf.mxu2  ;;  %v7074_v0 = vadd.f32 %v6991_v10, %v15025_v63 }
 0xc5a   : > { %v7362_v44 = vpop.f32.mrf.mxu0  ;;  %v7623_v15 = vadd.f32 %v7540_v52, %v7071_v4  ;;  %v7454_v7 = vpop.f32.mrf.mxu1 }
 0xc5b   : > { %v7621_v31 = vadd.f32 %v7362_v44, %v15023_v2  ;;  %v7625_v60 = vadd.f32 %v7454_v7, %v15024_v22  ;;  %v7738_v7 = vld [vmem:[%s14296_s10 + $0xc0] sm:$0xff]  ;;  %v7764_v22 = vpop.permute.xlu2 %7763 }
 0xc5c   : > { %v7911_v1 = vadd.f32 %v7754_v49, %v7623_v15  ;;  %v15026_v15 = vld [vmem:[#allocation40_spill] sm:$0xff] }
 0xc5d   : > { %v7909_v18 = vadd.f32 %v7754_v49, %v7621_v31  ;;  %9654 = vmatmul.msk.bf16.gmra.mxu1 %vm606_vm5, %v9839_v29  ;;  %v7913_v38 = vadd.f32 %v7759_v5, %v7625_v60 }
 0xc5e   : > { %9670 = vmatmul.msk.bf16.gmra.mxu2 %vm606_vm5, %v9839_v29  ;;  %8008 = vst.msk [vmem:[%s13989_s22 + $0x28] sm:$0xff] %vm8004_vm14, %v7911_v1 }
 0xc5f   : > { %8006 = vst [vmem:[%s13989_s22 + $0x18] sm:$0xff] %v7909_v18  ;;  %v15027_v18 = vld [vmem:[#allocation104_spill] sm:$0xff] }
 0xc60   : > { %8010 = vst [vmem:[%s13989_s22 + $0x38] sm:$0xff] %v7913_v38  ;;  %v6998_v4 = vpop.f32.mrf.mxu3  ;;  %7868 = vperm.xlu0 %9873, %v7738_v7   ;;  %v7077_v38 = vadd.f32 %v6993_v21, %v15027_v18  ;;  %v15029_v21 = vld [vmem:[#allocation36_spill] sm:$0xff] }
 0xc61   : > { %v7543_v52 = vpop.f32.mrf.mxu2 }
 0xc62   : > { %v7365_v44 = vpop.f32.mrf.mxu0  ;;  %v7626_v2 = vadd.f32 %v7543_v52, %v7074_v0  ;;  %v7456_v31 = vpop.f32.mrf.mxu1  ;;  %v15028_v52 = vld [vmem:[#allocation98_spill] sm:$0xff] }
 0xc63   : > { %v7624_v49 = vadd.f32 %v7365_v44, %v15026_v15  ;;  %v7628_v35 = vadd.f32 %v7456_v31, %v13572_v50  ;;  %v9840_v50 = vld [vmem:[%s14295_s9 + $0x450] sm:$0xff] }
 0xc64   : > { %v7914_v10 = vadd.f32 %v7759_v5, %v7626_v2  ;;  %v7741_v2 = vld [vmem:[%s14296_s10 + $0xd8] sm:$0xff] }
 0xc65   : > { %v7912_v60 = vadd.f32 %v7759_v5, %v7624_v49  ;;  %9638 = vmatmul.msk.bf16.gmra.mxu0 %vm606_vm5, %v9839_v29  ;;  %v7916_v1 = vadd.f32 %v7764_v22, %v7628_v35  ;;  %9528 = vmatmul.msk.bf16.gmra.mxu3 %vm606_vm5, %v13600_v32  ;;  %v7769_v49 = vpop.permute.xlu1 %7768 }
 0xc66   : > { %8011 = vst.msk [vmem:[%s13989_s22 + $0x40] sm:$0xff] %vm8004_vm14, %v7914_v10  ;;  %v15030_v10 = vld [vmem:[#allocation102_spill] sm:$0xff] }
 0xc67   : > { %8009 = vst [vmem:[%s13989_s22 + $0x30] sm:$0xff] %v7912_v60  ;;  %v7080_v60 = vadd.f32 %v6996_v42, %v15030_v10  ;;  %v15033_v10 = vld [vmem:[#allocation43_spill] sm:$0xff] }
 0xc68   : > { %8013 = vst [vmem:[%s13989_s22 + $0x50] sm:$0xff] %v7916_v1  ;;  %v7001_v63 = vpop.f32.mrf.mxu3  ;;  %7883 = vperm.xlu0 %9873, %v7741_v2  }
 0xc69   : > { %v7545_v5 = vpop.f32.mrf.mxu2 }
 0xc6a   : > { %v7367_v0 = vpop.f32.mrf.mxu0  ;;  %v7629_v29 = vadd.f32 %v7545_v5, %v7077_v38  ;;  %v7459_v32 = vpop.f32.mrf.mxu1 }
 0xc6b   : > { %v7627_v44 = vadd.f32 %v7367_v0, %v15028_v52  ;;  %v7631_v15 = vadd.f32 %v7459_v32, %v15029_v21  ;;  %v15031_v0 = vld [vmem:[#allocation100_spill] sm:$0xff]  ;;  %v7774_v32 = vpop.permute.xlu2 %7773 }
 0xc6c   : > { %v7917_v31 = vadd.f32 %v7764_v22, %v7629_v29  ;;  %v7744_v52 = vld [vmem:[%s14296_s10 + $0xf0] sm:$0xff] }
 0xc6d   : > { %v7915_v7 = vadd.f32 %v7764_v22, %v7627_v44  ;;  %9655 = vmatmul.msk.bf16.gmra.mxu1 %vm606_vm5, %v9840_v50  ;;  %v7919_v35 = vadd.f32 %v7769_v49, %v7631_v15  ;;  %v15032_v15 = vld [vmem:[#allocation46_spill] sm:$0xff] }
 0xc6e   : > { %9671 = vmatmul.msk.bf16.gmra.mxu2 %vm606_vm5, %v9840_v50  ;;  %8014 = vst.msk [vmem:[%s13989_s22 + $0x58] sm:$0xff] %vm8004_vm14, %v7917_v31  ;;  %v7083_v31 = vadd.f32 %v6998_v4, %v15032_v15  ;;  %v7784_v15 = vpop.permute.xlu1 %7783 }
 0xc6f   : > { %8012 = vst [vmem:[%s13989_s22 + $0x48] sm:$0xff] %v7915_v7 }
 0xc70   : > { %8016 = vst [vmem:[%s13989_s22 + $0x68] sm:$0xff] %v7919_v35  ;;  %v7003_v1 = vpop.f32.mrf.mxu3  ;;  %7898 = vperm.xlu0 %9873, %v7744_v52  }
 0xc71   : > { %v7548_v18 = vpop.f32.mrf.mxu2 }
 0xc72   : > { %v7370_v38 = vpop.f32.mrf.mxu0  ;;  %v7632_v5 = vadd.f32 %v7548_v18, %v7080_v60  ;;  %v7461_v29 = vpop.f32.mrf.mxu1 }
 0xc73   : > { %v7630_v22 = vadd.f32 %v7370_v38, %v15031_v0  ;;  %v7634_v44 = vadd.f32 %v7461_v29, %v13603_v33  ;;  %v9841_v33 = vld [vmem:[%s14295_s9 + $0x458] sm:$0xff]  ;;  %v7779_v18 = vpop.permute.xlu0 %7778 }
 0xc74   : > { %v7920_v42 = vadd.f32 %v7769_v49, %v7632_v5 }
 0xc75   : > { %v7918_v2 = vadd.f32 %v7769_v49, %v7630_v22  ;;  %9639 = vmatmul.msk.bf16.gmra.mxu0 %vm606_vm5, %v9840_v50  ;;  %v7922_v21 = vadd.f32 %v7774_v32, %v7634_v44  ;;  %9529 = vmatmul.msk.bf16.gmra.mxu3 %vm606_vm5, %v13631_v6  ;;  %v7086_v22 = vadd.f32 %v7001_v63, %v13619_v46  ;;  %v15035_v46 = vld [vmem:[#allocation99_spill] sm:$0xff] }
 0xc76   : > { %8017 = vst.msk [vmem:[%s13989_s22 + $0x70] sm:$0xff] %vm8004_vm14, %v7920_v42  ;;  %v15034_v42 = vld [vmem:[#allocation105_spill] sm:$0xff]  ;;  %v7089_v63 = vadd.f32 %v7003_v1, %v15035_v46 }
 0xc77   : > { %8015 = vst [vmem:[%s13989_s22 + $0x60] sm:$0xff] %v7918_v2 }
 0xc78   : > { %8019 = vst [vmem:[%s13989_s22 + $0x80] sm:$0xff] %v7922_v21  ;;  %v7006_v7 = vpop.f32.mrf.mxu3 }
 0xc79   : > { %v7550_v49 = vpop.f32.mrf.mxu2 }
 0xc7a   : > { %v7372_v50 = vpop.f32.mrf.mxu0  ;;  %v7635_v35 = vadd.f32 %v7550_v49, %v7083_v31  ;;  %v7464_v6 = vpop.f32.mrf.mxu1 }
 0xc7b   : > { %v7633_v60 = vadd.f32 %v7372_v50, %v15033_v10  ;;  %v7637_v38 = vadd.f32 %v7464_v6, %v13616_v59  ;;  %v15036_v6 = vld [vmem:[#allocation101_spill] sm:$0xff] }
 0xc7c   : > { %v7923_v5 = vadd.f32 %v7774_v32, %v7635_v35 }
 0xc7d   : > { %v7921_v4 = vadd.f32 %v7774_v32, %v7633_v60  ;;  %9656 = vmatmul.msk.bf16.gmra.mxu1 %vm606_vm5, %v9841_v33  ;;  %v7925_v0 = vadd.f32 %v7779_v18, %v7637_v38 }
 0xc7e   : > { %9672 = vmatmul.msk.bf16.gmra.mxu2 %vm606_vm5, %v9841_v33  ;;  %8020 = vst.msk [vmem:[%s13989_s22 + $0x88] sm:$0xff] %vm8004_vm14, %v7923_v5  ;;  %v7789_v5 = vpop.permute.xlu2 %7788 }
 0xc7f   : > { %8018 = vst [vmem:[%s13989_s22 + $0x78] sm:$0xff] %v7921_v4 }
 0xc80   : > { %8022 = vst [vmem:[%s13989_s22 + $0x98] sm:$0xff] %v7925_v0  ;;  %v7008_v29 = vpop.f32.mrf.mxu3 }
 0xc81   : > { %v7553_v52 = vpop.f32.mrf.mxu2 }
 0xc82   : > { %v7375_v44 = vpop.f32.mrf.mxu0  ;;  %v7638_v59 = vadd.f32 %v7553_v52, %v7086_v22  ;;  %v7466_v2 = vpop.f32.mrf.mxu1  ;;  %v15037_v22 = vld [vmem:[#allocation42_spill] sm:$0xff] }
 0xc83   : > { %v7636_v32 = vadd.f32 %v7375_v44, %v15034_v42  ;;  %v7640_v21 = vadd.f32 %v7466_v2, %v13634_v62  ;;  %v9842_v62 = vld [vmem:[%s14295_s9 + $0x460] sm:$0xff]  ;;  %v7092_v52 = vadd.f32 %v7006_v7, %v15037_v22  ;;  %v15039_v7 = vld [vmem:[#allocation45_spill] sm:$0xff] }
 0xc84   : > { %v7926_v31 = vadd.f32 %v7779_v18, %v7638_v59 }
 0xc85   : > { %v7924_v49 = vadd.f32 %v7779_v18, %v7636_v32  ;;  %9640 = vmatmul.msk.bf16.gmra.mxu0 %vm606_vm5, %v9841_v33  ;;  %v7928_v50 = vadd.f32 %v7784_v15, %v7640_v21  ;;  %9530 = vmatmul.msk.bf16.gmra.mxu3 %vm606_vm5, %v13662_v34  ;;  %v15038_v32 = vld [vmem:[#allocation39_spill] sm:$0xff] }
 0xc86   : > { %8023 = vst.msk [vmem:[%s13989_s22 + $0xa0] sm:$0xff] %vm8004_vm14, %v7926_v31 }
 0xc87   : > { %8021 = vst [vmem:[%s13989_s22 + $0x90] sm:$0xff] %v7924_v49 }
 0xc88   : > { %8025 = vst [vmem:[%s13989_s22 + $0xb0] sm:$0xff] %v7928_v50  ;;  %v7011_v35 = vpop.f32.mrf.mxu3 }
 0xc89   : > { %v7555_v10 = vpop.f32.mrf.mxu2 }
 0xc8a   : > { %v7377_v33 = vpop.f32.mrf.mxu0  ;;  %v7641_v60 = vadd.f32 %v7555_v10, %v7089_v63  ;;  %v7469_v34 = vpop.f32.mrf.mxu1  ;;  %v7095_v63 = vadd.f32 %v7008_v29, %v15039_v7 }
 0xc8b   : > { %v7639_v18 = vadd.f32 %v7377_v33, %v15036_v6  ;;  %v7643_v38 = vadd.f32 %v7469_v34, %v13647_v53  ;;  %v15040_v6 = vld [vmem:[#allocation49_spill] sm:$0xff] }
 0xc8c   : > { %v7929_v4 = vadd.f32 %v7784_v15, %v7641_v60 }
 0xc8d   : > { %v7927_v1 = vadd.f32 %v7784_v15, %v7639_v18  ;;  %9657 = vmatmul.msk.bf16.gmra.mxu1 %vm606_vm5, %v9842_v62  ;;  %v7931_v0 = vadd.f32 %v7789_v5, %v7643_v38  ;;  %v7794_v15 = vpop.permute.xlu0 %7793  ;;  %v7799_v38 = vpop.permute.xlu1 %7798 }
 0xc8e   : > { %9673 = vmatmul.msk.bf16.gmra.mxu2 %vm606_vm5, %v9842_v62  ;;  %8026 = vst.msk [vmem:[%s13989_s22 + $0xb8] sm:$0xff] %vm8004_vm14, %v7929_v4 }
 0xc8f   : > { %8024 = vst [vmem:[%s13989_s22 + $0xa8] sm:$0xff] %v7927_v1  ;;  %v15041_v1 = vld [vmem:[#allocation48_spill] sm:$0xff] }
 0xc90   : > { %8028 = vst [vmem:[%s13989_s22 + $0xc8] sm:$0xff] %v7931_v0  ;;  %v7013_v44 = vpop.f32.mrf.mxu3  ;;  %v7098_v0 = vadd.f32 %v7011_v35, %v15041_v1  ;;  %v15043_v35 = vld [vmem:[#allocation51_spill] sm:$0xff] }
 0xc91   : > { %v7558_v59 = vpop.f32.mrf.mxu2 }
 0xc92   : > { %v7380_v53 = vpop.f32.mrf.mxu0  ;;  %v7644_v42 = vadd.f32 %v7558_v59, %v7092_v52  ;;  %v7471_v21 = vpop.f32.mrf.mxu1 }
 0xc93   : > { %v7642_v2 = vadd.f32 %v7380_v53, %v15038_v32  ;;  %v7646_v31 = vadd.f32 %v7471_v21, %v13665_v11  ;;  %v9843_v11 = vld [vmem:[%s14295_s9 + $0x468] sm:$0xff]  ;;  %v15042_v53 = vld [vmem:[#allocation52_spill] sm:$0xff]  ;;  %v7804_v21 = vpop.permute.xlu2 %7803 }
 0xc94   : > { %v7932_v49 = vadd.f32 %v7789_v5, %v7644_v42 }
 0xc95   : > { %v7930_v50 = vadd.f32 %v7789_v5, %v7642_v2  ;;  %9641 = vmatmul.msk.bf16.gmra.mxu0 %vm606_vm5, %v9842_v62  ;;  %v7934_v46 = vadd.f32 %v7794_v15, %v7646_v31  ;;  %9531 = vmatmul.msk.bf16.gmra.mxu3 %vm606_vm5, %v13693_v56 }
 0xc96   : > { %8029 = vst.msk [vmem:[%s13989_s22 + $0xd0] sm:$0xff] %vm8004_vm14, %v7932_v49 }
 0xc97   : > { %8027 = vst [vmem:[%s13989_s22 + $0xc0] sm:$0xff] %v7930_v50  ;;  %v7101_v50 = vadd.f32 %v7013_v44, %v15043_v35 }
 0xc98   : > { %8031 = vst [vmem:[%s13989_s22 + $0xe0] sm:$0xff] %v7934_v46  ;;  %v7016_v10 = vpop.f32.mrf.mxu3 }
 0xc99   : > { %v7560_v33 = vpop.f32.mrf.mxu2 }
 0xc9a   : > { %v7382_v62 = vpop.f32.mrf.mxu0  ;;  %v7647_v60 = vadd.f32 %v7560_v33, %v7095_v63  ;;  %v7474_v56 = vpop.f32.mrf.mxu1  ;;  %v15044_v33 = vld [vmem:[#allocation55_spill] sm:$0xff] }
 0xc9b   : > { %v7645_v18 = vadd.f32 %v7382_v62, %v15040_v6  ;;  %v7649_v34 = vadd.f32 %v7474_v56, %v13678_v61 }
 0xc9c   : > { %v7935_v5 = vadd.f32 %v7794_v15, %v7647_v60  ;;  %v7809_v60 = vpop.permute.xlu0 %7808 }
 0xc9d   : > { %v7933_v29 = vadd.f32 %v7794_v15, %v7645_v18  ;;  %9658 = vmatmul.msk.bf16.gmra.mxu1 %vm606_vm5, %v9843_v11  ;;  %v7937_v4 = vadd.f32 %v7799_v38, %v7649_v34  ;;  %v7104_v34 = vadd.f32 %v7016_v10, %v13712_v41 }
 0xc9e   : > { %9674 = vmatmul.msk.bf16.gmra.mxu2 %vm606_vm5, %v9843_v11  ;;  %8032 = vst.msk [vmem:[%s13989_s22 + $0xe8] sm:$0xff] %vm8004_vm14, %v7935_v5 }
 0xc9f   : > { %8030 = vst [vmem:[%s13989_s22 + $0xd8] sm:$0xff] %v7933_v29 }
 0xca0   : > { %8034 = vst [vmem:[%s13989_s22 + $0xf8] sm:$0xff] %v7937_v4  ;;  %v7018_v22 = vpop.f32.mrf.mxu3 }
 0xca1   : > { %v7563_v52 = vpop.f32.mrf.mxu2  ;;  %v7107_v41 = vadd.f32 %v7018_v22, %v13730_v28 }
 0xca2   : > { %v7385_v61 = vpop.f32.mrf.mxu0  ;;  %v7650_v59 = vadd.f32 %v7563_v52, %v7098_v0  ;;  %v7476_v32 = vpop.f32.mrf.mxu1 }
 0xca3   : > { %v7648_v42 = vadd.f32 %v7385_v61, %v15042_v53  ;;  %v7652_v2 = vadd.f32 %v7476_v32, %v13696_v3  ;;  %v9844_v3 = vld [vmem:[%s14295_s9 + $0x470] sm:$0xff]  ;;  %v7814_v52 = vpop.permute.xlu1 %7813 }
 0xca4   : > { %v7938_v15 = vadd.f32 %v7799_v38, %v7650_v59 }
 0xca5   : > { %v7936_v31 = vadd.f32 %v7799_v38, %v7648_v42  ;;  %9642 = vmatmul.msk.bf16.gmra.mxu0 %vm606_vm5, %v9843_v11  ;;  %v7940_v49 = vadd.f32 %v7804_v21, %v7652_v2  ;;  %9532 = vmatmul.msk.bf16.gmra.mxu3 %vm606_vm5, %v13724_v37  ;;  %v15045_v2 = vld [vmem:[#allocation58_spill] sm:$0xff] }
 0xca6   : > { %8035 = vst.msk [vmem:[%s13989_s22 + $0x100] sm:$0xff] %vm8004_vm14, %v7938_v15 }
 0xca7   : > { %8033 = vst [vmem:[%s13989_s22 + $0xf0] sm:$0xff] %v7936_v31 }
 0xca8   : > { %8037 = vst [vmem:[%s13989_s22 + $0x110] sm:$0xff] %v7940_v49  ;;  %v7021_v46 = vpop.f32.mrf.mxu3  ;;  %v7819_v49 = vpop.permute.xlu2 %7818 }
 0xca9   : > { %v7565_v7 = vpop.f32.mrf.mxu2 }
 0xcaa   : > { %v7387_v63 = vpop.f32.mrf.mxu0  ;;  %v7653_v11 = vadd.f32 %v7565_v7, %v7101_v50  ;;  %v7479_v37 = vpop.f32.mrf.mxu1  ;;  %v7110_v50 = vadd.f32 %v7021_v46, %v13743_v23 }
 0xcab   : > { %v7651_v62 = vadd.f32 %v7387_v63, %v15044_v33  ;;  %v7655_v6 = vadd.f32 %v7479_v37, %v13709_v25 }
 0xcac   : > { %v7941_v18 = vadd.f32 %v7804_v21, %v7653_v11 }
 0xcad   : > { %v7939_v44 = vadd.f32 %v7804_v21, %v7651_v62  ;;  %9659 = vmatmul.msk.bf16.gmra.mxu1 %vm606_vm5, %v9844_v3  ;;  %v7943_v56 = vadd.f32 %v7809_v60, %v7655_v6  ;;  %v7824_v62 = vpop.permute.xlu0 %7823 }
 0xcae   : > { %9675 = vmatmul.msk.bf16.gmra.mxu2 %vm606_vm5, %v9844_v3  ;;  %8038 = vst.msk [vmem:[%s13989_s22 + $0x118] sm:$0xff] %vm8004_vm14, %v7941_v18 }
 0xcaf   : > { %8036 = vst [vmem:[%s13989_s22 + $0x108] sm:$0xff] %v7939_v44 }
 0xcb0   : > { %8040 = vst [vmem:[%s13989_s22 + $0x128] sm:$0xff] %v7943_v56  ;;  %v7023_v38 = vpop.f32.mrf.mxu3 }
 0xcb1   : > { %v7568_v5 = vpop.f32.mrf.mxu2  ;;  %v7113_v23 = vadd.f32 %v7023_v38, %v13762_v57 }
 0xcb2   : > { %v7390_v29 = vpop.f32.mrf.mxu0  ;;  %v7656_v25 = vadd.f32 %v7568_v5, %v7104_v34  ;;  %v7481_v1 = vpop.f32.mrf.mxu1  ;;  %v15046_v34 = vld [vmem:[#allocation108_spill] sm:$0xff] }
 0xcb3   : > { %v7654_v4 = vadd.f32 %v7390_v29, %v13702_v14  ;;  %v7658_v0 = vadd.f32 %v7481_v1, %v13727_v12  ;;  %v9845_v14 = vld [vmem:[%s14295_s9 + $0x478] sm:$0xff] }
 0xcb4   : > { %v7944_v61 = vadd.f32 %v7809_v60, %v7656_v25  ;;  %v7829_v25 = vpop.permute.xlu1 %7828 }
 0xcb5   : > { %v7942_v59 = vadd.f32 %v7809_v60, %v7654_v4  ;;  %9643 = vmatmul.msk.bf16.gmra.mxu0 %vm606_vm5, %v9844_v3  ;;  %v7946_v53 = vadd.f32 %v7814_v52, %v7658_v0 }
 0xcb6   : > { %8041 = vst.msk [vmem:[%s13989_s22 + $0x130] sm:$0xff] %vm8004_vm14, %v7944_v61 }
 0xcb7   : > { %8039 = vst [vmem:[%s13989_s22 + $0x120] sm:$0xff] %v7942_v59 }
 0xcb8   : > { %8043 = vst [vmem:[%s13989_s22 + $0x140] sm:$0xff] %v7946_v53  ;;  %v7026_v10 = vpop.f32.mrf.mxu3 }
 0xcb9   : > { %v7570_v12 = vpop.f32.mrf.mxu2  ;;  %v7116_v57 = vadd.f32 %v7026_v10, %v13773_v13 }
 0xcba   : > { %v7392_v42 = vpop.f32.mrf.mxu0  ;;  %v7659_v32 = vadd.f32 %v7570_v12, %v7107_v41  ;;  %v7484_v15 = vpop.f32.mrf.mxu1 }
 0xcbb   : > { %v7657_v21 = vadd.f32 %v7392_v42, %v15045_v2  ;;  %v7661_v31 = vadd.f32 %v7484_v15, %v13740_v54 }
 0xcbc   : > { %v7947_v35 = vadd.f32 %v7814_v52, %v7659_v32 }
 0xcbd   : > { %v7945_v28 = vadd.f32 %v7814_v52, %v7657_v21  ;;  %9660 = vmatmul.msk.bf16.gmra.mxu1 %vm606_vm5, %v9845_v14  ;;  %v7949_v22 = vadd.f32 %v7819_v49, %v7661_v31  ;;  %v7839_v31 = vpop.permute.xlu0 %7838 }
 0xcbe   : > { %9676 = vmatmul.msk.bf16.gmra.mxu2 %vm606_vm5, %v9845_v14  ;;  %8044 = vst.msk [vmem:[%s13989_s22 + $0x148] sm:$0xff] %vm8004_vm14, %v7947_v35 }
 0xcbf   : > { %8042 = vst [vmem:[%s13989_s22 + $0x138] sm:$0xff] %v7945_v28 }
 0xcc0   : > { %8046 = vst [vmem:[%s13989_s22 + $0x158] sm:$0xff] %v7949_v22  ;;  %v7028_v3 = vpop.f32.mrf.mxu3 }
 0xcc1   : > { %v7573_v7 = vpop.f32.mrf.mxu2  ;;  %v7119_v13 = vadd.f32 %v7028_v3, %v13788_v20 }
 0xcc2   : > { %v7395_v54 = vpop.f32.mrf.mxu0  ;;  %v7662_v63 = vadd.f32 %v7573_v7, %v7110_v50  ;;  %v7486_v33 = vpop.f32.mrf.mxu1 }
 0xcc3   : > { %v7660_v11 = vadd.f32 %v7395_v54, %v13733_v58  ;;  %v7664_v37 = vadd.f32 %v7486_v33, %v13759_v19 }
 0xcc4   : > { %v7950_v60 = vadd.f32 %v7819_v49, %v7662_v63 }
 0xcc5   : > { %v7948_v6 = vadd.f32 %v7819_v49, %v7660_v11  ;;  %9644 = vmatmul.msk.bf16.gmra.mxu0 %vm606_vm5, %v9845_v14  ;;  %v7952_v18 = vadd.f32 %v7824_v62, %v7664_v37  ;;  %v7834_v14 = vpop.permute.xlu2 %7833  ;;  %v7844_v11 = vpop.permute.xlu1 %7843 }
 0xcc6   : > { %8047 = vst.msk [vmem:[%s13989_s22 + $0x160] sm:$0xff] %vm8004_vm14, %v7950_v60 }
 0xcc7   : > { %8045 = vst [vmem:[%s13989_s22 + $0x150] sm:$0xff] %v7948_v6 }
 0xcc8   : > { %8049 = vst [vmem:[%s13989_s22 + $0x170] sm:$0xff] %v7952_v18  ;;  %v7031_v46 = vpop.f32.mrf.mxu3 }
 0xcc9   : > { %v7575_v58 = vpop.f32.mrf.mxu2  ;;  %v7122_v20 = vadd.f32 %v7031_v46, %v13799_v36  ;;  %v15047_v36 = vld [vmem:[#allocation60_spill] sm:$0xff]  ;;  %v15048_v46 = vld [vmem:[#allocation106_spill] sm:$0xff] }
 0xcca   : > { %v7397_v44 = vpop.f32.mrf.mxu0  ;;  %v7665_v56 = vadd.f32 %v7575_v58, %v7113_v23  ;;  %v7489_v5 = vpop.f32.mrf.mxu1 }
 0xccb   : > { %v7663_v19 = vadd.f32 %v7397_v44, %v15046_v34  ;;  %v7667_v29 = vadd.f32 %v7489_v5, %v13770_v43 }
 0xccc   : > { %v7953_v4 = vadd.f32 %v7824_v62, %v7665_v56 }
 0xccd   : > { %v7951_v1 = vadd.f32 %v7824_v62, %v7663_v19  ;;  %v7955_v0 = vadd.f32 %v7829_v25, %v7667_v29  ;;  %v7849_v56 = vpop.permute.xlu2 %7848 }
 0xcce   : > { %8050 = vst.msk [vmem:[%s13989_s22 + $0x178] sm:$0xff] %vm8004_vm14, %v7953_v4 }
 0xccf   : > { %8048 = vst [vmem:[%s13989_s22 + $0x168] sm:$0xff] %v7951_v1 }
 0xcd0   : > { %8052 = vst [vmem:[%s13989_s22 + $0x188] sm:$0xff] %v7955_v0  ;;  %v7033_v38 = vpop.f32.mrf.mxu3 }
 0xcd1   : > { %v7578_v52 = vpop.f32.mrf.mxu2  ;;  %v7125_v60 = vadd.f32 %v7033_v38, %v15047_v36 }
 0xcd2   : > { %v7400_v61 = vpop.f32.mrf.mxu0  ;;  %v7668_v59 = vadd.f32 %v7578_v52, %v7116_v57  ;;  %v7491_v43 = vpop.f32.mrf.mxu1 }
 0xcd3   : > { %v7666_v53 = vadd.f32 %v7400_v61, %v13765_v16  ;;  %v7670_v41 = vadd.f32 %v7491_v43, %v13785_v51 }
 0xcd4   : > { %v7956_v12 = vadd.f32 %v7829_v25, %v7668_v59  ;;  %v7854_v59 = vpop.permute.xlu0 %7853 }
 0xcd5   : > { %v7954_v42 = vadd.f32 %v7829_v25, %v7666_v53  ;;  %v7958_v32 = vadd.f32 %v7834_v14, %v7670_v41 }
 0xcd6   : > { %8053 = vst.msk [vmem:[%s13989_s22 + $0x190] sm:$0xff] %vm8004_vm14, %v7956_v12  ;;  %v15050_v12 = vld [vmem:[#allocation107_spill] sm:$0xff] }
 0xcd7   : > { %8051 = vst [vmem:[%s13989_s22 + $0x180] sm:$0xff] %v7954_v42 }
 0xcd8   : > { %8055 = vst [vmem:[%s13989_s22 + $0x1a0] sm:$0xff] %v7958_v32  ;;  %v7036_v10 = vpop.f32.mrf.mxu3  ;;  %v15051_v32 = vld [vmem:[#allocation110_spill] sm:$0xff] }
 0xcd9   : > { %v7580_v2 = vpop.f32.mrf.mxu2  ;;  %v7128_v29 = vadd.f32 %v7036_v10, %v13828_v55  ;;  %v15049_v55 = vld [vmem:[#allocation54_spill] sm:$0xff]  ;;  %v7859_v10 = vpop.permute.xlu1 %7858 }
 0xcda   : > { %v7402_v21 = vpop.f32.mrf.mxu0  ;;  %v7671_v16 = vadd.f32 %v7580_v2, %v7119_v13  ;;  %v7494_v51 = vpop.f32.mrf.mxu1 }
 0xcdb   : > { %v7669_v15 = vadd.f32 %v7402_v21, %v13776_v24  ;;  %v7673_v49 = vadd.f32 %v7494_v51, %v13796_v30  ;;  %v15052_v51 = vld [vmem:[#allocation109_spill] sm:$0xff] }
 0xcdc   : > { %v7959_v35 = vadd.f32 %v7834_v14, %v7671_v16 }
 0xcdd   : > { %v7957_v28 = vadd.f32 %v7834_v14, %v7669_v15  ;;  %v7961_v22 = vadd.f32 %v7839_v31, %v7673_v49 }
 0xcde   : > { %8056 = vst.msk [vmem:[%s13989_s22 + $0x1a8] sm:$0xff] %vm8004_vm14, %v7959_v35 }
 0xcdf   : > { %8054 = vst [vmem:[%s13989_s22 + $0x198] sm:$0xff] %v7957_v28 }
 0xce0   : > { %8058 = vst [vmem:[%s13989_s22 + $0x1b8] sm:$0xff] %v7961_v22  ;;  %v7038_v50 = vpop.f32.mrf.mxu3  ;;  %v15053_v22 = vld [vmem:[#allocation62_spill] sm:$0xff] }
 0xce1   : > { %v7583_v3 = vpop.f32.mrf.mxu2  ;;  %v7131_v43 = vadd.f32 %v7038_v50, %v15049_v55 }
 0xce2   : > { %v7405_v7 = vpop.f32.mrf.mxu0  ;;  %v7674_v24 = vadd.f32 %v7583_v3, %v7122_v20  ;;  %v7496_v63 = vpop.f32.mrf.mxu1 }
 0xce3   : > { %v7672_v54 = vadd.f32 %v7405_v7, %v13791_v39  ;;  %v7676_v30 = vadd.f32 %v7496_v63, %v13811_v45  ;;  %v7864_v7 = vpop.permute.xlu2 %7863 }
 0xce4   : > { %v7962_v33 = vadd.f32 %v7839_v31, %v7674_v24 }
 0xce5   : > { %v7960_v62 = vadd.f32 %v7839_v31, %v7672_v54  ;;  %v7964_v37 = vadd.f32 %v7844_v11, %v7676_v30  ;;  %v15054_v30 = vld [vmem:[#allocation11_spill] sm:$0xff] }
 0xce6   : > { %8059 = vst.msk [vmem:[%s13989_s22 + $0x1c0] sm:$0xff] %vm8004_vm14, %v7962_v33 }
 0xce7   : > { %8057 = vst [vmem:[%s13989_s22 + $0x1b0] sm:$0xff] %v7960_v62 }
 0xce8   : > { %8061 = vst [vmem:[%s13989_s22 + $0x1d0] sm:$0xff] %v7964_v37  ;;  %v7041_v23 = vpop.f32.mrf.mxu3 }
 0xce9   : > { %v7585_v6 = vpop.f32.mrf.mxu2  ;;  %v7134_v31 = vadd.f32 %v7041_v23, %v15052_v51 }
 0xcea   : > { %v7407_v18 = vpop.f32.mrf.mxu0  ;;  %v7677_v39 = vadd.f32 %v7585_v6, %v7125_v60  ;;  %v7499_v45 = vpop.f32.mrf.mxu1  ;;  %v15055_v60 = vld [vmem:[#allocation57_spill] sm:$0xff] }
 0xceb   : > { %v7675_v58 = vadd.f32 %v7407_v18, %v15048_v46  ;;  %v7679_v44 = vadd.f32 %v7499_v45, %v13825_v47  ;;  %v15056_v18 = vld [vmem:[#allocation59_spill] sm:$0xff] }
 0xcec   : > { %v7965_v34 = vadd.f32 %v7844_v11, %v7677_v39 }
 0xced   : > { %v7963_v19 = vadd.f32 %v7844_v11, %v7675_v58  ;;  %v7967_v5 = vadd.f32 %v7849_v56, %v7679_v44  ;;  %v7869_v58 = vpop.permute.xlu0 %7868  ;;  %v15057_v44 = vld [vmem:[#allocation114_spill] sm:$0xff] }
 0xcee   : > { %8062 = vst.msk [vmem:[%s13989_s22 + $0x1d8] sm:$0xff] %vm8004_vm14, %v7965_v34 }
 0xcef   : > { %8060 = vst [vmem:[%s13989_s22 + $0x1c8] sm:$0xff] %v7963_v19 }
 0xcf0   : > { %8064 = vst [vmem:[%s13989_s22 + $0x1e8] sm:$0xff] %v7967_v5  ;;  %v7043_v38 = vpop.f32.mrf.mxu3 }
 0xcf1   : > { %v7588_v25 = vpop.f32.mrf.mxu2  ;;  %v7137_v11 = vadd.f32 %v7043_v38, %v15054_v30  ;;  %v15064_v30 = vld [vmem:[#allocation113_spill] sm:$0xff] }
 0xcf2   : > { %v7410_v4 = vpop.f32.mrf.mxu0  ;;  %v7680_v1 = vadd.f32 %v7588_v25, %v7128_v29  ;;  %v7501_v57 = vpop.f32.mrf.mxu1  ;;  %v15058_v25 = vld [vmem:[#allocation112_spill] sm:$0xff] }
 0xcf3   : > { %v7678_v0 = vadd.f32 %v7410_v4, %v13820_v9  ;;  %v7682_v47 = vadd.f32 %v7501_v57, %v13840_v26 }
 0xcf4   : > { %v7968_v52 = vadd.f32 %v7849_v56, %v7680_v1 }
 0xcf5   : > { %v7966_v61 = vadd.f32 %v7849_v56, %v7678_v0  ;;  %v7970_v53 = vadd.f32 %v7854_v59, %v7682_v47  ;;  %v15059_v0 = vld [vmem:[#allocation61_spill] sm:$0xff]  ;;  %v7874_v47 = vpop.permute.xlu1 %7873 }
 0xcf6   : > { %8065 = vst.msk [vmem:[%s13989_s22 + $0x1f0] sm:$0xff] %vm8004_vm14, %v7968_v52 }
 0xcf7   : > { %8063 = vst [vmem:[%s13989_s22 + $0x1e0] sm:$0xff] %v7966_v61 }
 0xcf8   : > { %8067 = vst [vmem:[%s13989_s22 + $0x200] sm:$0xff] %v7970_v53  ;;  %v7046_v15 = vpop.f32.mrf.mxu3 }
 0xcf9   : > { %v7590_v41 = vpop.f32.mrf.mxu2  ;;  %v7140_v56 = vadd.f32 %v7046_v15, %v15057_v44 }
 0xcfa   : > { %v7412_v14 = vpop.f32.mrf.mxu0  ;;  %v7683_v9 = vadd.f32 %v7590_v41, %v7131_v43  ;;  %v7504_v26 = vpop.f32.mrf.mxu1 }
 0xcfb   : > { %v7681_v42 = vadd.f32 %v7412_v14, %v15050_v12  ;;  %v7685_v13 = vadd.f32 %v7504_v26, %v15051_v32  ;;  %v15061_v14 = vld [vmem:[#allocation111_spill] sm:$0xff]  ;;  %v7879_v26 = vpop.permute.xlu2 %7878 }
 0xcfc   : > { %v7971_v2 = vadd.f32 %v7854_v59, %v7683_v9 }
 0xcfd   : > { %v7969_v21 = vadd.f32 %v7854_v59, %v7681_v42  ;;  %v7973_v16 = vadd.f32 %v7859_v10, %v7685_v13  ;;  %v15060_v59 = vld [vmem:[#allocation14_spill] sm:$0xff] }
 0xcfe   : > { %8068 = vst.msk [vmem:[%s13989_s22 + $0x208] sm:$0xff] %vm8004_vm14, %v7971_v2 }
 0xcff   : > { %8066 = vst [vmem:[%s13989_s22 + $0x1f8] sm:$0xff] %v7969_v21 }
 0xd00   : > { %8070 = vst [vmem:[%s13989_s22 + $0x218] sm:$0xff] %v7973_v16  ;;  %v7048_v33 = vpop.f32.mrf.mxu3 }
 0xd01   : > { %v7593_v49 = vpop.f32.mrf.mxu2  ;;  %v7143_v53 = vadd.f32 %v7048_v33, %v15060_v59  ;;  %v15065_v33 = vld [vmem:[#allocation118_spill] sm:$0xff]  ;;  %v15070_v59 = vld [vmem:[#allocation20_spill] sm:$0xff] }
 0xd02   : > { %v7415_v35 = vpop.f32.mrf.mxu0  ;;  %v7686_v28 = vadd.f32 %v7593_v49, %v7134_v31  ;;  %v7506_v50 = vpop.f32.mrf.mxu1  ;;  %v15062_v31 = vld [vmem:[#allocation116_spill] sm:$0xff] }
 0xd03   : > { %v7684_v20 = vadd.f32 %v7415_v35, %v15053_v22  ;;  %v7688_v3 = vadd.f32 %v7506_v50, %v13869_v8 }
 0xd04   : > { %v7974_v24 = vadd.f32 %v7859_v10, %v7686_v28  ;;  %v7884_v28 = vpop.permute.xlu0 %7883 }
 0xd05   : > { %v7972_v54 = vadd.f32 %v7859_v10, %v7684_v20  ;;  %v7976_v63 = vadd.f32 %v7864_v7, %v7688_v3 }
 0xd06   : > { %8071 = vst.msk [vmem:[%s13989_s22 + $0x220] sm:$0xff] %vm8004_vm14, %v7974_v24 }
 0xd07   : > { %8069 = vst [vmem:[%s13989_s22 + $0x210] sm:$0xff] %v7972_v54 }
 0xd08   : > { %8073 = vst [vmem:[%s13989_s22 + $0x230] sm:$0xff] %v7976_v63  ;;  %v7051_v5 = vpop.f32.mrf.mxu3 }
 0xd09   : > { %v7595_v62 = vpop.f32.mrf.mxu2  ;;  %v7146_v21 = vadd.f32 %v7051_v5, %v13912_v17  ;;  %v15063_v17 = vld [vmem:[#allocation17_spill] sm:$0xff] }
 0xd0a   : > { %v7417_v37 = vpop.f32.mrf.mxu0  ;;  %v7689_v36 = vadd.f32 %v7595_v62, %v7137_v11  ;;  %v7509_v8 = vpop.f32.mrf.mxu1 }
 0xd0b   : > { %v7687_v6 = vadd.f32 %v7417_v37, %v15055_v60  ;;  %v7691_v23 = vadd.f32 %v7509_v8, %v15056_v18  ;;  %v7889_v37 = vpop.permute.xlu1 %7888  ;;  %v15066_v8 = vld [vmem:[#allocation122_spill] sm:$0xff] }
 0xd0c   : > { %v7977_v39 = vadd.f32 %v7864_v7, %v7689_v36 }
 0xd0d   : > { %v7975_v46 = vadd.f32 %v7864_v7, %v7687_v6  ;;  %v7979_v45 = vadd.f32 %v7869_v58, %v7691_v23 }
 0xd0e   : > { %8074 = vst.msk [vmem:[%s13989_s22 + $0x238] sm:$0xff] %vm8004_vm14, %v7977_v39 }
 0xd0f   : > { %8072 = vst [vmem:[%s13989_s22 + $0x228] sm:$0xff] %v7975_v46 }
 0xd10   : > { %8076 = vst [vmem:[%s13989_s22 + $0x248] sm:$0xff] %v7979_v45  ;;  %v7053_v32 = vpop.f32.mrf.mxu3  ;;  %v15067_v45 = vld [vmem:[#allocation63_spill] sm:$0xff] }
 0xd11   : > { %v7598_v34 = vpop.f32.mrf.mxu2  ;;  %v7149_v7 = vadd.f32 %v7053_v32, %v15063_v17 }
 0xd12   : > { %v7420_v19 = vpop.f32.mrf.mxu0  ;;  %v7692_v29 = vadd.f32 %v7598_v34, %v7140_v56  ;;  %v7511_v1 = vpop.f32.mrf.mxu1 }
 0xd13   : > { %v7690_v4 = vadd.f32 %v7420_v19, %v15058_v25  ;;  %v7694_v57 = vadd.f32 %v7511_v1, %v15059_v0  ;;  %v7894_v19 = vpop.permute.xlu2 %7893 }
 0xd14   : > { %v7980_v38 = vadd.f32 %v7869_v58, %v7692_v29 }
 0xd15   : > { %v7978_v52 = vadd.f32 %v7869_v58, %v7690_v4  ;;  %v7982_v61 = vadd.f32 %v7874_v47, %v7694_v57  ;;  %v15068_v4 = vld [vmem:[#allocation35_spill] sm:$0xff] }
 0xd16   : > { %8077 = vst.msk [vmem:[%s13989_s22 + $0x250] sm:$0xff] %vm8004_vm14, %v7980_v38  ;;  %v15069_v38 = vld [vmem:[#allocation115_spill] sm:$0xff] }
 0xd17   : > { %8075 = vst [vmem:[%s13989_s22 + $0x240] sm:$0xff] %v7978_v52 }
 0xd18   : > { %8079 = vst [vmem:[%s13989_s22 + $0x260] sm:$0xff] %v7982_v61  ;;  %v7056_v3 = vpop.f32.mrf.mxu3 }
 0xd19   : > { %v7600_v55 = vpop.f32.mrf.mxu2  ;;  %v7152_v18 = vadd.f32 %v7056_v3, %v15066_v8  ;;  %v15075_v3 = vld [vmem:[#allocation123_spill] sm:$0xff] }
 0xd1a   : > { %v7422_v43 = vpop.f32.mrf.mxu0  ;;  %v7695_v41 = vadd.f32 %v7600_v55, %v7143_v53  ;;  %v7514_v12 = vpop.f32.mrf.mxu1 }
 0xd1b   : > { %v7693_v9 = vadd.f32 %v7422_v43, %v15061_v14  ;;  %v7697_v42 = vadd.f32 %v7514_v12, %v13909_v40  ;;  %v7899_v55 = vpop.permute.xlu0 %7898 }
 0xd1c   : > { %v7983_v13 = vadd.f32 %v7874_v47, %v7695_v41 }
 0xd1d   : > { %v7981_v10 = vadd.f32 %v7874_v47, %v7693_v9  ;;  %v7985_v2 = vadd.f32 %v7879_v26, %v7697_v42  ;;  %v15071_v9 = vld [vmem:[#allocation120_spill] sm:$0xff] }
 0xd1e   : > { %8080 = vst.msk [vmem:[%s13989_s22 + $0x268] sm:$0xff] %vm8004_vm14, %v7983_v13  ;;  %v15072_v13 = vld [vmem:[#allocation38_spill] sm:$0xff] }
 0xd1f   : > { %8078 = vst [vmem:[%s13989_s22 + $0x258] sm:$0xff] %v7981_v10 }
 0xd20   : > { %8082 = vst [vmem:[%s13989_s22 + $0x278] sm:$0xff] %v7985_v2  ;;  %v7058_v23 = vpop.f32.mrf.mxu3 }
 0xd21   : > { %v7603_v16 = vpop.f32.mrf.mxu2  ;;  %v7155_v1 = vadd.f32 %v7058_v23, %v15068_v4 }
 0xd22   : > { %v7425_v15 = vpop.f32.mrf.mxu0  ;;  %v7698_v51 = vadd.f32 %v7603_v16, %v7146_v21  ;;  %v7516_v40 = vpop.f32.mrf.mxu1  ;;  %v15073_v21 = vld [vmem:[#allocation117_spill] sm:$0xff] }
 0xd23   : > { %v7696_v49 = vadd.f32 %v7425_v15, %v15062_v31  ;;  %v7700_v35 = vadd.f32 %v7516_v40, %v13924_v27  ;;  %v7904_v15 = vpop.permute.xlu1 %7903 }
 0xd24   : > { %v7986_v22 = vadd.f32 %v7879_v26, %v7698_v51 }
 0xd25   : > { %v7984_v20 = vadd.f32 %v7879_v26, %v7696_v49  ;;  %v7988_v50 = vadd.f32 %v7884_v28, %v7700_v35  ;;  %v15074_v35 = vld [vmem:[#allocation119_spill] sm:$0xff] }
 0xd26   : > { %8083 = vst.msk [vmem:[%s13989_s22 + $0x280] sm:$0xff] %vm8004_vm14, %v7986_v22 }
 0xd27   : > { %8081 = vst [vmem:[%s13989_s22 + $0x270] sm:$0xff] %v7984_v20 }
 0xd28   : > { %8085 = vst [vmem:[%s13989_s22 + $0x290] sm:$0xff] %v7988_v50 }
 0xd29   : > { %v7605_v24 = vpop.f32.mrf.mxu2 }
 0xd2a   : > { %v7427_v54 = vpop.f32.mrf.mxu0  ;;  %v7701_v63 = vadd.f32 %v7605_v24, %v7149_v7  ;;  %v7519_v27 = vpop.f32.mrf.mxu1 }
 0xd2b   : > { %v7699_v11 = vadd.f32 %v7427_v54, %v15064_v30  ;;  %v7703_v62 = vadd.f32 %v7519_v27, %v15065_v33 }
 0xd2c   : > { %v7989_v36 = vadd.f32 %v7884_v28, %v7701_v63 }
 0xd2d   : > { %v7987_v60 = vadd.f32 %v7884_v28, %v7699_v11  ;;  %v7991_v6 = vadd.f32 %v7889_v37, %v7703_v62 }
 0xd2e   : > { %8086 = vst.msk [vmem:[%s13989_s22 + $0x298] sm:$0xff] %vm8004_vm14, %v7989_v36 }
 0xd2f   : > { %8084 = vst [vmem:[%s13989_s22 + $0x288] sm:$0xff] %v7987_v60 }
 0xd30   : > { %8088 = vst [vmem:[%s13989_s22 + $0x2a8] sm:$0xff] %v7991_v6 }
 0xd31   : > { %v7608_v39 = vpop.f32.mrf.mxu2 }
 0xd32   : > { %v7430_v46 = vpop.f32.mrf.mxu0  ;;  %v7704_v58 = vadd.f32 %v7608_v39, %v7152_v18  ;;  %v7521_v56 = vpop.f32.mrf.mxu1 }
 0xd33   : > { %v7702_v44 = vadd.f32 %v7430_v46, %v15067_v45  ;;  %v7706_v34 = vadd.f32 %v7521_v56, %v13952_v48  ;;  %v7061_v48 = vpop.f32.mrf.mxu3 }
 0xd34   : > { %v7992_v5 = vadd.f32 %v7889_v37, %v7704_v58  ;;  %v7158_v12 = vadd.f32 %v7061_v48, %v15071_v9 }
 0xd35   : > { %v7990_v29 = vadd.f32 %v7889_v37, %v7702_v44  ;;  %v7994_v25 = vadd.f32 %v7894_v19, %v7706_v34 }
 0xd36   : > { %8089 = vst.msk [vmem:[%s13989_s22 + $0x2b0] sm:$0xff] %vm8004_vm14, %v7992_v5 }
 0xd37   : > { %8087 = vst [vmem:[%s13989_s22 + $0x2a0] sm:$0xff] %v7990_v29 }
 0xd38   : > { %8091 = vst [vmem:[%s13989_s22 + $0x2c0] sm:$0xff] %v7994_v25 }
 0xd39   : > { %v7610_v0 = vpop.f32.mrf.mxu2 }
 0xd3a   : > { %v7432_v57 = vpop.f32.mrf.mxu0  ;;  %v7707_v47 = vadd.f32 %v7610_v0, %v7155_v1  ;;  %v7524_v61 = vpop.f32.mrf.mxu1 }
 0xd3b   : > { %v7705_v52 = vadd.f32 %v7432_v57, %v15069_v38  ;;  %v7709_v53 = vadd.f32 %v7524_v61, %v15070_v59  ;;  %v7063_v49 = vpop.f32.mrf.mxu3 }
 0xd3c   : > { %v7995_v43 = vadd.f32 %v7894_v19, %v7707_v47  ;;  %v7161_v28 = vadd.f32 %v7063_v49, %v15074_v35 }
 0xd3d   : > { %v7993_v41 = vadd.f32 %v7894_v19, %v7705_v52  ;;  %v7997_v14 = vadd.f32 %v7899_v55, %v7709_v53 }
 0xd3e   : > { %8092 = vst.msk [vmem:[%s13989_s22 + $0x2c8] sm:$0xff] %vm8004_vm14, %v7995_v43 }
 0xd3f   : > { %8090 = vst [vmem:[%s13989_s22 + $0x2b8] sm:$0xff] %v7993_v41 }
 0xd40   : > { %8094 = vst [vmem:[%s13989_s22 + $0x2d8] sm:$0xff] %v7997_v14 }
 0xd41   : > { %v7613_v42 = vpop.f32.mrf.mxu2 }
 0xd42   : > { %v7435_v26 = vpop.f32.mrf.mxu0  ;;  %v7710_v32 = vadd.f32 %v7613_v42, %v7158_v12  ;;  %v7526_v2 = vpop.f32.mrf.mxu1 }
 0xd43   : > { %v7708_v10 = vadd.f32 %v7435_v26, %v15072_v13  ;;  %v7712_v16 = vadd.f32 %v7526_v2, %v15073_v21 }
 0xd44   : > { %v7998_v51 = vadd.f32 %v7899_v55, %v7710_v32 }
 0xd45   : > { %v7996_v31 = vadd.f32 %v7899_v55, %v7708_v10  ;;  %v8000_v40 = vadd.f32 %v7904_v15, %v7712_v16 }
 0xd46   : > { %8095 = vst.msk [vmem:[%s13989_s22 + $0x2e0] sm:$0xff] %vm8004_vm14, %v7998_v51 }
 0xd47   : > { %8093 = vst [vmem:[%s13989_s22 + $0x2d0] sm:$0xff] %v7996_v31 }
 0xd48   : > { %8097 = vst [vmem:[%s13989_s22 + $0x2f0] sm:$0xff] %v8000_v40 }
 0xd49   : > { %v7615_v22 = vpop.f32.mrf.mxu2 }
 0xd4a   : > { %v7437_v20 = vpop.f32.mrf.mxu0  ;;  %v7713_v50 = vadd.f32 %v7615_v22, %v7161_v28 }
 0xd4b   : > { %v7711_v17 = vadd.f32 %v7437_v20, %v15075_v3 }
 0xd4c   : > { %v8001_v7 = vadd.f32 %v7904_v15, %v7713_v50 }
 0xd4d   : > { %v7999_v24 = vadd.f32 %v7904_v15, %v7711_v17 }
 0xd4e   : > { %8098 = vst.msk [vmem:[%s13989_s22 + $0x2f8] sm:$0xff] %vm8004_vm14, %v8001_v7 }
 0xd4f   : > { %8096 = vst [vmem:[%s13989_s22 + $0x2e8] sm:$0xff] %v7999_v24 }
 0xd50 PF: > { %s21_s17 = sadd.s32 1, %s9880_s17  }
 0xd51   : > { %p18_p4 = scmp.ge.s32.totalorder %s21_s17, 4  }
 0xd53   :  { %20 = sbr.rel (!%p18_p4) target bundleno = 1 (0x1), region = 129 }

</bundles_post_ra>
